<compile_context>
chip_gen: v7x
topology: tpu7x:2x2x1
jax: 0.10.0
libtpu: 0.0.40
codegen_flags: <defaults>
</compile_context>

<pallas_src>
import numpy as np

import jax
import jax.numpy as jnp
from jax.experimental import pallas as pl
from jax.experimental.pallas import tpu as pltpu


# Fixed LeNet-5 geometry (28x28 input, implied by fc1 = Linear(120, 84)).
_R1 = 784        # conv1 output rows: 28*28 valid positions (i*28 + j)
_K1 = 25         # 5x5 taps
_P1_ROWS = 200   # pool1 slab rows: 14*14 = 196 valid + 4 zero pad rows
_M2 = 140        # conv2 output rows: 10 valid rows x row-stride 14
_K2 = 150        # conv2 im2col depth: 25 taps x 6 input channels
_P2_ROWS = 25    # pool2 output rows: 5*5 grid
_K3 = 400        # conv3 depth: 25 spatial positions x 16 channels


# ----------------------------------------------------------------------------
# Fused kernel: conv1 -> pool1 -> conv2 -> pool2 -> conv3 -> fc1 -> fc2
# ----------------------------------------------------------------------------
def _lenet5_kernel(
    im1_ref,    # (784, 25)  bf16  conv1 im2col patches for this image
    w1_ref,     # (25, 6)    bf16  conv1 taps   [ki*5+kj, cout]
    b1_ref,     # (1, 6)     f32
    pool1_ref,  # (200, 784) bf16  avg-pool selection matrix (0 / 0.25)
    w2_ref,     # (150, 16)  bf16  conv2 weights, row = (ki*5+kj)*6 + cin
    b2_ref,     # (1, 16)    f32
    pool2_ref,  # (25, 140)  bf16
    w3_ref,     # (400, 120) bf16  conv3 weights, row = (ki*5+kj)*16 + cin
    b3_ref,     # (1, 120)   f32
    w4_ref,     # (120, 84)  bf16
    b4_ref,     # (1, 84)    f32
    w5_ref,     # (84, 10)   bf16
    b5_ref,     # (1, 10)    f32
    o_ref,      # (1, 1, 10) f32
    a1_ref,     # scratch (784, 6)   bf16
    p1_ref,     # scratch (200, 6)   bf16
    im2_ref,    # scratch (140, 150) bf16
    p2_ref,     # scratch (25, 16)   bf16
    flat_ref,   # scratch (8, 400)   bf16
):
    f32, bf16 = jnp.float32, jnp.bfloat16

    # ---- conv1: 1->6, 5x5, pad 2 (patches built host-side) + tanh ----------
    a1 = jnp.dot(im1_ref[...], w1_ref[...], preferred_element_type=f32)
    a1_ref[...] = jnp.tanh(a1 + b1_ref[...]).astype(bf16)          # (784, 6)

    # ---- pool1: AvgPool2d(2,2) as one constant-matrix MXU matmul -----------
    p1 = jnp.dot(pool1_ref[...], a1_ref[...], preferred_element_type=f32)
    p1_ref[...] = p1.astype(bf16)                                  # cast once

    # ---- conv2: 6->16, 5x5 valid.  Build the (140,150) im2col with 25
    #      contiguous shifted copies of the pooled slab, then ONE K=150
    #      matmul (row r = oi*14 + oj; columns oj>=10 are wrap garbage that
    #      the pool2 matrix drops). ------------------------------------------
    for t in range(_K1):
        ki, kj = divmod(t, 5)
        off = ki * 14 + kj
        im2_ref[:, 6 * t:6 * t + 6] = p1_ref[off:off + _M2, :]
    a2 = jnp.dot(im2_ref[...], w2_ref[...], preferred_element_type=f32)
    a2 = jnp.tanh(a2 + b2_ref[...]).astype(bf16)                   # (140, 16)

    # ---- pool2 --------------------------------------------------------------
    p2 = jnp.dot(pool2_ref[...], a2, preferred_element_type=f32)
    p2_ref[...] = p2.astype(bf16)                                  # (25, 16)

    # ---- conv3: 16->120 on the 5x5 map == flatten + ONE K=400 matmul -------
    for t in range(_P2_ROWS):
        flat_ref[0:1, 16 * t:16 * t + 16] = p2_ref[t:t + 1, :]
    h3 = jnp.dot(flat_ref[0:1, :], w3_ref[...], preferred_element_type=f32)
    h3 = jnp.tanh(h3 + b3_ref[...])                                # (1, 120)

    # ---- fc1 (+tanh) and fc2 ------------------------------------------------
    h4 = jnp.tanh(jnp.dot(h3.astype(bf16), w4_ref[...],
                          preferred_element_type=f32) + b4_ref[...])   # (1, 84)
    logits = jnp.dot(h4.astype(bf16), w5_ref[...],
                     preferred_element_type=f32) + b5_ref[...]         # (1, 10)
    o_ref[...] = logits.reshape(1, 1, 10)


# ----------------------------------------------------------------------------
# Host-side (one-time) parameter packing
# ----------------------------------------------------------------------------
def _pool_matrix(h_out, w_out, in_row_stride, out_rows):
    """Constant matrix implementing AvgPool2d(2,2) on a row-major
    (spatial, channel) slab; also selects valid rows / pads with zero rows."""
    cols = 2 * h_out * in_row_stride
    m = np.zeros((out_rows, cols), np.float32)
    for i in range(h_out):
        for j in range(w_out):
            base = 2 * i * in_row_stride + 2 * j
            for d in (0, 1, in_row_stride, in_row_stride + 1):
                m[i * w_out + j, base + d] = 0.25
    return jnp.asarray(m, jnp.bfloat16)   # 0.25 / 0.0 are exact in bf16


def pack_params(params):
    f32, bf16 = jnp.float32, jnp.bfloat16
    w1 = jnp.asarray(params["w1"], f32)        # (6, 1, 5, 5)
    w2 = jnp.asarray(params["w2"], f32)        # (16, 6, 5, 5)
    w3 = jnp.asarray(params["w3"], f32)        # (120, 16, 5, 5)
    return dict(
        w1=w1[:, 0].transpose(1, 2, 0).reshape(_K1, 6).astype(bf16),      # (25, 6)
        b1=jnp.asarray(params["b1"], f32).reshape(1, 6),
        pool1=_pool_matrix(14, 14, 28, _P1_ROWS),                          # (200, 784)
        w2=w2.transpose(2, 3, 1, 0).reshape(_K2, 16).astype(bf16),         # (150, 16)
        b2=jnp.asarray(params["b2"], f32).reshape(1, 16),
        pool2=_pool_matrix(5, 5, 14, _P2_ROWS),                            # (25, 140)
        w3=w3.transpose(2, 3, 1, 0).reshape(_K3, 120).astype(bf16),        # (400, 120)
        b3=jnp.asarray(params["b3"], f32).reshape(1, 120),
        w4=jnp.asarray(params["w4"], f32).T.astype(bf16),                  # (120, 84)
        b4=jnp.asarray(params["b4"], f32).reshape(1, 84),
        w5=jnp.asarray(params["w5"], f32).T.astype(bf16),                  # (84, 10)
        b5=jnp.asarray(params["b5"], f32).reshape(1, 10),
    )


# ----------------------------------------------------------------------------
# Forward pass (matches __LeNet5__.forward semantics)
# ----------------------------------------------------------------------------
def lenet5_forward(packed, x):
    # x: (B, 1, 28, 28) NCHW float32
    B = x.shape[0]
    # Host side does only input formatting (pure layout, no FLOPs): zero-pad
    # (padding=2) and gather the 5x5 conv1 patches, column t = ki*5 + kj.
    xpad = jnp.pad(x[:, 0].astype(jnp.float32), ((0, 0), (2, 2), (2, 2)))  # (B,32,32)
    patches = jnp.stack(
        [xpad[:, ki:ki + 28, kj:kj + 28].reshape(B, _R1)
         for ki in range(5) for kj in range(5)], axis=-1)                  # (B,784,25)
    im1 = patches.astype(jnp.bfloat16).reshape(B * _R1, _K1)

    cm2 = lambda b: (0, 0)   # constant index map: weights DMA'd once

    out = pl.pallas_call(
        _lenet5_kernel,
        out_shape=jax.ShapeDtypeStruct((B, 1, 10), jnp.float32),
        grid=(B,),
        in_specs=[
            pl.BlockSpec((_R1, _K1), lambda b: (b, 0)),        # per-image patches
            pl.BlockSpec((_K1, 6), cm2),                        # w1
            pl.BlockSpec((1, 6), cm2),                          # b1
            pl.BlockSpec((_P1_ROWS, _R1), cm2),                 # pool1 matrix
            pl.BlockSpec((_K2, 16), cm2),                       # w2
            pl.BlockSpec((1, 16), cm2),                         # b2
            pl.BlockSpec((_P2_ROWS, _M2), cm2),                 # pool2 matrix
            pl.BlockSpec((_K3, 120), cm2),                      # w3
            pl.BlockSpec((1, 120), cm2),                        # b3
            pl.BlockSpec((120, 84), cm2),                       # w4
            pl.BlockSpec((1, 84), cm2),                         # b4
            pl.BlockSpec((84, 10), cm2),                        # w5
            pl.BlockSpec((1, 10), cm2),                         # b5
        ],
        out_specs=pl.BlockSpec((1, 1, 10), lambda b: (b, 0, 0)),
        scratch_shapes=[
            pltpu.VMEM((_R1, 6), jnp.bfloat16),       # a1
            pltpu.VMEM((_P1_ROWS, 6), jnp.bfloat16),  # p1
            pltpu.VMEM((_M2, _K2), jnp.bfloat16),     # conv2 im2col
            pltpu.VMEM((_P2_ROWS, 16), jnp.bfloat16), # p2
            pltpu.VMEM((8, _K3), jnp.bfloat16),       # conv3 flat input
        ],
        compiler_params=pltpu.CompilerParams(
            dimension_semantics=("parallel",),
            vmem_limit_bytes=32 * 1024 * 1024,
        ),
    )(im1, packed["w1"], packed["b1"], packed["pool1"], packed["w2"],
      packed["b2"], packed["pool2"], packed["w3"], packed["b3"],
      packed["w4"], packed["b4"], packed["w5"], packed["b5"])
    return out.reshape(B, 10)


# ----------------------------------------------------------------------------
# Deterministic PyTorch-style parameter init and a pure-JAX f32 reference
# ----------------------------------------------------------------------------
def init_params(key):
    def uni(k, shape, fan_in):
        bound = 1.0 / float(fan_in) ** 0.5
        return jax.random.uniform(k, shape, jnp.float32, -bound, bound)

    ks = jax.random.split(key, 10)
    return {
        "w1": uni(ks[0], (6, 1, 5, 5), 1 * 5 * 5),
        "b1": uni(ks[1], (6,), 1 * 5 * 5),
        "w2": uni(ks[2], (16, 6, 5, 5), 6 * 5 * 5),
        "b2": uni(ks[3], (16,), 6 * 5 * 5),
        "w3": uni(ks[4], (120, 16, 5, 5), 16 * 5 * 5),
        "b3": uni(ks[5], (120,), 16 * 5 * 5),
        "w4": uni(ks[6], (84, 120), 120),
        "b4": uni(ks[7], (84,), 120),
        "w5": uni(ks[8], (10, 84), 84),
        "b5": uni(ks[9], (10,), 84),
    }


def lenet5_reference(params, x):
    def conv(x, w, b, pad):
        y = jax.lax.conv_general_dilated(
            x, w, window_strides=(1, 1), padding=((pad, pad), (pad, pad)),
            dimension_numbers=("NCHW", "OIHW", "NCHW"))
        return y + b.reshape(1, -1, 1, 1)

    def avgpool(x):
        B, C, H, W = x.shape
        return x.reshape(B, C, H // 2, 2, W // 2, 2).mean(axis=(3, 5))

    x = jnp.tanh(conv(x, params["w1"], params["b1"], 2))
    x = avgpool(x)
    x = jnp.tanh(conv(x, params["w2"], params["b2"], 0))
    x = avgpool(x)
    x = jnp.tanh(conv(x, params["w3"], params["b3"], 0))
    x = x.reshape(x.shape[0], -1)
    x = jnp.tanh(x @ params["w4"].T + params["b4"])
    return x @ params["w5"].T + params["b5"]


if __name__ == "__main__":
    key = jax.random.PRNGKey(0)
    kx, kp = jax.random.split(key)

    B = 2
    x = jax.random.normal(kx, (B, 1, 28, 28), jnp.float32)  # LeNet-5 expects 28x28
    params = init_params(kp)
    packed = pack_params(params)

    fwd = jax.jit(lenet5_forward)
    out = jax.block_until_ready(fwd(packed, x))

    assert out.shape == (B, 10), out.shape
    assert out.dtype == jnp.float32
    assert bool(jnp.all(jnp.isfinite(out)))

    # Numerical check against a pure-JAX f32 reference (bf16 MXU operands give
    # ~1e-3-level drift on these logit magnitudes).
    ref = jax.jit(lenet5_reference)(params, x)
    max_err = float(jnp.max(jnp.abs(out - ref)))
    assert max_err < 5e-2, f"max abs error vs reference: {max_err}"

    print("KERNEL_OK")
</pallas_src>

<mosaic_0001>
module attributes {stable_mosaic.version = 11 : i64} {
  func.func @_lenet5_kernel(%arg0: i32, %arg1: memref<784x25xbf16, #tpu.memory_space<vmem>>, %arg2: memref<25x6xbf16, #tpu.memory_space<vmem>>, %arg3: memref<1x6xf32, #tpu.memory_space<vmem>>, %arg4: memref<200x784xbf16, #tpu.memory_space<vmem>>, %arg5: memref<150x16xbf16, #tpu.memory_space<vmem>>, %arg6: memref<1x16xf32, #tpu.memory_space<vmem>>, %arg7: memref<25x140xbf16, #tpu.memory_space<vmem>>, %arg8: memref<400x120xbf16, #tpu.memory_space<vmem>>, %arg9: memref<1x120xf32, #tpu.memory_space<vmem>>, %arg10: memref<120x84xbf16, #tpu.memory_space<vmem>>, %arg11: memref<1x84xf32, #tpu.memory_space<vmem>>, %arg12: memref<84x10xbf16, #tpu.memory_space<vmem>>, %arg13: memref<1x10xf32, #tpu.memory_space<vmem>>, %arg14: memref<1x1x10xf32, #tpu.memory_space<vmem>>, %arg15: memref<784x6xbf16, #tpu.memory_space<vmem>>, %arg16: memref<200x6xbf16, #tpu.memory_space<vmem>>, %arg17: memref<140x150xbf16, #tpu.memory_space<vmem>>, %arg18: memref<25x16xbf16, #tpu.memory_space<vmem>>, %arg19: memref<8x400xbf16, #tpu.memory_space<vmem>>) attributes {dimension_semantics = [#tpu.dimension_semantics<parallel>], iteration_bounds = array<i64: 2>, scalar_prefetch = 0 : i64, scratch_operands = 5 : i64, tpu.core_type = #tpu.core_type<tc>, window_params = [{transform_indices = @transform_0, window_bounds = array<i64: 784, 25>}, {pipeline_mode = #tpu.pipeline_mode<synchronous>, transform_indices = @transform_1, window_bounds = array<i64: 25, 6>}, {pipeline_mode = #tpu.pipeline_mode<synchronous>, transform_indices = @transform_2, window_bounds = array<i64: 1, 6>}, {pipeline_mode = #tpu.pipeline_mode<synchronous>, transform_indices = @transform_3, window_bounds = array<i64: 200, 784>}, {pipeline_mode = #tpu.pipeline_mode<synchronous>, transform_indices = @transform_4, window_bounds = array<i64: 150, 16>}, {pipeline_mode = #tpu.pipeline_mode<synchronous>, transform_indices = @transform_5, window_bounds = array<i64: 1, 16>}, {pipeline_mode = #tpu.pipeline_mode<synchronous>, transform_indices = @transform_6, window_bounds = array<i64: 25, 140>}, {pipeline_mode = #tpu.pipeline_mode<synchronous>, transform_indices = @transform_7, window_bounds = array<i64: 400, 120>}, {pipeline_mode = #tpu.pipeline_mode<synchronous>, transform_indices = @transform_8, window_bounds = array<i64: 1, 120>}, {pipeline_mode = #tpu.pipeline_mode<synchronous>, transform_indices = @transform_9, window_bounds = array<i64: 120, 84>}, {pipeline_mode = #tpu.pipeline_mode<synchronous>, transform_indices = @transform_10, window_bounds = array<i64: 1, 84>}, {pipeline_mode = #tpu.pipeline_mode<synchronous>, transform_indices = @transform_11, window_bounds = array<i64: 84, 10>}, {pipeline_mode = #tpu.pipeline_mode<synchronous>, transform_indices = @transform_12, window_bounds = array<i64: 1, 10>}, {transform_indices = @transform_13, window_bounds = array<i64: 1, 1, 10>}]} {
    %c0 = arith.constant 0 : index
    %c0_0 = arith.constant 0 : index
    %0 = vector.load %arg1[%c0, %c0_0] : memref<784x25xbf16, #tpu.memory_space<vmem>>, vector<784x25xbf16>
    %c0_1 = arith.constant 0 : index
    %c0_2 = arith.constant 0 : index
    %1 = vector.load %arg2[%c0_1, %c0_2] : memref<25x6xbf16, #tpu.memory_space<vmem>>, vector<25x6xbf16>
    %cst = arith.constant dense<0.000000e+00> : vector<784x6xf32>
    %2 = tpu.matmul %0, %1, %cst {dimension_numbers = #tpu.dot_dimension_numbers<[1], [0], [0], [1], [0, 0, 1, 1], [], []>} : vector<784x25xbf16>, vector<25x6xbf16>, vector<784x6xf32> -> vector<784x6xf32>
    %c0_3 = arith.constant 0 : index
    %c0_4 = arith.constant 0 : index
    %3 = vector.load %arg3[%c0_3, %c0_4] : memref<1x6xf32, #tpu.memory_space<vmem>>, vector<1x6xf32>
    %4 = vector.broadcast %3 : vector<1x6xf32> to vector<784x6xf32>
    %5 = arith.addf %2, %4 : vector<784x6xf32>
    %6 = math.tanh %5 : vector<784x6xf32>
    %7 = arith.truncf %6 : vector<784x6xf32> to vector<784x6xbf16>
    %c0_5 = arith.constant 0 : index
    %c0_6 = arith.constant 0 : index
    %8 = vector.load %arg15[%c0_5, %c0_6] : memref<784x6xbf16, #tpu.memory_space<vmem>>, vector<784x6xbf16>
    tpu.vector_store %arg15[%c0_5, %c0_6], %7 {strides = array<i32>} : memref<784x6xbf16, #tpu.memory_space<vmem>>, vector<784x6xbf16>,
    %c0_7 = arith.constant 0 : index
    %c0_8 = arith.constant 0 : index
    %9 = vector.load %arg4[%c0_7, %c0_8] : memref<200x784xbf16, #tpu.memory_space<vmem>>, vector<200x784xbf16>
    %c0_9 = arith.constant 0 : index
    %c0_10 = arith.constant 0 : index
    %10 = vector.load %arg15[%c0_9, %c0_10] : memref<784x6xbf16, #tpu.memory_space<vmem>>, vector<784x6xbf16>
    %cst_11 = arith.constant dense<0.000000e+00> : vector<200x6xf32>
    %11 = tpu.matmul %9, %10, %cst_11 {dimension_numbers = #tpu.dot_dimension_numbers<[1], [0], [0], [1], [0, 0, 1, 1], [], []>} : vector<200x784xbf16>, vector<784x6xbf16>, vector<200x6xf32> -> vector<200x6xf32>
    %12 = arith.truncf %11 : vector<200x6xf32> to vector<200x6xbf16>
    %c0_12 = arith.constant 0 : index
    %c0_13 = arith.constant 0 : index
    %13 = vector.load %arg16[%c0_12, %c0_13] : memref<200x6xbf16, #tpu.memory_space<vmem>>, vector<200x6xbf16>
    tpu.vector_store %arg16[%c0_12, %c0_13], %12 {strides = array<i32>} : memref<200x6xbf16, #tpu.memory_space<vmem>>, vector<200x6xbf16>,
    %c0_14 = arith.constant 0 : index
    %c0_15 = arith.constant 0 : index
    %14 = vector.load %arg16[%c0_14, %c0_15] : memref<200x6xbf16, #tpu.memory_space<vmem>>, vector<140x6xbf16>
    %c0_16 = arith.constant 0 : index
    %c0_17 = arith.constant 0 : index
    %15 = vector.load %arg17[%c0_16, %c0_17] : memref<140x150xbf16, #tpu.memory_space<vmem>>, vector<140x6xbf16>
    tpu.vector_store %arg17[%c0_16, %c0_17], %14 {strides = array<i32>} : memref<140x150xbf16, #tpu.memory_space<vmem>>, vector<140x6xbf16>,
    %c1 = arith.constant 1 : index
    %c0_18 = arith.constant 0 : index
    %16 = vector.load %arg16[%c1, %c0_18] : memref<200x6xbf16, #tpu.memory_space<vmem>>, vector<140x6xbf16>
    %c0_19 = arith.constant 0 : index
    %c6 = arith.constant 6 : index
    %17 = vector.load %arg17[%c0_19, %c6] : memref<140x150xbf16, #tpu.memory_space<vmem>>, vector<140x6xbf16>
    tpu.vector_store %arg17[%c0_19, %c6], %16 {strides = array<i32>} : memref<140x150xbf16, #tpu.memory_space<vmem>>, vector<140x6xbf16>,
    %c2 = arith.constant 2 : index
    %c0_20 = arith.constant 0 : index
    %18 = vector.load %arg16[%c2, %c0_20] : memref<200x6xbf16, #tpu.memory_space<vmem>>, vector<140x6xbf16>
    %c0_21 = arith.constant 0 : index
    %c12 = arith.constant 12 : index
    %19 = vector.load %arg17[%c0_21, %c12] : memref<140x150xbf16, #tpu.memory_space<vmem>>, vector<140x6xbf16>
    tpu.vector_store %arg17[%c0_21, %c12], %18 {strides = array<i32>} : memref<140x150xbf16, #tpu.memory_space<vmem>>, vector<140x6xbf16>,
    %c3 = arith.constant 3 : index
    %c0_22 = arith.constant 0 : index
    %20 = vector.load %arg16[%c3, %c0_22] : memref<200x6xbf16, #tpu.memory_space<vmem>>, vector<140x6xbf16>
    %c0_23 = arith.constant 0 : index
    %c18 = arith.constant 18 : index
    %21 = vector.load %arg17[%c0_23, %c18] : memref<140x150xbf16, #tpu.memory_space<vmem>>, vector<140x6xbf16>
    tpu.vector_store %arg17[%c0_23, %c18], %20 {strides = array<i32>} : memref<140x150xbf16, #tpu.memory_space<vmem>>, vector<140x6xbf16>,
    %c4 = arith.constant 4 : index
    %c0_24 = arith.constant 0 : index
    %22 = vector.load %arg16[%c4, %c0_24] : memref<200x6xbf16, #tpu.memory_space<vmem>>, vector<140x6xbf16>
    %c0_25 = arith.constant 0 : index
    %c24 = arith.constant 24 : index
    %23 = vector.load %arg17[%c0_25, %c24] : memref<140x150xbf16, #tpu.memory_space<vmem>>, vector<140x6xbf16>
    tpu.vector_store %arg17[%c0_25, %c24], %22 {strides = array<i32>} : memref<140x150xbf16, #tpu.memory_space<vmem>>, vector<140x6xbf16>,
    %c14 = arith.constant 14 : index
    %c0_26 = arith.constant 0 : index
    %24 = vector.load %arg16[%c14, %c0_26] : memref<200x6xbf16, #tpu.memory_space<vmem>>, vector<140x6xbf16>
    %c0_27 = arith.constant 0 : index
    %c30 = arith.constant 30 : index
    %25 = vector.load %arg17[%c0_27, %c30] : memref<140x150xbf16, #tpu.memory_space<vmem>>, vector<140x6xbf16>
    tpu.vector_store %arg17[%c0_27, %c30], %24 {strides = array<i32>} : memref<140x150xbf16, #tpu.memory_space<vmem>>, vector<140x6xbf16>,
    %c15 = arith.constant 15 : index
    %c0_28 = arith.constant 0 : index
    %26 = vector.load %arg16[%c15, %c0_28] : memref<200x6xbf16, #tpu.memory_space<vmem>>, vector<140x6xbf16>
    %c0_29 = arith.constant 0 : index
    %c36 = arith.constant 36 : index
    %27 = vector.load %arg17[%c0_29, %c36] : memref<140x150xbf16, #tpu.memory_space<vmem>>, vector<140x6xbf16>
    tpu.vector_store %arg17[%c0_29, %c36], %26 {strides = array<i32>} : memref<140x150xbf16, #tpu.memory_space<vmem>>, vector<140x6xbf16>,
    %c16 = arith.constant 16 : index
    %c0_30 = arith.constant 0 : index
    %28 = vector.load %arg16[%c16, %c0_30] : memref<200x6xbf16, #tpu.memory_space<vmem>>, vector<140x6xbf16>
    %c0_31 = arith.constant 0 : index
    %c42 = arith.constant 42 : index
    %29 = vector.load %arg17[%c0_31, %c42] : memref<140x150xbf16, #tpu.memory_space<vmem>>, vector<140x6xbf16>
    tpu.vector_store %arg17[%c0_31, %c42], %28 {strides = array<i32>} : memref<140x150xbf16, #tpu.memory_space<vmem>>, vector<140x6xbf16>,
    %c17 = arith.constant 17 : index
    %c0_32 = arith.constant 0 : index
    %30 = vector.load %arg16[%c17, %c0_32] : memref<200x6xbf16, #tpu.memory_space<vmem>>, vector<140x6xbf16>
    %c0_33 = arith.constant 0 : index
    %c48 = arith.constant 48 : index
    %31 = vector.load %arg17[%c0_33, %c48] : memref<140x150xbf16, #tpu.memory_space<vmem>>, vector<140x6xbf16>
    tpu.vector_store %arg17[%c0_33, %c48], %30 {strides = array<i32>} : memref<140x150xbf16, #tpu.memory_space<vmem>>, vector<140x6xbf16>,
    %c18_34 = arith.constant 18 : index
    %c0_35 = arith.constant 0 : index
    %32 = vector.load %arg16[%c18_34, %c0_35] : memref<200x6xbf16, #tpu.memory_space<vmem>>, vector<140x6xbf16>
    %c0_36 = arith.constant 0 : index
    %c54 = arith.constant 54 : index
    %33 = vector.load %arg17[%c0_36, %c54] : memref<140x150xbf16, #tpu.memory_space<vmem>>, vector<140x6xbf16>
    tpu.vector_store %arg17[%c0_36, %c54], %32 {strides = array<i32>} : memref<140x150xbf16, #tpu.memory_space<vmem>>, vector<140x6xbf16>,
    %c28 = arith.constant 28 : index
    %c0_37 = arith.constant 0 : index
    %34 = vector.load %arg16[%c28, %c0_37] : memref<200x6xbf16, #tpu.memory_space<vmem>>, vector<140x6xbf16>
    %c0_38 = arith.constant 0 : index
    %c60 = arith.constant 60 : index
    %35 = vector.load %arg17[%c0_38, %c60] : memref<140x150xbf16, #tpu.memory_space<vmem>>, vector<140x6xbf16>
    tpu.vector_store %arg17[%c0_38, %c60], %34 {strides = array<i32>} : memref<140x150xbf16, #tpu.memory_space<vmem>>, vector<140x6xbf16>,
    %c29 = arith.constant 29 : index
    %c0_39 = arith.constant 0 : index
    %36 = vector.load %arg16[%c29, %c0_39] : memref<200x6xbf16, #tpu.memory_space<vmem>>, vector<140x6xbf16>
    %c0_40 = arith.constant 0 : index
    %c66 = arith.constant 66 : index
    %37 = vector.load %arg17[%c0_40, %c66] : memref<140x150xbf16, #tpu.memory_space<vmem>>, vector<140x6xbf16>
    tpu.vector_store %arg17[%c0_40, %c66], %36 {strides = array<i32>} : memref<140x150xbf16, #tpu.memory_space<vmem>>, vector<140x6xbf16>,
    %c30_41 = arith.constant 30 : index
    %c0_42 = arith.constant 0 : index
    %38 = vector.load %arg16[%c30_41, %c0_42] : memref<200x6xbf16, #tpu.memory_space<vmem>>, vector<140x6xbf16>
    %c0_43 = arith.constant 0 : index
    %c72 = arith.constant 72 : index
    %39 = vector.load %arg17[%c0_43, %c72] : memref<140x150xbf16, #tpu.memory_space<vmem>>, vector<140x6xbf16>
    tpu.vector_store %arg17[%c0_43, %c72], %38 {strides = array<i32>} : memref<140x150xbf16, #tpu.memory_space<vmem>>, vector<140x6xbf16>,
    %c31 = arith.constant 31 : index
    %c0_44 = arith.constant 0 : index
    %40 = vector.load %arg16[%c31, %c0_44] : memref<200x6xbf16, #tpu.memory_space<vmem>>, vector<140x6xbf16>
    %c0_45 = arith.constant 0 : index
    %c78 = arith.constant 78 : index
    %41 = vector.load %arg17[%c0_45, %c78] : memref<140x150xbf16, #tpu.memory_space<vmem>>, vector<140x6xbf16>
    tpu.vector_store %arg17[%c0_45, %c78], %40 {strides = array<i32>} : memref<140x150xbf16, #tpu.memory_space<vmem>>, vector<140x6xbf16>,
    %c32 = arith.constant 32 : index
    %c0_46 = arith.constant 0 : index
    %42 = vector.load %arg16[%c32, %c0_46] : memref<200x6xbf16, #tpu.memory_space<vmem>>, vector<140x6xbf16>
    %c0_47 = arith.constant 0 : index
    %c84 = arith.constant 84 : index
    %43 = vector.load %arg17[%c0_47, %c84] : memref<140x150xbf16, #tpu.memory_space<vmem>>, vector<140x6xbf16>
    tpu.vector_store %arg17[%c0_47, %c84], %42 {strides = array<i32>} : memref<140x150xbf16, #tpu.memory_space<vmem>>, vector<140x6xbf16>,
    %c42_48 = arith.constant 42 : index
    %c0_49 = arith.constant 0 : index
    %44 = vector.load %arg16[%c42_48, %c0_49] : memref<200x6xbf16, #tpu.memory_space<vmem>>, vector<140x6xbf16>
    %c0_50 = arith.constant 0 : index
    %c90 = arith.constant 90 : index
    %45 = vector.load %arg17[%c0_50, %c90] : memref<140x150xbf16, #tpu.memory_space<vmem>>, vector<140x6xbf16>
    tpu.vector_store %arg17[%c0_50, %c90], %44 {strides = array<i32>} : memref<140x150xbf16, #tpu.memory_space<vmem>>, vector<140x6xbf16>,
    %c43 = arith.constant 43 : index
    %c0_51 = arith.constant 0 : index
    %46 = vector.load %arg16[%c43, %c0_51] : memref<200x6xbf16, #tpu.memory_space<vmem>>, vector<140x6xbf16>
    %c0_52 = arith.constant 0 : index
    %c96 = arith.constant 96 : index
    %47 = vector.load %arg17[%c0_52, %c96] : memref<140x150xbf16, #tpu.memory_space<vmem>>, vector<140x6xbf16>
    tpu.vector_store %arg17[%c0_52, %c96], %46 {strides = array<i32>} : memref<140x150xbf16, #tpu.memory_space<vmem>>, vector<140x6xbf16>,
    %c44 = arith.constant 44 : index
    %c0_53 = arith.constant 0 : index
    %48 = vector.load %arg16[%c44, %c0_53] : memref<200x6xbf16, #tpu.memory_space<vmem>>, vector<140x6xbf16>
    %c0_54 = arith.constant 0 : index
    %c102 = arith.constant 102 : index
    %49 = vector.load %arg17[%c0_54, %c102] : memref<140x150xbf16, #tpu.memory_space<vmem>>, vector<140x6xbf16>
    tpu.vector_store %arg17[%c0_54, %c102], %48 {strides = array<i32>} : memref<140x150xbf16, #tpu.memory_space<vmem>>, vector<140x6xbf16>,
    %c45 = arith.constant 45 : index
    %c0_55 = arith.constant 0 : index
    %50 = vector.load %arg16[%c45, %c0_55] : memref<200x6xbf16, #tpu.memory_space<vmem>>, vector<140x6xbf16>
    %c0_56 = arith.constant 0 : index
    %c108 = arith.constant 108 : index
    %51 = vector.load %arg17[%c0_56, %c108] : memref<140x150xbf16, #tpu.memory_space<vmem>>, vector<140x6xbf16>
    tpu.vector_store %arg17[%c0_56, %c108], %50 {strides = array<i32>} : memref<140x150xbf16, #tpu.memory_space<vmem>>, vector<140x6xbf16>,
    %c46 = arith.constant 46 : index
    %c0_57 = arith.constant 0 : index
    %52 = vector.load %arg16[%c46, %c0_57] : memref<200x6xbf16, #tpu.memory_space<vmem>>, vector<140x6xbf16>
    %c0_58 = arith.constant 0 : index
    %c114 = arith.constant 114 : index
    %53 = vector.load %arg17[%c0_58, %c114] : memref<140x150xbf16, #tpu.memory_space<vmem>>, vector<140x6xbf16>
    tpu.vector_store %arg17[%c0_58, %c114], %52 {strides = array<i32>} : memref<140x150xbf16, #tpu.memory_space<vmem>>, vector<140x6xbf16>,
    %c56 = arith.constant 56 : index
    %c0_59 = arith.constant 0 : index
    %54 = vector.load %arg16[%c56, %c0_59] : memref<200x6xbf16, #tpu.memory_space<vmem>>, vector<140x6xbf16>
    %c0_60 = arith.constant 0 : index
    %c120 = arith.constant 120 : index
    %55 = vector.load %arg17[%c0_60, %c120] : memref<140x150xbf16, #tpu.memory_space<vmem>>, vector<140x6xbf16>
    tpu.vector_store %arg17[%c0_60, %c120], %54 {strides = array<i32>} : memref<140x150xbf16, #tpu.memory_space<vmem>>, vector<140x6xbf16>,
    %c57 = arith.constant 57 : index
    %c0_61 = arith.constant 0 : index
    %56 = vector.load %arg16[%c57, %c0_61] : memref<200x6xbf16, #tpu.memory_space<vmem>>, vector<140x6xbf16>
    %c0_62 = arith.constant 0 : index
    %c126 = arith.constant 126 : index
    %57 = vector.load %arg17[%c0_62, %c126] : memref<140x150xbf16, #tpu.memory_space<vmem>>, vector<140x6xbf16>
    tpu.vector_store %arg17[%c0_62, %c126], %56 {strides = array<i32>} : memref<140x150xbf16, #tpu.memory_space<vmem>>, vector<140x6xbf16>,
    %c58 = arith.constant 58 : index
    %c0_63 = arith.constant 0 : index
    %58 = vector.load %arg16[%c58, %c0_63] : memref<200x6xbf16, #tpu.memory_space<vmem>>, vector<140x6xbf16>
    %c0_64 = arith.constant 0 : index
    %c132 = arith.constant 132 : index
    %59 = vector.load %arg17[%c0_64, %c132] : memref<140x150xbf16, #tpu.memory_space<vmem>>, vector<140x6xbf16>
    tpu.vector_store %arg17[%c0_64, %c132], %58 {strides = array<i32>} : memref<140x150xbf16, #tpu.memory_space<vmem>>, vector<140x6xbf16>,
    %c59 = arith.constant 59 : index
    %c0_65 = arith.constant 0 : index
    %60 = vector.load %arg16[%c59, %c0_65] : memref<200x6xbf16, #tpu.memory_space<vmem>>, vector<140x6xbf16>
    %c0_66 = arith.constant 0 : index
    %c138 = arith.constant 138 : index
    %61 = vector.load %arg17[%c0_66, %c138] : memref<140x150xbf16, #tpu.memory_space<vmem>>, vector<140x6xbf16>
    tpu.vector_store %arg17[%c0_66, %c138], %60 {strides = array<i32>} : memref<140x150xbf16, #tpu.memory_space<vmem>>, vector<140x6xbf16>,
    %c60_67 = arith.constant 60 : index
    %c0_68 = arith.constant 0 : index
    %62 = vector.load %arg16[%c60_67, %c0_68] : memref<200x6xbf16, #tpu.memory_space<vmem>>, vector<140x6xbf16>
    %c0_69 = arith.constant 0 : index
    %c144 = arith.constant 144 : index
    %63 = vector.load %arg17[%c0_69, %c144] : memref<140x150xbf16, #tpu.memory_space<vmem>>, vector<140x6xbf16>
    tpu.vector_store %arg17[%c0_69, %c144], %62 {strides = array<i32>} : memref<140x150xbf16, #tpu.memory_space<vmem>>, vector<140x6xbf16>,
    %c0_70 = arith.constant 0 : index
    %c0_71 = arith.constant 0 : index
    %64 = vector.load %arg17[%c0_70, %c0_71] : memref<140x150xbf16, #tpu.memory_space<vmem>>, vector<140x150xbf16>
    %c0_72 = arith.constant 0 : index
    %c0_73 = arith.constant 0 : index
    %65 = vector.load %arg5[%c0_72, %c0_73] : memref<150x16xbf16, #tpu.memory_space<vmem>>, vector<150x16xbf16>
    %cst_74 = arith.constant dense<0.000000e+00> : vector<140x16xf32>
    %66 = tpu.matmul %64, %65, %cst_74 {dimension_numbers = #tpu.dot_dimension_numbers<[1], [0], [0], [1], [0, 0, 1, 1], [], []>} : vector<140x150xbf16>, vector<150x16xbf16>, vector<140x16xf32> -> vector<140x16xf32>
    %c0_75 = arith.constant 0 : index
    %c0_76 = arith.constant 0 : index
    %67 = vector.load %arg6[%c0_75, %c0_76] : memref<1x16xf32, #tpu.memory_space<vmem>>, vector<1x16xf32>
    %68 = vector.broadcast %67 : vector<1x16xf32> to vector<140x16xf32>
    %69 = arith.addf %66, %68 : vector<140x16xf32>
    %70 = math.tanh %69 : vector<140x16xf32>
    %71 = arith.truncf %70 : vector<140x16xf32> to vector<140x16xbf16>
    %c0_77 = arith.constant 0 : index
    %c0_78 = arith.constant 0 : index
    %72 = vector.load %arg7[%c0_77, %c0_78] : memref<25x140xbf16, #tpu.memory_space<vmem>>, vector<25x140xbf16>
    %cst_79 = arith.constant dense<0.000000e+00> : vector<25x16xf32>
    %73 = tpu.matmul %72, %71, %cst_79 {dimension_numbers = #tpu.dot_dimension_numbers<[1], [0], [0], [1], [0, 0, 1, 1], [], []>} : vector<25x140xbf16>, vector<140x16xbf16>, vector<25x16xf32> -> vector<25x16xf32>
    %74 = arith.truncf %73 : vector<25x16xf32> to vector<25x16xbf16>
    %c0_80 = arith.constant 0 : index
    %c0_81 = arith.constant 0 : index
    %75 = vector.load %arg18[%c0_80, %c0_81] : memref<25x16xbf16, #tpu.memory_space<vmem>>, vector<25x16xbf16>
    tpu.vector_store %arg18[%c0_80, %c0_81], %74 {strides = array<i32>} : memref<25x16xbf16, #tpu.memory_space<vmem>>, vector<25x16xbf16>,
    %c0_82 = arith.constant 0 : index
    %c0_83 = arith.constant 0 : index
    %76 = vector.load %arg18[%c0_82, %c0_83] : memref<25x16xbf16, #tpu.memory_space<vmem>>, vector<1x16xbf16>
    %c0_84 = arith.constant 0 : index
    %c0_85 = arith.constant 0 : index
    %77 = vector.load %arg19[%c0_84, %c0_85] : memref<8x400xbf16, #tpu.memory_space<vmem>>, vector<1x16xbf16>
    tpu.vector_store %arg19[%c0_84, %c0_85], %76 {strides = array<i32>} : memref<8x400xbf16, #tpu.memory_space<vmem>>, vector<1x16xbf16>,
    %c1_86 = arith.constant 1 : index
    %c0_87 = arith.constant 0 : index
    %78 = vector.load %arg18[%c1_86, %c0_87] : memref<25x16xbf16, #tpu.memory_space<vmem>>, vector<1x16xbf16>
    %c0_88 = arith.constant 0 : index
    %c16_89 = arith.constant 16 : index
    %79 = vector.load %arg19[%c0_88, %c16_89] : memref<8x400xbf16, #tpu.memory_space<vmem>>, vector<1x16xbf16>
    tpu.vector_store %arg19[%c0_88, %c16_89], %78 {strides = array<i32>} : memref<8x400xbf16, #tpu.memory_space<vmem>>, vector<1x16xbf16>,
    %c2_90 = arith.constant 2 : index
    %c0_91 = arith.constant 0 : index
    %80 = vector.load %arg18[%c2_90, %c0_91] : memref<25x16xbf16, #tpu.memory_space<vmem>>, vector<1x16xbf16>
    %c0_92 = arith.constant 0 : index
    %c32_93 = arith.constant 32 : index
    %81 = vector.load %arg19[%c0_92, %c32_93] : memref<8x400xbf16, #tpu.memory_space<vmem>>, vector<1x16xbf16>
    tpu.vector_store %arg19[%c0_92, %c32_93], %80 {strides = array<i32>} : memref<8x400xbf16, #tpu.memory_space<vmem>>, vector<1x16xbf16>,
    %c3_94 = arith.constant 3 : index
    %c0_95 = arith.constant 0 : index
    %82 = vector.load %arg18[%c3_94, %c0_95] : memref<25x16xbf16, #tpu.memory_space<vmem>>, vector<1x16xbf16>
    %c0_96 = arith.constant 0 : index
    %c48_97 = arith.constant 48 : index
    %83 = vector.load %arg19[%c0_96, %c48_97] : memref<8x400xbf16, #tpu.memory_space<vmem>>, vector<1x16xbf16>
    tpu.vector_store %arg19[%c0_96, %c48_97], %82 {strides = array<i32>} : memref<8x400xbf16, #tpu.memory_space<vmem>>, vector<1x16xbf16>,
    %c4_98 = arith.constant 4 : index
    %c0_99 = arith.constant 0 : index
    %84 = vector.load %arg18[%c4_98, %c0_99] : memref<25x16xbf16, #tpu.memory_space<vmem>>, vector<1x16xbf16>
    %c0_100 = arith.constant 0 : index
    %c64 = arith.constant 64 : index
    %85 = vector.load %arg19[%c0_100, %c64] : memref<8x400xbf16, #tpu.memory_space<vmem>>, vector<1x16xbf16>
    tpu.vector_store %arg19[%c0_100, %c64], %84 {strides = array<i32>} : memref<8x400xbf16, #tpu.memory_space<vmem>>, vector<1x16xbf16>,
    %c5 = arith.constant 5 : index
    %c0_101 = arith.constant 0 : index
    %86 = vector.load %arg18[%c5, %c0_101] : memref<25x16xbf16, #tpu.memory_space<vmem>>, vector<1x16xbf16>
    %c0_102 = arith.constant 0 : index
    %c80 = arith.constant 80 : index
    %87 = vector.load %arg19[%c0_102, %c80] : memref<8x400xbf16, #tpu.memory_space<vmem>>, vector<1x16xbf16>
    tpu.vector_store %arg19[%c0_102, %c80], %86 {strides = array<i32>} : memref<8x400xbf16, #tpu.memory_space<vmem>>, vector<1x16xbf16>,
    %c6_103 = arith.constant 6 : index
    %c0_104 = arith.constant 0 : index
    %88 = vector.load %arg18[%c6_103, %c0_104] : memref<25x16xbf16, #tpu.memory_space<vmem>>, vector<1x16xbf16>
    %c0_105 = arith.constant 0 : index
    %c96_106 = arith.constant 96 : index
    %89 = vector.load %arg19[%c0_105, %c96_106] : memref<8x400xbf16, #tpu.memory_space<vmem>>, vector<1x16xbf16>
    tpu.vector_store %arg19[%c0_105, %c96_106], %88 {strides = array<i32>} : memref<8x400xbf16, #tpu.memory_space<vmem>>, vector<1x16xbf16>,
    %c7 = arith.constant 7 : index
    %c0_107 = arith.constant 0 : index
    %90 = vector.load %arg18[%c7, %c0_107] : memref<25x16xbf16, #tpu.memory_space<vmem>>, vector<1x16xbf16>
    %c0_108 = arith.constant 0 : index
    %c112 = arith.constant 112 : index
    %91 = vector.load %arg19[%c0_108, %c112] : memref<8x400xbf16, #tpu.memory_space<vmem>>, vector<1x16xbf16>
    tpu.vector_store %arg19[%c0_108, %c112], %90 {strides = array<i32>} : memref<8x400xbf16, #tpu.memory_space<vmem>>, vector<1x16xbf16>,
    %c8 = arith.constant 8 : index
    %c0_109 = arith.constant 0 : index
    %92 = vector.load %arg18[%c8, %c0_109] : memref<25x16xbf16, #tpu.memory_space<vmem>>, vector<1x16xbf16>
    %c0_110 = arith.constant 0 : index
    %c128 = arith.constant 128 : index
    %93 = vector.load %arg19[%c0_110, %c128] : memref<8x400xbf16, #tpu.memory_space<vmem>>, vector<1x16xbf16>
    tpu.vector_store %arg19[%c0_110, %c128], %92 {strides = array<i32>} : memref<8x400xbf16, #tpu.memory_space<vmem>>, vector<1x16xbf16>,
    %c9 = arith.constant 9 : index
    %c0_111 = arith.constant 0 : index
    %94 = vector.load %arg18[%c9, %c0_111] : memref<25x16xbf16, #tpu.memory_space<vmem>>, vector<1x16xbf16>
    %c0_112 = arith.constant 0 : index
    %c144_113 = arith.constant 144 : index
    %95 = vector.load %arg19[%c0_112, %c144_113] : memref<8x400xbf16, #tpu.memory_space<vmem>>, vector<1x16xbf16>
    tpu.vector_store %arg19[%c0_112, %c144_113], %94 {strides = array<i32>} : memref<8x400xbf16, #tpu.memory_space<vmem>>, vector<1x16xbf16>,
    %c10 = arith.constant 10 : index
    %c0_114 = arith.constant 0 : index
    %96 = vector.load %arg18[%c10, %c0_114] : memref<25x16xbf16, #tpu.memory_space<vmem>>, vector<1x16xbf16>
    %c0_115 = arith.constant 0 : index
    %c160 = arith.constant 160 : index
    %97 = vector.load %arg19[%c0_115, %c160] : memref<8x400xbf16, #tpu.memory_space<vmem>>, vector<1x16xbf16>
    tpu.vector_store %arg19[%c0_115, %c160], %96 {strides = array<i32>} : memref<8x400xbf16, #tpu.memory_space<vmem>>, vector<1x16xbf16>,
    %c11 = arith.constant 11 : index
    %c0_116 = arith.constant 0 : index
    %98 = vector.load %arg18[%c11, %c0_116] : memref<25x16xbf16, #tpu.memory_space<vmem>>, vector<1x16xbf16>
    %c0_117 = arith.constant 0 : index
    %c176 = arith.constant 176 : index
    %99 = vector.load %arg19[%c0_117, %c176] : memref<8x400xbf16, #tpu.memory_space<vmem>>, vector<1x16xbf16>
    tpu.vector_store %arg19[%c0_117, %c176], %98 {strides = array<i32>} : memref<8x400xbf16, #tpu.memory_space<vmem>>, vector<1x16xbf16>,
    %c12_118 = arith.constant 12 : index
    %c0_119 = arith.constant 0 : index
    %100 = vector.load %arg18[%c12_118, %c0_119] : memref<25x16xbf16, #tpu.memory_space<vmem>>, vector<1x16xbf16>
    %c0_120 = arith.constant 0 : index
    %c192 = arith.constant 192 : index
    %101 = vector.load %arg19[%c0_120, %c192] : memref<8x400xbf16, #tpu.memory_space<vmem>>, vector<1x16xbf16>
    tpu.vector_store %arg19[%c0_120, %c192], %100 {strides = array<i32>} : memref<8x400xbf16, #tpu.memory_space<vmem>>, vector<1x16xbf16>,
    %c13 = arith.constant 13 : index
    %c0_121 = arith.constant 0 : index
    %102 = vector.load %arg18[%c13, %c0_121] : memref<25x16xbf16, #tpu.memory_space<vmem>>, vector<1x16xbf16>
    %c0_122 = arith.constant 0 : index
    %c208 = arith.constant 208 : index
    %103 = vector.load %arg19[%c0_122, %c208] : memref<8x400xbf16, #tpu.memory_space<vmem>>, vector<1x16xbf16>
    tpu.vector_store %arg19[%c0_122, %c208], %102 {strides = array<i32>} : memref<8x400xbf16, #tpu.memory_space<vmem>>, vector<1x16xbf16>,
    %c14_123 = arith.constant 14 : index
    %c0_124 = arith.constant 0 : index
    %104 = vector.load %arg18[%c14_123, %c0_124] : memref<25x16xbf16, #tpu.memory_space<vmem>>, vector<1x16xbf16>
    %c0_125 = arith.constant 0 : index
    %c224 = arith.constant 224 : index
    %105 = vector.load %arg19[%c0_125, %c224] : memref<8x400xbf16, #tpu.memory_space<vmem>>, vector<1x16xbf16>
    tpu.vector_store %arg19[%c0_125, %c224], %104 {strides = array<i32>} : memref<8x400xbf16, #tpu.memory_space<vmem>>, vector<1x16xbf16>,
    %c15_126 = arith.constant 15 : index
    %c0_127 = arith.constant 0 : index
    %106 = vector.load %arg18[%c15_126, %c0_127] : memref<25x16xbf16, #tpu.memory_space<vmem>>, vector<1x16xbf16>
    %c0_128 = arith.constant 0 : index
    %c240 = arith.constant 240 : index
    %107 = vector.load %arg19[%c0_128, %c240] : memref<8x400xbf16, #tpu.memory_space<vmem>>, vector<1x16xbf16>
    tpu.vector_store %arg19[%c0_128, %c240], %106 {strides = array<i32>} : memref<8x400xbf16, #tpu.memory_space<vmem>>, vector<1x16xbf16>,
    %c16_129 = arith.constant 16 : index
    %c0_130 = arith.constant 0 : index
    %108 = vector.load %arg18[%c16_129, %c0_130] : memref<25x16xbf16, #tpu.memory_space<vmem>>, vector<1x16xbf16>
    %c0_131 = arith.constant 0 : index
    %c256 = arith.constant 256 : index
    %109 = vector.load %arg19[%c0_131, %c256] : memref<8x400xbf16, #tpu.memory_space<vmem>>, vector<1x16xbf16>
    tpu.vector_store %arg19[%c0_131, %c256], %108 {strides = array<i32>} : memref<8x400xbf16, #tpu.memory_space<vmem>>, vector<1x16xbf16>,
    %c17_132 = arith.constant 17 : index
    %c0_133 = arith.constant 0 : index
    %110 = vector.load %arg18[%c17_132, %c0_133] : memref<25x16xbf16, #tpu.memory_space<vmem>>, vector<1x16xbf16>
    %c0_134 = arith.constant 0 : index
    %c272 = arith.constant 272 : index
    %111 = vector.load %arg19[%c0_134, %c272] : memref<8x400xbf16, #tpu.memory_space<vmem>>, vector<1x16xbf16>
    tpu.vector_store %arg19[%c0_134, %c272], %110 {strides = array<i32>} : memref<8x400xbf16, #tpu.memory_space<vmem>>, vector<1x16xbf16>,
    %c18_135 = arith.constant 18 : index
    %c0_136 = arith.constant 0 : index
    %112 = vector.load %arg18[%c18_135, %c0_136] : memref<25x16xbf16, #tpu.memory_space<vmem>>, vector<1x16xbf16>
    %c0_137 = arith.constant 0 : index
    %c288 = arith.constant 288 : index
    %113 = vector.load %arg19[%c0_137, %c288] : memref<8x400xbf16, #tpu.memory_space<vmem>>, vector<1x16xbf16>
    tpu.vector_store %arg19[%c0_137, %c288], %112 {strides = array<i32>} : memref<8x400xbf16, #tpu.memory_space<vmem>>, vector<1x16xbf16>,
    %c19 = arith.constant 19 : index
    %c0_138 = arith.constant 0 : index
    %114 = vector.load %arg18[%c19, %c0_138] : memref<25x16xbf16, #tpu.memory_space<vmem>>, vector<1x16xbf16>
    %c0_139 = arith.constant 0 : index
    %c304 = arith.constant 304 : index
    %115 = vector.load %arg19[%c0_139, %c304] : memref<8x400xbf16, #tpu.memory_space<vmem>>, vector<1x16xbf16>
    tpu.vector_store %arg19[%c0_139, %c304], %114 {strides = array<i32>} : memref<8x400xbf16, #tpu.memory_space<vmem>>, vector<1x16xbf16>,
    %c20 = arith.constant 20 : index
    %c0_140 = arith.constant 0 : index
    %116 = vector.load %arg18[%c20, %c0_140] : memref<25x16xbf16, #tpu.memory_space<vmem>>, vector<1x16xbf16>
    %c0_141 = arith.constant 0 : index
    %c320 = arith.constant 320 : index
    %117 = vector.load %arg19[%c0_141, %c320] : memref<8x400xbf16, #tpu.memory_space<vmem>>, vector<1x16xbf16>
    tpu.vector_store %arg19[%c0_141, %c320], %116 {strides = array<i32>} : memref<8x400xbf16, #tpu.memory_space<vmem>>, vector<1x16xbf16>,
    %c21 = arith.constant 21 : index
    %c0_142 = arith.constant 0 : index
    %118 = vector.load %arg18[%c21, %c0_142] : memref<25x16xbf16, #tpu.memory_space<vmem>>, vector<1x16xbf16>
    %c0_143 = arith.constant 0 : index
    %c336 = arith.constant 336 : index
    %119 = vector.load %arg19[%c0_143, %c336] : memref<8x400xbf16, #tpu.memory_space<vmem>>, vector<1x16xbf16>
    tpu.vector_store %arg19[%c0_143, %c336], %118 {strides = array<i32>} : memref<8x400xbf16, #tpu.memory_space<vmem>>, vector<1x16xbf16>,
    %c22 = arith.constant 22 : index
    %c0_144 = arith.constant 0 : index
    %120 = vector.load %arg18[%c22, %c0_144] : memref<25x16xbf16, #tpu.memory_space<vmem>>, vector<1x16xbf16>
    %c0_145 = arith.constant 0 : index
    %c352 = arith.constant 352 : index
    %121 = vector.load %arg19[%c0_145, %c352] : memref<8x400xbf16, #tpu.memory_space<vmem>>, vector<1x16xbf16>
    tpu.vector_store %arg19[%c0_145, %c352], %120 {strides = array<i32>} : memref<8x400xbf16, #tpu.memory_space<vmem>>, vector<1x16xbf16>,
    %c23 = arith.constant 23 : index
    %c0_146 = arith.constant 0 : index
    %122 = vector.load %arg18[%c23, %c0_146] : memref<25x16xbf16, #tpu.memory_space<vmem>>, vector<1x16xbf16>
    %c0_147 = arith.constant 0 : index
    %c368 = arith.constant 368 : index
    %123 = vector.load %arg19[%c0_147, %c368] : memref<8x400xbf16, #tpu.memory_space<vmem>>, vector<1x16xbf16>
    tpu.vector_store %arg19[%c0_147, %c368], %122 {strides = array<i32>} : memref<8x400xbf16, #tpu.memory_space<vmem>>, vector<1x16xbf16>,
    %c24_148 = arith.constant 24 : index
    %c0_149 = arith.constant 0 : index
    %124 = vector.load %arg18[%c24_148, %c0_149] : memref<25x16xbf16, #tpu.memory_space<vmem>>, vector<1x16xbf16>
    %c0_150 = arith.constant 0 : index
    %c384 = arith.constant 384 : index
    %125 = vector.load %arg19[%c0_150, %c384] : memref<8x400xbf16, #tpu.memory_space<vmem>>, vector<1x16xbf16>
    tpu.vector_store %arg19[%c0_150, %c384], %124 {strides = array<i32>} : memref<8x400xbf16, #tpu.memory_space<vmem>>, vector<1x16xbf16>,
    %c0_151 = arith.constant 0 : index
    %c0_152 = arith.constant 0 : index
    %126 = vector.load %arg19[%c0_151, %c0_152] : memref<8x400xbf16, #tpu.memory_space<vmem>>, vector<1x400xbf16>
    %c0_153 = arith.constant 0 : index
    %c0_154 = arith.constant 0 : index
    %127 = vector.load %arg8[%c0_153, %c0_154] : memref<400x120xbf16, #tpu.memory_space<vmem>>, vector<400x120xbf16>
    %cst_155 = arith.constant dense<0.000000e+00> : vector<1x120xf32>
    %128 = tpu.matmul %126, %127, %cst_155 {dimension_numbers = #tpu.dot_dimension_numbers<[1], [0], [0], [1], [0, 0, 1, 1], [], []>} : vector<1x400xbf16>, vector<400x120xbf16>, vector<1x120xf32> -> vector<1x120xf32>
    %c0_156 = arith.constant 0 : index
    %c0_157 = arith.constant 0 : index
    %129 = vector.load %arg9[%c0_156, %c0_157] : memref<1x120xf32, #tpu.memory_space<vmem>>, vector<1x120xf32>
    %130 = arith.addf %128, %129 : vector<1x120xf32>
    %131 = math.tanh %130 : vector<1x120xf32>
    %132 = arith.truncf %131 : vector<1x120xf32> to vector<1x120xbf16>
    %c0_158 = arith.constant 0 : index
    %c0_159 = arith.constant 0 : index
    %133 = vector.load %arg10[%c0_158, %c0_159] : memref<120x84xbf16, #tpu.memory_space<vmem>>, vector<120x84xbf16>
    %cst_160 = arith.constant dense<0.000000e+00> : vector<1x84xf32>
    %134 = tpu.matmul %132, %133, %cst_160 {dimension_numbers = #tpu.dot_dimension_numbers<[1], [0], [0], [1], [0, 0, 1, 1], [], []>} : vector<1x120xbf16>, vector<120x84xbf16>, vector<1x84xf32> -> vector<1x84xf32>
    %c0_161 = arith.constant 0 : index
    %c0_162 = arith.constant 0 : index
    %135 = vector.load %arg11[%c0_161, %c0_162] : memref<1x84xf32, #tpu.memory_space<vmem>>, vector<1x84xf32>
    %136 = arith.addf %134, %135 : vector<1x84xf32>
    %137 = math.tanh %136 : vector<1x84xf32>
    %138 = arith.truncf %137 : vector<1x84xf32> to vector<1x84xbf16>
    %c0_163 = arith.constant 0 : index
    %c0_164 = arith.constant 0 : index
    %139 = vector.load %arg12[%c0_163, %c0_164] : memref<84x10xbf16, #tpu.memory_space<vmem>>, vector<84x10xbf16>
    %cst_165 = arith.constant dense<0.000000e+00> : vector<1x10xf32>
    %140 = tpu.matmul %138, %139, %cst_165 {dimension_numbers = #tpu.dot_dimension_numbers<[1], [0], [0], [1], [0, 0, 1, 1], [], []>} : vector<1x84xbf16>, vector<84x10xbf16>, vector<1x10xf32> -> vector<1x10xf32>
    %c0_166 = arith.constant 0 : index
    %c0_167 = arith.constant 0 : index
    %141 = vector.load %arg13[%c0_166, %c0_167] : memref<1x10xf32, #tpu.memory_space<vmem>>, vector<1x10xf32>
    %142 = arith.addf %140, %141 : vector<1x10xf32>
    %143 = vector.shape_cast %142 : vector<1x10xf32> to vector<1x1x10xf32>
    %c0_168 = arith.constant 0 : index
    %c0_169 = arith.constant 0 : index
    %c0_170 = arith.constant 0 : index
    %144 = vector.load %arg14[%c0_168, %c0_169, %c0_170] : memref<1x1x10xf32, #tpu.memory_space<vmem>>, vector<1x1x10xf32>
    tpu.vector_store %arg14[%c0_168, %c0_169, %c0_170], %143 {strides = array<i32>} : memref<1x1x10xf32, #tpu.memory_space<vmem>>, vector<1x1x10xf32>,
    return
  }
  func.func @transform_0(%arg0: i32) -> (i32, i32) {
    %c0_i32 = arith.constant 0 : i32
    %c0_i32_0 = arith.constant 0 : i32
    return %arg0, %c0_i32 : i32, i32
  }
  func.func @transform_1(%arg0: i32) -> (i32, i32) {
    %c0_i32 = arith.constant 0 : i32
    %c0_i32_0 = arith.constant 0 : i32
    %c0_i32_1 = arith.constant 0 : i32
    return %c0_i32, %c0_i32_0 : i32, i32
  }
  func.func @transform_2(%arg0: i32) -> (i32, i32) {
    %c0_i32 = arith.constant 0 : i32
    %c0_i32_0 = arith.constant 0 : i32
    %c0_i32_1 = arith.constant 0 : i32
    return %c0_i32, %c0_i32_0 : i32, i32
  }
  func.func @transform_3(%arg0: i32) -> (i32, i32) {
    %c0_i32 = arith.constant 0 : i32
    %c0_i32_0 = arith.constant 0 : i32
    %c0_i32_1 = arith.constant 0 : i32
    return %c0_i32, %c0_i32_0 : i32, i32
  }
  func.func @transform_4(%arg0: i32) -> (i32, i32) {
    %c0_i32 = arith.constant 0 : i32
    %c0_i32_0 = arith.constant 0 : i32
    %c0_i32_1 = arith.constant 0 : i32
    return %c0_i32, %c0_i32_0 : i32, i32
  }
  func.func @transform_5(%arg0: i32) -> (i32, i32) {
    %c0_i32 = arith.constant 0 : i32
    %c0_i32_0 = arith.constant 0 : i32
    %c0_i32_1 = arith.constant 0 : i32
    return %c0_i32, %c0_i32_0 : i32, i32
  }
  func.func @transform_6(%arg0: i32) -> (i32, i32) {
    %c0_i32 = arith.constant 0 : i32
    %c0_i32_0 = arith.constant 0 : i32
    %c0_i32_1 = arith.constant 0 : i32
    return %c0_i32, %c0_i32_0 : i32, i32
  }
  func.func @transform_7(%arg0: i32) -> (i32, i32) {
    %c0_i32 = arith.constant 0 : i32
    %c0_i32_0 = arith.constant 0 : i32
    %c0_i32_1 = arith.constant 0 : i32
    return %c0_i32, %c0_i32_0 : i32, i32
  }
  func.func @transform_8(%arg0: i32) -> (i32, i32) {
    %c0_i32 = arith.constant 0 : i32
    %c0_i32_0 = arith.constant 0 : i32
    %c0_i32_1 = arith.constant 0 : i32
    return %c0_i32, %c0_i32_0 : i32, i32
  }
  func.func @transform_9(%arg0: i32) -> (i32, i32) {
    %c0_i32 = arith.constant 0 : i32
    %c0_i32_0 = arith.constant 0 : i32
    %c0_i32_1 = arith.constant 0 : i32
    return %c0_i32, %c0_i32_0 : i32, i32
  }
  func.func @transform_10(%arg0: i32) -> (i32, i32) {
    %c0_i32 = arith.constant 0 : i32
    %c0_i32_0 = arith.constant 0 : i32
    %c0_i32_1 = arith.constant 0 : i32
    return %c0_i32, %c0_i32_0 : i32, i32
  }
  func.func @transform_11(%arg0: i32) -> (i32, i32) {
    %c0_i32 = arith.constant 0 : i32
    %c0_i32_0 = arith.constant 0 : i32
    %c0_i32_1 = arith.constant 0 : i32
    return %c0_i32, %c0_i32_0 : i32, i32
  }
  func.func @transform_12(%arg0: i32) -> (i32, i32) {
    %c0_i32 = arith.constant 0 : i32
    %c0_i32_0 = arith.constant 0 : i32
    %c0_i32_1 = arith.constant 0 : i32
    return %c0_i32, %c0_i32_0 : i32, i32
  }
  func.func @transform_13(%arg0: i32) -> (i32, i32, i32) {
    %c0_i32 = arith.constant 0 : i32
    %c0_i32_0 = arith.constant 0 : i32
    %c0_i32_1 = arith.constant 0 : i32
    return %arg0, %c0_i32, %c0_i32_0 : i32, i32, i32
  }
}

</mosaic_0001>

<bundles_post_ra>
// kernel: lenet5_forward.1
= control target key start
LH: loop header
LB: loop body
LE: loop exit
PB: predicated region body
PF: predicated region fallthrough
CT: control target
= control target key end

     0   :  { %s16152_s0 = inlined_call_operand.vmem [shape: bf16[1568,25], index: 0, kind: input, shape index: {}]   ;;  %s16153_s1 = inlined_call_operand.vmem [shape: bf16[25,6], index: 1, kind: input, shape index: {}]   ;;  %s16154_s2 = inlined_call_operand.vmem [shape: f32[1,6], index: 2, kind: input, shape index: {}]   ;;  %s16155_s3 = inlined_call_operand.vmem [shape: bf16[200,784], index: 3, kind: input, shape index: {}]   ;;  %s16156_s4 = inlined_call_operand.vmem [shape: bf16[150,16], index: 4, kind: input, shape index: {}]   ;;  %s16157_s5 = inlined_call_operand.vmem [shape: f32[1,16], index: 5, kind: input, shape index: {}]   ;;  %s16158_s6 = inlined_call_operand.vmem [shape: bf16[25,140], index: 6, kind: input, shape index: {}]   ;;  %s16159_s7 = inlined_call_operand.vmem [shape: bf16[400,120], index: 7, kind: input, shape index: {}]   ;;  %s16160_s8 = inlined_call_operand.vmem [shape: f32[1,120], index: 8, kind: input, shape index: {}]   ;;  %s16161_s9 = inlined_call_operand.vmem [shape: bf16[120,84], index: 9, kind: input, shape index: {}]   ;;  %s16162_s10 = inlined_call_operand.vmem [shape: f32[1,84], index: 10, kind: input, shape index: {}]   ;;  %s16163_s11 = inlined_call_operand.vmem [shape: bf16[84,10], index: 11, kind: input, shape index: {}]   ;;  %s16164_s12 = inlined_call_operand.vmem [shape: f32[1,10], index: 12, kind: input, shape index: {}]   ;;  %s16165_s13 = inlined_call_operand.hbm [shape: f32[2,1,10], index: 13, kind: output, shape index: {}]  }
   0x1   :  { %16400 = sst [smem:[#allocation48_spill]] %s16152_s0 }
   0x2   :  { %16401 = sst [smem:[#allocation49_spill]] %s16153_s1 }
   0x3   :  { %16402 = sst [smem:[#allocation50_spill]] %s16154_s2 }
   0x4   :  { %16403 = sst [smem:[#allocation51_spill]] %s16155_s3 }
   0x5   :  { %16404 = sst [smem:[#allocation52_spill]] %s16156_s4 }
   0x6   :  { %16405 = sst [smem:[#allocation53_spill]] %s16160_s8 }
   0x7   :  { %16406 = sst [smem:[#allocation54_spill]] %s16162_s10 }
   0x8   :  { %16407 = sst [smem:[#allocation55_spill]] %s16164_s12 }
   0x9   :  { %16408 = sst [smem:[#allocation56_spill]] %s16165_s13 }
   0xa   :  { %18 = vsyncpa [#allocation8], 0 }
   0xb   :  { %20 = vsyncpa [#allocation8 + $0x1], 0  ;;  %s10921_s25 = smov 0   ;;  %s10923_s26 = smov 0  }
   0xc   :  { %s10925_s27 = smov 0   ;;  %s10927_s28 = smov 0  }
   0xd LB: > { %16409 = sst [smem:[#allocation10_spill]] %s10804_s25  ;;  %s10942_s29 = sadd.s32 4294967295, %s10816_s28   ;;  %s10816_s28 = sphi %s10927_s28, %s17038_s28   ;;  %s10812_s27 = sphi %s10925_s27, %s17041_s27   ;;  %s10808_s26 = sphi %s10923_s26, %s17040_s26   ;;  %s10804_s25 = sphi %s10921_s25, %s17039_s25  }
   0xe   : > { %16410 = sst [smem:[#allocation11_spill]] %s10808_s26  ;;  %s9110_s30 = sadd.s32 4294967294, %s10816_s28  }
   0xf   : > { %16411 = sst [smem:[#allocation12_spill]] %s10812_s27  ;;  %s10946_s14 = sadd.s32 1, %s10816_s28  }
  0x10   : > { %16412 = sst [smem:[#allocation13_spill]] %s10816_s28  ;;  %s311_s15 = sadd.s32 1, %s10812_s27 }
  0x11   : > { %16413 = sst [smem:[#allocation14_spill]] %s10942_s29  ;;  %s308_s16 = ssub.s32 %s10816_s28, %s10946_s14 }
  0x12   : > { %16414 = sst [smem:[#allocation15_spill]] %s10946_s14  ;;  %p321_p0 = scmp.ne.s32.totalorder %s10812_s27, %s10808_s26 }
  0x13   : > { %p309_p1 = scmp.eq.s32.totalorder %s308_s16, 0  ;;  %p322_p2 = scmp.eq.s32.totalorder %s10942_s29, 1 }
  0x14   : > { %p327_p3 = scmp.ne.s32.totalorder %s10808_s26, %s10804_s25  ;;  %p328_p4 = scmp.eq.s32.totalorder %s9110_s30, 1 }
  0x15   : > { %s10957_s17 = scalar_select %p309_p1, %s10812_s27, %s311_s15  }
  0x16   : > { %p10959_p5 = por %p322_p2, %p321_p0  ;;  %p10963_p6 = por %p328_p4, %p327_p3 }
  0x17   : > { %16415 = sst [smem:[#allocation16_spill]] %s10957_s17  ;;  %p9113_p7 = scmp.ge.s32.totalorder %s10816_s28, 1 }
  0x18   : > { %s16416_s18 = scalar_select %p10959_p5, 1, 0 }
  0x19   : > { %s16418_s19 = scalar_select %p10963_p6, 1, 0 }
  0x1a   : > { %16417 = sst [smem:[#allocation17_spill]] %s16416_s18  ;;  %p391_p8 = scmp.lt.s32.totalorder %s10816_s28, 3 }
  0x1b   : > { %16419 = sst [smem:[#allocation18_spill]] %s16418_s19 }
  0x1c   : > { %p392_p9 = pnand %p9113_p7, %p391_p8 }
  0x1e   : > { %395 = sbr.rel (%p392_p9) target bundleno = 3319 (0xcf7), region = 72 }
  0x25   : > { %s16420_s1 = sld [smem:[#allocation49_spill]]  ;;  %v16185_v1 = vmov 0.0   ;;  %vm16189_vm0 = vcmask 1043456   ;;  %vm955_vm1 = vcmask 1044480   ;;  %s434_s24 = smul.u32 98, %s10942_s29  ;;  %v10819_v3 = vmov 65535  }
  0x26   : > { %9890 = vmatprep.subr.bf16.mxu0 %v16185_v1  ;;  %v956_v4 = vsel %vm16189_vm0, 4294967295, %v10819_v3  ;;  %vm16200_vm2 = vmmov 0   ;;  %s16421_s0 = sld [smem:[#allocation48_spill]]  ;;  %vm806_vm3 = vcmask 203776   ;;  %s16422_s2 = sld [smem:[#allocation50_spill]]  ;;  %vm1533_vm4 = vcmask 48128  }
  0x27   : > { %9894 = vmatprep.mubr.msk.bf16.mxu0 %vm16200_vm2, %v16185_v1  ;;  %v957_v5 = vsel %vm955_vm1, %v956_v4, 0  ;;  %p435_p10 = scmp.lt.s32.totalorder %s434_s24, 195  ;;  %s16423_s3 = sld [smem:[#allocation51_spill]]  ;;  %vm16193_vm5 = vcmask 130048   ;;  %vm2861_vm6 = vcmask 44032   ;;  %vm16184_vm7 = vcmask 1041408  }
  0x28   : > { %vm3675_vm8 = vcmask 1045508   ;;  %vm16215_vm9 = vcmask 1042432   ;;  %vm3235_vm10 = vcmask 1046532   ;;  %vm2942_vm11 = vsmask.f32 3328  ;;  %s16221_s16 = smov 12  }
  0x29   : > { %s17043_s24 = smov (!%p435_p10, %s434_s24), 195  ;;  %vm11849_vm12 = vmor %vm16184_vm7, %vm3675_vm8  ;;  %vm2943_vm13 = vsmask.f32 7440  ;;  %vm3382_vm15 = vsmask.f32 2304  ;;  %s16174_s21 = smov 42  }
  0x2a   : > { %s9114_s30 = sshll.u32 %s17043_s24, 2  ;;  %vm11854_vm14 = vmor %vm16215_vm9, %vm3235_vm10  ;;  %s16166_s22 = smov 6   ;;  %vm3843_vm10 = vcmask 1044484   ;;  %vm16229_vm7 = vcmask 191632   ;;  %vm16233_vm0 = vcmask 240832   ;;  %vm16280_vm9 = vcmask 437632  }
  0x2b   : > { %v10251_v0 = vld [vmem:[%s16420_s1] sm:$0xff]   ;;  %v10252_v2 = vld [vmem:[%s16420_s1 + $0x8] sm:$0x1f]   ;;  %vm11880_vm1 = vmor %vm2942_vm11, %vm2943_vm13  ;;  %s16170_s1 = smov 30   ;;  %vm16202_vm13 = vsmask.f32 256 }
  0x2c   : > { %9891 = vmatpush3.bf16.msra.mxu0 %v10251_v0  ;;  %v959_v6 = vand.u32 %v10252_v2, %v957_v5  ;;  %s10984_s20 = scalar_lea.vmem %s16421_s0, %s9114_s30  ;;  %v11095_v34 = vld [vmem:[%s16422_s2] ss:$0 sm:$0xff]  ;;  %s16211_s0 = smov 18  }
  0x2d   : > { %9892 = vmatprep.subr.bf16.mxu0 %v16185_v1  ;;  %v10253_v7 = vld [vmem:[%s10984_s20] sm:$0xff]   ;;  %v10254_v8 = vld [vmem:[%s10984_s20 + $0x8] sm:$0xff]   ;;  %v10255_v9 = vld [vmem:[%s10984_s20 + $0x10] sm:$0xff]   ;;  %s16224_s23 = smov 54   ;;  %s16178_s24 = smov 36  }
  0x2e   : > { %v10256_v10 = vld [vmem:[%s10984_s20 + $0x18] sm:$0xff]   ;;  %v10257_v11 = vld [vmem:[%s10984_s20 + $0x20] sm:$0xff]   ;;  %v10258_v12 = vld [vmem:[%s10984_s20 + $0x28] sm:$0xff]   ;;  %s16176_s30 = smov 84   ;;  %s16168_s15 = smov 48  }
  0x2f   : > { %v10259_v13 = vld [vmem:[%s10984_s20 + $0x30] sm:$0xff]   ;;  %v10260_v14 = vld [vmem:[%s10984_s20 + $0x38] sm:$0xff]   ;;  %v10261_v15 = vld [vmem:[%s10984_s20 + $0x40] sm:$0xff]   ;;  %s16459_s17 = smov 18   ;;  %s16460_s27 = smov 120  }
  0x30   : > { %9893 = vmatpush3.bf16.msra.mxu0 %v959_v6  ;;  %v10262_v16 = vld [vmem:[%s10984_s20 + $0x48] sm:$0xff]   ;;  %v10263_v17 = vld [vmem:[%s10984_s20 + $0x50] sm:$0xff]   ;;  %v10264_v18 = vld [vmem:[%s10984_s20 + $0x58] sm:$0xff]   ;;  %s16238_s14 = smov 16   ;;  %s16467_s19 = smov 102  }
  0x31   : > { %v10265_v19 = vld [vmem:[%s10984_s20 + $0x60] sm:$0xff]   ;;  %v10266_v20 = vld [vmem:[%s10984_s20 + $0x68] sm:$0xff]   ;;  %v10267_v21 = vld [vmem:[%s10984_s20 + $0x70] sm:$0xff]   ;;  %s16469_s4 = sld [smem:[#allocation52_spill]]  ;;  %s16470_s13 = smov 16  }
  0x32   : > { %v10268_v22 = vld [vmem:[%s10984_s20 + $0x78] sm:$0xff]   ;;  %v10269_v23 = vld [vmem:[%s10984_s20 + $0x80] sm:$0xff]   ;;  %v10270_v24 = vld [vmem:[%s10984_s20 + $0x88] sm:$0xff]   ;;  %s16472_s25 = smov 60   ;;  %s16479_s28 = smov 114  }
  0x33   : > { %9895 = vmatmul.mubr.msk.bf16.vlgmr.msra.gmra.mrb[0].mxu0 %vm806_vm3, %v10253_v7  ;;  %v10271_v25 = vld [vmem:[%s10984_s20 + $0x90] sm:$0xff]   ;;  %v10272_v26 = vld [vmem:[%s10984_s20 + $0x98] sm:$0xff]   ;;  %v10273_v27 = vld [vmem:[%s10984_s20 + $0xa0] sm:$0xff]   ;;  %s16267_s12 = smov 126   ;;  %s16503_s10 = smov 54  }
  0x34   : > { %9898 = vmatprep.mubr.msk.bf16.mxu0 %vm16200_vm2, %v16185_v1  ;;  %v10274_v28 = vld [vmem:[%s10984_s20 + $0xa8] sm:$0xff]   ;;  %v10275_v29 = vld [vmem:[%s10984_s20 + $0xb0] sm:$0xff]   ;;  %v10276_v30 = vld [vmem:[%s10984_s20 + $0xb8] sm:$0xff]   ;;  %s16506_s29 = smov 96   ;;  %s16510_s8 = smov 10  }
  0x35   : > { %v10277_v31 = vld [vmem:[%s10984_s20 + $0xc0] sm:$0xff]   ;;  %v10278_v32 = vld [vmem:[%s10984_s20 + $0xc8] sm:$0xff]   ;;  %v10279_v33 = vld [vmem:[%s10984_s20 + $0xd0] sm:$0xff]   ;;  %s16576_s26 = smov 126  }
  0x36   : > { %v10280_v38 = vld [vmem:[%s10984_s20 + $0xd8] sm:$0xff]   ;;  %v10281_v45 = vld [vmem:[%s10984_s20 + $0xe0] sm:$0xff]   ;;  %v10282_v55 = vld [vmem:[%s10984_s20 + $0xe8] sm:$0xff]  }
  0x37   : > { %v10283_v2 = vld [vmem:[%s10984_s20 + $0xf0] sm:$0xff]  }
  0x3b   : > { %9899 = vmatmul.mubr.msk.bf16.gmra.mrb[4].mxu0 %vm806_vm3, %v10254_v8 }
  0x3c   : > { %9902 = vmatprep.mubr.msk.bf16.mxu0 %vm16200_vm2, %v16185_v1 }
  0x43   : > { %9903 = vmatmul.mubr.msk.bf16.gmra.mrb[8].mxu0 %vm806_vm3, %v10255_v9 }
  0x44   : > { %9906 = vmatprep.mubr.msk.bf16.mxu0 %vm16200_vm2, %v16185_v1 }
  0x4b   : > { %9907 = vmatmul.mubr.msk.bf16.gmra.mrb[12].mxu0 %vm806_vm3, %v10256_v10 }
  0x4c   : > { %9910 = vmatprep.mubr.msk.bf16.mxu0 %vm16200_vm2, %v16185_v1 }
  0x53   : > { %9911 = vmatmul.mubr.msk.bf16.gmra.mrb[16].mxu0 %vm806_vm3, %v10257_v11 }
  0x54   : > { %9914 = vmatprep.mubr.msk.bf16.mxu0 %vm16200_vm2, %v16185_v1 }
  0x5b   : > { %9915 = vmatmul.mubr.msk.bf16.gmra.mrb[20].mxu0 %vm806_vm3, %v10258_v12  ;;  %v10284_v12 = vld [vmem:[%s10984_s20 + $0xf8] sm:$0xff]  }
  0x5c   : > { %9918 = vmatprep.mubr.msk.bf16.mxu0 %vm16200_vm2, %v16185_v1 }
  0x63   : > { %9919 = vmatmul.mubr.msk.bf16.gmra.mrb[24].mxu0 %vm806_vm3, %v10259_v13 }
  0x64   : > { %9922 = vmatprep.mubr.msk.bf16.mxu0 %vm16200_vm2, %v16185_v1 }
  0x6b   : > { %9923 = vmatmul.mubr.msk.bf16.gmra.mrb[28].mxu0 %vm806_vm3, %v10260_v14 }
  0x6c   : > { %9926 = vmatprep.mubr.msk.bf16.mxu0 %vm16200_vm2, %v16185_v1 }
  0x73   : > { %9927 = vmatmul.mubr.msk.bf16.gmra.mrb[32].mxu0 %vm806_vm3, %v10261_v15 }
  0x74   : > { %9930 = vmatprep.mubr.msk.bf16.mxu0 %vm16200_vm2, %v16185_v1 }
  0x7b   : > { %9931 = vmatmul.mubr.msk.bf16.gmra.mrb[36].mxu0 %vm806_vm3, %v10262_v16 }
  0x7c   : > { %9934 = vmatprep.mubr.msk.bf16.mxu0 %vm16200_vm2, %v16185_v1 }
  0x83   : > { %9935 = vmatmul.mubr.msk.bf16.gmra.mrb[40].mxu0 %vm806_vm3, %v10263_v17 }
  0x84   : > { %9938 = vmatprep.mubr.msk.bf16.mxu0 %vm16200_vm2, %v16185_v1 }
  0x8b   : > { %9939 = vmatmul.mubr.msk.bf16.gmra.mrb[44].mxu0 %vm806_vm3, %v10264_v18 }
  0x8c   : > { %9942 = vmatprep.mubr.msk.bf16.mxu0 %vm16200_vm2, %v16185_v1 }
  0x93   : > { %9943 = vmatmul.mubr.msk.bf16.gmra.mrb[48].mxu0 %vm806_vm3, %v10265_v19 }
  0x94   : > { %9946 = vmatprep.mubr.msk.bf16.mxu0 %vm16200_vm2, %v16185_v1 }
  0x9b   : > { %9947 = vmatmul.mubr.msk.bf16.gmra.mrb[52].mxu0 %vm806_vm3, %v10266_v20 }
  0x9c   : > { %9950 = vmatprep.mubr.msk.bf16.mxu0 %vm16200_vm2, %v16185_v1 }
  0xa3   : > { %9951 = vmatmul.mubr.msk.bf16.gmra.mrb[56].mxu0 %vm806_vm3, %v10267_v21 }
  0xa4   : > { %9954 = vmatprep.mubr.msk.bf16.mxu0 %vm16200_vm2, %v16185_v1 }
  0xab   : > { %9955 = vmatmul.mubr.msk.bf16.gmra.mrb[60].mxu0 %vm806_vm3, %v10268_v22  ;;  %v10285_v22 = vld [vmem:[%s10984_s20 + $0x100] sm:$0xff]  }
  0xac   : > { %9958 = vmatprep.mubr.msk.bf16.mxu0 %vm16200_vm2, %v16185_v1 }
  0xb3   : > { %9959 = vmatmul.mubr.msk.bf16.gmra.mrb[64].mxu0 %vm806_vm3, %v10269_v23 }
  0xb4   : > { %9962 = vmatprep.mubr.msk.bf16.mxu0 %vm16200_vm2, %v16185_v1 }
  0xbb   : > { %9963 = vmatmul.mubr.msk.bf16.gmra.mrb[68].mxu0 %vm806_vm3, %v10270_v24 }
  0xbc   : > { %9966 = vmatprep.mubr.msk.bf16.mxu0 %vm16200_vm2, %v16185_v1 }
  0xc3   : > { %9967 = vmatmul.mubr.msk.bf16.gmra.mrb[72].mxu0 %vm806_vm3, %v10271_v25 }
  0xc4   : > { %9970 = vmatprep.mubr.msk.bf16.mxu0 %vm16200_vm2, %v16185_v1 }
  0xcb   : > { %9971 = vmatmul.mubr.msk.bf16.gmra.mrb[76].mxu0 %vm806_vm3, %v10272_v26  ;;  %v10303_v26 = vld [vmem:[%s16423_s3 + $0x4] ss:$28 sps:$4 sm:$0xff]  }
  0xcc   : > { %9974 = vmatprep.mubr.msk.bf16.mxu0 %vm16200_vm2, %v16185_v1  ;;  %2248 = vmatprep.mubr.bf16.mxu1 %v10303_v26 }
  0xd3   : > { %9975 = vmatmul.mubr.msk.bf16.gmra.mrb[80].mxu0 %vm806_vm3, %v10273_v27 }
  0xd4   : > { %9978 = vmatprep.mubr.msk.bf16.mxu0 %vm16200_vm2, %v16185_v1 }
  0xdb   : > { %9979 = vmatmul.mubr.msk.bf16.gmra.mrb[84].mxu0 %vm806_vm3, %v10274_v28 }
  0xdc   : > { %9982 = vmatprep.mubr.msk.bf16.mxu0 %vm16200_vm2, %v16185_v1 }
  0xe3   : > { %9983 = vmatmul.mubr.msk.bf16.gmra.mrb[88].mxu0 %vm806_vm3, %v10275_v29 }
  0xe4   : > { %9986 = vmatprep.mubr.msk.bf16.mxu0 %vm16200_vm2, %v16185_v1 }
  0xeb   : > { %9987 = vmatmul.mubr.msk.bf16.gmra.mrb[92].mxu0 %vm806_vm3, %v10276_v30 }
  0xec   : > { %9990 = vmatprep.mubr.msk.bf16.mxu0 %vm16200_vm2, %v16185_v1 }
  0xf3   : > { %9991 = vmatmul.mubr.msk.bf16.gmra.mrb[96].mxu0 %vm806_vm3, %v10277_v31 }
  0xf4   : > { %9994 = vmatprep.mubr.msk.bf16.mxu0 %vm16200_vm2, %v16185_v1 }
  0xfb   : > { %9995 = vmatmul.mubr.msk.bf16.gmra.mrb[100].mxu0 %vm806_vm3, %v10278_v32 }
  0xfc   : > { %9998 = vmatprep.mubr.msk.bf16.mxu0 %vm16200_vm2, %v16185_v1 }
 0x103   : > { %9999 = vmatmul.mubr.msk.bf16.gmra.mrb[104].mxu0 %vm806_vm3, %v10279_v33  ;;  %v10286_v33 = vld [vmem:[%s10984_s20 + $0x108] sm:$0xff]  }
 0x104   : > { %10002 = vmatprep.mubr.msk.bf16.mxu0 %vm16200_vm2, %v16185_v1 }
 0x106   : > { %v995_v35 = vpop.f32.mrb[0].mxu0 }
 0x107   : > { %v996_v36 = vadd.f32 %v11095_v34, %v995_v35  ;;  %v9896_v37 = vpop.f32.mrb[1].mxu0 }
 0x108   : > { %v998_v39 = vpop.f32.mrb[2].mxu0 }
 0x109   : > { %v999_v40 = vadd.f32 %v11095_v34, %v998_v39  ;;  %v9897_v41 = vpop.f32.mrb[3].mxu0  ;;  %10515 = vtanh.f32 %v996_v36 }
 0x10b   : > { %10517 = vtanh.f32 %v999_v40  ;;  %10003 = vmatmul.mubr.msk.bf16.gmra.mrb[108].mxu0 %vm806_vm3, %v10280_v38 }
 0x10c   : > { %10006 = vmatprep.mubr.msk.bf16.mxu0 %vm16200_vm2, %v16185_v1 }
 0x10e   : > { %v1003_v42 = vpop.f32.mrb[4].mxu0 }
 0x10f   : > { %v1004_v43 = vadd.f32 %v11095_v34, %v1003_v42  ;;  %v9900_v44 = vpop.f32.mrb[5].mxu0 }
 0x110   : > { %v1006_v46 = vpop.f32.mrb[6].mxu0  ;;  %v10287_v44 = vld [vmem:[%s10984_s20 + $0x110] sm:$0xff]  }
 0x111   : > { %v1007_v47 = vadd.f32 %v11095_v34, %v1006_v46  ;;  %v9901_v48 = vpop.f32.mrb[7].mxu0  ;;  %10519 = vtanh.f32 %v1004_v43 }
 0x113   : > { %10521 = vtanh.f32 %v1007_v47  ;;  %10007 = vmatmul.mubr.msk.bf16.gmra.mrb[112].mxu0 %vm806_vm3, %v10281_v45  ;;  %v10516_v49 = vpop.eup %10515 }
 0x114   : > { %10010 = vmatprep.mubr.msk.bf16.mxu0 %vm16200_vm2, %v16185_v1 }
 0x115   : > { %v10518_v50 = vpop.eup %10517 }
 0x116   : > { %v1484_v51 = vpack.c.bf16 %v10518_v50, %v10516_v49  ;;  %v1011_v52 = vpop.f32.mrb[8].mxu0 }
 0x117   : > { %v1012_v53 = vadd.f32 %v11095_v34, %v1011_v52  ;;  %v9904_v54 = vpop.f32.mrb[9].mxu0 }
 0x118   : > { %1534 = vst.msk [vmem:[#allocation2] sm:$0xff] %vm1533_vm4, %v1484_v51  ;;  %v1014_v56 = vpop.f32.mrb[10].mxu0  ;;  %v10288_v54 = vld [vmem:[%s10984_s20 + $0x118] sm:$0xff]  }
 0x119   : > { %v1015_v57 = vadd.f32 %v11095_v34, %v1014_v56  ;;  %v9905_v58 = vpop.f32.mrb[11].mxu0  ;;  %10523 = vtanh.f32 %v1012_v53 }
 0x11b   : > { %10525 = vtanh.f32 %v1015_v57  ;;  %10011 = vmatmul.mubr.msk.bf16.gmra.mrb[116].mxu0 %vm806_vm3, %v10282_v55  ;;  %v10520_v59 = vpop.eup %10519 }
 0x11c   : > { %10014 = vmatprep.mubr.msk.bf16.mxu0 %vm16200_vm2, %v16185_v1 }
 0x11d   : > { %v10522_v60 = vpop.eup %10521 }
 0x11e   : > { %v1485_v61 = vpack.c.bf16 %v10522_v60, %v10520_v59  ;;  %v1019_v62 = vpop.f32.mrb[12].mxu0 }
 0x11f   : > { %v1020_v63 = vadd.f32 %v11095_v34, %v1019_v62  ;;  %v9908_v0 = vpop.f32.mrb[13].mxu0 }
 0x120   : > { %1535 = vst.msk [vmem:[#allocation2 + $0x8] sm:$0xff] %vm1533_vm4, %v1485_v61  ;;  %v1022_v3 = vpop.f32.mrb[14].mxu0  ;;  %v10289_v0 = vld [vmem:[%s10984_s20 + $0x120] sm:$0xff]  }
 0x121   : > { %v1023_v4 = vadd.f32 %v11095_v34, %v1022_v3  ;;  %v9909_v5 = vpop.f32.mrb[15].mxu0  ;;  %10527 = vtanh.f32 %v1020_v63 }
 0x123   : > { %10529 = vtanh.f32 %v1023_v4  ;;  %10015 = vmatmul.mubr.msk.bf16.gmra.mrb[120].mxu0 %vm806_vm3, %v10283_v2  ;;  %v10524_v6 = vpop.eup %10523 }
 0x124   : > { %10018 = vmatprep.mubr.msk.bf16.mxu0 %vm16200_vm2, %v16185_v1 }
 0x125   : > { %v10526_v7 = vpop.eup %10525 }
 0x126   : > { %v1486_v8 = vpack.c.bf16 %v10526_v7, %v10524_v6  ;;  %v1027_v9 = vpop.f32.mrb[16].mxu0 }
 0x127   : > { %v1028_v10 = vadd.f32 %v11095_v34, %v1027_v9  ;;  %v9912_v11 = vpop.f32.mrb[17].mxu0 }
 0x128   : > { %1536 = vst.msk [vmem:[#allocation2 + $0x10] sm:$0xff] %vm1533_vm4, %v1486_v8  ;;  %v1030_v13 = vpop.f32.mrb[18].mxu0  ;;  %v10290_v11 = vld [vmem:[%s10984_s20 + $0x128] sm:$0xff]  }
 0x129   : > { %v1031_v14 = vadd.f32 %v11095_v34, %v1030_v13  ;;  %v9913_v15 = vpop.f32.mrb[19].mxu0  ;;  %10531 = vtanh.f32 %v1028_v10 }
 0x12b   : > { %10533 = vtanh.f32 %v1031_v14  ;;  %10019 = vmatmul.mubr.msk.bf16.gmra.mrb[124].mxu0 %vm806_vm3, %v10284_v12  ;;  %v10528_v16 = vpop.eup %10527 }
 0x12c   : > { %10022 = vmatprep.mubr.msk.bf16.mxu0 %vm16200_vm2, %v16185_v1 }
 0x12d   : > { %v10530_v17 = vpop.eup %10529 }
 0x12e   : > { %v1487_v18 = vpack.c.bf16 %v10530_v17, %v10528_v16  ;;  %v1035_v19 = vpop.f32.mrb[20].mxu0 }
 0x12f   : > { %v1036_v20 = vadd.f32 %v11095_v34, %v1035_v19  ;;  %v9916_v21 = vpop.f32.mrb[21].mxu0 }
 0x130   : > { %1537 = vst.msk [vmem:[#allocation2 + $0x18] sm:$0xff] %vm1533_vm4, %v1487_v18  ;;  %v1038_v23 = vpop.f32.mrb[22].mxu0 }
 0x131   : > { %v1039_v24 = vadd.f32 %v11095_v34, %v1038_v23  ;;  %v9917_v25 = vpop.f32.mrb[23].mxu0  ;;  %10535 = vtanh.f32 %v1036_v20 }
 0x133   : > { %10537 = vtanh.f32 %v1039_v24  ;;  %10023 = vmatmul.mubr.msk.bf16.gmra.mrb[128].mxu0 %vm806_vm3, %v10285_v22  ;;  %v10532_v27 = vpop.eup %10531  ;;  %v10291_v22 = vld [vmem:[%s10984_s20 + $0x130] sm:$0xff]   ;;  %v1683_v24 = vld [vmem:[#allocation2] sm:$0xff] }
 0x134   : > { %10026 = vmatprep.mubr.msk.bf16.mxu0 %vm16200_vm2, %v16185_v1 }
 0x135   : > { %v10534_v28 = vpop.eup %10533 }
 0x136   : > { %v1488_v29 = vpack.c.bf16 %v10534_v28, %v10532_v27  ;;  %v1043_v30 = vpop.f32.mrb[24].mxu0 }
 0x137   : > { %v1044_v31 = vadd.f32 %v11095_v34, %v1043_v30  ;;  %v9920_v32 = vpop.f32.mrb[25].mxu0 }
 0x138   : > { %1538 = vst.msk [vmem:[#allocation2 + $0x20] sm:$0xff] %vm1533_vm4, %v1488_v29  ;;  %v1046_v35 = vpop.f32.mrb[26].mxu0 }
 0x139   : > { %v1047_v36 = vadd.f32 %v11095_v34, %v1046_v35  ;;  %v9921_v37 = vpop.f32.mrb[27].mxu0  ;;  %10539 = vtanh.f32 %v1044_v31  ;;  %v10292_v35 = vld [vmem:[%s10984_s20 + $0x138] sm:$0xff]  }
 0x13a   : > { %v1684_v37 = vld [vmem:[#allocation2 + $0x8] sm:$0xff] }
 0x13b   : > { %10541 = vtanh.f32 %v1047_v36  ;;  %10027 = vmatmul.mubr.msk.bf16.gmra.mrb[132].mxu0 %vm806_vm3, %v10286_v33  ;;  %v10536_v38 = vpop.eup %10535 }
 0x13c   : > { %10030 = vmatprep.mubr.msk.bf16.mxu0 %vm16200_vm2, %v16185_v1 }
 0x13d   : > { %v10538_v39 = vpop.eup %10537 }
 0x13e   : > { %v1489_v40 = vpack.c.bf16 %v10538_v39, %v10536_v38  ;;  %v1051_v41 = vpop.f32.mrb[28].mxu0 }
 0x13f   : > { %v1052_v42 = vadd.f32 %v11095_v34, %v1051_v41  ;;  %v9924_v43 = vpop.f32.mrb[29].mxu0 }
 0x140   : > { %1539 = vst.msk [vmem:[#allocation2 + $0x28] sm:$0xff] %vm1533_vm4, %v1489_v40  ;;  %v1054_v45 = vpop.f32.mrb[30].mxu0 }
 0x141   : > { %v1055_v46 = vadd.f32 %v11095_v34, %v1054_v45  ;;  %v9925_v47 = vpop.f32.mrb[31].mxu0  ;;  %10543 = vtanh.f32 %v1052_v42 }
 0x142   : > { %v10293_v47 = vld [vmem:[%s10984_s20 + $0x140] sm:$0xff]  }
 0x143   : > { %10545 = vtanh.f32 %v1055_v46  ;;  %10031 = vmatmul.mubr.msk.bf16.gmra.mrb[136].mxu0 %vm806_vm3, %v10287_v44  ;;  %v10540_v48 = vpop.eup %10539 }
 0x144   : > { %10034 = vmatprep.mubr.msk.bf16.mxu0 %vm16200_vm2, %v16185_v1 }
 0x145   : > { %v10542_v49 = vpop.eup %10541 }
 0x146   : > { %v1490_v50 = vpack.c.bf16 %v10542_v49, %v10540_v48  ;;  %v1059_v51 = vpop.f32.mrb[32].mxu0  ;;  %v1685_v49 = vld [vmem:[#allocation2 + $0x10] sm:$0xff] }
 0x147   : > { %v1060_v52 = vadd.f32 %v11095_v34, %v1059_v51  ;;  %v9928_v53 = vpop.f32.mrb[33].mxu0 }
 0x148   : > { %1540 = vst.msk [vmem:[#allocation2 + $0x30] sm:$0xff] %vm1533_vm4, %v1490_v50  ;;  %v1062_v55 = vpop.f32.mrb[34].mxu0 }
 0x149   : > { %v1063_v56 = vadd.f32 %v11095_v34, %v1062_v55  ;;  %v9929_v57 = vpop.f32.mrb[35].mxu0  ;;  %10547 = vtanh.f32 %v1060_v52 }
 0x14b   : > { %10549 = vtanh.f32 %v1063_v56  ;;  %10035 = vmatmul.mubr.msk.bf16.gmra.mrb[140].mxu0 %vm806_vm3, %v10288_v54  ;;  %v10544_v58 = vpop.eup %10543 }
 0x14c   : > { %10038 = vmatprep.mubr.msk.bf16.mxu0 %vm16200_vm2, %v16185_v1 }
 0x14d   : > { %v10546_v59 = vpop.eup %10545 }
 0x14e   : > { %v1491_v60 = vpack.c.bf16 %v10546_v59, %v10544_v58  ;;  %v1067_v61 = vpop.f32.mrb[36].mxu0  ;;  %v10294_v59 = vld [vmem:[%s10984_s20 + $0x148] sm:$0xff]  }
 0x14f   : > { %v1068_v62 = vadd.f32 %v11095_v34, %v1067_v61  ;;  %v9932_v63 = vpop.f32.mrb[37].mxu0  ;;  %v1686_v61 = vld [vmem:[#allocation2 + $0x18] sm:$0xff] }
 0x150   : > { %1541 = vst.msk [vmem:[#allocation2 + $0x38] sm:$0xff] %vm1533_vm4, %v1491_v60  ;;  %v1070_v2 = vpop.f32.mrb[38].mxu0 }
 0x151   : > { %v1071_v3 = vadd.f32 %v11095_v34, %v1070_v2  ;;  %v9933_v4 = vpop.f32.mrb[39].mxu0  ;;  %10551 = vtanh.f32 %v1068_v62 }
 0x153   : > { %10553 = vtanh.f32 %v1071_v3  ;;  %10039 = vmatmul.mubr.msk.bf16.gmra.mrb[144].mxu0 %vm806_vm3, %v10289_v0  ;;  %v10548_v5 = vpop.eup %10547 }
 0x154   : > { %10042 = vmatprep.mubr.msk.bf16.mxu0 %vm16200_vm2, %v16185_v1 }
 0x155   : > { %v10550_v6 = vpop.eup %10549 }
 0x156   : > { %v1492_v7 = vpack.c.bf16 %v10550_v6, %v10548_v5  ;;  %v1075_v8 = vpop.f32.mrb[40].mxu0 }
 0x157   : > { %v1076_v9 = vadd.f32 %v11095_v34, %v1075_v8  ;;  %v9936_v10 = vpop.f32.mrb[41].mxu0  ;;  %v10295_v8 = vld [vmem:[%s10984_s20 + $0x150] sm:$0xff]  }
 0x158   : > { %1542 = vst.msk [vmem:[#allocation2 + $0x40] sm:$0xff] %vm1533_vm4, %v1492_v7  ;;  %v1078_v12 = vpop.f32.mrb[42].mxu0  ;;  %v1687_v10 = vld [vmem:[#allocation2 + $0x20] sm:$0xff] }
 0x159   : > { %v1079_v13 = vadd.f32 %v11095_v34, %v1078_v12  ;;  %v9937_v14 = vpop.f32.mrb[43].mxu0  ;;  %10555 = vtanh.f32 %v1076_v9 }
 0x15b   : > { %10557 = vtanh.f32 %v1079_v13  ;;  %10043 = vmatmul.mubr.msk.bf16.gmra.mrb[148].mxu0 %vm806_vm3, %v10290_v11  ;;  %v10552_v15 = vpop.eup %10551 }
 0x15c   : > { %10046 = vmatprep.mubr.msk.bf16.mxu0 %vm16200_vm2, %v16185_v1 }
 0x15d   : > { %v10554_v16 = vpop.eup %10553 }
 0x15e   : > { %v1493_v17 = vpack.c.bf16 %v10554_v16, %v10552_v15  ;;  %v1083_v18 = vpop.f32.mrb[44].mxu0 }
 0x15f   : > { %v1084_v19 = vadd.f32 %v11095_v34, %v1083_v18  ;;  %v9940_v20 = vpop.f32.mrb[45].mxu0  ;;  %v1691_v21 = vld [vmem:[#allocation2 + $0x40] sm:$0xff] }
 0x160   : > { %1543 = vst.msk [vmem:[#allocation2 + $0x48] sm:$0xff] %vm1533_vm4, %v1493_v17  ;;  %v1086_v23 = vpop.f32.mrb[46].mxu0  ;;  %9556 = vmatprep.subr.bf16.mxu1 %v1691_v21  ;;  %v10296_v20 = vld [vmem:[%s10984_s20 + $0x158] sm:$0xff]  }
 0x161   : > { %v1087_v25 = vadd.f32 %v11095_v34, %v1086_v23  ;;  %v9941_v26 = vpop.f32.mrb[47].mxu0  ;;  %9557 = vmatpush3.bf16.msra.mxu1 %v1683_v24  ;;  %10559 = vtanh.f32 %v1084_v19 }
 0x163   : > { %10561 = vtanh.f32 %v1087_v25  ;;  %10047 = vmatmul.mubr.msk.bf16.gmra.mrb[152].mxu0 %vm806_vm3, %v10291_v22  ;;  %v10556_v27 = vpop.eup %10555  ;;  %v1688_v22 = vld [vmem:[#allocation2 + $0x28] sm:$0xff] }
 0x164   : > { %10050 = vmatprep.mubr.msk.bf16.mxu0 %vm16200_vm2, %v16185_v1 }
 0x165   : > { %v10558_v28 = vpop.eup %10557 }
 0x166   : > { %v1494_v29 = vpack.c.bf16 %v10558_v28, %v10556_v27  ;;  %v1091_v30 = vpop.f32.mrb[48].mxu0 }
 0x167   : > { %v1092_v31 = vadd.f32 %v11095_v34, %v1091_v30  ;;  %v9944_v32 = vpop.f32.mrb[49].mxu0  ;;  %v1692_v33 = vld [vmem:[#allocation2 + $0x48] sm:$0xff] }
 0x168   : > { %1544 = vst.msk [vmem:[#allocation2 + $0x50] sm:$0xff] %vm1533_vm4, %v1494_v29  ;;  %v1094_v36 = vpop.f32.mrb[50].mxu0  ;;  %9558 = vmatprep.subr.bf16.mxu1 %v1692_v33  ;;  %v10297_v32 = vld [vmem:[%s10984_s20 + $0x160] sm:$0xff]  }
 0x169   : > { %v1095_v38 = vadd.f32 %v11095_v34, %v1094_v36  ;;  %v9945_v39 = vpop.f32.mrb[51].mxu0  ;;  %9559 = vmatpush3.bf16.msra.mxu1 %v1684_v37  ;;  %10563 = vtanh.f32 %v1092_v31 }
 0x16b   : > { %10565 = vtanh.f32 %v1095_v38  ;;  %10051 = vmatmul.mubr.msk.bf16.gmra.mrb[156].mxu0 %vm806_vm3, %v10292_v35  ;;  %v10560_v40 = vpop.eup %10559  ;;  %v1689_v35 = vld [vmem:[#allocation2 + $0x30] sm:$0xff] }
 0x16c   : > { %10054 = vmatprep.mubr.msk.bf16.mxu0 %vm16200_vm2, %v16185_v1 }
 0x16d   : > { %v10562_v41 = vpop.eup %10561 }
 0x16e   : > { %v1495_v42 = vpack.c.bf16 %v10562_v41, %v10560_v40  ;;  %v1099_v43 = vpop.f32.mrb[52].mxu0 }
 0x16f   : > { %v1100_v44 = vadd.f32 %v11095_v34, %v1099_v43  ;;  %v9948_v45 = vpop.f32.mrb[53].mxu0  ;;  %v1693_v46 = vld [vmem:[#allocation2 + $0x50] sm:$0xff] }
 0x170   : > { %1545 = vst.msk [vmem:[#allocation2 + $0x58] sm:$0xff] %vm1533_vm4, %v1495_v42  ;;  %v1102_v48 = vpop.f32.mrb[54].mxu0  ;;  %9560 = vmatprep.subr.bf16.mxu1 %v1693_v46  ;;  %v10298_v45 = vld [vmem:[%s10984_s20 + $0x168] sm:$0xff]  }
 0x171   : > { %v1103_v50 = vadd.f32 %v11095_v34, %v1102_v48  ;;  %v9949_v51 = vpop.f32.mrb[55].mxu0  ;;  %9561 = vmatpush3.bf16.msra.mxu1 %v1685_v49  ;;  %10567 = vtanh.f32 %v1100_v44  ;;  %v10301_v48 = vld [vmem:[%s16423_s3] ss:$28 sps:$4 sm:$0xff]  }
 0x172   : > { %v10304_v51 = vld [vmem:[%s16423_s3 + $0x3c] ss:$28 sps:$4 sm:$0xff]  }
 0x173   : > { %10569 = vtanh.f32 %v1103_v50  ;;  %10055 = vmatmul.mubr.msk.bf16.gmra.mrb[160].mxu0 %vm806_vm3, %v10293_v47  ;;  %v10564_v52 = vpop.eup %10563  ;;  %v1690_v47 = vld [vmem:[#allocation2 + $0x38] sm:$0xff] }
 0x174   : > { %10058 = vmatprep.mubr.msk.bf16.mxu0 %vm16200_vm2, %v16185_v1 }
 0x175   : > { %v10566_v53 = vpop.eup %10565 }
 0x176   : > { %v1496_v54 = vpack.c.bf16 %v10566_v53, %v10564_v52  ;;  %v1107_v55 = vpop.f32.mrb[56].mxu0 }
 0x177   : > { %v1108_v56 = vadd.f32 %v11095_v34, %v1107_v55  ;;  %v9952_v57 = vpop.f32.mrb[57].mxu0  ;;  %v1694_v58 = vld [vmem:[#allocation2 + $0x58] sm:$0xff] }
 0x178   : > { %1546 = vst.msk [vmem:[#allocation2 + $0x60] sm:$0xff] %vm1533_vm4, %v1496_v54  ;;  %v1110_v60 = vpop.f32.mrb[58].mxu0  ;;  %9562 = vmatprep.subr.bf16.mxu1 %v1694_v58  ;;  %v10299_v58 = vld [vmem:[%s10984_s20 + $0x170] sm:$0xff]  }
 0x179   : > { %v1111_v62 = vadd.f32 %v11095_v34, %v1110_v60  ;;  %v9953_v63 = vpop.f32.mrb[59].mxu0  ;;  %9563 = vmatpush3.bf16.msra.mxu1 %v1686_v61  ;;  %10571 = vtanh.f32 %v1108_v56  ;;  %v10306_v60 = vld [vmem:[%s16423_s3 + $0x38] ss:$28 sps:$4 sm:$0xff]  }
 0x17a   : > { %v10307_v63 = vld [vmem:[%s16423_s3 + $0x74] ss:$28 sps:$4 sm:$0xff]  }
 0x17b   : > { %10573 = vtanh.f32 %v1111_v62  ;;  %10059 = vmatmul.mubr.msk.bf16.gmra.mrb[164].mxu0 %vm806_vm3, %v10294_v59  ;;  %v10568_v0 = vpop.eup %10567 }
 0x17c   : > { %10062 = vmatprep.mubr.msk.bf16.mxu0 %vm16200_vm2, %v16185_v1 }
 0x17d   : > { %v10570_v2 = vpop.eup %10569 }
 0x17e   : > { %v1497_v3 = vpack.c.bf16 %v10570_v2, %v10568_v0  ;;  %v1115_v4 = vpop.f32.mrb[60].mxu0 }
 0x17f   : > { %v1116_v5 = vadd.f32 %v11095_v34, %v1115_v4  ;;  %v9956_v6 = vpop.f32.mrb[61].mxu0  ;;  %v1695_v7 = vld [vmem:[#allocation2 + $0x60] sm:$0xff] }
 0x180   : > { %1547 = vst.msk [vmem:[#allocation2 + $0x68] sm:$0xff] %vm1533_vm4, %v1497_v3  ;;  %v1118_v9 = vpop.f32.mrb[62].mxu0  ;;  %9564 = vmatprep.subr.bf16.mxu1 %v1695_v7  ;;  %v10300_v7 = vld [vmem:[%s10984_s20 + $0x178] sm:$0xff]  }
 0x181   : > { %v1119_v11 = vadd.f32 %v11095_v34, %v1118_v9  ;;  %v9957_v12 = vpop.f32.mrb[63].mxu0  ;;  %9565 = vmatpush3.bf16.msra.mxu1 %v1687_v10  ;;  %10575 = vtanh.f32 %v1116_v5  ;;  %v10309_v9 = vld [vmem:[%s16423_s3 + $0x70] ss:$28 sps:$4 sm:$0xff]  }
 0x182   : > { %v10310_v12 = vld [vmem:[%s16423_s3 + $0xac] ss:$28 sps:$4 sm:$0xff]  }
 0x183   : > { %10577 = vtanh.f32 %v1119_v11  ;;  %10063 = vmatmul.mubr.msk.bf16.gmra.mrb[168].mxu0 %vm806_vm3, %v10295_v8  ;;  %v10572_v13 = vpop.eup %10571 }
 0x184   : > { %10066 = vmatprep.mubr.msk.bf16.mxu0 %vm16200_vm2, %v16185_v1 }
 0x185   : > { %v10574_v14 = vpop.eup %10573 }
 0x186   : > { %v1498_v15 = vpack.c.bf16 %v10574_v14, %v10572_v13  ;;  %v1123_v16 = vpop.f32.mrb[64].mxu0 }
 0x187   : > { %v1124_v17 = vadd.f32 %v11095_v34, %v1123_v16  ;;  %v9960_v18 = vpop.f32.mrb[65].mxu0  ;;  %v1696_v19 = vld [vmem:[#allocation2 + $0x68] sm:$0xff] }
 0x188   : > { %1548 = vst.msk [vmem:[#allocation2 + $0x70] sm:$0xff] %vm1533_vm4, %v1498_v15  ;;  %v1126_v21 = vpop.f32.mrb[66].mxu0  ;;  %9566 = vmatprep.subr.bf16.mxu1 %v1696_v19  ;;  %v10316_v19 = vld [vmem:[%s10984_s20 + $0x180] sm:$0xff]   ;;  %s16213_s20 = smov 24  }
 0x189   : > { %v1127_v23 = vadd.f32 %v11095_v34, %v1126_v21  ;;  %v9961_v24 = vpop.f32.mrb[67].mxu0  ;;  %9567 = vmatpush3.bf16.msra.mxu1 %v1688_v22  ;;  %10579 = vtanh.f32 %v1124_v17  ;;  %v10312_v21 = vld [vmem:[%s16423_s3 + $0xa8] ss:$28 sps:$4 sm:$0xff]  }
 0x18a   : > { %v10313_v24 = vld [vmem:[%s16423_s3 + $0xe4] ss:$28 sps:$4 sm:$0xff]  }
 0x18b   : > { %10581 = vtanh.f32 %v1127_v23  ;;  %10067 = vmatmul.mubr.msk.bf16.gmra.mrb[172].mxu0 %vm806_vm3, %v10296_v20  ;;  %v10576_v25 = vpop.eup %10575 }
 0x18c   : > { %10070 = vmatprep.mubr.msk.bf16.mxu0 %vm16200_vm2, %v16185_v1 }
 0x18d   : > { %v10578_v26 = vpop.eup %10577 }
 0x18e   : > { %v1499_v27 = vpack.c.bf16 %v10578_v26, %v10576_v25  ;;  %v1131_v28 = vpop.f32.mrb[68].mxu0 }
 0x18f   : > { %v1132_v29 = vadd.f32 %v11095_v34, %v1131_v28  ;;  %v9964_v30 = vpop.f32.mrb[69].mxu0  ;;  %v1697_v31 = vld [vmem:[#allocation2 + $0x70] sm:$0xff] }
 0x190   : > { %1549 = vst.msk [vmem:[#allocation2 + $0x78] sm:$0xff] %vm1533_vm4, %v1499_v27  ;;  %v1134_v33 = vpop.f32.mrb[70].mxu0  ;;  %9568 = vmatprep.subr.bf16.mxu1 %v1697_v31 }
 0x191   : > { %v1135_v36 = vadd.f32 %v11095_v34, %v1134_v33  ;;  %v9965_v37 = vpop.f32.mrb[71].mxu0  ;;  %9569 = vmatpush3.bf16.msra.mxu1 %v1689_v35  ;;  %10583 = vtanh.f32 %v1132_v29 }
 0x193   : > { %10585 = vtanh.f32 %v1135_v36  ;;  %10071 = vmatmul.mubr.msk.bf16.gmra.mrb[176].mxu0 %vm806_vm3, %v10297_v32  ;;  %v10580_v38 = vpop.eup %10579  ;;  %v10315_v32 = vld [vmem:[%s16423_s3 + $0xe0] ss:$28 sps:$4 sm:$0xff]  }
 0x194   : > { %10074 = vmatprep.mubr.msk.bf16.mxu0 %vm16200_vm2, %v16185_v1  ;;  %v10317_v36 = vld [vmem:[%s16423_s3 + $0x11c] ss:$28 sps:$4 sm:$0xff]  }
 0x195   : > { %v10582_v39 = vpop.eup %10581 }
 0x196   : > { %v1500_v40 = vpack.c.bf16 %v10582_v39, %v10580_v38  ;;  %v1139_v41 = vpop.f32.mrb[72].mxu0 }
 0x197   : > { %v1140_v42 = vadd.f32 %v11095_v34, %v1139_v41  ;;  %v9968_v43 = vpop.f32.mrb[73].mxu0  ;;  %v1698_v44 = vld [vmem:[#allocation2 + $0x78] sm:$0xff] }
 0x198   : > { %1550 = vst.msk [vmem:[#allocation2 + $0x80] sm:$0xff] %vm1533_vm4, %v1500_v40  ;;  %v1142_v46 = vpop.f32.mrb[74].mxu0  ;;  %9570 = vmatprep.subr.bf16.mxu1 %v1698_v44  ;;  %v10319_v44 = vld [vmem:[%s16423_s3 + $0x118] ss:$28 sps:$4 sm:$0xff]  }
 0x199   : > { %v1143_v49 = vadd.f32 %v11095_v34, %v1142_v46  ;;  %v9969_v50 = vpop.f32.mrb[75].mxu0  ;;  %9571 = vmatpush3.bf16.msra.mxu1 %v1690_v47  ;;  %10587 = vtanh.f32 %v1140_v42  ;;  %v10320_v47 = vld [vmem:[%s16423_s3 + $0x154] ss:$28 sps:$4 sm:$0xff]  }
 0x19b   : > { %10589 = vtanh.f32 %v1143_v49  ;;  %10075 = vmatmul.mubr.msk.bf16.gmra.mrb[180].mxu0 %vm806_vm3, %v10298_v45  ;;  %v10584_v52 = vpop.eup %10583 }
 0x19c   : > { %10078 = vmatprep.mubr.msk.bf16.mxu0 %vm16200_vm2, %v16185_v1  ;;  %2249 = vmatmul.mubr.bf16.vlgmr.msra.gmra.mrb[0].mxu1 %v10301_v48 }
 0x19d   : > { %v10586_v53 = vpop.eup %10585  ;;  %2256 = vmatprep.mubr.bf16.mxu1 %v10304_v51 }
 0x19e   : > { %v1501_v54 = vpack.c.bf16 %v10586_v53, %v10584_v52  ;;  %v1147_v55 = vpop.f32.mrb[76].mxu0 }
 0x19f   : > { %v1148_v56 = vadd.f32 %v11095_v34, %v1147_v55  ;;  %v9972_v57 = vpop.f32.mrb[77].mxu0  ;;  %v10322_v55 = vld [vmem:[%s16423_s3 + $0x150] ss:$28 sps:$4 sm:$0xff]  }
 0x1a0   : > { %1551 = vst.msk [vmem:[#allocation2 + $0x88] sm:$0xff] %vm1533_vm4, %v1501_v54  ;;  %v1150_v59 = vpop.f32.mrb[78].mxu0 }
 0x1a1   : > { %v1151_v61 = vadd.f32 %v11095_v34, %v1150_v59  ;;  %v9973_v62 = vpop.f32.mrb[79].mxu0  ;;  %10591 = vtanh.f32 %v1148_v56 }
 0x1a3   : > { %10593 = vtanh.f32 %v1151_v61  ;;  %10079 = vmatmul.mubr.msk.bf16.gmra.mrb[184].mxu0 %vm806_vm3, %v10299_v58  ;;  %v10588_v0 = vpop.eup %10587  ;;  %v10323_v58 = vld [vmem:[%s16423_s3 + $0x18c] ss:$28 sps:$4 sm:$0xff]  }
 0x1a4   : > { %10082 = vmatprep.mubr.msk.bf16.mxu0 %vm16200_vm2, %v16185_v1  ;;  %2257 = vmatmul.mubr.bf16.gmra.mrb[4].mxu1 %v10306_v60 }
 0x1a5   : > { %v10590_v2 = vpop.eup %10589  ;;  %2264 = vmatprep.mubr.bf16.mxu1 %v10307_v63 }
 0x1a6   : > { %v1502_v3 = vpack.c.bf16 %v10590_v2, %v10588_v0  ;;  %v1155_v4 = vpop.f32.mrb[80].mxu0 }
 0x1a7   : > { %v1156_v5 = vadd.f32 %v11095_v34, %v1155_v4  ;;  %v9976_v6 = vpop.f32.mrb[81].mxu0 }
 0x1a8   : > { %1552 = vst.msk [vmem:[#allocation2 + $0x90] sm:$0xff] %vm1533_vm4, %v1502_v3  ;;  %v1158_v8 = vpop.f32.mrb[82].mxu0  ;;  %v10325_v3 = vld [vmem:[%s16423_s3 + $0x188] ss:$28 sps:$4 sm:$0xff]  }
 0x1a9   : > { %v1159_v10 = vadd.f32 %v11095_v34, %v1158_v8  ;;  %v9977_v11 = vpop.f32.mrb[83].mxu0  ;;  %10595 = vtanh.f32 %v1156_v5  ;;  %v10326_v6 = vld [vmem:[%s16423_s3 + $0x1c4] ss:$28 sps:$4 sm:$0xff]  }
 0x1ab   : > { %10597 = vtanh.f32 %v1159_v10  ;;  %10083 = vmatmul.mubr.msk.bf16.gmra.mrb[188].mxu0 %vm806_vm3, %v10300_v7  ;;  %v10592_v13 = vpop.eup %10591 }
 0x1ac   : > { %2265 = vmatmul.mubr.bf16.gmra.mrb[8].mxu1 %v10309_v9  ;;  %10086 = vmatprep.mubr.msk.bf16.mxu0 %vm16200_vm2, %v16185_v1 }
 0x1ad   : > { %v10594_v14 = vpop.eup %10593  ;;  %2272 = vmatprep.mubr.bf16.mxu1 %v10310_v12 }
 0x1ae   : > { %v1503_v15 = vpack.c.bf16 %v10594_v14, %v10592_v13  ;;  %v1163_v16 = vpop.f32.mrb[84].mxu0  ;;  %v10328_v14 = vld [vmem:[%s16423_s3 + $0x1c0] ss:$28 sps:$4 sm:$0xff]  }
 0x1af   : > { %v1164_v17 = vadd.f32 %v11095_v34, %v1163_v16  ;;  %v9980_v18 = vpop.f32.mrb[85].mxu0 }
 0x1b0   : > { %1553 = vst.msk [vmem:[#allocation2 + $0x98] sm:$0xff] %vm1533_vm4, %v1503_v15  ;;  %v1166_v20 = vpop.f32.mrb[86].mxu0 }
 0x1b1   : > { %v1167_v22 = vadd.f32 %v11095_v34, %v1166_v20  ;;  %v9981_v23 = vpop.f32.mrb[87].mxu0  ;;  %10599 = vtanh.f32 %v1164_v17  ;;  %v10329_v17 = vld [vmem:[%s16423_s3 + $0x1fc] ss:$28 sps:$4 sm:$0xff]  }
 0x1b3   : > { %10601 = vtanh.f32 %v1167_v22  ;;  %10087 = vmatmul.mubr.msk.bf16.gmra.mrb[192].mxu0 %vm806_vm3, %v10316_v19  ;;  %v10596_v25 = vpop.eup %10595  ;;  %vm3383_vm3 = vsmask.f32 6416 }
 0x1b4   : > { %2273 = vmatmul.mubr.bf16.gmra.mrb[12].mxu1 %v10312_v21  ;;  %vm11904_vm8 = vmor %vm3382_vm15, %vm3383_vm3  ;;  %vm3994_vm15 = vsmask.f32 4368 }
 0x1b5   : > { %v10598_v26 = vpop.eup %10597  ;;  %2280 = vmatprep.mubr.bf16.mxu1 %v10313_v24  ;;  %vm11974_vm3 = vmor %vm16202_vm13, %vm3994_vm15  ;;  %vm16218_vm13 = vcmask 388432  }
 0x1b6   : > { %v1504_v27 = vpack.c.bf16 %v10598_v26, %v10596_v25  ;;  %v1171_v28 = vpop.f32.mrb[88].mxu0  ;;  %v1699_v26 = vld [vmem:[#allocation2 + $0x80] sm:$0xff] }
 0x1b7   : > { %v1172_v29 = vadd.f32 %v11095_v34, %v1171_v28  ;;  %v9984_v30 = vpop.f32.mrb[89].mxu0 }
 0x1b8   : > { %1554 = vst.msk [vmem:[#allocation2 + $0xa0] sm:$0xff] %vm1533_vm4, %v1504_v27  ;;  %v1174_v31 = vpop.f32.mrb[90].mxu0  ;;  %v10331_v27 = vld [vmem:[%s16423_s3 + $0x1f8] ss:$28 sps:$4 sm:$0xff]  }
 0x1b9   : > { %v1175_v33 = vadd.f32 %v11095_v34, %v1174_v31  ;;  %v9985_v35 = vpop.f32.mrb[91].mxu0  ;;  %10603 = vtanh.f32 %v1172_v29  ;;  %v10332_v30 = vld [vmem:[%s16423_s3 + $0x234] ss:$28 sps:$4 sm:$0xff]  }
 0x1bb   : > { %10605 = vtanh.f32 %v1175_v33  ;;  %v10600_v37 = vpop.eup %10599 }
 0x1bc   : > { %2281 = vmatmul.mubr.bf16.gmra.mrb[16].mxu1 %v10315_v32 }
 0x1bd   : > { %v10602_v38 = vpop.eup %10601  ;;  %2288 = vmatprep.mubr.bf16.mxu1 %v10317_v36 }
 0x1be   : > { %v1505_v39 = vpack.c.bf16 %v10602_v38, %v10600_v37  ;;  %v1179_v40 = vpop.f32.mrb[92].mxu0 }
 0x1bf   : > { %v1180_v41 = vadd.f32 %v11095_v34, %v1179_v40  ;;  %v9988_v42 = vpop.f32.mrb[93].mxu0  ;;  %v1700_v40 = vld [vmem:[#allocation2 + $0x88] sm:$0xff] }
 0x1c0   : > { %1555 = vst.msk [vmem:[#allocation2 + $0xa8] sm:$0xff] %vm1533_vm4, %v1505_v39  ;;  %v1182_v43 = vpop.f32.mrb[94].mxu0 }
 0x1c1   : > { %v1183_v45 = vadd.f32 %v11095_v34, %v1182_v43  ;;  %v9989_v46 = vpop.f32.mrb[95].mxu0  ;;  %10607 = vtanh.f32 %v1180_v41  ;;  %v10334_v41 = vld [vmem:[%s16423_s3 + $0x230] ss:$28 sps:$4 sm:$0xff]  }
 0x1c3   : > { %10609 = vtanh.f32 %v1183_v45  ;;  %v10604_v48 = vpop.eup %10603 }
 0x1c4   : > { %2289 = vmatmul.mubr.bf16.gmra.mrb[20].mxu1 %v10319_v44  ;;  %v10335_v44 = vld [vmem:[%s16423_s3 + $0x26c] ss:$28 sps:$4 sm:$0xff]  }
 0x1c5   : > { %v10606_v49 = vpop.eup %10605  ;;  %2296 = vmatprep.mubr.bf16.mxu1 %v10320_v47 }
 0x1c6   : > { %v1506_v50 = vpack.c.bf16 %v10606_v49, %v10604_v48  ;;  %v1187_v51 = vpop.f32.mrb[96].mxu0  ;;  %v1679_v49 = vld [vmem:[%s16423_s3 + $0x2a0] sm:$0xff] }
 0x1c7   : > { %v1188_v52 = vadd.f32 %v11095_v34, %v1187_v51  ;;  %v9992_v53 = vpop.f32.mrb[97].mxu0 }
 0x1c8   : > { %1556 = vst.msk [vmem:[#allocation2 + $0xb0] sm:$0xff] %vm1533_vm4, %v1506_v50  ;;  %v1190_v54 = vpop.f32.mrb[98].mxu0 }
 0x1c9   : > { %v1191_v56 = vadd.f32 %v11095_v34, %v1190_v54  ;;  %v9993_v57 = vpop.f32.mrb[99].mxu0  ;;  %10611 = vtanh.f32 %v1188_v52  ;;  %v1701_v54 = vld [vmem:[#allocation2 + $0x90] sm:$0xff] }
 0x1cb   : > { %10613 = vtanh.f32 %v1191_v56  ;;  %v10608_v59 = vpop.eup %10607 }
 0x1cc   : > { %2297 = vmatmul.mubr.bf16.gmra.mrb[24].mxu1 %v10322_v55  ;;  %v10337_v55 = vld [vmem:[%s16423_s3 + $0x268] ss:$28 sps:$4 sm:$0xff]  }
 0x1cd   : > { %v10610_v60 = vpop.eup %10609  ;;  %2304 = vmatprep.mubr.bf16.mxu1 %v10323_v58  ;;  %v9301_v58 = vcombine.high %v1679_v49, %v1679_v49 }
 0x1ce   : > { %v1507_v61 = vpack.c.bf16 %v10610_v60, %v10608_v59  ;;  %v1195_v62 = vpop.f32.mrb[100].mxu0 }
 0x1cf   : > { %v1196_v63 = vadd.f32 %v11095_v34, %v1195_v62  ;;  %v9996_v0 = vpop.f32.mrb[101].mxu0 }
 0x1d0   : > { %1557 = vst.msk [vmem:[#allocation2 + $0xb8] sm:$0xff] %vm1533_vm4, %v1507_v61  ;;  %v1198_v2 = vpop.f32.mrb[102].mxu0 }
 0x1d1   : > { %v1199_v4 = vadd.f32 %v11095_v34, %v1198_v2  ;;  %v9997_v5 = vpop.f32.mrb[103].mxu0  ;;  %10615 = vtanh.f32 %v1196_v63  ;;  %v11351_v63 = vld [vmem:[%s16422_s2] ss:$0 sm:$0xff]  ;;  %s16454_s2 = smov 24  }
 0x1d2   : > { %v9300_v5 = vcombine.low %v1679_v49, %v1679_v49 }
 0x1d3   : > { %10617 = vtanh.f32 %v1199_v4  ;;  %v10612_v7 = vpop.eup %10611  ;;  %v1702_v4 = vld [vmem:[#allocation2 + $0x98] sm:$0xff] }
 0x1d4   : > { %2305 = vmatmul.mubr.bf16.gmra.mrb[28].mxu1 %v10325_v3 }
 0x1d5   : > { %v10614_v8 = vpop.eup %10613  ;;  %2312 = vmatprep.mubr.bf16.mxu1 %v10326_v6 }
 0x1d6   : > { %v1508_v9 = vpack.c.bf16 %v10614_v8, %v10612_v7  ;;  %v1203_v10 = vpop.f32.mrb[104].mxu0  ;;  %v10342_v8 = vld [vmem:[%s16423_s3 + $0xc] ss:$28 sps:$4 sm:$0xff]  }
 0x1d7   : > { %v1204_v11 = vadd.f32 %v11095_v34, %v1203_v10  ;;  %v10000_v12 = vpop.f32.mrb[105].mxu0 }
 0x1d8   : > { %1558 = vst.msk [vmem:[#allocation2 + $0xc0] sm:$0xff] %vm1533_vm4, %v1508_v9  ;;  %v1206_v13 = vpop.f32.mrb[106].mxu0 }
 0x1d9   : > { %v1207_v15 = vadd.f32 %v11095_v34, %v1206_v13  ;;  %v10001_v16 = vpop.f32.mrb[107].mxu0  ;;  %10619 = vtanh.f32 %v1204_v11 }
 0x1db   : > { %10621 = vtanh.f32 %v1207_v15  ;;  %v10616_v18 = vpop.eup %10615 }
 0x1dc   : > { %2313 = vmatmul.mubr.bf16.gmra.mrb[32].mxu1 %v10328_v14 }
 0x1dd   : > { %v10618_v19 = vpop.eup %10617  ;;  %2320 = vmatprep.mubr.bf16.mxu1 %v10329_v17  ;;  %v1703_v17 = vld [vmem:[#allocation2 + $0xa0] sm:$0xff] }
 0x1de   : > { %v1509_v20 = vpack.c.bf16 %v10618_v19, %v10616_v18  ;;  %v1211_v21 = vpop.f32.mrb[108].mxu0 }
 0x1df   : > { %v1212_v22 = vadd.f32 %v11095_v34, %v1211_v21  ;;  %v10004_v23 = vpop.f32.mrb[109].mxu0  ;;  %v1707_v24 = vld [vmem:[#allocation2 + $0xc0] sm:$0xff] }
 0x1e0   : > { %1559 = vst.msk [vmem:[#allocation2 + $0xc8] sm:$0xff] %vm1533_vm4, %v1509_v20  ;;  %v1214_v25 = vpop.f32.mrb[110].mxu0  ;;  %9650 = vmatprep.subr.bf16.mxu1 %v1707_v24 }
 0x1e1   : > { %v1215_v28 = vadd.f32 %v11095_v34, %v1214_v25  ;;  %v10005_v29 = vpop.f32.mrb[111].mxu0  ;;  %9651 = vmatpush3.bf16.msra.mxu1 %v1699_v26  ;;  %10623 = vtanh.f32 %v1212_v22 }
 0x1e3   : > { %10625 = vtanh.f32 %v1215_v28  ;;  %v10620_v31 = vpop.eup %10619  ;;  %v1704_v28 = vld [vmem:[#allocation2 + $0xa8] sm:$0xff] }
 0x1e4   : > { %2321 = vmatmul.mubr.bf16.gmra.mrb[36].mxu1 %v10331_v27 }
 0x1e5   : > { %v10622_v32 = vpop.eup %10621  ;;  %2328 = vmatprep.mubr.bf16.mxu1 %v10332_v30 }
 0x1e6   : > { %v1510_v33 = vpack.c.bf16 %v10622_v32, %v10620_v31  ;;  %v1219_v35 = vpop.f32.mrb[112].mxu0 }
 0x1e7   : > { %v1220_v36 = vadd.f32 %v11095_v34, %v1219_v35  ;;  %v10008_v37 = vpop.f32.mrb[113].mxu0  ;;  %v1708_v38 = vld [vmem:[#allocation2 + $0xc8] sm:$0xff] }
 0x1e8   : > { %1560 = vst.msk [vmem:[#allocation2 + $0xd0] sm:$0xff] %vm1533_vm4, %v1510_v33  ;;  %v1222_v39 = vpop.f32.mrb[114].mxu0  ;;  %9652 = vmatprep.subr.bf16.mxu1 %v1708_v38 }
 0x1e9   : > { %v1223_v42 = vadd.f32 %v11095_v34, %v1222_v39  ;;  %v10009_v43 = vpop.f32.mrb[115].mxu0  ;;  %9653 = vmatpush3.bf16.msra.mxu1 %v1700_v40  ;;  %10627 = vtanh.f32 %v1220_v36  ;;  %v1705_v40 = vld [vmem:[#allocation2 + $0xb0] sm:$0xff] }
 0x1eb   : > { %10629 = vtanh.f32 %v1223_v42  ;;  %v10624_v45 = vpop.eup %10623 }
 0x1ec   : > { %2329 = vmatmul.mubr.bf16.gmra.mrb[40].mxu1 %v10334_v41 }
 0x1ed   : > { %v10626_v46 = vpop.eup %10625  ;;  %2336 = vmatprep.mubr.bf16.mxu1 %v10335_v44 }
 0x1ee   : > { %v1511_v47 = vpack.c.bf16 %v10626_v46, %v10624_v45  ;;  %v1227_v48 = vpop.f32.mrb[116].mxu0 }
 0x1ef   : > { %v1228_v50 = vadd.f32 %v11095_v34, %v1227_v48  ;;  %v10012_v51 = vpop.f32.mrb[117].mxu0  ;;  %v1709_v52 = vld [vmem:[#allocation2 + $0xd0] sm:$0xff] }
 0x1f0   : > { %1561 = vst.msk [vmem:[#allocation2 + $0xd8] sm:$0xff] %vm1533_vm4, %v1511_v47  ;;  %v1230_v53 = vpop.f32.mrb[118].mxu0  ;;  %9654 = vmatprep.subr.bf16.mxu1 %v1709_v52  ;;  %v1706_v51 = vld [vmem:[#allocation2 + $0xb8] sm:$0xff]  ;;  %v10340_v52 = vld [vmem:[%s16423_s3 + $0x8] ss:$28 sps:$4 sm:$0xff]  }
 0x1f1   : > { %v1231_v56 = vadd.f32 %v11095_v34, %v1230_v53  ;;  %v10013_v57 = vpop.f32.mrb[119].mxu0  ;;  %9655 = vmatpush3.bf16.msra.mxu1 %v1701_v54  ;;  %10631 = vtanh.f32 %v1228_v50 }
 0x1f3   : > { %10633 = vtanh.f32 %v1231_v56  ;;  %v10628_v59 = vpop.eup %10627 }
 0x1f4   : > { %2337 = vmatmul.mubr.bf16.gmra.mrb[44].mxu1 %v10337_v55  ;;  %v10343_v55 = vld [vmem:[%s16423_s3 + $0x44] ss:$28 sps:$4 sm:$0xff]  }
 0x1f5   : > { %v10630_v60 = vpop.eup %10629  ;;  %2344 = vmatprep.mubr.bf16.mxu1 %v9301_v58 }
 0x1f6   : > { %v1512_v61 = vpack.c.bf16 %v10630_v60, %v10628_v59  ;;  %v1235_v62 = vpop.f32.mrb[120].mxu0 }
 0x1f7   : > { %v1236_v0 = vadd.f32 %v11351_v63, %v1235_v62  ;;  %v10016_v2 = vpop.f32.mrb[121].mxu0  ;;  %v1710_v34 = vld [vmem:[#allocation2 + $0xd8] sm:$0xff] }
 0x1f8   : > { %1562 = vst.msk [vmem:[#allocation2 + $0xe0] sm:$0xff] %vm1533_vm4, %v1512_v61  ;;  %v1238_v3 = vpop.f32.mrb[122].mxu0  ;;  %9656 = vmatprep.subr.bf16.mxu1 %v1710_v34 }
 0x1f9   : > { %v1239_v6 = vadd.f32 %v11351_v63, %v1238_v3  ;;  %v10017_v7 = vpop.f32.mrb[123].mxu0  ;;  %9657 = vmatpush3.bf16.msra.mxu1 %v1702_v4  ;;  %10635 = vtanh.f32 %v1236_v0  ;;  %v10345_v0 = vld [vmem:[%s16423_s3 + $0x40] ss:$28 sps:$4 sm:$0xff]  }
 0x1fa   : > { %v10346_v3 = vld [vmem:[%s16423_s3 + $0x7c] ss:$28 sps:$4 sm:$0xff]  }
 0x1fb   : > { %10637 = vtanh.f32 %v1239_v6  ;;  %v10632_v9 = vpop.eup %10631 }
 0x1fc   : > { %2345 = vmatmul.mubr.bf16.gmra.mrb[48].mxu1 %v9300_v5 }
 0x1fd   : > { %v10634_v10 = vpop.eup %10633  ;;  %2384 = vmatprep.mubr.bf16.mxu1 %v10342_v8 }
 0x1fe   : > { %v1513_v11 = vpack.c.bf16 %v10634_v10, %v10632_v9  ;;  %v1243_v12 = vpop.f32.mrb[124].mxu0 }
 0x1ff   : > { %v1244_v13 = vadd.f32 %v11351_v63, %v1243_v12  ;;  %v10020_v14 = vpop.f32.mrb[125].mxu0  ;;  %v1711_v15 = vld [vmem:[#allocation2 + $0xe0] sm:$0xff] }
 0x200   : > { %1563 = vst.msk [vmem:[#allocation2 + $0xe8] sm:$0xff] %vm1533_vm4, %v1513_v11  ;;  %v1246_v16 = vpop.f32.mrb[126].mxu0  ;;  %9658 = vmatprep.subr.bf16.mxu1 %v1711_v15  ;;  %v10348_v11 = vld [vmem:[%s16423_s3 + $0x78] ss:$28 sps:$4 sm:$0xff]  }
 0x201   : > { %v1247_v18 = vadd.f32 %v11351_v63, %v1246_v16  ;;  %v10021_v19 = vpop.f32.mrb[127].mxu0  ;;  %9659 = vmatpush3.bf16.msra.mxu1 %v1703_v17  ;;  %10639 = vtanh.f32 %v1244_v13  ;;  %v10349_v14 = vld [vmem:[%s16423_s3 + $0xb4] ss:$28 sps:$4 sm:$0xff]  }
 0x203   : > { %10641 = vtanh.f32 %v1247_v18  ;;  %v10636_v20 = vpop.eup %10635 }
 0x205   : > { %v10638_v21 = vpop.eup %10637 }
 0x206   : > { %v1514_v22 = vpack.c.bf16 %v10638_v21, %v10636_v20  ;;  %v1251_v23 = vpop.f32.mrb[128].mxu0 }
 0x207   : > { %v1252_v24 = vadd.f32 %v11351_v63, %v1251_v23  ;;  %v10024_v25 = vpop.f32.mrb[129].mxu0  ;;  %v1712_v26 = vld [vmem:[#allocation2 + $0xe8] sm:$0xff] }
 0x208   : > { %1564 = vst.msk [vmem:[#allocation2 + $0xf0] sm:$0xff] %vm1533_vm4, %v1514_v22  ;;  %v1254_v27 = vpop.f32.mrb[130].mxu0  ;;  %9660 = vmatprep.subr.bf16.mxu1 %v1712_v26  ;;  %v10351_v22 = vld [vmem:[%s16423_s3 + $0xb0] ss:$28 sps:$4 sm:$0xff]  }
 0x209   : > { %v1255_v29 = vadd.f32 %v11351_v63, %v1254_v27  ;;  %v10025_v30 = vpop.f32.mrb[131].mxu0  ;;  %9661 = vmatpush3.bf16.msra.mxu1 %v1704_v28  ;;  %10643 = vtanh.f32 %v1252_v24  ;;  %v10352_v25 = vld [vmem:[%s16423_s3 + $0xec] ss:$28 sps:$4 sm:$0xff]  }
 0x20b   : > { %10645 = vtanh.f32 %v1255_v29  ;;  %v10640_v31 = vpop.eup %10639 }
 0x20d   : > { %v10642_v32 = vpop.eup %10641 }
 0x20e   : > { %v1515_v33 = vpack.c.bf16 %v10642_v32, %v10640_v31  ;;  %v1259_v35 = vpop.f32.mrb[132].mxu0 }
 0x20f   : > { %v1260_v36 = vadd.f32 %v11351_v63, %v1259_v35  ;;  %v10028_v37 = vpop.f32.mrb[133].mxu0  ;;  %v1713_v38 = vld [vmem:[#allocation2 + $0xf0] sm:$0xff] }
 0x210   : > { %1565 = vst.msk [vmem:[#allocation2 + $0xf8] sm:$0xff] %vm1533_vm4, %v1515_v33  ;;  %v1262_v39 = vpop.f32.mrb[134].mxu0  ;;  %9662 = vmatprep.subr.bf16.mxu1 %v1713_v38  ;;  %v10354_v33 = vld [vmem:[%s16423_s3 + $0xe8] ss:$28 sps:$4 sm:$0xff]  }
 0x211   : > { %v1263_v41 = vadd.f32 %v11351_v63, %v1262_v39  ;;  %v10029_v42 = vpop.f32.mrb[135].mxu0  ;;  %9663 = vmatpush3.bf16.msra.mxu1 %v1705_v40  ;;  %10647 = vtanh.f32 %v1260_v36  ;;  %v10355_v37 = vld [vmem:[%s16423_s3 + $0x124] ss:$28 sps:$4 sm:$0xff]  }
 0x213   : > { %10649 = vtanh.f32 %v1263_v41  ;;  %v10644_v43 = vpop.eup %10643 }
 0x215   : > { %v10646_v44 = vpop.eup %10645 }
 0x216   : > { %v1516_v45 = vpack.c.bf16 %v10646_v44, %v10644_v43  ;;  %v1267_v46 = vpop.f32.mrb[136].mxu0 }
 0x217   : > { %v1268_v47 = vadd.f32 %v11351_v63, %v1267_v46  ;;  %v10032_v48 = vpop.f32.mrb[137].mxu0  ;;  %v1714_v49 = vld [vmem:[#allocation2 + $0xf8] sm:$0xff] }
 0x218   : > { %1566 = vst.msk [vmem:[#allocation2 + $0x100] sm:$0xff] %vm1533_vm4, %v1516_v45  ;;  %v1270_v50 = vpop.f32.mrb[138].mxu0  ;;  %9664 = vmatprep.subr.bf16.mxu1 %v1714_v49  ;;  %v10357_v45 = vld [vmem:[%s16423_s3 + $0x120] ss:$28 sps:$4 sm:$0xff]  }
 0x219   : > { %v1271_v53 = vadd.f32 %v11351_v63, %v1270_v50  ;;  %v10033_v54 = vpop.f32.mrb[139].mxu0  ;;  %9665 = vmatpush3.bf16.msra.mxu1 %v1706_v51  ;;  %10651 = vtanh.f32 %v1268_v47  ;;  %v10358_v48 = vld [vmem:[%s16423_s3 + $0x15c] ss:$28 sps:$4 sm:$0xff]  }
 0x21b   : > { %10653 = vtanh.f32 %v1271_v53  ;;  %v10648_v56 = vpop.eup %10647 }
 0x21c   : > { %2385 = vmatmul.mubr.bf16.vlgmr.msra.gmra.mrb[52].mxu1 %v10340_v52 }
 0x21d   : > { %v10650_v57 = vpop.eup %10649  ;;  %2392 = vmatprep.mubr.bf16.mxu1 %v10343_v55 }
 0x21e   : > { %v1517_v58 = vpack.c.bf16 %v10650_v57, %v10648_v56  ;;  %v1275_v59 = vpop.f32.mrb[140].mxu0  ;;  %v10360_v56 = vld [vmem:[%s16423_s3 + $0x158] ss:$28 sps:$4 sm:$0xff]  }
 0x21f   : > { %v1276_v60 = vadd.f32 %v11351_v63, %v1275_v59  ;;  %v10036_v61 = vpop.f32.mrb[141].mxu0  ;;  %v10361_v59 = vld [vmem:[%s16423_s3 + $0x194] ss:$28 sps:$4 sm:$0xff]  }
 0x220   : > { %1567 = vst.msk [vmem:[#allocation2 + $0x108] sm:$0xff] %vm1533_vm4, %v1517_v58  ;;  %v1278_v62 = vpop.f32.mrb[142].mxu0 }
 0x221   : > { %v1279_v2 = vadd.f32 %v11351_v63, %v1278_v62  ;;  %v10037_v34 = vpop.f32.mrb[143].mxu0  ;;  %10655 = vtanh.f32 %v1276_v60 }
 0x223   : > { %10657 = vtanh.f32 %v1279_v2  ;;  %v10652_v4 = vpop.eup %10651 }
 0x224   : > { %2393 = vmatmul.mubr.bf16.gmra.mrb[56].mxu1 %v10345_v0 }
 0x225   : > { %v10654_v5 = vpop.eup %10653  ;;  %2400 = vmatprep.mubr.bf16.mxu1 %v10346_v3 }
 0x226   : > { %v1518_v6 = vpack.c.bf16 %v10654_v5, %v10652_v4  ;;  %v1283_v7 = vpop.f32.mrb[144].mxu0  ;;  %v10363_v4 = vld [vmem:[%s16423_s3 + $0x190] ss:$28 sps:$4 sm:$0xff]  }
 0x227   : > { %v1284_v8 = vadd.f32 %v11351_v63, %v1283_v7  ;;  %v10040_v9 = vpop.f32.mrb[145].mxu0  ;;  %v10364_v7 = vld [vmem:[%s16423_s3 + $0x1cc] ss:$28 sps:$4 sm:$0xff]  }
 0x228   : > { %1568 = vst.msk [vmem:[#allocation2 + $0x110] sm:$0xff] %vm1533_vm4, %v1518_v6  ;;  %v1286_v10 = vpop.f32.mrb[146].mxu0 }
 0x229   : > { %v1287_v12 = vadd.f32 %v11351_v63, %v1286_v10  ;;  %v10041_v13 = vpop.f32.mrb[147].mxu0  ;;  %10659 = vtanh.f32 %v1284_v8 }
 0x22b   : > { %10661 = vtanh.f32 %v1287_v12  ;;  %v10656_v15 = vpop.eup %10655 }
 0x22c   : > { %2401 = vmatmul.mubr.bf16.gmra.mrb[60].mxu1 %v10348_v11 }
 0x22d   : > { %v10658_v16 = vpop.eup %10657  ;;  %2408 = vmatprep.mubr.bf16.mxu1 %v10349_v14 }
 0x22e   : > { %v1519_v17 = vpack.c.bf16 %v10658_v16, %v10656_v15  ;;  %v1291_v18 = vpop.f32.mrb[148].mxu0  ;;  %v10366_v15 = vld [vmem:[%s16423_s3 + $0x1c8] ss:$28 sps:$4 sm:$0xff]  }
 0x22f   : > { %v1292_v19 = vadd.f32 %v11351_v63, %v1291_v18  ;;  %v10044_v20 = vpop.f32.mrb[149].mxu0  ;;  %v10367_v18 = vld [vmem:[%s16423_s3 + $0x204] ss:$28 sps:$4 sm:$0xff]  }
 0x230   : > { %1569 = vst.msk [vmem:[#allocation2 + $0x118] sm:$0xff] %vm1533_vm4, %v1519_v17  ;;  %v1294_v21 = vpop.f32.mrb[150].mxu0 }
 0x231   : > { %v1295_v23 = vadd.f32 %v11351_v63, %v1294_v21  ;;  %v10045_v24 = vpop.f32.mrb[151].mxu0  ;;  %10663 = vtanh.f32 %v1292_v19 }
 0x233   : > { %10665 = vtanh.f32 %v1295_v23  ;;  %v10660_v26 = vpop.eup %10659 }
 0x234   : > { %2409 = vmatmul.mubr.bf16.gmra.mrb[64].mxu1 %v10351_v22 }
 0x235   : > { %v10662_v27 = vpop.eup %10661  ;;  %2416 = vmatprep.mubr.bf16.mxu1 %v10352_v25 }
 0x236   : > { %v1520_v28 = vpack.c.bf16 %v10662_v27, %v10660_v26  ;;  %v1299_v29 = vpop.f32.mrb[152].mxu0  ;;  %v1715_v27 = vld [vmem:[#allocation2 + $0x100] sm:$0xff] }
 0x237   : > { %v1300_v30 = vadd.f32 %v11351_v63, %v1299_v29  ;;  %v10048_v31 = vpop.f32.mrb[153].mxu0 }
 0x238   : > { %1570 = vst.msk [vmem:[#allocation2 + $0x120] sm:$0xff] %vm1533_vm4, %v1520_v28  ;;  %v1302_v32 = vpop.f32.mrb[154].mxu0  ;;  %v10369_v28 = vld [vmem:[%s16423_s3 + $0x200] ss:$28 sps:$4 sm:$0xff]  }
 0x239   : > { %v1303_v35 = vadd.f32 %v11351_v63, %v1302_v32  ;;  %v10049_v36 = vpop.f32.mrb[155].mxu0  ;;  %10667 = vtanh.f32 %v1300_v30  ;;  %v10370_v31 = vld [vmem:[%s16423_s3 + $0x23c] ss:$28 sps:$4 sm:$0xff]  }
 0x23b   : > { %10669 = vtanh.f32 %v1303_v35  ;;  %v10664_v38 = vpop.eup %10663 }
 0x23c   : > { %2417 = vmatmul.mubr.bf16.gmra.mrb[68].mxu1 %v10354_v33 }
 0x23d   : > { %v10666_v39 = vpop.eup %10665  ;;  %2424 = vmatprep.mubr.bf16.mxu1 %v10355_v37 }
 0x23e   : > { %v1521_v40 = vpack.c.bf16 %v10666_v39, %v10664_v38  ;;  %v1307_v41 = vpop.f32.mrb[156].mxu0 }
 0x23f   : > { %v1308_v42 = vadd.f32 %v11351_v63, %v1307_v41  ;;  %v10052_v43 = vpop.f32.mrb[157].mxu0  ;;  %v1716_v41 = vld [vmem:[#allocation2 + $0x108] sm:$0xff] }
 0x240   : > { %1571 = vst.msk [vmem:[#allocation2 + $0x128] sm:$0xff] %vm1533_vm4, %v1521_v40  ;;  %v1310_v44 = vpop.f32.mrb[158].mxu0 }
 0x241   : > { %v1311_v46 = vadd.f32 %v11351_v63, %v1310_v44  ;;  %v10053_v47 = vpop.f32.mrb[159].mxu0  ;;  %10671 = vtanh.f32 %v1308_v42  ;;  %v10372_v42 = vld [vmem:[%s16423_s3 + $0x238] ss:$28 sps:$4 sm:$0xff]  }
 0x243   : > { %10673 = vtanh.f32 %v1311_v46  ;;  %v10668_v49 = vpop.eup %10667 }
 0x244   : > { %2425 = vmatmul.mubr.bf16.gmra.mrb[72].mxu1 %v10357_v45  ;;  %v10373_v45 = vld [vmem:[%s16423_s3 + $0x274] ss:$28 sps:$4 sm:$0xff]  }
 0x245   : > { %v10670_v50 = vpop.eup %10669  ;;  %2432 = vmatprep.mubr.bf16.mxu1 %v10358_v48 }
 0x246   : > { %v1522_v51 = vpack.c.bf16 %v10670_v50, %v10668_v49  ;;  %v1315_v52 = vpop.f32.mrb[160].mxu0  ;;  %v1680_v50 = vld [vmem:[%s16423_s3 + $0x2a8] sm:$0xff] }
 0x247   : > { %v1316_v53 = vadd.f32 %v11351_v63, %v1315_v52  ;;  %v10056_v54 = vpop.f32.mrb[161].mxu0 }
 0x248   : > { %1572 = vst.msk [vmem:[#allocation2 + $0x130] sm:$0xff] %vm1533_vm4, %v1522_v51  ;;  %v1318_v55 = vpop.f32.mrb[162].mxu0 }
 0x249   : > { %v1319_v57 = vadd.f32 %v11351_v63, %v1318_v55  ;;  %v10057_v58 = vpop.f32.mrb[163].mxu0  ;;  %10675 = vtanh.f32 %v1316_v53 }
 0x24b   : > { %10677 = vtanh.f32 %v1319_v57  ;;  %v10672_v60 = vpop.eup %10671  ;;  %v10375_v57 = vld [vmem:[%s16423_s3 + $0x270] ss:$28 sps:$4 sm:$0xff]  }
 0x24c   : > { %2433 = vmatmul.mubr.bf16.gmra.mrb[76].mxu1 %v10360_v56  ;;  %v1717_v56 = vld [vmem:[#allocation2 + $0x110] sm:$0xff] }
 0x24d   : > { %v10674_v61 = vpop.eup %10673  ;;  %2440 = vmatprep.mubr.bf16.mxu1 %v10361_v59 }
 0x24e   : > { %v1523_v62 = vpack.c.bf16 %v10674_v61, %v10672_v60  ;;  %v1323_v0 = vpop.f32.mrb[164].mxu0  ;;  %v9303_v61 = vcombine.high %v1680_v50, %v1680_v50 }
 0x24f   : > { %v1324_v2 = vadd.f32 %v11351_v63, %v1323_v0  ;;  %v10060_v34 = vpop.f32.mrb[165].mxu0 }
 0x250   : > { %1573 = vst.msk [vmem:[#allocation2 + $0x138] sm:$0xff] %vm1533_vm4, %v1523_v62  ;;  %v1326_v3 = vpop.f32.mrb[166].mxu0 }
 0x251   : > { %v1327_v5 = vadd.f32 %v11351_v63, %v1326_v3  ;;  %v10061_v6 = vpop.f32.mrb[167].mxu0  ;;  %10679 = vtanh.f32 %v1324_v2 }
 0x253   : > { %10681 = vtanh.f32 %v1327_v5  ;;  %v10676_v8 = vpop.eup %10675 }
 0x254   : > { %2441 = vmatmul.mubr.bf16.gmra.mrb[80].mxu1 %v10363_v4 }
 0x255   : > { %v10678_v9 = vpop.eup %10677  ;;  %2448 = vmatprep.mubr.bf16.mxu1 %v10364_v7 }
 0x256   : > { %v1524_v10 = vpack.c.bf16 %v10678_v9, %v10676_v8  ;;  %v1331_v11 = vpop.f32.mrb[168].mxu0 }
 0x257   : > { %v1332_v12 = vadd.f32 %v11351_v63, %v1331_v11  ;;  %v10064_v13 = vpop.f32.mrb[169].mxu0 }
 0x258   : > { %1574 = vst.msk [vmem:[#allocation2 + $0x140] sm:$0xff] %vm1533_vm4, %v1524_v10  ;;  %v1334_v14 = vpop.f32.mrb[170].mxu0  ;;  %v9302_v13 = vcombine.low %v1680_v50, %v1680_v50 }
 0x259   : > { %v1335_v16 = vadd.f32 %v11351_v63, %v1334_v14  ;;  %v10065_v17 = vpop.f32.mrb[171].mxu0  ;;  %10683 = vtanh.f32 %v1332_v12  ;;  %v1718_v12 = vld [vmem:[#allocation2 + $0x118] sm:$0xff] }
 0x25a   : > { %v10380_v17 = vld [vmem:[%s16423_s3 + $0x14] ss:$28 sps:$4 sm:$0xff]  }
 0x25b   : > { %10685 = vtanh.f32 %v1335_v16  ;;  %v10680_v19 = vpop.eup %10679 }
 0x25c   : > { %2449 = vmatmul.mubr.bf16.gmra.mrb[84].mxu1 %v10366_v15 }
 0x25d   : > { %v10682_v20 = vpop.eup %10681  ;;  %2456 = vmatprep.mubr.bf16.mxu1 %v10367_v18 }
 0x25e   : > { %v1525_v21 = vpack.c.bf16 %v10682_v20, %v10680_v19  ;;  %v1339_v22 = vpop.f32.mrb[172].mxu0 }
 0x25f   : > { %v1340_v23 = vadd.f32 %v11351_v63, %v1339_v22  ;;  %v10068_v24 = vpop.f32.mrb[173].mxu0  ;;  %v1723_v25 = vld [vmem:[#allocation2 + $0x140] sm:$0xff] }
 0x260   : > { %1575 = vst.msk [vmem:[#allocation2 + $0x148] sm:$0xff] %vm1533_vm4, %v1525_v21  ;;  %v1342_v26 = vpop.f32.mrb[174].mxu0  ;;  %9744 = vmatprep.subr.bf16.mxu1 %v1723_v25 }
 0x261   : > { %v1343_v29 = vadd.f32 %v11351_v63, %v1342_v26  ;;  %9745 = vmatpush3.bf16.msra.mxu1 %v1715_v27  ;;  %v10069_v30 = vpop.f32.mrb[175].mxu0  ;;  %10687 = vtanh.f32 %v1340_v23 }
 0x263   : > { %10689 = vtanh.f32 %v1343_v29  ;;  %v10684_v32 = vpop.eup %10683 }
 0x264   : > { %2457 = vmatmul.mubr.bf16.gmra.mrb[88].mxu1 %v10369_v28 }
 0x265   : > { %v10686_v33 = vpop.eup %10685  ;;  %2464 = vmatprep.mubr.bf16.mxu1 %v10370_v31  ;;  %v1719_v31 = vld [vmem:[#allocation2 + $0x120] sm:$0xff] }
 0x266   : > { %v1526_v35 = vpack.c.bf16 %v10686_v33, %v10684_v32  ;;  %v1347_v36 = vpop.f32.mrb[176].mxu0 }
 0x267   : > { %v1348_v37 = vadd.f32 %v11351_v63, %v1347_v36  ;;  %v10072_v38 = vpop.f32.mrb[177].mxu0  ;;  %v1724_v39 = vld [vmem:[#allocation2 + $0x148] sm:$0xff] }
 0x268   : > { %1576 = vst.msk [vmem:[#allocation2 + $0x150] sm:$0xff] %vm1533_vm4, %v1526_v35  ;;  %v1350_v40 = vpop.f32.mrb[178].mxu0  ;;  %9746 = vmatprep.subr.bf16.mxu1 %v1724_v39 }
 0x269   : > { %v1351_v43 = vadd.f32 %v11351_v63, %v1350_v40  ;;  %9747 = vmatpush3.bf16.msra.mxu1 %v1716_v41  ;;  %v10073_v44 = vpop.f32.mrb[179].mxu0  ;;  %10691 = vtanh.f32 %v1348_v37 }
 0x26b   : > { %10693 = vtanh.f32 %v1351_v43  ;;  %v10688_v46 = vpop.eup %10687 }
 0x26c   : > { %2465 = vmatmul.mubr.bf16.gmra.mrb[92].mxu1 %v10372_v42 }
 0x26d   : > { %v10690_v47 = vpop.eup %10689  ;;  %2472 = vmatprep.mubr.bf16.mxu1 %v10373_v45 }
 0x26e   : > { %v1527_v48 = vpack.c.bf16 %v10690_v47, %v10688_v46  ;;  %v1355_v49 = vpop.f32.mrb[180].mxu0 }
 0x26f   : > { %v1356_v51 = vadd.f32 %v11351_v63, %v1355_v49  ;;  %v10076_v52 = vpop.f32.mrb[181].mxu0  ;;  %v1725_v53 = vld [vmem:[#allocation2 + $0x150] sm:$0xff]  ;;  %v9572_v54 = vpop.f32.mrb[0].mxu1 }
 0x270   : > { %1577 = vst.msk [vmem:[#allocation2 + $0x158] sm:$0xff] %vm1533_vm4, %v1527_v48  ;;  %v1358_v55 = vpop.f32.mrb[182].mxu0  ;;  %9748 = vmatprep.subr.bf16.mxu1 %v1725_v53  ;;  %v9573_v58 = vpop.f32.mrb[1].mxu1  ;;  %v1720_v48 = vld [vmem:[#allocation2 + $0x128] sm:$0xff] }
 0x271   : > { %v1359_v59 = vadd.f32 %v11351_v63, %v1358_v55  ;;  %9749 = vmatpush3.bf16.msra.mxu1 %v1717_v56  ;;  %v10077_v60 = vpop.f32.mrb[183].mxu0  ;;  %v11476_v62 = vadd.f32 %v9573_v58, %v9572_v54  ;;  %v9575_v0 = vpop.f32.mrb[2].mxu1  ;;  %10695 = vtanh.f32 %v1356_v51 }
 0x272   : > { %v9576_v2 = vpop.f32.mrb[3].mxu1 }
 0x273   : > { %10697 = vtanh.f32 %v1359_v59  ;;  %v11478_v34 = vadd.f32 %v9576_v2, %v9575_v0  ;;  %v10692_v3 = vpop.eup %10691  ;;  %v1721_v0 = vld [vmem:[#allocation2 + $0x130] sm:$0xff] }
 0x274   : > { %2473 = vmatmul.mubr.bf16.gmra.mrb[96].mxu1 %v10375_v57 }
 0x275   : > { %v10694_v4 = vpop.eup %10693  ;;  %2480 = vmatprep.mubr.bf16.mxu1 %v9303_v61 }
 0x276   : > { %v1528_v5 = vpack.c.bf16 %v10694_v4, %v10692_v3  ;;  %v1363_v6 = vpop.f32.mrb[184].mxu0 }
 0x277   : > { %v1364_v7 = vadd.f32 %v11351_v63, %v1363_v6  ;;  %v10080_v8 = vpop.f32.mrb[185].mxu0  ;;  %v1726_v9 = vld [vmem:[#allocation2 + $0x158] sm:$0xff]  ;;  %v9578_v10 = vpop.f32.mrb[4].mxu1 }
 0x278   : > { %1578 = vst.msk [vmem:[#allocation2 + $0x160] sm:$0xff] %vm1533_vm4, %v1528_v5  ;;  %v1366_v11 = vpop.f32.mrb[186].mxu0  ;;  %9750 = vmatprep.subr.bf16.mxu1 %v1726_v9  ;;  %v9579_v14 = vpop.f32.mrb[5].mxu1 }
 0x279   : > { %v1367_v15 = vadd.f32 %v11351_v63, %v1366_v11  ;;  %9751 = vmatpush3.bf16.msra.mxu1 %v1718_v12  ;;  %v10081_v16 = vpop.f32.mrb[187].mxu0  ;;  %v11486_v18 = vadd.f32 %v9579_v14, %v9578_v10  ;;  %v9581_v19 = vpop.f32.mrb[6].mxu1  ;;  %10699 = vtanh.f32 %v1364_v7  ;;  %v1722_v11 = vld [vmem:[#allocation2 + $0x138] sm:$0xff]  ;;  %v10378_v12 = vld [vmem:[%s16423_s3 + $0x10] ss:$28 sps:$4 sm:$0xff]  }
 0x27a   : > { %v9582_v20 = vpop.f32.mrb[7].mxu1  ;;  %v10381_v14 = vld [vmem:[%s16423_s3 + $0x4c] ss:$28 sps:$4 sm:$0xff]  }
 0x27b   : > { %10701 = vtanh.f32 %v1367_v15  ;;  %v11488_v21 = vadd.f32 %v9582_v20, %v9581_v19  ;;  %v10696_v22 = vpop.eup %10695 }
 0x27c   : > { %2481 = vmatmul.mubr.bf16.gmra.mrb[100].mxu1 %v9302_v13 }
 0x27d   : > { %v10698_v23 = vpop.eup %10697  ;;  %2520 = vmatprep.mubr.bf16.mxu1 %v10380_v17 }
 0x27e   : > { %v1529_v24 = vpack.c.bf16 %v10698_v23, %v10696_v22  ;;  %v1371_v25 = vpop.f32.mrb[188].mxu0  ;;  %v10383_v23 = vld [vmem:[%s16423_s3 + $0x48] ss:$28 sps:$4 sm:$0xff]  }
 0x27f   : > { %v1372_v26 = vadd.f32 %v11351_v63, %v1371_v25  ;;  %v10084_v27 = vpop.f32.mrb[189].mxu0  ;;  %v1727_v28 = vld [vmem:[#allocation2 + $0x160] sm:$0xff]  ;;  %v9584_v29 = vpop.f32.mrb[8].mxu1 }
 0x280   : > { %1579 = vst.msk [vmem:[#allocation2 + $0x168] sm:$0xff] %vm1533_vm4, %v1529_v24  ;;  %v1374_v30 = vpop.f32.mrb[190].mxu0  ;;  %9752 = vmatprep.subr.bf16.mxu1 %v1727_v28  ;;  %v9585_v32 = vpop.f32.mrb[9].mxu1  ;;  %v10384_v25 = vld [vmem:[%s16423_s3 + $0x84] ss:$28 sps:$4 sm:$0xff]  }
 0x281   : > { %v1375_v33 = vadd.f32 %v11351_v63, %v1374_v30  ;;  %9753 = vmatpush3.bf16.msra.mxu1 %v1719_v31  ;;  %v10085_v35 = vpop.f32.mrb[191].mxu0  ;;  %v11493_v36 = vadd.f32 %v9585_v32, %v9584_v29  ;;  %v9587_v37 = vpop.f32.mrb[10].mxu1  ;;  %10703 = vtanh.f32 %v1372_v26  ;;  %v10386_v31 = vld [vmem:[%s16423_s3 + $0x80] ss:$28 sps:$4 sm:$0xff]  }
 0x282   : > { %v9588_v38 = vpop.f32.mrb[11].mxu1 }
 0x283   : > { %10705 = vtanh.f32 %v1375_v33  ;;  %v11495_v39 = vadd.f32 %v9588_v38, %v9587_v37  ;;  %v10700_v40 = vpop.eup %10699  ;;  %v10387_v33 = vld [vmem:[%s16423_s3 + $0xbc] ss:$28 sps:$4 sm:$0xff]  }
 0x285   : > { %v10702_v41 = vpop.eup %10701 }
 0x286   : > { %v1530_v42 = vpack.c.bf16 %v10702_v41, %v10700_v40  ;;  %v1379_v43 = vpop.f32.mrb[192].mxu0 }
 0x287   : > { %v1728_v44 = vld [vmem:[#allocation2 + $0x168] sm:$0xff]  ;;  %v1380_v45 = vadd.f32 %v11351_v63, %v1379_v43  ;;  %v10088_v46 = vpop.f32.mrb[193].mxu0  ;;  %v9590_v47 = vpop.f32.mrb[12].mxu1 }
 0x288   : > { %1580 = vst.msk [vmem:[#allocation2 + $0x170] sm:$0xff] %vm1533_vm4, %v1530_v42  ;;  %9754 = vmatprep.subr.bf16.mxu1 %v1728_v44  ;;  %v1382_v49 = vpop.f32.mrb[194].mxu0  ;;  %v9591_v50 = vpop.f32.mrb[13].mxu1  ;;  %v10389_v42 = vld [vmem:[%s16423_s3 + $0xb8] ss:$28 sps:$4 sm:$0xff]  }
 0x289   : > { %9755 = vmatpush3.bf16.msra.mxu1 %v1720_v48  ;;  %10707 = vtanh.f32 %v1380_v45  ;;  %v1383_v51 = vadd.f32 %v11351_v63, %v1382_v49  ;;  %v10089_v52 = vpop.f32.mrb[195].mxu0  ;;  %v11500_v53 = vadd.f32 %v9591_v50, %v9590_v47  ;;  %v9593_v54 = vpop.f32.mrb[14].mxu1  ;;  %v10390_v44 = vld [vmem:[%s16423_s3 + $0xf4] ss:$28 sps:$4 sm:$0xff]  }
 0x28a   : > { %v9594_v55 = vpop.f32.mrb[15].mxu1  ;;  %v10392_v50 = vld [vmem:[%s16423_s3 + $0xf0] ss:$28 sps:$4 sm:$0xff]  }
 0x28b   : > { %10709 = vtanh.f32 %v1383_v51  ;;  %v11502_v56 = vadd.f32 %v9594_v55, %v9593_v54  ;;  %v10704_v57 = vpop.eup %10703  ;;  %v10393_v52 = vld [vmem:[%s16423_s3 + $0x12c] ss:$28 sps:$4 sm:$0xff]  }
 0x28d   : > { %v10706_v58 = vpop.eup %10705 }
 0x28e   : > { %v1531_v59 = vpack.c.bf16 %v10706_v58, %v10704_v57 }
 0x28f   : > { %v1729_v60 = vld [vmem:[#allocation2 + $0x170] sm:$0xff]  ;;  %v9596_v61 = vpop.f32.mrb[16].mxu1 }
 0x290   : > { %1581 = vst.msk [vmem:[#allocation2 + $0x178] sm:$0xff] %vm1533_vm4, %v1531_v59  ;;  %9756 = vmatprep.subr.bf16.mxu1 %v1729_v60  ;;  %v9597_v2 = vpop.f32.mrb[17].mxu1  ;;  %v10395_v60 = vld [vmem:[%s16423_s3 + $0x128] ss:$28 sps:$4 sm:$0xff]  }
 0x291   : > { %9757 = vmatpush3.bf16.msra.mxu1 %v1721_v0  ;;  %v11505_v63 = vadd.f32 %v9597_v2, %v9596_v61  ;;  %v9599_v3 = vpop.f32.mrb[18].mxu1  ;;  %v10396_v0 = vld [vmem:[%s16423_s3 + $0x164] ss:$28 sps:$4 sm:$0xff]  }
 0x292   : > { %v9600_v4 = vpop.f32.mrb[19].mxu1 }
 0x293   : > { %v10708_v5 = vpop.eup %10707  ;;  %v11507_v6 = vadd.f32 %v9600_v4, %v9599_v3 }
 0x295   : > { %v10710_v7 = vpop.eup %10709 }
 0x296   : > { %v1532_v8 = vpack.c.bf16 %v10710_v7, %v10708_v5 }
 0x297   : > { %v1730_v9 = vld [vmem:[#allocation2 + $0x178] sm:$0xff]  ;;  %v9602_v10 = vpop.f32.mrb[20].mxu1 }
 0x298   : > { %9758 = vmatprep.subr.bf16.mxu1 %v1730_v9  ;;  %1582 = vst.msk [vmem:[#allocation2 + $0x180] sm:$0xff] %vm1533_vm4, %v1532_v8  ;;  %v9603_v13 = vpop.f32.mrb[21].mxu1  ;;  %v10398_v8 = vld [vmem:[%s16423_s3 + $0x160] ss:$28 sps:$4 sm:$0xff]   ;;  %vm3842_vm4 = vcmask 1040384  }
 0x299   : > { %9759 = vmatpush3.bf16.msra.mxu1 %v1722_v11  ;;  %v11516_v15 = vadd.f32 %v9603_v13, %v9602_v10  ;;  %v9605_v16 = vpop.f32.mrb[22].mxu1  ;;  %v10399_v10 = vld [vmem:[%s16423_s3 + $0x19c] ss:$28 sps:$4 sm:$0xff]   ;;  %vm11929_vm11 = vmor %vm3842_vm4, %vm3843_vm10  ;;  %vm4962_vm4 = vsmask.f32 1280 }
 0x29a   : > { %10090 = vmatprep.subr.bf16.mxu1 %v16185_v1  ;;  %v9606_v17 = vpop.f32.mrb[23].mxu1  ;;  %vm4963_vm10 = vsmask.f32 5392 }
 0x29b   : > { %v11519_v19 = vadd.f32 %v9606_v17, %v9605_v16  ;;  %v10401_v17 = vld [vmem:[%s16423_s3 + $0x198] ss:$28 sps:$4 sm:$0xff]   ;;  %vm12170_vm15 = vmor %vm4962_vm4, %vm4963_vm10  ;;  %vm16279_vm4 = vcmask 93232   ;;  %vm16235_vm10 = vcmask 142432  }
 0x29c   : > { %2521 = vmatmul.mubr.bf16.vlgmr.msra.gmra.mrb[104].mxu1 %v10378_v12 }
 0x29d   : > { %2528 = vmatprep.mubr.bf16.mxu1 %v10381_v14 }
 0x29f   : > { %v1731_v20 = vld [vmem:[#allocation2 + $0x180] sm:$0xff]  ;;  %v9608_v22 = vpop.f32.mrb[24].mxu1 }
 0x2a0   : > { %10091 = vmatpush3.bf16.msra.mxu1 %v1731_v20  ;;  %v9609_v24 = vpop.f32.mrb[25].mxu1 }
 0x2a1   : > { %v11527_v26 = vadd.f32 %v9609_v24, %v9608_v22  ;;  %v9611_v27 = vpop.f32.mrb[26].mxu1  ;;  %v10402_v22 = vld [vmem:[%s16423_s3 + $0x1d4] ss:$28 sps:$4 sm:$0xff]  }
 0x2a2   : > { %v9612_v28 = vpop.f32.mrb[27].mxu1 }
 0x2a3   : > { %v11529_v29 = vadd.f32 %v9612_v28, %v9611_v27  ;;  %v10404_v27 = vld [vmem:[%s16423_s3 + $0x1d0] ss:$28 sps:$4 sm:$0xff]  }
 0x2a4   : > { %2529 = vmatmul.mubr.bf16.gmra.mrb[108].mxu1 %v10383_v23  ;;  %v10405_v28 = vld [vmem:[%s16423_s3 + $0x20c] ss:$28 sps:$4 sm:$0xff]  }
 0x2a5   : > { %2536 = vmatprep.mubr.bf16.mxu1 %v10384_v25 }
 0x2a7   : > { %v9614_v30 = vpop.f32.mrb[28].mxu1 }
 0x2a8   : > { %v9615_v32 = vpop.f32.mrb[29].mxu1 }
 0x2a9   : > { %v11537_v35 = vadd.f32 %v9615_v32, %v9614_v30  ;;  %v9617_v37 = vpop.f32.mrb[30].mxu1  ;;  %v10407_v30 = vld [vmem:[%s16423_s3 + $0x208] ss:$28 sps:$4 sm:$0xff]   ;;  %v10410_v32 = vld [vmem:[%s16423_s3 + $0x240] ss:$28 sps:$4 sm:$0xff]  }
 0x2aa   : > { %v9618_v38 = vpop.f32.mrb[31].mxu1 }
 0x2ab   : > { %v11539_v40 = vadd.f32 %v9618_v38, %v9617_v37  ;;  %v1681_v37 = vld [vmem:[%s16423_s3 + $0x2b0] sm:$0xff] }
 0x2ac   : > { %2537 = vmatmul.mubr.bf16.gmra.mrb[112].mxu1 %v10386_v31  ;;  %v10408_v31 = vld [vmem:[%s16423_s3 + $0x244] ss:$28 sps:$4 sm:$0xff]  }
 0x2ad   : > { %2544 = vmatprep.mubr.bf16.mxu1 %v10387_v33  ;;  %v10411_v33 = vld [vmem:[%s16423_s3 + $0x27c] ss:$28 sps:$4 sm:$0xff]  }
 0x2af   : > { %v9620_v41 = vpop.f32.mrb[32].mxu1 }
 0x2b0   : > { %v9621_v43 = vpop.f32.mrb[33].mxu1 }
 0x2b1   : > { %v11547_v45 = vadd.f32 %v9621_v43, %v9620_v41  ;;  %v9623_v46 = vpop.f32.mrb[34].mxu1 }
 0x2b2   : > { %v9624_v47 = vpop.f32.mrb[35].mxu1 }
 0x2b3   : > { %v11549_v48 = vadd.f32 %v9624_v47, %v9623_v46  ;;  %v9305_v46 = vcombine.high %v1681_v37, %v1681_v37 }
 0x2b4   : > { %2545 = vmatmul.mubr.bf16.gmra.mrb[116].mxu1 %v10389_v42  ;;  %v10413_v42 = vld [vmem:[%s16423_s3 + $0x278] ss:$28 sps:$4 sm:$0xff]  }
 0x2b5   : > { %2552 = vmatprep.mubr.bf16.mxu1 %v10390_v44 }
 0x2b7   : > { %v9626_v49 = vpop.f32.mrb[36].mxu1 }
 0x2b8   : > { %v9627_v51 = vpop.f32.mrb[37].mxu1 }
 0x2b9   : > { %v11557_v54 = vadd.f32 %v9627_v51, %v9626_v49  ;;  %v9629_v55 = vpop.f32.mrb[38].mxu1 }
 0x2ba   : > { %v9630_v57 = vpop.f32.mrb[39].mxu1 }
 0x2bb   : > { %v11559_v58 = vadd.f32 %v9630_v57, %v9629_v55  ;;  %v9304_v57 = vcombine.low %v1681_v37, %v1681_v37 }
 0x2bc   : > { %2553 = vmatmul.mubr.bf16.gmra.mrb[120].mxu1 %v10392_v50 }
 0x2bd   : > { %2560 = vmatprep.mubr.bf16.mxu1 %v10393_v52 }
 0x2bf   : > { %v9632_v59 = vpop.f32.mrb[40].mxu1 }
 0x2c0   : > { %v9633_v61 = vpop.f32.mrb[41].mxu1 }
 0x2c1   : > { %v11567_v2 = vadd.f32 %v9633_v61, %v9632_v59  ;;  %v9635_v3 = vpop.f32.mrb[42].mxu1 }
 0x2c2   : > { %v9636_v4 = vpop.f32.mrb[43].mxu1 }
 0x2c3   : > { %v11569_v5 = vadd.f32 %v9636_v4, %v9635_v3 }
 0x2c4   : > { %2561 = vmatmul.mubr.bf16.gmra.mrb[124].mxu1 %v10395_v60 }
 0x2c5   : > { %2568 = vmatprep.mubr.bf16.mxu1 %v10396_v0 }
 0x2c7   : > { %v9638_v7 = vpop.f32.mrb[44].mxu1 }
 0x2c8   : > { %v9639_v9 = vpop.f32.mrb[45].mxu1 }
 0x2c9   : > { %v11577_v11 = vadd.f32 %v9639_v9, %v9638_v7  ;;  %v9641_v12 = vpop.f32.mrb[46].mxu1  ;;  %v10416_v7 = vld [vmem:[%s16423_s3 + $0x18] ss:$28 sps:$4 sm:$0xff]  }
 0x2ca   : > { %v9642_v13 = vpop.f32.mrb[47].mxu1 }
 0x2cb   : > { %v11579_v14 = vadd.f32 %v9642_v13, %v9641_v12 }
 0x2cc   : > { %2569 = vmatmul.mubr.bf16.gmra.mrb[128].mxu1 %v10398_v8 }
 0x2cd   : > { %2576 = vmatprep.mubr.bf16.mxu1 %v10399_v10 }
 0x2cf   : > { %v9644_v16 = vpop.f32.mrb[48].mxu1 }
 0x2d0   : > { %v9645_v20 = vpop.f32.mrb[49].mxu1 }
 0x2d1   : > { %v11587_v23 = vadd.f32 %v9645_v20, %v9644_v16  ;;  %v9647_v24 = vpop.f32.mrb[50].mxu1 }
 0x2d2   : > { %v9648_v25 = vpop.f32.mrb[51].mxu1 }
 0x2d4   : > { %2577 = vmatmul.mubr.bf16.gmra.mrb[132].mxu1 %v10401_v17  ;;  %v10417_v17 = vld [vmem:[%s16423_s3 + $0x50] ss:$28 sps:$4 sm:$0xff]  }
 0x2d5   : > { %2584 = vmatprep.mubr.bf16.mxu1 %v10402_v22 }
 0x2dc   : > { %2585 = vmatmul.mubr.bf16.gmra.mrb[136].mxu1 %v10404_v27 }
 0x2dd   : > { %2592 = vmatprep.mubr.bf16.mxu1 %v10405_v28 }
 0x2e4   : > { %2593 = vmatmul.mubr.bf16.gmra.mrb[140].mxu1 %v10407_v30  ;;  %v10418_v30 = vld [vmem:[%s16423_s3 + $0x88] ss:$28 sps:$4 sm:$0xff]  }
 0x2e5   : > { %2600 = vmatprep.mubr.bf16.mxu1 %v10408_v31 }
 0x2ec   : > { %2601 = vmatmul.mubr.bf16.gmra.mrb[144].mxu1 %v10410_v32 }
 0x2ed   : > { %2608 = vmatprep.mubr.bf16.mxu1 %v10411_v33 }
 0x2ef   : > { %v9666_v38 = vpop.f32.mrb[52].mxu1 }
 0x2f0   : > { %v9667_v41 = vpop.f32.mrb[53].mxu1 }
 0x2f1   : > { %v9668_v43 = vadd.f32 %v9667_v41, %v9666_v38  ;;  %v9669_v44 = vpop.f32.mrb[54].mxu1 }
 0x2f2   : > { %v9670_v47 = vpop.f32.mrb[55].mxu1 }
 0x2f3   : > { %v11614_v49 = vadd.f32 %v9668_v43, %v11476_v62  ;;  %v9671_v50 = vadd.f32 %v9670_v47, %v9669_v44 }
 0x2f4   : > { %2609 = vmatmul.mubr.bf16.gmra.mrb[148].mxu1 %v10413_v42  ;;  %v10419_v42 = vld [vmem:[%s16423_s3 + $0xc0] ss:$28 sps:$4 sm:$0xff]  }
 0x2f5   : > { %v11617_v51 = vadd.f32 %v9671_v50, %v11478_v34  ;;  %2616 = vmatprep.mubr.bf16.mxu1 %v9305_v46 }
 0x2f7   : > { %v9672_v52 = vpop.f32.mrb[56].mxu1 }
 0x2f8   : > { %v9673_v55 = vpop.f32.mrb[57].mxu1 }
 0x2f9   : > { %v9674_v59 = vadd.f32 %v9673_v55, %v9672_v52  ;;  %v9675_v60 = vpop.f32.mrb[58].mxu1  ;;  %v10420_v55 = vld [vmem:[%s16423_s3 + $0xf8] ss:$28 sps:$4 sm:$0xff]  }
 0x2fa   : > { %v9676_v61 = vpop.f32.mrb[59].mxu1 }
 0x2fb   : > { %v11620_v0 = vadd.f32 %v9674_v59, %v11486_v18  ;;  %v9677_v3 = vadd.f32 %v9676_v61, %v9675_v60 }
 0x2fc   : > { %2617 = vmatmul.mubr.bf16.gmra.mrb[152].mxu1 %v9304_v57 }
 0x2fd   : > { %v11623_v62 = vadd.f32 %v9677_v3, %v11488_v21  ;;  %10092 = vmatprep.mubr.msk.bf16.mxu1 %vm16200_vm2, %v16185_v1 }
 0x2ff   : > { %v9678_v34 = vpop.f32.mrb[60].mxu1 }
 0x300   : > { %v9679_v4 = vpop.f32.mrb[61].mxu1 }
 0x301   : > { %v9680_v8 = vadd.f32 %v9679_v4, %v9678_v34  ;;  %v9681_v9 = vpop.f32.mrb[62].mxu1  ;;  %v10421_v4 = vld [vmem:[%s16423_s3 + $0x130] ss:$28 sps:$4 sm:$0xff]  }
 0x302   : > { %v9682_v10 = vpop.f32.mrb[63].mxu1 }
 0x303   : > { %v11631_v18 = vadd.f32 %v9680_v8, %v11493_v36  ;;  %v9683_v12 = vadd.f32 %v9682_v10, %v9681_v9 }
 0x304   : > { %10093 = vmatmul.mubr.msk.bf16.vlgmr.msra.gmra.mrb[156].mxu1 %vm16193_vm5, %v10416_v7 }
 0x305   : > { %v11635_v21 = vadd.f32 %v9683_v12, %v11495_v39  ;;  %10096 = vmatprep.mubr.msk.bf16.mxu1 %vm16200_vm2, %v16185_v1 }
 0x307   : > { %v9684_v13 = vpop.f32.mrb[64].mxu1 }
 0x308   : > { %v9685_v16 = vpop.f32.mrb[65].mxu1 }
 0x309   : > { %v9686_v20 = vadd.f32 %v9685_v16, %v9684_v13  ;;  %v9687_v22 = vpop.f32.mrb[66].mxu1  ;;  %v10422_v16 = vld [vmem:[%s16423_s3 + $0x168] ss:$28 sps:$4 sm:$0xff]  }
 0x30a   : > { %v9688_v24 = vpop.f32.mrb[67].mxu1 }
 0x30b   : > { %v11643_v36 = vadd.f32 %v9686_v20, %v11500_v53  ;;  %v9689_v25 = vadd.f32 %v9688_v24, %v9687_v22 }
 0x30c   : > { %10097 = vmatmul.mubr.msk.bf16.gmra.mrb[160].mxu1 %vm16193_vm5, %v10417_v17 }
 0x30d   : > { %v11647_v39 = vadd.f32 %v9689_v25, %v11502_v56  ;;  %10100 = vmatprep.mubr.msk.bf16.mxu1 %vm16200_vm2, %v16185_v1 }
 0x30f   : > { %v9690_v27 = vpop.f32.mrb[68].mxu1 }
 0x310   : > { %v9691_v28 = vpop.f32.mrb[69].mxu1 }
 0x311   : > { %v9692_v31 = vadd.f32 %v9691_v28, %v9690_v27  ;;  %v9693_v32 = vpop.f32.mrb[70].mxu1  ;;  %v10423_v28 = vld [vmem:[%s16423_s3 + $0x1a0] ss:$28 sps:$4 sm:$0xff]  }
 0x312   : > { %v9694_v33 = vpop.f32.mrb[71].mxu1 }
 0x313   : > { %v11655_v53 = vadd.f32 %v9692_v31, %v11505_v63  ;;  %v9695_v37 = vadd.f32 %v9694_v33, %v9693_v32 }
 0x314   : > { %10101 = vmatmul.mubr.msk.bf16.gmra.mrb[164].mxu1 %vm16193_vm5, %v10418_v30 }
 0x315   : > { %v11659_v56 = vadd.f32 %v9695_v37, %v11507_v6  ;;  %10104 = vmatprep.mubr.msk.bf16.mxu1 %vm16200_vm2, %v16185_v1 }
 0x317   : > { %v9696_v38 = vpop.f32.mrb[72].mxu1 }
 0x318   : > { %v9697_v41 = vpop.f32.mrb[73].mxu1 }
 0x319   : > { %v9698_v43 = vadd.f32 %v9697_v41, %v9696_v38  ;;  %v9699_v44 = vpop.f32.mrb[74].mxu1  ;;  %v10424_v41 = vld [vmem:[%s16423_s3 + $0x1d8] ss:$28 sps:$4 sm:$0xff]  }
 0x31a   : > { %v9700_v46 = vpop.f32.mrb[75].mxu1 }
 0x31b   : > { %v11667_v63 = vadd.f32 %v9698_v43, %v11516_v15  ;;  %v9701_v47 = vadd.f32 %v9700_v46, %v9699_v44 }
 0x31c   : > { %10105 = vmatmul.mubr.msk.bf16.gmra.mrb[168].mxu1 %vm16193_vm5, %v10419_v42 }
 0x31d   : > { %v11671_v6 = vadd.f32 %v9701_v47, %v11519_v19  ;;  %10108 = vmatprep.mubr.msk.bf16.mxu1 %vm16200_vm2, %v16185_v1 }
 0x31f   : > { %v9702_v50 = vpop.f32.mrb[76].mxu1 }
 0x320   : > { %v9703_v52 = vpop.f32.mrb[77].mxu1 }
 0x321   : > { %v9704_v57 = vadd.f32 %v9703_v52, %v9702_v50  ;;  %v9705_v59 = vpop.f32.mrb[78].mxu1  ;;  %v10425_v52 = vld [vmem:[%s16423_s3 + $0x210] ss:$28 sps:$4 sm:$0xff]  }
 0x322   : > { %v9706_v60 = vpop.f32.mrb[79].mxu1 }
 0x323   : > { %v11679_v15 = vadd.f32 %v9704_v57, %v11527_v26  ;;  %v9707_v61 = vadd.f32 %v9706_v60, %v9705_v59 }
 0x324   : > { %10109 = vmatmul.mubr.msk.bf16.gmra.mrb[172].mxu1 %vm16193_vm5, %v10420_v55 }
 0x325   : > { %v11683_v19 = vadd.f32 %v9707_v61, %v11529_v29  ;;  %10112 = vmatprep.mubr.msk.bf16.mxu1 %vm16200_vm2, %v16185_v1 }
 0x327   : > { %v9708_v3 = vpop.f32.mrb[80].mxu1 }
 0x328   : > { %v9709_v34 = vpop.f32.mrb[81].mxu1 }
 0x329   : > { %v9710_v7 = vadd.f32 %v9709_v34, %v9708_v3  ;;  %v9711_v8 = vpop.f32.mrb[82].mxu1  ;;  %v10426_v34 = vld [vmem:[%s16423_s3 + $0x248] ss:$28 sps:$4 sm:$0xff]  }
 0x32a   : > { %v9712_v9 = vpop.f32.mrb[83].mxu1 }
 0x32b   : > { %v11691_v26 = vadd.f32 %v9710_v7, %v11537_v35  ;;  %v9713_v10 = vadd.f32 %v9712_v9, %v9711_v8  ;;  %v10428_v9 = vld [vmem:[%s16423_s3 + $0x2b8] ss:$0 sps:$4 sm:$0xff]  }
 0x32c   : > { %10113 = vmatmul.mubr.msk.bf16.gmra.mrb[176].mxu1 %vm16193_vm5, %v10421_v4 }
 0x32d   : > { %v11695_v29 = vadd.f32 %v9713_v10, %v11539_v40  ;;  %10116 = vmatprep.mubr.msk.bf16.mxu1 %vm16200_vm2, %v16185_v1 }
 0x32f   : > { %v9714_v12 = vpop.f32.mrb[84].mxu1 }
 0x330   : > { %v9715_v13 = vpop.f32.mrb[85].mxu1 }
 0x331   : > { %v9716_v17 = vadd.f32 %v9715_v13, %v9714_v12  ;;  %v9717_v20 = vpop.f32.mrb[86].mxu1 }
 0x332   : > { %v9718_v22 = vpop.f32.mrb[87].mxu1 }
 0x333   : > { %v11703_v35 = vadd.f32 %v9716_v17, %v11547_v45  ;;  %v9719_v24 = vadd.f32 %v9718_v22, %v9717_v20 }
 0x334   : > { %10117 = vmatmul.mubr.msk.bf16.gmra.mrb[180].mxu1 %vm16193_vm5, %v10422_v16 }
 0x335   : > { %v11707_v40 = vadd.f32 %v9719_v24, %v11549_v48  ;;  %10120 = vmatprep.mubr.msk.bf16.mxu1 %vm16200_vm2, %v16185_v1 }
 0x337   : > { %v9720_v25 = vpop.f32.mrb[88].mxu1 }
 0x338   : > { %v9721_v27 = vpop.f32.mrb[89].mxu1 }
 0x339   : > { %v9722_v30 = vadd.f32 %v9721_v27, %v9720_v25  ;;  %v9723_v31 = vpop.f32.mrb[90].mxu1 }
 0x33a   : > { %v9724_v32 = vpop.f32.mrb[91].mxu1 }
 0x33b   : > { %v11715_v45 = vadd.f32 %v9722_v30, %v11557_v54  ;;  %v9725_v33 = vadd.f32 %v9724_v32, %v9723_v31 }
 0x33c   : > { %10121 = vmatmul.mubr.msk.bf16.gmra.mrb[184].mxu1 %vm16193_vm5, %v10423_v28 }
 0x33d   : > { %v11719_v48 = vadd.f32 %v9725_v33, %v11559_v58  ;;  %10124 = vmatprep.mubr.msk.bf16.mxu1 %vm16200_vm2, %v16185_v1 }
 0x33f   : > { %v9726_v37 = vpop.f32.mrb[92].mxu1 }
 0x340   : > { %v9727_v38 = vpop.f32.mrb[93].mxu1 }
 0x341   : > { %v9728_v42 = vadd.f32 %v9727_v38, %v9726_v37  ;;  %v9729_v43 = vpop.f32.mrb[94].mxu1 }
 0x342   : > { %v9730_v44 = vpop.f32.mrb[95].mxu1 }
 0x343   : > { %v11727_v54 = vadd.f32 %v9728_v42, %v11567_v2  ;;  %v9731_v46 = vadd.f32 %v9730_v44, %v9729_v43 }
 0x344   : > { %10125 = vmatmul.mubr.msk.bf16.gmra.mrb[188].mxu1 %vm16193_vm5, %v10424_v41 }
 0x345   : > { %v11731_v58 = vadd.f32 %v9731_v46, %v11569_v5  ;;  %10128 = vmatprep.mubr.msk.bf16.mxu1 %vm16200_vm2, %v16185_v1 }
 0x347   : > { %v9732_v47 = vpop.f32.mrb[96].mxu1 }
 0x348   : > { %v9733_v50 = vpop.f32.mrb[97].mxu1 }
 0x349   : > { %v9734_v55 = vadd.f32 %v9733_v50, %v9732_v47  ;;  %v9735_v57 = vpop.f32.mrb[98].mxu1 }
 0x34a   : > { %v9736_v59 = vpop.f32.mrb[99].mxu1 }
 0x34b   : > { %v11739_v2 = vadd.f32 %v9734_v55, %v11577_v11  ;;  %v9737_v60 = vadd.f32 %v9736_v59, %v9735_v57 }
 0x34c   : > { %10129 = vmatmul.mubr.msk.bf16.gmra.mrb[192].mxu1 %vm16193_vm5, %v10425_v52 }
 0x34d   : > { %v11743_v5 = vadd.f32 %v9737_v60, %v11579_v14  ;;  %10132 = vmatprep.mubr.msk.bf16.mxu1 %vm16200_vm2, %v16185_v1  ;;  %v10427_v14 = vld [vmem:[%s16423_s3 + $0x280] ss:$28 sps:$4 sm:$0xff]   ;;  %s16230_s3 = smov 4  }
 0x34f   : > { %v9738_v61 = vpop.f32.mrb[100].mxu1 }
 0x350   : > { %v9739_v3 = vpop.f32.mrb[101].mxu1 }
 0x351   : > { %v9740_v4 = vadd.f32 %v9739_v3, %v9738_v61  ;;  %v9741_v7 = vpop.f32.mrb[102].mxu1 }
 0x352   : > { %v9742_v8 = vpop.f32.mrb[103].mxu1 }
 0x353   : > { %v11751_v11 = vadd.f32 %v9740_v4, %v11587_v23 }
 0x354   : > { %10133 = vmatmul.mubr.msk.bf16.gmra.mrb[196].mxu1 %vm16193_vm5, %v10426_v34 }
 0x355   : > { %10136 = vmatprep.mubr.msk.bf16.mxu1 %vm16200_vm2, %v16185_v1 }
 0x35c   : > { %10137 = vmatmul.mubr.msk.bf16.gmra.mrb[200].mxu1 %vm16193_vm5, %v10427_v14 }
 0x35d   : > { %10140 = vmatprep.mubr.msk.bf16.mxu1 %vm16200_vm2, %v16185_v1  ;;  %vm16264_vm2 = vcmask 339232  }
 0x364   : > { %10141 = vmatmul.mubr.msk.bf16.gmra.mrb[204].mxu1 %vm16193_vm5, %v10428_v9  ;;  %vm16232_vm5 = vcmask 290032  }
 0x36f   : > { %v9760_v23 = vpop.f32.mrb[104].mxu1 }
 0x370   : > { %v9761_v10 = vpop.f32.mrb[105].mxu1 }
 0x371   : > { %v9762_v12 = vadd.f32 %v9761_v10, %v9760_v23  ;;  %v9763_v13 = vpop.f32.mrb[106].mxu1 }
 0x372   : > { %v9764_v16 = vpop.f32.mrb[107].mxu1 }
 0x373   : > { %v9765_v17 = vadd.f32 %v9764_v16, %v9763_v13  ;;  %v11767_v20 = vadd.f32 %v9762_v12, %v11614_v49 }
 0x375   : > { %v11770_v22 = vadd.f32 %v9765_v17, %v11617_v51 }
 0x377   : > { %v9766_v24 = vpop.f32.mrb[108].mxu1 }
 0x378   : > { %v9767_v25 = vpop.f32.mrb[109].mxu1 }
 0x379   : > { %v9768_v27 = vadd.f32 %v9767_v25, %v9766_v24  ;;  %v9769_v28 = vpop.f32.mrb[110].mxu1 }
 0x37a   : > { %v9770_v30 = vpop.f32.mrb[111].mxu1 }
 0x37b   : > { %v9771_v31 = vadd.f32 %v9770_v30, %v9769_v28  ;;  %v11773_v32 = vadd.f32 %v9768_v27, %v11620_v0 }
 0x37d   : > { %v11776_v33 = vadd.f32 %v9771_v31, %v11623_v62 }
 0x37f   : > { %v9772_v37 = vpop.f32.mrb[112].mxu1 }
 0x380   : > { %v9773_v38 = vpop.f32.mrb[113].mxu1 }
 0x381   : > { %v9774_v41 = vadd.f32 %v9773_v38, %v9772_v37  ;;  %v9775_v49 = vpop.f32.mrb[114].mxu1 }
 0x382   : > { %v9776_v42 = vpop.f32.mrb[115].mxu1 }
 0x383   : > { %v9777_v43 = vadd.f32 %v9776_v42, %v9775_v49  ;;  %v11779_v51 = vadd.f32 %v9774_v41, %v11631_v18 }
 0x385   : > { %v11782_v44 = vadd.f32 %v9777_v43, %v11635_v21 }
 0x387   : > { %v9778_v46 = vpop.f32.mrb[116].mxu1 }
 0x388   : > { %v9779_v47 = vpop.f32.mrb[117].mxu1 }
 0x389   : > { %v9780_v50 = vadd.f32 %v9779_v47, %v9778_v46  ;;  %v9781_v0 = vpop.f32.mrb[118].mxu1 }
 0x38a   : > { %v9782_v52 = vpop.f32.mrb[119].mxu1 }
 0x38b   : > { %v9783_v55 = vadd.f32 %v9782_v52, %v9781_v0  ;;  %v11785_v62 = vadd.f32 %v9780_v50, %v11643_v36 }
 0x38d   : > { %v11788_v57 = vadd.f32 %v9783_v55, %v11647_v39 }
 0x38f   : > { %v9784_v59 = vpop.f32.mrb[120].mxu1 }
 0x390   : > { %v9785_v60 = vpop.f32.mrb[121].mxu1 }
 0x391   : > { %v9786_v61 = vadd.f32 %v9785_v60, %v9784_v59  ;;  %v9787_v18 = vpop.f32.mrb[122].mxu1 }
 0x392   : > { %v9788_v3 = vpop.f32.mrb[123].mxu1 }
 0x393   : > { %v9789_v34 = vadd.f32 %v9788_v3, %v9787_v18  ;;  %v11791_v21 = vadd.f32 %v9786_v61, %v11655_v53 }
 0x395   : > { %v11794_v4 = vadd.f32 %v9789_v34, %v11659_v56 }
 0x397   : > { %v9790_v7 = vpop.f32.mrb[124].mxu1 }
 0x398   : > { %v9791_v8 = vpop.f32.mrb[125].mxu1 }
 0x399   : > { %v9792_v14 = vadd.f32 %v9791_v8, %v9790_v7  ;;  %v9793_v36 = vpop.f32.mrb[126].mxu1 }
 0x39a   : > { %v9794_v9 = vpop.f32.mrb[127].mxu1 }
 0x39b   : > { %v9795_v23 = vadd.f32 %v9794_v9, %v9793_v36  ;;  %v11797_v39 = vadd.f32 %v9792_v14, %v11667_v63 }
 0x39d   : > { %v11800_v10 = vadd.f32 %v9795_v23, %v11671_v6 }
 0x39f   : > { %v9796_v12 = vpop.f32.mrb[128].mxu1 }
 0x3a0   : > { %v9797_v13 = vpop.f32.mrb[129].mxu1 }
 0x3a1   : > { %v9798_v16 = vadd.f32 %v9797_v13, %v9796_v12  ;;  %v9799_v53 = vpop.f32.mrb[130].mxu1 }
 0x3a2   : > { %v9800_v17 = vpop.f32.mrb[131].mxu1 }
 0x3a3   : > { %v9801_v24 = vadd.f32 %v9800_v17, %v9799_v53  ;;  %v11803_v56 = vadd.f32 %v9798_v16, %v11679_v15 }
 0x3a5   : > { %v11806_v25 = vadd.f32 %v9801_v24, %v11683_v19 }
 0x3a7   : > { %v9802_v27 = vpop.f32.mrb[132].mxu1 }
 0x3a8   : > { %v9803_v28 = vpop.f32.mrb[133].mxu1 }
 0x3a9   : > { %v9804_v30 = vadd.f32 %v9803_v28, %v9802_v27  ;;  %v9805_v63 = vpop.f32.mrb[134].mxu1 }
 0x3aa   : > { %v9806_v31 = vpop.f32.mrb[135].mxu1 }
 0x3ab   : > { %v9807_v37 = vadd.f32 %v9806_v31, %v9805_v63  ;;  %v11809_v6 = vadd.f32 %v9804_v30, %v11691_v26 }
 0x3ad   : > { %v11812_v38 = vadd.f32 %v9807_v37, %v11695_v29 }
 0x3af   : > { %v9808_v41 = vpop.f32.mrb[136].mxu1 }
 0x3b0   : > { %v9809_v49 = vpop.f32.mrb[137].mxu1 }
 0x3b1   : > { %v9810_v42 = vadd.f32 %v9809_v49, %v9808_v41  ;;  %v9811_v15 = vpop.f32.mrb[138].mxu1 }
 0x3b2   : > { %v9812_v43 = vpop.f32.mrb[139].mxu1 }
 0x3b3   : > { %v9813_v46 = vadd.f32 %v9812_v43, %v9811_v15  ;;  %v11815_v19 = vadd.f32 %v9810_v42, %v11703_v35 }
 0x3b5   : > { %v11818_v47 = vadd.f32 %v9813_v46, %v11707_v40 }
 0x3b7   : > { %v9814_v50 = vpop.f32.mrb[140].mxu1 }
 0x3b8   : > { %v9815_v0 = vpop.f32.mrb[141].mxu1 }
 0x3b9   : > { %v9816_v52 = vadd.f32 %v9815_v0, %v9814_v50  ;;  %v9817_v26 = vpop.f32.mrb[142].mxu1 }
 0x3ba   : > { %v9818_v55 = vpop.f32.mrb[143].mxu1 }
 0x3bb   : > { %v9819_v59 = vadd.f32 %v9818_v55, %v9817_v26  ;;  %v11821_v29 = vadd.f32 %v9816_v52, %v11715_v45 }
 0x3bd   : > { %v11824_v60 = vadd.f32 %v9819_v59, %v11719_v48 }
 0x3bf   : > { %v9820_v61 = vpop.f32.mrb[144].mxu1 }
 0x3c0   : > { %v9821_v18 = vpop.f32.mrb[145].mxu1 }
 0x3c1   : > { %v9822_v3 = vadd.f32 %v9821_v18, %v9820_v61  ;;  %v9823_v35 = vpop.f32.mrb[146].mxu1 }
 0x3c2   : > { %v9824_v34 = vpop.f32.mrb[147].mxu1 }
 0x3c3   : > { %v9825_v7 = vadd.f32 %v9824_v34, %v9823_v35  ;;  %v11827_v40 = vadd.f32 %v9822_v3, %v11727_v54 }
 0x3c5   : > { %v11830_v8 = vadd.f32 %v9825_v7, %v11731_v58 }
 0x3c7   : > { %v9826_v14 = vpop.f32.mrb[148].mxu1 }
 0x3c8   : > { %v9827_v36 = vpop.f32.mrb[149].mxu1 }
 0x3c9   : > { %v9828_v9 = vadd.f32 %v9827_v36, %v9826_v14  ;;  %v9829_v45 = vpop.f32.mrb[150].mxu1 }
 0x3ca   : > { %v9830_v23 = vpop.f32.mrb[151].mxu1 }
 0x3cb   : > { %v9831_v12 = vadd.f32 %v9830_v23, %v9829_v45  ;;  %v11833_v48 = vadd.f32 %v9828_v9, %v11739_v2 }
 0x3cd   : > { %v11836_v13 = vadd.f32 %v9831_v12, %v11743_v5 }
 0x3cf   : > { %v9832_v16 = vpop.f32.mrb[152].mxu1 }
 0x3d0   : > { %v9833_v53 = vpop.f32.mrb[153].mxu1 }
 0x3d1   : > { %v9834_v17 = vadd.f32 %v9833_v53, %v9832_v16  ;;  %v9835_v54 = vpop.f32.mrb[154].mxu1 }
 0x3d2   : > { %v9836_v24 = vpop.f32.mrb[155].mxu1 }
 0x3d3   : > { %v11839_v58 = vadd.f32 %v9834_v17, %v11751_v11 }
 0x3d7   : > { %v2658_v27 = vpop.f32.mrb[156].mxu1 }
 0x3d8   : > { %v2659_v28 = vadd.f32 %v2658_v27, %v11767_v20  ;;  %v10094_v30 = vpop.f32.mrb[157].mxu1 }
 0x3d9   : > { %v2661_v63 = vpop.f32.mrb[158].mxu1 }
 0x3da   : > { %v9476_v31 = vpack.c.bf16 %v2659_v28, %v2659_v28  ;;  %v2662_v2 = vadd.f32 %v2661_v63, %v11770_v22  ;;  %v10095_v37 = vpop.f32.mrb[159].mxu1 }
 0x3dc   : > { %2862 = vst.msk [vmem:[#allocation3] sm:$0xf] %vm2861_vm6, %v9476_v31  ;;  %v9477_v5 = vpack.c.bf16 %v2662_v2, %v2662_v2 }
 0x3de   : > { %2863 = vst.msk [vmem:[#allocation3 + $0x4] sm:$0xf] %vm2861_vm6, %v9477_v5 }
 0x3df   : > { %v2666_v41 = vpop.f32.mrb[160].mxu1 }
 0x3e0   : > { %v2667_v49 = vadd.f32 %v2666_v41, %v11773_v32  ;;  %v10098_v11 = vpop.f32.mrb[161].mxu1 }
 0x3e1   : > { %v2669_v42 = vpop.f32.mrb[162].mxu1 }
 0x3e2   : > { %v9478_v20 = vpack.c.bf16 %v2667_v49, %v2667_v49  ;;  %v2670_v15 = vadd.f32 %v2669_v42, %v11776_v33  ;;  %v10099_v43 = vpop.f32.mrb[163].mxu1 }
 0x3e3   : > { %v3638_v22 = vld [vmem:[#allocation3] sm:$0xc] }
 0x3e4   : > { %v3198_v46 = vld [vmem:[#allocation3] sm:$0xe]  ;;  %2864 = vst.msk [vmem:[#allocation3 + $0x8] sm:$0xf] %vm2861_vm6, %v9478_v20  ;;  %v9479_v0 = vpack.c.bf16 %v2670_v15, %v2670_v15  ;;  %v9346_v59 = vrot.slane %v3638_v22, 10 }
 0x3e5   : > { %v2924_v50 = vld [vmem:[#allocation3] sm:$0xf]  ;;  %v3639_v55 = vld [vmem:[#allocation3 + $0x4] sm:$0xf]  ;;  %v9345_v18 = vrot.slane %v3198_v46, 9 }
 0x3e6   : > { %v2946_v52 = vshrl.u32 %v2924_v50, 16  ;;  %v3364_v26 = vld [vmem:[#allocation3] sm:$0xe]  ;;  %v3199_v33 = vld [vmem:[#allocation3 + $0x4] sm:$0xf]  ;;  %v3679_v3 = vrot.slane %v3639_v55, 6 }
 0x3e7   : > { %2865 = vst.msk [vmem:[#allocation3 + $0xc] sm:$0xf] %vm2861_vm6, %v9479_v0  ;;  %v3239_v35 = vrot.slane %v3199_v33, 5  ;;  %v11859_v34 = vld [vmem:[#allocation3 + $0x4] sm:$0xf]  ;;  %v2949_v14 = vshll.u32 %v2924_v50, 16 }
 0x3e8   : > { %v2948_v7 = vrot.slane %v2946_v52, 4  ;;  %v2674_v36 = vpop.f32.mrb[164].mxu1  ;;  %v3365_v9 = vld [vmem:[#allocation3 + $0x4] sm:$0xf]  ;;  %v3386_v45 = vshrl.u32 %v3364_v26, 16  ;;  %v3389_v23 = vshll.u32 %v3364_v26, 16  ;;  %v3680_v53 = vsel %vm11849_vm12, %v9346_v59, %v3679_v3 }
 0x3e9   : > { %v2675_v12 = vadd.f32 %v2674_v36, %v11779_v51  ;;  %v10102_v16 = vpop.f32.mrb[165].mxu1  ;;  %v3240_v17 = vsel %vm11854_vm14, %v9345_v18, %v3239_v35  ;;  %v2951_v54 = vrot.slane %v2949_v14, 5  ;;  %3730 = vrot.lane.b32.xlu0 %v3680_v53, %s16213_s20  ;;  %v2955_v27 = vshll.u32 %v11859_v34, 16  ;;  %v2887_v5 = vld [vmem:[#allocation3] sm:$0xf] }
 0x3ea   : > { %3290 = vrot.lane.b32.xlu1 %v3240_v17, %s16221_s16  ;;  %v2677_v24 = vpop.f32.mrb[166].mxu1  ;;  %v3388_v28 = vrot.slane %v3386_v45, 5  ;;  %v3391_v51 = vrot.slane %v3389_v23, 6  ;;  %v3395_v37 = vshrl.u32 %v3365_v9, 16  ;;  %v2888_v41 = vld [vmem:[#allocation3 + $0x4] sm:$0xf] }
 0x3eb   : > { %v9480_v30 = vpack.c.bf16 %v2675_v12, %v2675_v12  ;;  %v2678_v63 = vadd.f32 %v2677_v24, %v11782_v44  ;;  %v10103_v31 = vpop.f32.mrb[167].mxu1  ;;  %v2952_v2 = vor.u32 %v2951_v54, %v2948_v7  ;;  %v4236_v49 = vld [vmem:[#allocation3 + $0x8] sm:$0xf]  ;;  %v3398_v42 = vshll.u32 %v3365_v9, 16  ;;  %2905 = vst.msk [vmem:[#allocation4] sm:$0xf] %vm2861_vm6, %v2887_v5 }
 0x3ec   : > { %v11870_v11 = vld [vmem:[#allocation3 + $0x8] sm:$0xf]  ;;  %2906 = vst.msk [vmem:[#allocation4 + $0x8] sm:$0xf] %vm2861_vm6, %v2888_v41  ;;  %v3392_v43 = vor.u32 %v3391_v51, %v3388_v28  ;;  %v3397_v22 = vrot.slane %v3395_v37, 5  ;;  %v11887_v26 = vrot.slane %v2955_v27, 5 }
 0x3ed   : > { %2866 = vst.msk [vmem:[#allocation3 + $0x10] sm:$0xf] %vm2861_vm6, %v9480_v30  ;;  %v9481_v20 = vpack.c.bf16 %v2678_v63, %v2678_v63  ;;  %v2953_v15 = vrot.slane %v2952_v2, 4  ;;  %v11875_v44 = vld [vmem:[#allocation3 + $0x8] sm:$0xf]  ;;  %4272 = vrot.lane.b32.xlu0 %v4236_v49, %s16174_s21  ;;  %v3242_v0 = vrot.slane %v11870_v11, 5 }
 0x3ee   : > { %v4237_v46 = vld [vmem:[#allocation3 + $0xc] sm:$0xf]  ;;  %v3400_v52 = vrot.slane %v3398_v42, 6  ;;  %v2959_v55 = vshrl.u32 %v11859_v34, 16  ;;  %v3805_v59 = vld [vmem:[#allocation3 + $0x8] sm:$0xf] }
 0x3ef   : > { %2867 = vst.msk [vmem:[#allocation3 + $0x14] sm:$0xf] %vm2861_vm6, %v9481_v20  ;;  %4274 = vrot.lane.b32.xlu1 %v4237_v46, %s16174_s21  ;;  %v2682_v33 = vpop.f32.mrb[168].mxu1  ;;  %v3241_v18 = vrot.slane %v3239_v35, 4  ;;  %v3681_v7 = vrot.slane %v3679_v3, 4  ;;  %v3682_v14 = vrot.slane %v11875_v44, 6  ;;  %v2958_v45 = vsel %vm11880_vm1, %v2953_v15, %v11887_v26 }
 0x3f0   : > { %v2683_v36 = vadd.f32 %v2682_v33, %v11785_v62  ;;  %v10106_v9 = vpop.f32.mrb[169].mxu1  ;;  %v3393_v23 = vrot.slane %v3392_v43, 4  ;;  %v11895_v12 = vor.u32 %v3400_v52, %v3397_v22  ;;  %v3366_v16 = vld [vmem:[#allocation3 + $0x8] sm:$0xf]  ;;  %v16430_v62 = vmov 0 }
 0x3f1   : > { %3124 = vrot.lane.b32.xlu0 %v2958_v45, %s16166_s22  ;;  %v2685_v34 = vpop.f32.mrb[170].mxu1  ;;  %v3243_v3 = vsel %vm11854_vm14, %v3241_v18, %v3242_v0  ;;  %v16431_v62 = vsel %vm11904_vm8, 4294967295, %v16430_v62  ;;  %v3847_v35 = vrot.slane %v3805_v59, 7  ;;  %v11908_v53 = vld [vmem:[#allocation3 + $0xc] sm:$0xf]  ;;  %v2961_v28 = vrot.slane %v2959_v55, 4 }
 0x3f2   : > { %16432 = vst [vmem:[#allocation19_spill] sm:$0xff] %v16431_v62  ;;  %v11910_v17 = vld [vmem:[#allocation3 + $0x8] sm:$0xf]  ;;  %v9482_v54 = vpack.c.bf16 %v2683_v36, %v2683_v36  ;;  %v2686_v24 = vadd.f32 %v2685_v34, %v11788_v57  ;;  %v10107_v27 = vpop.f32.mrb[171].mxu1  ;;  %v3976_v51 = vld [vmem:[#allocation3 + $0xc] sm:$0xf]  ;;  %v3683_v30 = vsel %vm11849_vm12, %v3681_v7, %v3682_v14  ;;  %v3402_v57 = vsel %vm11904_vm8, %v3393_v23, %v11895_v12 }
 0x3f3   : > { %3292 = vrot.lane.b32.xlu1 %v3243_v3, %s16221_s16  ;;  %v3804_v63 = vld [vmem:[#allocation3 + $0x4] sm:$0x8]  ;;  %v3405_v31 = vshrl.u32 %v3366_v16, 16  ;;  %v3408_v2 = vshll.u32 %v3366_v16, 16  ;;  %v3850_v5 = vrot.slane %v11908_v53, 7  ;;  %v2965_v41 = vshll.u32 %v11910_v17, 16 }
 0x3f4   : > { %2868 = vst.msk [vmem:[#allocation3 + $0x18] sm:$0xf] %vm2861_vm6, %v9482_v54  ;;  %v9483_v37 = vpack.c.bf16 %v2686_v24, %v2686_v24  ;;  %v11924_v49 = vld [vmem:[#allocation3 + $0x8] sm:$0xf]  ;;  %v16433_v42 = vmov 0  ;;  %v3849_v20 = vrot.slane %v3847_v35, 4  ;;  %v2962_v52 = vor.u32 %v2961_v28, %v11887_v26 }
 0x3f5   : > { %3564 = vrot.lane.b32.xlu0 %v3402_v57, %s16211_s0  ;;  %v16434_v42 = vsel %vm11929_vm11, 4294967295, %v16433_v42  ;;  %v3407_v15 = vrot.slane %v3405_v31, 5  ;;  %v3410_v43 = vrot.slane %v3408_v2, 6  ;;  %v4011_v22 = vshrl.u32 %v3976_v51, 16  ;;  %v11949_v23 = vld [vmem:[#allocation3 + $0xc] sm:$0xf] }
 0x3f6   : > { %16435 = vst [vmem:[#allocation20_spill] sm:$0xff] %v16434_v42  ;;  %2869 = vst.msk [vmem:[#allocation3 + $0x1c] sm:$0xf] %vm2861_vm6, %v9483_v37  ;;  %v9347_v46 = vrot.slane %v3804_v63, 11  ;;  %v4002_v59 = vshrl.u32 %v11924_v49, 16  ;;  %v11940_v36 = vrot.slane %v2965_v41, 5  ;;  %v3851_v26 = vsel %vm11929_vm11, %v3849_v20, %v3850_v5 }
 0x3f7   : > { %3732 = vrot.lane.b32.xlu1 %v3683_v30, %s16213_s20  ;;  %v2690_v55 = vpop.f32.mrb[172].mxu1  ;;  %v11947_v45 = vor.u32 %v3410_v43, %v3407_v15  ;;  %v2963_v3 = vrot.slane %v2962_v52, 4  ;;  %v3403_v54 = vrot.slane %v11895_v12, 4  ;;  %v4617_v24 = vld [vmem:[#allocation3 + $0x8] sm:$0xe]  ;;  %v4014_v28 = vshll.u32 %v3976_v51, 16 }
 0x3f8   : > { %v2691_v33 = vadd.f32 %v2690_v55, %v11791_v21  ;;  %v10110_v18 = vpop.f32.mrb[173].mxu1  ;;  %v3848_v7 = vsel %vm11929_vm11, %v9347_v46, %v3847_v35  ;;  %v11951_v21 = vrot.slane %v4011_v22, 7  ;;  %v4004_v27 = vrot.slane %v4002_v59, 7  ;;  %v11966_v51 = vld [vmem:[#allocation3 + $0xc] sm:$0xf] }
 0x3f9   : > { %3900 = vrot.lane.b32.xlu0 %v3848_v7, %s16170_s1  ;;  %v2693_v9 = vpop.f32.mrb[174].mxu1  ;;  %v2968_v63 = vsel %vm11880_vm1, %v2963_v3, %v11940_v36  ;;  %v4655_v31 = vrot.slane %v11949_v23, 5  ;;  %v9349_v2 = vrot.slane %v4617_v24, 9  ;;  %v3244_v22 = vrot.slane %v3242_v0, 4  ;;  %v11981_v52 = vld [vmem:[#allocation3 + $0xc] sm:$0xf] }
 0x3fa   : > { %v9484_v16 = vpack.c.bf16 %v2691_v33, %v2691_v33  ;;  %v2694_v34 = vadd.f32 %v2693_v9, %v11794_v4  ;;  %v10111_v35 = vpop.f32.mrb[175].mxu1  ;;  %v3412_v4 = vsel %vm11904_vm8, %v3403_v54, %v11947_v45  ;;  %v4016_v12 = vor.u32 %v4014_v28, %v11951_v21  ;;  %v3974_v7 = vld [vmem:[#allocation3 + $0x4] sm:$0x8]  ;;  %v5650_v23 = vld [vmem:[#allocation3 + $0x14] sm:$0xf] }
 0x3fb   : > { %3902 = vrot.lane.b32.xlu1 %v3851_v26, %s16170_s1  ;;  %v4009_v57 = vrot.slane %v4004_v27, 4  ;;  %v4656_v15 = vsel %vm11854_vm14, %v9349_v2, %v4655_v31  ;;  %v3245_v46 = vrot.slane %v11966_v51, 5  ;;  %v3684_v11 = vrot.slane %v3682_v14, 4  ;;  %v4347_v35 = vld [vmem:[#allocation3 + $0xc] sm:$0xf] }
 0x3fc   : > { %2870 = vst.msk [vmem:[#allocation3 + $0x20] sm:$0xf] %vm2861_vm6, %v9484_v16  ;;  %v9485_v30 = vpack.c.bf16 %v2694_v34, %v2694_v34  ;;  %v3685_v0 = vrot.slane %v11981_v52, 6  ;;  %v3997_v44 = vshrl.u32 %v3974_v7, 16  ;;  %v4005_v14 = vshll.u32 %v11924_v49, 16 }
 0x3fd   : > { %3126 = vrot.lane.b32.xlu0 %v2968_v63, %s16166_s22  ;;  %v4017_v55 = vsel %vm11974_vm3, %v4009_v57, %v4016_v12  ;;  %v3246_v26 = vsel %vm11854_vm14, %v3244_v22, %v3245_v46  ;;  %v11998_v16 = vld [vmem:[#allocation3 + $0x10] sm:$0xf]  ;;  %v4239_v12 = vld [vmem:[#allocation3 + $0x14] sm:$0xf] }
 0x3fe   : > { %2871 = vst.msk [vmem:[#allocation3 + $0x24] sm:$0xf] %vm2861_vm6, %v9485_v30  ;;  %v3686_v3 = vsel %vm11849_vm12, %v3684_v11, %v3685_v0  ;;  %v4007_v28 = vor.u32 %v4005_v14, %v4004_v27  ;;  %v4658_v49 = vrot.slane %v11998_v16, 5  ;;  %v2969_v27 = vshrl.u32 %v11910_v17, 16  ;;  %v12025_v7 = vld [vmem:[#allocation3 + $0x10] sm:$0xf] }
 0x3ff   : > { %3566 = vrot.lane.b32.xlu1 %v3412_v4, %s16211_s0  ;;  %v2698_v37 = vpop.f32.mrb[176].mxu1 }
 0x400   : > { %v2699_v41 = vadd.f32 %v2698_v37, %v11797_v39  ;;  %v10114_v20 = vpop.f32.mrb[177].mxu1  ;;  %v9348_v37 = vrot.slane %v3997_v44, 11 }
 0x401   : > { %4706 = vrot.lane.b32.xlu0 %v4656_v15, %s16224_s23  ;;  %v2701_v39 = vpop.f32.mrb[178].mxu1  ;;  %v4657_v20 = vrot.slane %v4655_v31, 4  ;;  %v4378_v15 = vshrl.u32 %v4347_v35, 16  ;;  %v3247_v31 = vrot.slane %v3245_v46, 4 }
 0x402   : > { %v9486_v59 = vpack.c.bf16 %v2699_v41, %v2699_v41  ;;  %v2702_v33 = vadd.f32 %v2701_v39, %v11800_v10  ;;  %v10115_v18 = vpop.f32.mrb[179].mxu1  ;;  %v4346_v10 = vld [vmem:[#allocation3 + $0x8] sm:$0xf]  ;;  %v12009_v41 = vld [vmem:[#allocation3 + $0x10] sm:$0xf]  ;;  %v4008_v39 = vsel %vm11974_vm3, %v9348_v37, %v4007_v28  ;;  %v4384_v28 = vshll.u32 %v12025_v7, 16 }
 0x403   : > { %4164 = vrot.lane.b32.xlu1 %v4017_v55, %s16178_s24  ;;  %v4365_v30 = vshrl.u32 %v4346_v10, 16  ;;  %v4368_v63 = vshll.u32 %v4346_v10, 16  ;;  %v3248_v17 = vrot.slane %v12009_v41, 5  ;;  %v12023_v18 = vld [vmem:[#allocation3 + $0x10] sm:$0xf] }
 0x404   : > { %2872 = vst.msk [vmem:[#allocation3 + $0x28] sm:$0xf] %vm2861_vm6, %v9486_v59  ;;  %v9487_v9 = vpack.c.bf16 %v2702_v33, %v2702_v33  ;;  %v4659_v33 = vsel %vm11854_vm14, %v4657_v20, %v4658_v49  ;;  %v4238_v20 = vld [vmem:[#allocation3 + $0x10] sm:$0xf]  ;;  %v2890_v41 = vld [vmem:[#allocation3 + $0xc] sm:$0xf] }
 0x405   : > { %3294 = vrot.lane.b32.xlu0 %v3246_v26, %s16221_s16  ;;  %v4367_v55 = vrot.slane %v4365_v30, 4  ;;  %v4370_v59 = vrot.slane %v4368_v63, 5  ;;  %v4380_v26 = vrot.slane %v4378_v15, 4  ;;  %v3249_v46 = vsel %vm11854_vm14, %v3247_v31, %v3248_v17  ;;  %v3367_v30 = vld [vmem:[#allocation3 + $0xc] sm:$0xf] }
 0x406   : > { %2873 = vst.msk [vmem:[#allocation3 + $0x2c] sm:$0xf] %vm2861_vm6, %v9487_v9  ;;  %2908 = vst.msk [vmem:[#allocation4 + $0x18] sm:$0xf] %vm2861_vm6, %v2890_v41 }
 0x407   : > { %5687 = vrot.lane.b32.xlu1 %v5650_v23, %s16176_s30  ;;  %v2706_v34 = vpop.f32.mrb[180].mxu1  ;;  %v2971_v23 = vrot.slane %v2969_v27, 4 }
 0x408   : > { %v2707_v54 = vadd.f32 %v2706_v34, %v11803_v56  ;;  %v10118_v24 = vpop.f32.mrb[181].mxu1  ;;  %v4374_v56 = vshll.u32 %v4347_v35, 16  ;;  %v4371_v35 = vor.u32 %v4370_v59, %v4367_v55 }
 0x409   : > { %3734 = vrot.lane.b32.xlu0 %v3686_v3, %s16213_s20  ;;  %v2709_v4 = vpop.f32.mrb[182].mxu1  ;;  %v5649_v3 = vld [vmem:[#allocation3 + $0x10] sm:$0xf]  ;;  %v3688_v24 = vrot.slane %v12023_v18, 6  ;;  %v2972_v37 = vor.u32 %v2971_v23, %v11940_v36 }
 0x40a   : > { %v9488_v51 = vpack.c.bf16 %v2707_v54, %v2707_v54  ;;  %v2710_v2 = vadd.f32 %v2709_v4, %v11806_v25  ;;  %v10119_v57 = vpop.f32.mrb[183].mxu1  ;;  %v2927_v25 = vld [vmem:[#allocation3 + $0xc] sm:$0xf]  ;;  %v4376_v11 = vrot.slane %v4374_v56, 5  ;;  %v4372_v15 = vrot.slane %v4371_v35, 4 }
 0x40b   : > { %4278 = vrot.lane.b32.xlu1 %v4239_v12, %s16174_s21  ;;  %v2975_v10 = vshll.u32 %v2927_v25, 16  ;;  %v2979_v44 = vshrl.u32 %v2927_v25, 16  ;;  %v2973_v25 = vrot.slane %v2972_v37, 4 }
 0x40c   : > { %2874 = vst.msk [vmem:[#allocation3 + $0x30] sm:$0xf] %vm2861_vm6, %v9488_v51  ;;  %v9489_v22 = vpack.c.bf16 %v2710_v2, %v2710_v2  ;;  %v12039_v51 = vld [vmem:[#allocation3 + $0x10] sm:$0xf]  ;;  %v4381_v2 = vor.u32 %v4380_v26, %v4376_v11  ;;  %v4377_v26 = vsel %vm11880_vm1, %v4372_v15, %v4376_v11 }
 0x40d   : > { %4162 = vrot.lane.b32.xlu0 %v4008_v39, %s16178_s24  ;;  %v2977_v57 = vrot.slane %v2975_v10, 5  ;;  %v2981_v56 = vrot.slane %v2979_v44, 4  ;;  %v2985_v36 = vshll.u32 %v12039_v51, 16  ;;  %v12053_v39 = vld [vmem:[#allocation3 + $0x10] sm:$0xf] }
 0x40e   : > { %2875 = vst.msk [vmem:[#allocation3 + $0x34] sm:$0xf] %vm2861_vm6, %v9489_v22  ;;  %v3415_v22 = vshrl.u32 %v3367_v30, 16  ;;  %v4382_v59 = vrot.slane %v4381_v2, 4  ;;  %v12058_v44 = vld [vmem:[#allocation3 + $0x10] sm:$0xf] }
 0x40f   : > { %4708 = vrot.lane.b32.xlu1 %v4659_v33, %s16224_s23  ;;  %v2714_v9 = vpop.f32.mrb[184].mxu1  ;;  %v2982_v33 = vor.u32 %v2981_v56, %v2977_v57  ;;  %v12078_v2 = vld [vmem:[#allocation3 + $0x14] sm:$0xf]  ;;  %v4951_v42 = vld [vmem:[#allocation3 + $0x2c] sm:$0xf] }
 0x410   : > { %v2715_v14 = vadd.f32 %v2714_v9, %v11809_v6  ;;  %v10122_v34 = vpop.f32.mrb[185].mxu1  ;;  %v3687_v6 = vrot.slane %v3685_v0, 4  ;;  %v12048_v0 = vrot.slane %v4384_v28, 5  ;;  %v3417_v23 = vrot.slane %v3415_v22, 5 }
 0x411   : > { %5685 = vrot.lane.b32.xlu0 %v5649_v3, %s16176_s30  ;;  %v2717_v54 = vpop.f32.mrb[186].mxu1  ;;  %v12064_v3 = vrot.slane %v2985_v36, 5  ;;  %v2983_v28 = vrot.slane %v2982_v33, 4 }
 0x412   : > { %v9490_v63 = vpack.c.bf16 %v2715_v14, %v2715_v14  ;;  %v2718_v4 = vadd.f32 %v2717_v54, %v11812_v38  ;;  %v10123_v12 = vpop.f32.mrb[187].mxu1  ;;  %v3418_v38 = vshll.u32 %v3367_v30, 16  ;;  %v3689_v52 = vsel %vm11849_vm12, %v3687_v6, %v3688_v24 }
 0x413   : > { %3296 = vrot.lane.b32.xlu1 %v3249_v46, %s16221_s16  ;;  %v4387_v34 = vsel %vm11880_vm1, %v4382_v59, %v12048_v0  ;;  %v12069_v46 = vld [vmem:[#allocation3 + $0x14] sm:$0xf]  ;;  %v5263_v30 = vrot.slane %v12058_v44, 7  ;;  %v3413_v6 = vrot.slane %v11947_v45, 4  ;;  %v2988_v37 = vsel %vm11880_vm1, %v2983_v28, %v12064_v3  ;;  %v4780_v45 = vld [vmem:[#allocation3 + $0xc] sm:$0xc] }
 0x414   : > { %2876 = vst.msk [vmem:[#allocation3 + $0x38] sm:$0xf] %vm2861_vm6, %v9490_v63  ;;  %v9491_v27 = vpack.c.bf16 %v2718_v4, %v2718_v4  ;;  %v3420_v10 = vrot.slane %v3418_v38, 6  ;;  %v2978_v4 = vsel %vm11880_vm1, %v2973_v25, %v2977_v57  ;;  %v4944_v57 = vld [vmem:[#allocation3 + $0x10] sm:$0xf]  ;;  %v5266_v38 = vrot.slane %v12078_v2, 7 }
 0x415   : > { %4276 = vrot.lane.b32.xlu0 %v4238_v20, %s16174_s21  ;;  %v3368_v20 = vld [vmem:[#allocation3 + $0x10] sm:$0xf]  ;;  %v5265_v22 = vrot.slane %v5263_v30, 4  ;;  %v12097_v59 = vld [vmem:[#allocation3 + $0x14] sm:$0xf] }
 0x416   : > { %2877 = vst.msk [vmem:[#allocation3 + $0x3c] sm:$0xf] %vm2861_vm6, %v9491_v27  ;;  %v12076_v12 = vor.u32 %v3420_v10, %v3417_v23  ;;  %v4821_v27 = vrot.slane %v12069_v46, 6  ;;  %v3425_v25 = vshrl.u32 %v3368_v20, 16  ;;  %v3428_v33 = vshll.u32 %v3368_v20, 16 }
 0x417   : > { %3736 = vrot.lane.b32.xlu1 %v3689_v52, %s16213_s20  ;;  %v2722_v55 = vpop.f32.mrb[188].mxu1  ;;  %v4975_v23 = vshrl.u32 %v4944_v57, 16  ;;  %v5223_v28 = vld [vmem:[#allocation3 + $0xc] sm:$0x8]  ;;  %v2894_v2 = vld [vmem:[#allocation3 + $0x1c] sm:$0xf] }
 0x418   : > { %v2723_v31 = vadd.f32 %v2722_v55, %v11815_v19  ;;  %v10126_v9 = vpop.f32.mrb[189].mxu1  ;;  %v4818_v19 = vrot.slane %v12053_v39, 6  ;;  %v3422_v55 = vsel %vm11904_vm8, %v3413_v6, %v12076_v12  ;;  %v3427_v6 = vrot.slane %v3425_v25, 5  ;;  %2912 = vst.msk [vmem:[#allocation4 + $0x38] sm:$0xf] %vm2861_vm6, %v2894_v2 }
 0x419   : > { %4543 = vrot.lane.b32.xlu0 %v4377_v26, %s16168_s15  ;;  %v2725_v14 = vpop.f32.mrb[190].mxu1  ;;  %v9350_v26 = vrot.slane %v4780_v45, 10  ;;  %v9351_v45 = vrot.slane %v5223_v28, 11 }
 0x41a   : > { %v9492_v35 = vpack.c.bf16 %v2723_v31, %v2723_v31  ;;  %v2726_v54 = vadd.f32 %v2725_v14, %v11818_v47  ;;  %v10127_v11 = vpop.f32.mrb[191].mxu1  ;;  %v12080_v47 = vld [vmem:[#allocation3 + $0x10] sm:$0xf]  ;;  %v4820_v56 = vrot.slane %v4818_v19, 4 }
 0x41b   : > { %4545 = vrot.lane.b32.xlu1 %v4387_v34, %s16168_s15  ;;  %v3853_v52 = vrot.slane %v12080_v47, 7  ;;  %v5267_v11 = vsel %vm11929_vm11, %v5265_v22, %v5266_v38  ;;  %v3430_v47 = vrot.slane %v3428_v33, 6  ;;  %s16172_s15 = smov 72   ;;  %v3852_v22 = vrot.slane %v3850_v5, 4  ;;  %v12133_v5 = vld [vmem:[#allocation3 + $0x14] sm:$0xf] }
 0x41c   : > { %2878 = vst.msk [vmem:[#allocation3 + $0x40] sm:$0xf] %vm2861_vm6, %v9492_v35  ;;  %v9493_v63 = vpack.c.bf16 %v2726_v54, %v2726_v54  ;;  %v4822_v9 = vsel %vm11849_vm12, %v4820_v56, %v4821_v27  ;;  %v4945_v35 = vld [vmem:[#allocation3 + $0x14] sm:$0xf]  ;;  %v4819_v54 = vsel %vm11849_vm12, %v9350_v26, %v4818_v19  ;;  %v4661_v28 = vrot.slane %v12133_v5, 5 }
 0x41d   : > { %3128 = vrot.lane.b32.xlu0 %v2978_v4, %s16166_s22  ;;  %v4985_v20 = vshrl.u32 %v4945_v35, 16  ;;  %v4988_v19 = vshll.u32 %v4945_v35, 16  ;;  %v12128_v33 = vor.u32 %v3430_v47, %v3427_v6  ;;  %v12156_v6 = vld [vmem:[#allocation3 + $0x14] sm:$0xf]  ;;  %v12244_v5 = vld [vmem:[#allocation3 + $0x18] sm:$0xf] }
 0x41e   : > { %2879 = vst.msk [vmem:[#allocation3 + $0x44] sm:$0xf] %vm2861_vm6, %v9493_v63  ;;  %v3856_v63 = vrot.slane %v12097_v59, 7 }
 0x41f   : > { %3130 = vrot.lane.b32.xlu1 %v2988_v37, %s16166_s22  ;;  %v2730_v15 = vpop.f32.mrb[192].mxu1  ;;  %s16198_s22 = smov 60   ;;  %v4977_v37 = vrot.slane %v4975_v23, 6  ;;  %v4987_v44 = vrot.slane %v4985_v20, 6 }
 0x420   : > { %v2731_v36 = vadd.f32 %v2730_v15, %v11821_v29  ;;  %v10130_v39 = vpop.f32.mrb[193].mxu1  ;;  %v4978_v29 = vshll.u32 %v4944_v57, 16  ;;  %v5392_v57 = vld [vmem:[#allocation3 + $0x14] sm:$0xf] }
 0x421   : > { %3568 = vrot.lane.b32.xlu0 %v3422_v55, %s16211_s0  ;;  %v2733_v31 = vpop.f32.mrb[194].mxu1  ;;  %v5264_v55 = vsel %vm11929_vm11, %v9351_v45, %v5263_v30  ;;  %v5424_v26 = vshrl.u32 %v5392_v57, 16 }
 0x422   : > { %v9494_v10 = vpack.c.bf16 %v2731_v36, %v2731_v36  ;;  %v2734_v14 = vadd.f32 %v2733_v31, %v11824_v60  ;;  %v10131_v34 = vpop.f32.mrb[195].mxu1  ;;  %v3855_v60 = vrot.slane %v3853_v52, 4  ;;  %v4980_v56 = vrot.slane %v4978_v29, 7  ;;  %v12130_v31 = vld [vmem:[#allocation3 + $0x10] sm:$0xf] }
 0x423   : > { %4871 = vrot.lane.b32.xlu1 %v4822_v9, %s16198_s22  ;;  %v4990_v9 = vrot.slane %v4988_v19, 7  ;;  %v3423_v29 = vrot.slane %v12076_v12, 4  ;;  %v3854_v34 = vsel %vm11929_vm11, %v3852_v22, %v3853_v52  ;;  %v5415_v35 = vshrl.u32 %v12130_v31, 16 }
 0x424   : > { %2880 = vst.msk [vmem:[#allocation3 + $0x48] sm:$0xf] %vm2861_vm6, %v9494_v10  ;;  %v9495_v4 = vpack.c.bf16 %v2734_v14, %v2734_v14  ;;  %v3857_v25 = vsel %vm11929_vm11, %v3855_v60, %v3856_v63  ;;  %v3978_v14 = vld [vmem:[#allocation3 + $0x14] sm:$0xf]  ;;  %v4660_v12 = vrot.slane %v4658_v49, 4  ;;  %v12158_v47 = vrot.slane %v5424_v26, 7 }
 0x425   : > { %4869 = vrot.lane.b32.xlu0 %v4819_v54, %s16198_s22  ;;  %v4943_v54 = vld [vmem:[#allocation3 + $0xc] sm:$0xc]  ;;  %v12154_v60 = vor.u32 %v4990_v9, %v4987_v44  ;;  %v5417_v20 = vrot.slane %v5415_v35, 7  ;;  %v5427_v19 = vshll.u32 %v5392_v57, 16  ;;  %v3251_v57 = vrot.slane %v12156_v6, 5 }
 0x426   : > { %2881 = vst.msk [vmem:[#allocation3 + $0x4c] sm:$0xf] %vm2861_vm6, %v9495_v4  ;;  %v12150_v4 = vld [vmem:[#allocation3 + $0x10] sm:$0xf]  ;;  %v4966_v16 = vshrl.u32 %v4943_v54, 16  ;;  %v4969_v49 = vshll.u32 %v4943_v54, 16 }
 0x427   : > { %5318 = vrot.lane.b32.xlu1 %v5267_v11, %s16172_s15  ;;  %v2738_v15 = vpop.f32.mrb[196].mxu1  ;;  %v4020_v45 = vshrl.u32 %v12150_v4, 16  ;;  %v5429_v44 = vor.u32 %v5427_v19, %v12158_v47  ;;  %v12182_v9 = vld [vmem:[#allocation3 + $0x14] sm:$0xf]  ;;  %v4032_v54 = vshll.u32 %v3978_v14, 16 }
 0x428   : > { %v2739_v36 = vadd.f32 %v2738_v15, %v11827_v40  ;;  %v10134_v39 = vpop.f32.mrb[197].mxu1  ;;  %v12135_v40 = vor.u32 %v4980_v56, %v4977_v37  ;;  %v4029_v37 = vshrl.u32 %v3978_v14, 16  ;;  %v3369_v6 = vld [vmem:[#allocation3 + $0x14] sm:$0xf] }
 0x429   : > { %5316 = vrot.lane.b32.xlu0 %v5264_v55, %s16172_s15  ;;  %v2741_v53 = vpop.f32.mrb[198].mxu1  ;;  %v3250_v55 = vrot.slane %v3248_v17, 4  ;;  %v4022_v35 = vrot.slane %v4020_v45, 7  ;;  %s16180_s15 = smov 78  }
 0x42a   : > { %v9496_v30 = vpack.c.bf16 %v2739_v36, %v2739_v36  ;;  %v2742_v23 = vadd.f32 %v2741_v53, %v11830_v8  ;;  %v10135_v10 = vpop.f32.mrb[199].mxu1  ;;  %v3432_v8 = vsel %vm11904_vm8, %v3423_v29, %v12128_v33  ;;  %v4983_v52 = vrot.slane %v12135_v40, 4 }
 0x42b   : > { %3906 = vrot.lane.b32.xlu1 %v3857_v25, %s16170_s1  ;;  %v4662_v36 = vsel %vm11854_vm14, %v4660_v12, %v4661_v28  ;;  %v2889_v25 = vld [vmem:[#allocation3 + $0x8] sm:$0xf]  ;;  %v12184_v26 = vrot.slane %v4029_v37, 7  ;;  %v4968_v29 = vrot.slane %v4966_v16, 6  ;;  %v4971_v10 = vrot.slane %v4969_v49, 7 }
 0x42c   : > { %2882 = vst.msk [vmem:[#allocation3 + $0x50] sm:$0xf] %vm2861_vm6, %v9496_v30  ;;  %v9497_v11 = vpack.c.bf16 %v2742_v23, %v2742_v23  ;;  %v4992_v53 = vsel %vm12170_vm15, %v4983_v52, %v12154_v60  ;;  %2907 = vst.msk [vmem:[#allocation4 + $0x10] sm:$0xf] %vm2861_vm6, %v2889_v25  ;;  %v3691_v12 = vrot.slane %v12182_v9, 6  ;;  %v4027_v49 = vrot.slane %v4022_v35, 4 }
 0x42d   : > { %3904 = vrot.lane.b32.xlu0 %v3854_v34, %s16170_s1  ;;  %s16182_s1 = smov 66   ;;  %v5422_v34 = vrot.slane %v5417_v20, 4  ;;  %v4034_v14 = vor.u32 %v4032_v54, %v12184_v26  ;;  %v4972_v37 = vor.u32 %v4971_v10, %v4968_v29  ;;  %v4018_v10 = vrot.slane %v11951_v21, 4  ;;  %v4349_v54 = vld [vmem:[#allocation3 + $0x14] sm:$0xf] }
 0x42e   : > { %2883 = vst.msk [vmem:[#allocation3 + $0x54] sm:$0xf] %vm2861_vm6, %v9497_v11 }
 0x42f   : > { %3570 = vrot.lane.b32.xlu1 %v3432_v8, %s16211_s0  ;;  %v2746_v56 = vpop.f32.mrb[200].mxu1  ;;  %v3252_v8 = vsel %vm11854_vm14, %v3250_v55, %v3251_v57  ;;  %v5430_v52 = vsel %vm11974_vm3, %v5422_v34, %v5429_v44  ;;  %v4035_v19 = vsel %vm11974_vm3, %v4027_v49, %v4034_v14  ;;  %v5418_v55 = vshll.u32 %v12130_v31, 16  ;;  %v5652_v44 = vld [vmem:[#allocation3 + $0x1c] sm:$0xf]  ;;  %v12230_v34 = vld [vmem:[#allocation3 + $0x18] sm:$0xf] }
 0x430   : > { %v2747_v15 = vadd.f32 %v2746_v56, %v11833_v48  ;;  %v10138_v22 = vpop.f32.mrb[201].mxu1  ;;  %v5390_v56 = vld [vmem:[#allocation3 + $0xc] sm:$0x8]  ;;  %v4388_v31 = vshrl.u32 %v12025_v7, 16  ;;  %v3254_v21 = vrot.slane %v12230_v34, 5 }
 0x431   : > { %4710 = vrot.lane.b32.xlu0 %v4662_v36, %s16224_s23  ;;  %v2749_v48 = vpop.f32.mrb[202].mxu1  ;;  %v4973_v22 = vrot.slane %v4972_v37, 4  ;;  %v5410_v36 = vshrl.u32 %v5390_v56, 16  ;;  %v4398_v37 = vshrl.u32 %v4349_v54, 16  ;;  %v4350_v56 = vld [vmem:[#allocation3 + $0x18] sm:$0xf] }
 0x432   : > { %v9498_v17 = vpack.c.bf16 %v2747_v15, %v2747_v15  ;;  %v2750_v30 = vadd.f32 %v2749_v48, %v11836_v13  ;;  %v10139_v23 = vpop.f32.mrb[203].mxu1  ;;  %v3690_v13 = vrot.slane %v3688_v24, 4  ;;  %v5420_v48 = vor.u32 %v5418_v55, %v5417_v20 }
 0x433   : > { %5151 = vrot.lane.b32.xlu1 %v4992_v53, %s16182_s1  ;;  %v9352_v41 = vrot.slane %v5410_v36, 11  ;;  %v4390_v7 = vrot.slane %v4388_v31, 4  ;;  %v3438_v31 = vshll.u32 %v3369_v6, 16 }
 0x434   : > { %2884 = vst.msk [vmem:[#allocation3 + $0x58] sm:$0xf] %vm2861_vm6, %v9498_v17  ;;  %v9499_v11 = vpack.c.bf16 %v2750_v30, %v2750_v30  ;;  %v3692_v24 = vsel %vm11849_vm12, %v3690_v13, %v3691_v12  ;;  %v4023_v17 = vshll.u32 %v12150_v4, 16  ;;  %v12221_v30 = vld [vmem:[#allocation3 + $0x18] sm:$0xf]  ;;  %v4663_v4 = vrot.slane %v4661_v28, 4 }
 0x435   : > { %3298 = vrot.lane.b32.xlu0 %v3252_v8, %s16221_s16  ;;  %v5421_v23 = vsel %vm11974_vm3, %v9352_v41, %v5420_v48  ;;  %v4664_v20 = vrot.slane %v12221_v30, 5  ;;  %v4394_v28 = vshll.u32 %v4349_v54, 16  ;;  %v12246_v13 = vld [vmem:[#allocation3 + $0x18] sm:$0xf]  ;;  %v4391_v14 = vor.u32 %v4390_v7, %v12048_v0  ;;  %v2892_v0 = vld [vmem:[#allocation3 + $0x14] sm:$0xf] }
 0x436   : > { %2885 = vst.msk [vmem:[#allocation3 + $0x5c] sm:$0xf] %vm2861_vm6, %v9499_v11  ;;  %v4025_v29 = vor.u32 %v4023_v17, %v4022_v35  ;;  %v2989_v11 = vshrl.u32 %v12039_v51, 16  ;;  %v5651_v51 = vld [vmem:[#allocation3 + $0x18] sm:$0xf]  ;;  %v4404_v48 = vshll.u32 %v4350_v56, 16 }
 0x437   : > { %5577 = vrot.lane.b32.xlu1 %v5430_v52, %s16180_s15  ;;  %v2754_v16 = vpop.f32.mrb[204].mxu1  ;;  %v4665_v8 = vsel %vm11854_vm14, %v4663_v4, %v4664_v20  ;;  %v3253_v52 = vrot.slane %v3251_v57, 4  ;;  %v3693_v57 = vrot.slane %v3691_v12, 4  ;;  %2910 = vst.msk [vmem:[#allocation4 + $0x28] sm:$0xf] %vm2861_vm6, %v2892_v0  ;;  %v4392_v55 = vrot.slane %v4391_v14, 4 }
 0x438   : > { %v2755_v18 = vadd.f32 %v2754_v16, %v11839_v58  ;;  %v10142_v45 = vpop.f32.mrb[205].mxu1  ;;  %v4982_v58 = vsel %vm12170_vm15, %v4973_v22, %v12135_v40  ;;  %v4241_v40 = vld [vmem:[#allocation3 + $0x1c] sm:$0xf]  ;;  %v4026_v35 = vsel %vm11974_vm3, %v4018_v10, %v4025_v29  ;;  %v2929_v16 = vld [vmem:[#allocation3 + $0x14] sm:$0xf]  ;;  %v2991_v49 = vrot.slane %v2989_v11, 4 }
 0x439   : > { %3738 = vrot.lane.b32.xlu0 %v3692_v24, %s16213_s20  ;;  %v2757_v25 = vpop.f32.mrb[206].mxu1  ;;  %v3255_v24 = vsel %vm11854_vm14, %v3253_v52, %v3254_v21  ;;  %v5797_v45 = vrot.slane %v12246_v13, 5  ;;  %v12262_v22 = vld [vmem:[#allocation3 + $0x1c] sm:$0xf]  ;;  %v2995_v36 = vshll.u32 %v2929_v16, 16  ;;  %v3435_v17 = vshrl.u32 %v3369_v6, 16 }
 0x43a   : > { %v9500_v15 = vpack.c.bf16 %v2755_v18, %v2755_v18  ;;  %v10143_v53 = vpop.f32.mrb[207].mxu1  ;;  %v2891_v18 = vld [vmem:[#allocation3 + $0x10] sm:$0xf]  ;;  %v2999_v25 = vshrl.u32 %v2929_v16, 16  ;;  %v2992_v41 = vor.u32 %v2991_v49, %v12064_v3  ;;  %v4408_v29 = vshrl.u32 %v4350_v56, 16 }
 0x43b   : > { %4168 = vrot.lane.b32.xlu1 %v4035_v19, %s16178_s24  ;;  %v16197_v19 = vrot.slane %v12244_v5, 6  ;;  %2909 = vst.msk [vmem:[#allocation4 + $0x20] sm:$0xf] %vm2861_vm6, %v2891_v18  ;;  %v2930_v53 = vld [vmem:[#allocation3 + $0x18] sm:$0xf]  ;;  %v5799_v12 = vrot.slane %v5797_v45, 4 }
 0x43c   : > { %2886 = vst.msk [vmem:[#allocation3 + $0x60] sm:$0xf] %vm2861_vm6, %v9500_v15  ;;  %v4396_v15 = vrot.slane %v4394_v28, 5  ;;  %v3005_v10 = vshll.u32 %v2930_v53, 16  ;;  %v12277_v54 = vrot.slane %v4404_v48, 5  ;;  %v3001_v7 = vrot.slane %v2999_v25, 4 }
 0x43d   : > { %5149 = vrot.lane.b32.xlu0 %v4982_v58, %s16182_s1  ;;  %v4400_v58 = vrot.slane %v4398_v37, 4  ;;  %v3695_v9 = vsel %vm11849_vm12, %v3693_v57, %v16197_v19  ;;  %v2993_v11 = vrot.slane %v2992_v41, 4  ;;  %v3009_v28 = vshrl.u32 %v2930_v53, 16  ;;  %v12289_v37 = vld [vmem:[#allocation3 + $0x18] sm:$0xf]  ;;  %s16194_s1 = smov 102  }
 0x43e   : > { %v4397_v3 = vsel %vm11880_vm1, %v4392_v55, %v4396_v15  ;;  %v12284_v52 = vrot.slane %v4408_v29, 4  ;;  %v12287_v14 = vrot.slane %v3005_v10, 5  ;;  %v12308_v55 = vld [vmem:[#allocation3 + $0x18] sm:$0xf]  ;;  %v4352_v25 = vld [vmem:[#allocation3 + $0x20] sm:$0xf] }
 0x43f   : > { %5691 = vrot.lane.b32.xlu1 %v5652_v44, %s16176_s30  ;;  %v4240_v44 = vld [vmem:[#allocation3 + $0x18] sm:$0xf]  ;;  %v4401_v4 = vor.u32 %v4400_v58, %v4396_v15  ;;  %v12298_v0 = vrot.slane %v3009_v28, 4  ;;  %v12304_v15 = vld [vmem:[#allocation3 + $0x1c] sm:$0xf]  ;;  %v4428_v29 = vshrl.u32 %v4352_v25, 16 }
 0x440   : > { %v16192_v53 = vrot.slane %v12304_v15, 6 }
 0x441   : > { %5575 = vrot.lane.b32.xlu0 %v5421_v23, %s16180_s15  ;;  %v16196_v23 = vrot.slane %v12262_v22, 5  ;;  %v4402_v16 = vrot.slane %v4401_v4, 4  ;;  %s16205_s15 = smov 120  }
 0x443   : > { %4282 = vrot.lane.b32.xlu1 %v4241_v40, %s16174_s21  ;;  %v2997_v40 = vrot.slane %v2995_v36, 5  ;;  %v4407_v57 = vsel %vm11880_vm1, %v4402_v16, %v12277_v54  ;;  %v6231_v36 = vrot.slane %v12289_v37, 6  ;;  %v12341_v37 = vld [vmem:[#allocation3 + $0x1c] sm:$0xf] }
 0x445   : > { %4166 = vrot.lane.b32.xlu0 %v4026_v35, %s16178_s24  ;;  %v3437_v35 = vrot.slane %v3435_v17, 5  ;;  %v3002_v49 = vor.u32 %v3001_v7, %v2997_v40  ;;  %v2998_v18 = vsel %vm11880_vm1, %v2993_v11, %v2997_v40  ;;  %s16441_s24 = smov 6   ;;  %v6233_v41 = vrot.slane %v6231_v36, 4  ;;  %v6800_v7 = vld [vmem:[#allocation3 + $0x1c] sm:$0xf] }
 0x446   : > { %v4824_v17 = vrot.slane %v12308_v55, 6 }
 0x447   : > { %4712 = vrot.lane.b32.xlu1 %v4665_v8, %s16224_s23  ;;  %v3440_v8 = vrot.slane %v3438_v31, 6  ;;  %v3003_v58 = vrot.slane %v3002_v49, 4  ;;  %v12321_v31 = vld [vmem:[#allocation3 + $0x18] sm:$0xf] }
 0x448   : > { %v6673_v11 = vrot.slane %v12321_v31, 7  ;;  %v4826_v28 = vrot.slane %v4824_v17, 4  ;;  %v12344_v49 = vld [vmem:[#allocation3 + $0x18] sm:$0xf] }
 0x449   : > { %5689 = vrot.lane.b32.xlu0 %v5651_v51, %s16176_s30  ;;  %v5801_v51 = vsel %vm11854_vm14, %v5799_v12, %v16196_v23  ;;  %s16187_s30 = smov 90   ;;  %v12296_v6 = vor.u32 %v3440_v8, %v3437_v35  ;;  %v12324_v12 = vld [vmem:[#allocation3 + $0x1c] sm:$0xf]  ;;  %v12331_v35 = vrot.slane %v4428_v29, 4  ;;  %v6235_v8 = vsel %vm11849_vm12, %v6233_v41, %v16192_v53  ;;  %v12368_v29 = vld [vmem:[#allocation3 + $0x18] sm:$0xf] }
 0x44a   : > { %v5269_v13 = vrot.slane %v12344_v49, 7 }
 0x44b   : > { %3300 = vrot.lane.b32.xlu1 %v3255_v24, %s16221_s16  ;;  %v3433_v24 = vrot.slane %v12128_v33, 4  ;;  %v3443_v31 = vrot.slane %v12296_v6, 4 }
 0x44d   : > { %4280 = vrot.lane.b32.xlu0 %v4240_v44, %s16174_s21  ;;  %s16440_s21 = smov 48   ;;  %v3442_v48 = vsel %vm11904_vm8, %v3433_v24, %v12296_v6  ;;  %v3008_v44 = vsel %vm11880_vm1, %v3003_v58, %v12287_v14 }
 0x44f   : > { %3740 = vrot.lane.b32.xlu1 %v3695_v9, %s16213_s20  ;;  %v4424_v9 = vshll.u32 %v4352_v25, 16 }
 0x451   : > { %4547 = vrot.lane.b32.xlu0 %v4397_v3, %s16440_s21  ;;  %v5759_v3 = vld [vmem:[#allocation3 + $0x14] sm:$0xe]  ;;  %v12328_v4 = vrot.slane %v4424_v9, 5  ;;  %v12364_v9 = vld [vmem:[#allocation3 + $0x1c] sm:$0xf] }
 0x452   : > { %v9353_v16 = vrot.slane %v5759_v3, 9  ;;  %v3370_v3 = vld [vmem:[#allocation3 + $0x18] sm:$0xf] }
 0x453   : > { %5850 = vrot.lane.b32.xlu1 %v5801_v51, %s16187_s30  ;;  %v16191_v51 = vrot.slane %v12324_v12, 6  ;;  %v3448_v1 = vshll.u32 %v3370_v3, 16 }
 0x454   : > { %v5798_v58 = vsel %vm11854_vm14, %v9353_v16, %v5797_v45 }
 0x455   : > { %3132 = vrot.lane.b32.xlu0 %v2998_v18, %s16441_s24  ;;  %v4828_v41 = vsel %vm11849_vm12, %v4826_v28, %v16191_v51 }
 0x457   : > { %4549 = vrot.lane.b32.xlu1 %v4407_v57, %s16440_s21  ;;  %v6193_v57 = vld [vmem:[#allocation3 + $0x14] sm:$0xc] }
 0x458   : > { %v9354_v45 = vrot.slane %v6193_v57, 10  ;;  %v16208_v57 = vrot.slane %v12364_v9, 7 }
 0x459   : > { %3572 = vrot.lane.b32.xlu0 %v3442_v48, %s16211_s0  ;;  %v6675_v48 = vrot.slane %v6673_v11, 4 }
 0x45a   : > { %v6232_v28 = vsel %vm11849_vm12, %v9354_v45, %v6231_v36  ;;  %v3859_v36 = vrot.slane %v12368_v29, 7  ;;  %v3445_v45 = vshrl.u32 %v3370_v3, 16  ;;  %v12461_v29 = vld [vmem:[#allocation3 + $0x1c] sm:$0xf] }
 0x45b   : > { %3134 = vrot.lane.b32.xlu1 %v3008_v44, %s16441_s24  ;;  %v12326_v40 = vpop.permute.xlu0 %3730  ;;  %v16190_v44 = vrot.slane %v12341_v37, 7 }
 0x45c   : > { %v3291_v10 = vpop.permute.xlu1 %3290  ;;  %v3447_v55 = vrot.slane %v3445_v45, 5 }
 0x45d   : > { %6836 = vrot.lane.b32.xlu0 %v6800_v7, %s16205_s15  ;;  %v6677_v16 = vsel %vm11929_vm11, %v6675_v48, %v16190_v44  ;;  %v4823_v48 = vrot.slane %v4821_v27, 4  ;;  %v3861_v27 = vrot.slane %v3859_v36, 4 }
 0x45f   : > { %6284 = vrot.lane.b32.xlu1 %v6235_v8, %s16194_s1  ;;  %v12348_v24 = vpop.permute.xlu0 %4272  ;;  %v4825_v53 = vsel %vm11849_vm12, %v4823_v48, %v4824_v17  ;;  %v6357_v17 = vld [vmem:[#allocation3 + $0x18] sm:$0xf] }
 0x460   : > { %v2893_v48 = vld [vmem:[#allocation3 + $0x18] sm:$0xf]  ;;  %v6388_v45 = vshll.u32 %v6357_v17, 16 }
 0x461   : > { %v12350_v25 = vpop.permute.xlu1 %4274  ;;  %5848 = vrot.lane.b32.xlu0 %v5798_v58, %s16187_s30  ;;  %v5923_v58 = vld [vmem:[#allocation3 + $0x18] sm:$0xf]  ;;  %s16203_s30 = smov 114   ;;  %2911 = vst.msk [vmem:[#allocation4 + $0x30] sm:$0xf] %vm2861_vm6, %v2893_v48 }
 0x462   : > { %v5950_v44 = vshrl.u32 %v5923_v58, 16  ;;  %v6390_v48 = vrot.slane %v6388_v45, 7  ;;  %v5922_v45 = vld [vmem:[#allocation3 + $0x14] sm:$0xe] }
 0x463   : > { %4875 = vrot.lane.b32.xlu1 %v4828_v41, %s16198_s22  ;;  %v3125_v7 = vpop.permute.xlu0 %3124  ;;  %v5271_v41 = vrot.slane %v5269_v13, 4 }
 0x464   : > { %3179 = vst.msk [vmem:[#allocation4] sm:$0xf] %vm16279_vm4, %v3125_v7  ;;  %v12384_v7 = vld [vmem:[#allocation3 + $0x1c] sm:$0xf] }
 0x465   : > { %v12371_v8 = vpop.permute.xlu1 %3292  ;;  %6282 = vrot.lane.b32.xlu0 %v6232_v28, %s16194_s1  ;;  %3345 = vst.msk [vmem:[#allocation4] sm:$0xf] %vm16235_vm10, %v3291_v10  ;;  %v6633_v28 = vld [vmem:[#allocation3 + $0x14] sm:$0x8]  ;;  %v5953_v10 = vshll.u32 %v5923_v58, 16  ;;  %v16207_v3 = vrot.slane %v12384_v7, 7  ;;  %v5273_v46 = vsel %vm11929_vm11, %v5271_v41, %v16208_v57 }
 0x466   : > { %s16442_s1 = smov 72   ;;  %v9355_v58 = vrot.slane %v6633_v28, 11  ;;  %v6385_v41 = vshrl.u32 %v6357_v17, 16  ;;  %v5268_v28 = vrot.slane %v5266_v38, 4 }
 0x467   : > { %6728 = vrot.lane.b32.xlu1 %v6677_v16, %s16203_s30  ;;  %v3565_v18 = vpop.permute.xlu0 %3564  ;;  %v5924_v16 = vld [vmem:[#allocation3 + $0x1c] sm:$0xf]  ;;  %v5955_v33 = vrot.slane %v5953_v10, 6 }
 0x468   : > { %3619 = vst.msk [vmem:[#allocation4] sm:$0xf] %vm16229_vm7, %v3565_v18  ;;  %v3450_v18 = vrot.slane %v3448_v1, 6  ;;  %v5960_v56 = vshrl.u32 %v5924_v16, 16  ;;  %v5963_v19 = vshll.u32 %v5924_v16, 16  ;;  %v6674_v1 = vsel %vm11929_vm11, %v9355_v58, %v6673_v11 }
 0x469   : > { %v3733_v51 = vpop.permute.xlu1 %3732  ;;  %4873 = vrot.lane.b32.xlu0 %v4825_v53, %s16198_s22  ;;  %3785 = vst.msk [vmem:[#allocation4] sm:$0xf] %vm16233_vm0, %v12326_v40  ;;  %v5952_v53 = vrot.slane %v5950_v44, 5  ;;  %v3863_v44 = vsel %vm11929_vm11, %v3861_v27, %v16207_v3  ;;  %s16443_s22 = smov 30   ;;  %v4946_v11 = vld [vmem:[#allocation3 + $0x18] sm:$0xf] }
 0x46a   : > { %v12419_v10 = vor.u32 %v3450_v18, %v3447_v55  ;;  %v5962_v27 = vrot.slane %v5960_v56, 5  ;;  %v5965_v58 = vrot.slane %v5963_v19, 6  ;;  %v12430_v55 = vld [vmem:[#allocation3 + $0x1c] sm:$0xf]  ;;  %v6387_v18 = vrot.slane %v6385_v41, 6 }
 0x46b   : > { %5322 = vrot.lane.b32.xlu1 %v5273_v46, %s16442_s1  ;;  %v3901_v23 = vpop.permute.xlu0 %3900  ;;  %v5270_v46 = vsel %vm11929_vm11, %v5268_v28, %v5269_v13  ;;  %v12427_v17 = vor.u32 %v5955_v33, %v5952_v53  ;;  %v3858_v56 = vrot.slane %v3856_v63, 4  ;;  %v4995_v33 = vshrl.u32 %v4946_v11, 16 }
 0x46c   : > { %3955 = vst.msk [vmem:[#allocation4] sm:$0xf] %vm16232_vm5, %v3901_v23  ;;  %v6358_v23 = vld [vmem:[#allocation3 + $0x1c] sm:$0xf]  ;;  %v3452_v19 = vsel %vm11904_vm8, %v3443_v31, %v12419_v10  ;;  %v4998_v49 = vshll.u32 %v4946_v11, 16  ;;  %v4666_v13 = vrot.slane %v4664_v20, 4  ;;  %v12453_v41 = vor.u32 %v5965_v58, %v5962_v27 }
 0x46d   : > { %v3903_v40 = vpop.permute.xlu1 %3902  ;;  %6726 = vrot.lane.b32.xlu0 %v6674_v1, %s16203_s30  ;;  %v6395_v6 = vshrl.u32 %v6358_v23, 16  ;;  %v6398_v1 = vshll.u32 %v6358_v23, 16  ;;  %v3860_v59 = vsel %vm11929_vm11, %v3858_v56, %v3859_v36  ;;  %v16210_v63 = vrot.slane %v12430_v55, 5  ;;  %v6801_v20 = vld [vmem:[#allocation3 + $0x20] sm:$0xf]  ;;  %s16216_s30 = smov 96  }
 0x46e   : > { %v4997_v36 = vrot.slane %v4995_v33, 6  ;;  %v5000_v31 = vrot.slane %v4998_v49, 7  ;;  %v5394_v27 = vld [vmem:[#allocation3 + $0x1c] sm:$0xf]  ;;  %v12483_v56 = vld [vmem:[#allocation3 + $0x18] sm:$0xf] }
 0x46f   : > { %3910 = vrot.lane.b32.xlu1 %v3863_v44, %s16443_s22  ;;  %v3127_v16 = vpop.permute.xlu0 %3126  ;;  %v5958_v44 = vrot.slane %v12427_v17, 4  ;;  %v6397_v28 = vrot.slane %v6395_v6, 6  ;;  %v6400_v23 = vrot.slane %v6398_v1, 7  ;;  %v4668_v2 = vsel %vm11854_vm14, %v4666_v13, %v16210_v63  ;;  %v12486_v33 = vld [vmem:[#allocation3 + $0x1c] sm:$0xf] }
 0x470   : > { %3180 = vst.msk [vmem:[#allocation4 + $0x8] sm:$0xf] %vm16279_vm4, %v3127_v16  ;;  %v16209_v1 = vrot.slane %v12461_v29, 5  ;;  %v12488_v34 = vor.u32 %v5000_v31, %v4997_v36  ;;  %v5442_v13 = vshrl.u32 %v5394_v27, 16 }
 0x471   : > { %v3567_v38 = vpop.permute.xlu1 %3566  ;;  %3346 = vst.msk [vmem:[#allocation4 + $0x8] sm:$0xf] %vm16235_vm10, %v12371_v8  ;;  %5320 = vrot.lane.b32.xlu0 %v5270_v46, %s16442_s1  ;;  %v4947_v8 = vld [vmem:[#allocation3 + $0x1c] sm:$0xf]  ;;  %v5944_v46 = vshll.u32 %v5922_v45, 16  ;;  %v5967_v6 = vsel %vm11904_vm8, %v5958_v44, %v12453_v41 }
 0x472   : > { %3620 = vst.msk [vmem:[#allocation4 + $0x8] sm:$0xf] %vm16229_vm7, %v3567_v38  ;;  %v5005_v11 = vshrl.u32 %v4947_v8, 16  ;;  %v5008_v16 = vshll.u32 %v4947_v8, 16  ;;  %v3256_v38 = vrot.slane %v3254_v21, 4 }
 0x473   : > { %3574 = vrot.lane.b32.xlu1 %v3452_v19, %s16211_s0  ;;  %3786 = vst.msk [vmem:[#allocation4 + $0x8] sm:$0xf] %vm16233_vm0, %v3733_v51  ;;  %v12446_v53 = vpop.permute.xlu0 %4706  ;;  %v12457_v51 = vor.u32 %v6390_v48, %v6387_v18  ;;  %v6356_v18 = vld [vmem:[#allocation3 + $0x14] sm:$0xc]  ;;  %v12481_v19 = vor.u32 %v6400_v23, %v6397_v28  ;;  %v5433_v28 = vshrl.u32 %v12483_v56, 16  ;;  %s16445_s0 = smov 66  }
 0x474   : > { %3956 = vst.msk [vmem:[#allocation4 + $0x8] sm:$0xf] %vm16232_vm5, %v3903_v40  ;;  %v5941_v40 = vshrl.u32 %v5922_v45, 16  ;;  %v5007_v21 = vrot.slane %v5005_v11, 6  ;;  %v5010_v49 = vrot.slane %v5008_v16, 7  ;;  %v6376_v45 = vshrl.u32 %v6356_v18, 16 }
 0x475   : > { %v4165_v30 = vpop.permute.xlu1 %4164  ;;  %3908 = vrot.lane.b32.xlu0 %v3860_v59, %s16443_s22  ;;  %v5946_v59 = vrot.slane %v5944_v46, 6  ;;  %v3258_v36 = vsel %vm11854_vm14, %v3256_v38, %v16209_v1  ;;  %v16444_v11 = vrot.slane %v12244_v5, 6  ;;  %v12506_v46 = vld [vmem:[#allocation3 + $0x18] sm:$0xf]  ;;  %v5435_v57 = vrot.slane %v5433_v28, 7 }
 0x476   : > { %4218 = vst.msk [vmem:[#allocation4 + $0x8] sm:$0xf] %vm16264_vm2, %v4165_v30  ;;  %v5943_v8 = vrot.slane %v5941_v40, 5  ;;  %v6379_v30 = vshll.u32 %v6356_v18, 16  ;;  %v3697_v40 = vrot.slane %v12486_v33, 6  ;;  %v12510_v18 = vor.u32 %v5010_v49, %v5007_v21 }
 0x477   : > { %6838 = vrot.lane.b32.xlu1 %v6801_v20, %s16205_s15  ;;  %4328 = vst.msk [vmem:[#allocation4 + $0x8] sm:$0xf] %vm16218_vm13, %v12350_v25  ;;  %v12466_v58 = vpop.permute.xlu0 %3294  ;;  %v6393_v25 = vrot.slane %v12457_v51, 4  ;;  %v3980_v20 = vld [vmem:[#allocation3 + $0x1c] sm:$0xf]  ;;  %v3696_v16 = vrot.slane %v16444_v11, 4 }
 0x478   : > { %v4047_v38 = vshrl.u32 %v3980_v20, 16  ;;  %s16219_s15 = smov 108   ;;  %v6378_v3 = vrot.slane %v6376_v45, 6  ;;  %v6381_v5 = vrot.slane %v6379_v30, 7  ;;  %v5445_v1 = vshll.u32 %v5394_v27, 16 }
 0x479   : > { %v12474_v48 = vpop.permute.xlu1 %5687  ;;  %4714 = vrot.lane.b32.xlu0 %v4668_v2, %s16224_s23  ;;  %v6402_v31 = vsel %vm12170_vm15, %v6393_v25, %v12481_v19  ;;  %v5003_v2 = vrot.slane %v12488_v34, 4  ;;  %v5947_v25 = vor.u32 %v5946_v59, %v5943_v8  ;;  %v4038_v63 = vshrl.u32 %v12506_v46, 16  ;;  %v2932_v45 = vld [vmem:[#allocation3 + $0x20] sm:$0xf] }
 0x47a   : > { %v3698_v21 = vsel %vm11849_vm12, %v3696_v16, %v3697_v40  ;;  %v12526_v8 = vrot.slane %v4047_v38, 7  ;;  %v6382_v59 = vor.u32 %v6381_v5, %v6378_v3  ;;  %v5440_v28 = vrot.slane %v5435_v57, 4 }
 0x47b   : > { %6121 = vrot.lane.b32.xlu1 %v5967_v6, %s16216_s30  ;;  %v12491_v44 = vpop.permute.xlu0 %3734  ;;  %v12512_v6 = vrot.slane %v5442_v13, 7  ;;  %v5012_v49 = vsel %vm12170_vm15, %v5003_v2, %v12510_v18  ;;  %v5948_v27 = vrot.slane %v5947_v25, 4  ;;  %v4050_v16 = vshll.u32 %v3980_v20, 16 }
 0x47c   : > { %v3025_v38 = vshll.u32 %v2932_v45, 16  ;;  %v6383_v3 = vrot.slane %v6382_v59, 4  ;;  %v3029_v20 = vshrl.u32 %v2932_v45, 16 }
 0x47d   : > { %v12494_v23 = vpop.permute.xlu1 %4278  ;;  %3302 = vrot.lane.b32.xlu0 %v3258_v36, %s16221_s16  ;;  %v5447_v13 = vor.u32 %v5445_v1, %v12512_v6  ;;  %v5957_v1 = vsel %vm11904_vm8, %v5948_v27, %v12427_v17  ;;  %v4052_v2 = vor.u32 %v4050_v16, %v12526_v8  ;;  %v5436_v27 = vshll.u32 %v12483_v56, 16  ;;  %s16449_s16 = smov 42  }
 0x47e   : > { %v6392_v17 = vsel %vm12170_vm15, %v6383_v3, %v12457_v51  ;;  %v12556_v45 = vrot.slane %v3029_v20, 4  ;;  %v5431_v56 = vrot.slane %v12158_v47, 4  ;;  %v4243_v47 = vld [vmem:[#allocation3 + $0x24] sm:$0xf]  ;;  %v16450_v20 = vrot.slane %v12430_v55, 5 }
 0x47f   : > { %6561 = vrot.lane.b32.xlu1 %v6402_v31, %s16219_s15  ;;  %v4163_v11 = vpop.permute.xlu0 %4162  ;;  %v4040_v31 = vrot.slane %v4038_v63, 7  ;;  %v5438_v16 = vor.u32 %v5436_v27, %v5435_v57  ;;  %v12572_v57 = vld [vmem:[#allocation3 + $0x20] sm:$0xf]  ;;  %v6912_v27 = vld [vmem:[#allocation3 + $0x24] sm:$0xf] }
 0x480   : > { %4217 = vst.msk [vmem:[#allocation4] sm:$0xf] %vm16264_vm2, %v4163_v11 }
 0x481   : > { %v4709_v36 = vpop.permute.xlu1 %4708  ;;  %3742 = vrot.lane.b32.xlu0 %v3698_v21, %s16213_s20  ;;  %4327 = vst.msk [vmem:[#allocation4] sm:$0xf] %vm16218_vm13, %v12348_v24  ;;  %v5448_v24 = vsel %vm11974_vm3, %v5440_v28, %v5447_v13  ;;  %s16446_s20 = smov 78   ;;  %v4045_v63 = vrot.slane %v4040_v31, 4  ;;  %v4993_v13 = vrot.slane %v12154_v60, 4  ;;  %vm16223_vm13 = vcmask 486832  }
 0x483   : > { %5155 = vrot.lane.b32.xlu1 %v5012_v49, %s16445_s0  ;;  %v12531_v30 = vpop.permute.xlu0 %5685  ;;  %v4053_v21 = vsel %vm11974_vm3, %v4045_v63, %v4052_v2  ;;  %v12551_v49 = vrot.slane %v3025_v38, 5  ;;  %v5002_v28 = vsel %vm12170_vm15, %v4993_v13, %v12488_v34  ;;  %v4041_v34 = vshll.u32 %v12506_v46, 16  ;;  %v2895_v2 = vld [vmem:[#allocation3 + $0x20] sm:$0xf]  ;;  %v2896_v13 = vld [vmem:[#allocation3 + $0x24] sm:$0xf] }
 0x484   : > { %2913 = vst.msk [vmem:[#allocation4 + $0x40] sm:$0xf] %vm2861_vm6, %v2895_v2  ;;  %v16245_v46 = vrot.slane %v12572_v57, 5  ;;  %2914 = vst.msk [vmem:[#allocation4 + $0x48] sm:$0xf] %vm2861_vm6, %v2896_v13 }
 0x485   : > { %v3297_v11 = vpop.permute.xlu1 %3296  ;;  %6119 = vrot.lane.b32.xlu0 %v5957_v1, %s16216_s30  ;;  %s16447_s30 = smov 36   ;;  %v5654_v1 = vld [vmem:[#allocation3 + $0x24] sm:$0xf]  ;;  %v4043_v3 = vor.u32 %v4041_v34, %v4040_v31  ;;  %v12586_v31 = vld [vmem:[#allocation3 + $0x20] sm:$0xf] }
 0x486   : > { %v16227_v55 = vrot.slane %v12586_v31, 5  ;;  %v2931_v13 = vld [vmem:[#allocation3 + $0x1c] sm:$0xf] }
 0x487   : > { %5581 = vrot.lane.b32.xlu1 %v5448_v24, %s16446_s20  ;;  %v12541_v25 = vpop.permute.xlu0 %4276 }
 0x489   : > { %v12543_v5 = vpop.permute.xlu1 %3736  ;;  %6559 = vrot.lane.b32.xlu0 %v6392_v17, %s16219_s15  ;;  %s16448_s15 = smov 84  }
 0x48b   : > { %4172 = vrot.lane.b32.xlu1 %v4053_v21, %s16447_s30  ;;  %v4544_v59 = vpop.permute.xlu0 %4543 }
 0x48c   : > { %4598 = vst.msk [vmem:[#allocation4] sm:$0xf] %vm16280_vm9, %v4544_v59  ;;  %v4351_v59 = vld [vmem:[#allocation3 + $0x1c] sm:$0xf] }
 0x48d   : > { %v4546_v51 = vpop.permute.xlu1 %4545  ;;  %5153 = vrot.lane.b32.xlu0 %v5002_v28, %s16445_s0  ;;  %4761 = vst.msk [vmem:[#allocation4] sm:$0xf] %vm16223_vm13, %v12446_v53  ;;  %v5439_v53 = vsel %vm11974_vm3, %v5431_v56, %v5438_v16  ;;  %v16451_v28 = vrot.slane %v12461_v29, 5  ;;  %v5653_v56 = vld [vmem:[#allocation3 + $0x20] sm:$0xf] }
 0x48e   : > { %4599 = vst.msk [vmem:[#allocation4 + $0x8] sm:$0xf] %vm16280_vm9, %v4546_v51  ;;  %v3371_v29 = vld [vmem:[#allocation3 + $0x1c] sm:$0xf] }
 0x48f   : > { %5695 = vrot.lane.b32.xlu1 %v5654_v1, %s16448_s15  ;;  %4762 = vst.msk [vmem:[#allocation4 + $0x8] sm:$0xf] %vm16223_vm13, %v4709_v36  ;;  %v3129_v24 = vpop.permute.xlu0 %3128  ;;  %vm16228_vm13 = vcmask 536032   ;;  %v4036_v36 = vrot.slane %v12184_v26, 4  ;;  %v3259_v16 = vrot.slane %v16451_v28, 4  ;;  %v3458_v28 = vshll.u32 %v3371_v29, 16 }
 0x490   : > { %3181 = vst.msk [vmem:[#allocation4 + $0x10] sm:$0xf] %vm16279_vm4, %v3129_v24  ;;  %v6948_v24 = vshll.u32 %v6912_v27, 16 }
 0x491   : > { %v3131_v38 = vpop.permute.xlu1 %3130  ;;  %3347 = vst.msk [vmem:[#allocation4 + $0x10] sm:$0xf] %vm16235_vm10, %v12466_v58  ;;  %5579 = vrot.lane.b32.xlu0 %v5439_v53, %s16446_s20  ;;  %v4669_v58 = vrot.slane %v16450_v20, 4  ;;  %v4044_v21 = vsel %vm11974_vm3, %v4036_v36, %v4043_v3  ;;  %v3261_v2 = vsel %vm11854_vm14, %v3259_v16, %v16227_v55  ;;  %v3699_v3 = vrot.slane %v3697_v40, 4  ;;  %v12625_v36 = vld [vmem:[#allocation3 + $0x20] sm:$0xf] }
 0x492   : > { %3182 = vst.msk [vmem:[#allocation4 + $0x18] sm:$0xf] %vm16279_vm4, %v3131_v38  ;;  %v4414_v38 = vshll.u32 %v4351_v59, 16  ;;  %v3455_v40 = vshrl.u32 %v3371_v29, 16  ;;  %v12636_v16 = vrot.slane %v6948_v24, 5  ;;  %v3460_v55 = vrot.slane %v3458_v28, 6 }
 0x493   : > { %3348 = vst.msk [vmem:[#allocation4 + $0x18] sm:$0xf] %vm16235_vm10, %v3297_v11  ;;  %4286 = vrot.lane.b32.xlu1 %v4243_v47, %s16449_s16  ;;  %v3569_v63 = vpop.permute.xlu0 %3568  ;;  %v4671_v26 = vsel %vm11854_vm14, %v4669_v58, %v16245_v46  ;;  %v12602_v11 = vld [vmem:[#allocation3 + $0x20] sm:$0xf]  ;;  %v12623_v47 = vld [vmem:[#allocation3 + $0x24] sm:$0xf]  ;;  %v16453_v58 = vor.u32 %v12284_v52, %v12277_v54 }
 0x494   : > { %3621 = vst.msk [vmem:[#allocation4 + $0x10] sm:$0xf] %vm16229_vm7, %v3569_v63  ;;  %v16226_v34 = vrot.slane %v12602_v11, 6  ;;  %v6952_v63 = vshrl.u32 %v6912_v27, 16  ;;  %v4416_v27 = vrot.slane %v4414_v38, 5  ;;  %v16244_v52 = vrot.slane %v12623_v47, 5 }
 0x495   : > { %v4872_v17 = vpop.permute.xlu1 %4871  ;;  %3787 = vst.msk [vmem:[#allocation4 + $0x10] sm:$0xf] %vm16233_vm0, %v12491_v44  ;;  %4170 = vrot.lane.b32.xlu0 %v4044_v21, %s16447_s30  ;;  %v12606_v44 = vld [vmem:[#allocation3 + $0x20] sm:$0xf]  ;;  %v4418_v21 = vshrl.u32 %v4351_v59, 16  ;;  %v5803_v59 = vrot.slane %v12625_v36, 5 }
 0x496   : > { %4925 = vst.msk [vmem:[#allocation4 + $0x8] sm:$0xf] %vm16228_vm13, %v4872_v17  ;;  %v7260_v53 = vrot.slane %v12606_v44, 5  ;;  %v4412_v17 = vrot.slane %v16453_v58, 4  ;;  %v3701_v33 = vsel %vm11849_vm12, %v3699_v3, %v16226_v34  ;;  %v12646_v3 = vrot.slane %v6952_v63, 4 }
 0x497   : > { %4716 = vrot.lane.b32.xlu1 %v4671_v26, %s16224_s23  ;;  %v4870_v51 = vpop.permute.xlu0 %4869  ;;  %s16452_s23 = smov 12   ;;  %v4420_v58 = vrot.slane %v4418_v21, 4  ;;  %v3457_v34 = vrot.slane %v3455_v40, 5  ;;  %v12668_v21 = vld [vmem:[#allocation3 + $0x20] sm:$0xf]  ;;  %v3019_v28 = vshrl.u32 %v2931_v13, 16 }
 0x498   : > { %4924 = vst.msk [vmem:[#allocation4] sm:$0xf] %vm16228_vm13, %v4870_v51  ;;  %v4242_v51 = vld [vmem:[#allocation3 + $0x20] sm:$0xf]  ;;  %v7262_v54 = vrot.slane %v7260_v53, 4  ;;  %16455 = vst [vmem:[#allocation21_spill] sm:$0xff] %v12646_v3  ;;  %v4417_v24 = vsel %vm11880_vm1, %v4412_v17, %v4416_v27 }
 0x499   : > { %v12611_v1 = vpop.permute.xlu1 %5318  ;;  %5693 = vrot.lane.b32.xlu0 %v5653_v56, %s16448_s15  ;;  %v3015_v56 = vshll.u32 %v2931_v13, 16  ;;  %v5805_v17 = vrot.slane %v5803_v59, 4  ;;  %vm16384_vm13 = vcmask 585232   ;;  %v7694_v13 = vrot.slane %v12668_v21, 6  ;;  %v12741_v44 = vld [vmem:[#allocation3 + $0x20] sm:$0xf] }
 0x49a   : > { %v7264_v63 = vsel %vm11854_vm14, %v7262_v54, %v16244_v52  ;;  %v4421_v54 = vor.u32 %v4420_v58, %v4416_v27  ;;  %vm16461_vm10 = vcmask 388432   ;;  %v12766_v36 = vld [vmem:[#allocation3 + $0x20] sm:$0xf] }
 0x49b   : > { %3304 = vrot.lane.b32.xlu1 %v3261_v2, %s16452_s23  ;;  %v12627_v20 = vpop.permute.xlu0 %5316  ;;  %v12644_v2 = vld [vmem:[#allocation3 + $0x24] sm:$0xf]  ;;  %v7696_v58 = vrot.slane %v7694_v13, 4  ;;  %v12785_v46 = vld [vmem:[#allocation3 + $0x20] sm:$0xf] }
 0x49d   : > { %v3907_v26 = vpop.permute.xlu1 %3906  ;;  %4284 = vrot.lane.b32.xlu0 %v4242_v51, %s16449_s16  ;;  %v16456_v51 = vor.u32 %v12298_v0, %v12287_v14  ;;  %v16242_v14 = vrot.slane %v12644_v2, 5  ;;  %v3017_v0 = vrot.slane %v3015_v56, 5 }
 0x49f   : > { %3744 = vrot.lane.b32.xlu1 %v3701_v33, %s16454_s2  ;;  %v3905_v29 = vpop.permute.xlu0 %3904  ;;  %v3013_v60 = vrot.slane %v16456_v51, 4 }
 0x4a0   : > { %3957 = vst.msk [vmem:[#allocation4 + $0x10] sm:$0xf] %vm16232_vm5, %v3905_v29 }
 0x4a1   : > { %v3571_v38 = vpop.permute.xlu1 %3570  ;;  %4551 = vrot.lane.b32.xlu0 %v4417_v24, %s16440_s21  ;;  %v3018_v24 = vsel %vm11880_vm1, %v3013_v60, %v3017_v0  ;;  %v3021_v60 = vrot.slane %v3019_v28, 4 }
 0x4a2   : > { %3622 = vst.msk [vmem:[#allocation4 + $0x18] sm:$0xf] %vm16229_vm7, %v3571_v38  ;;  %vm16317_vm7 = vcmask 634432   ;;  %v12676_v38 = vor.u32 %v3460_v55, %v3457_v34  ;;  %v4422_v34 = vrot.slane %v4421_v54, 4  ;;  %v7222_v54 = vld [vmem:[#allocation3 + $0x1c] sm:$0xe] }
 0x4a3   : > { %3788 = vst.msk [vmem:[#allocation4 + $0x18] sm:$0xf] %vm16233_vm0, %v12543_v5  ;;  %7313 = vrot.lane.b32.xlu1 %v7264_v63, %s16230_s3  ;;  %v12671_v40 = vpop.permute.xlu0 %4710  ;;  %v3453_v5 = vrot.slane %v12419_v10, 4  ;;  %s16457_s3 = smov 90   ;;  %v12688_v10 = vld [vmem:[#allocation3 + $0x24] sm:$0xf] }
 0x4a4   : > { %3958 = vst.msk [vmem:[#allocation4 + $0x18] sm:$0xf] %vm16232_vm5, %v3907_v26  ;;  %v5807_v26 = vsel %vm11854_vm14, %v5805_v17, %v16242_v14  ;;  %vm16285_vm5 = vcmask 683632   ;;  %16458 = vst [vmem:[#allocation22_spill] sm:$0xff] %v12688_v10  ;;  %vm16266_vm0 = vcmask 732832   ;;  %v16240_v51 = vrot.slane %v12688_v10, 6 }
 0x4a5   : > { %v5152_v29 = vpop.permute.xlu1 %5151  ;;  %3136 = vrot.lane.b32.xlu0 %v3018_v24, %s16441_s24  ;;  %v3462_v56 = vsel %vm11904_vm8, %v3453_v5, %v12676_v38  ;;  %v12704_v63 = vld [vmem:[#allocation3 + $0x20] sm:$0xf]  ;;  %v3022_v17 = vor.u32 %v3021_v60, %v3017_v0  ;;  %v6802_v24 = vld [vmem:[#allocation3 + $0x24] sm:$0xf] }
 0x4a6   : > { %5205 = vst.msk [vmem:[#allocation4 + $0x8] sm:$0xf] %vm16384_vm13, %v5152_v29  ;;  %v7698_v5 = vsel %vm11849_vm12, %v7696_v58, %v16240_v51  ;;  %v12720_v0 = vld [vmem:[#allocation3 + $0x24] sm:$0xf]  ;;  %v12722_v60 = vld [vmem:[#allocation3 + $0x20] sm:$0xf] }
 0x4a7   : > { %5854 = vrot.lane.b32.xlu1 %v5807_v26, %s16457_s3  ;;  %5372 = vst.msk [vmem:[#allocation4 + $0x8] sm:$0xf] %vm16317_vm7, %v12611_v1  ;;  %v12690_v55 = vpop.permute.xlu0 %3298  ;;  %v4427_v1 = vsel %vm11880_vm1, %v4422_v34, %v12328_v4  ;;  %v6237_v26 = vrot.slane %v12704_v63, 6  ;;  %16462 = vst [vmem:[#allocation23_spill] sm:$0xff] %v12720_v0  ;;  %v12772_v14 = vld [vmem:[#allocation3 + $0x24] sm:$0xf] }
 0x4a8   : > { %16468 = vst [vmem:[#allocation26_spill] sm:$0xff] %v12772_v14  ;;  %v16476_v63 = vrot.slane %v12766_v36, 7 }
 0x4a9   : > { %v5578_v27 = vpop.permute.xlu1 %5577  ;;  %3576 = vrot.lane.b32.xlu0 %v3462_v56, %s16459_s17  ;;  %v6239_v58 = vrot.slane %v6237_v26, 4 }
 0x4aa   : > { %5631 = vst.msk [vmem:[#allocation4 + $0x8] sm:$0xf] %vm16285_vm5, %v5578_v27  ;;  %v3023_v27 = vrot.slane %v3022_v17, 4  ;;  %v16243_v17 = vrot.slane %v12720_v0, 6 }
 0x4ab   : > { %4553 = vrot.lane.b32.xlu1 %v4427_v1, %s16440_s21  ;;  %5741 = vst.msk [vmem:[#allocation4 + $0x8] sm:$0xf] %vm16266_vm0, %v12474_v48  ;;  %v12708_v28 = vpop.permute.xlu0 %3738  ;;  %v9356_v48 = vrot.slane %v7222_v54, 9  ;;  %v16250_v54 = vrot.slane %v12722_v60, 6 }
 0x4ac   : > { %v6241_v33 = vsel %vm11849_vm12, %v6239_v58, %v16243_v17 }
 0x4ad   : > { %v4169_v29 = vpop.permute.xlu1 %4168  ;;  %6840 = vrot.lane.b32.xlu0 %v6802_v24, %s16460_s27  ;;  %v7261_v1 = vsel %vm11854_vm14, %v9356_v48, %v7260_v53  ;;  %v16464_v53 = vrot.slane %v12262_v22, 5  ;;  %v4354_v24 = vld [vmem:[#allocation3 + $0x28] sm:$0xf]  ;;  %v7656_v48 = vld [vmem:[#allocation3 + $0x1c] sm:$0xc] }
 0x4ae   : > { %4220 = vst.msk [vmem:[#allocation4 + $0x18] sm:$0xf] %vm16264_vm2, %v4169_v29  ;;  %v12746_v29 = vld [vmem:[#allocation3 + $0x24] sm:$0xf]  ;;  %v2934_v22 = vld [vmem:[#allocation3 + $0x28] sm:$0xf] }
 0x4af   : > { %4330 = vst.msk [vmem:[#allocation4 + $0x18] sm:$0xf] %vm16461_vm10, %v12494_v23  ;;  %7747 = vrot.lane.b32.xlu1 %v7698_v5, %s16238_s14  ;;  %v5150_v34 = vpop.permute.xlu0 %5149  ;;  %s16463_s14 = smov 4   ;;  %v3028_v23 = vsel %vm11880_vm1, %v3023_v27, %v12551_v49  ;;  %16465 = vst [vmem:[#allocation24_spill] sm:$0xff] %v12746_v29  ;;  %v16251_v51 = vrot.slane %v12746_v29, 6  ;;  %v4448_v58 = vshrl.u32 %v4354_v24, 16 }
 0x4b0   : > { %5204 = vst.msk [vmem:[#allocation4] sm:$0xf] %vm16384_vm13, %v5150_v34  ;;  %v12748_v34 = vld [vmem:[#allocation3 + $0x24] sm:$0xf]  ;;  %v3045_v17 = vshll.u32 %v2934_v22, 16 }
 0x4b1   : > { %v12725_v56 = vpop.permute.xlu1 %5691  ;;  %5371 = vst.msk [vmem:[#allocation4] sm:$0xf] %vm16317_vm7, %v12627_v20  ;;  %7311 = vrot.lane.b32.xlu0 %v7261_v1, %s16463_s14  ;;  %v5802_v20 = vrot.slane %v16464_v53, 4  ;;  %16466 = vst [vmem:[#allocation25_spill] sm:$0xff] %v12748_v34  ;;  %v2897_v53 = vld [vmem:[#allocation3 + $0x28] sm:$0xf] }
 0x4b2   : > { %2915 = vst.msk [vmem:[#allocation4 + $0x50] sm:$0xf] %vm2861_vm6, %v2897_v53 }
 0x4b3   : > { %3138 = vrot.lane.b32.xlu1 %v3028_v23, %s16441_s24  ;;  %v5576_v5 = vpop.permute.xlu0 %5575  ;;  %v5804_v1 = vsel %vm11854_vm14, %v5802_v20, %v5803_v59  ;;  %v16249_v23 = vrot.slane %v12741_v44, 7  ;;  %v4444_v59 = vshll.u32 %v4354_v24, 16  ;;  %v9357_v20 = vrot.slane %v7656_v48, 10  ;;  %v2898_v48 = vld [vmem:[#allocation3 + $0x2c] sm:$0xf] }
 0x4b4   : > { %5630 = vst.msk [vmem:[#allocation4] sm:$0xf] %vm16285_vm5, %v5576_v5  ;;  %v4832_v5 = vrot.slane %v16250_v54, 4  ;;  %v16252_v24 = vmov 0   ;;  %v3049_v54 = vshrl.u32 %v2934_v22, 16  ;;  %v12816_v22 = vrot.slane %v4448_v58, 4 }
 0x4b5   : > { %v12751_v27 = vpop.permute.xlu1 %4282  ;;  %5852 = vrot.lane.b32.xlu0 %v5804_v1, %s16457_s3  ;;  %5740 = vst.msk [vmem:[#allocation4] sm:$0xf] %vm16266_vm0, %v12531_v30  ;;  %v7695_v30 = vsel %vm11849_vm12, %v9357_v20, %v7694_v13  ;;  %v6681_v53 = vrot.slane %v16249_v23, 4  ;;  %8033 = vmatprep.subr.bf16.mxu0 %v16252_v24  ;;  %v16471_v13 = vrot.slane %v12304_v15, 6  ;;  %v12801_v23 = vrot.slane %v4444_v59, 5 }
 0x4b6   : > { %8198 = vmatprep.subr.bf16.mxu1 %v16252_v24  ;;  %v4834_v21 = vsel %vm11849_vm12, %v4832_v5, %v16251_v51  ;;  %2916 = vst.msk [vmem:[#allocation4 + $0x58] sm:$0xf] %vm2861_vm6, %v2898_v48  ;;  %v16473_v15 = vrot.slane %v12324_v12, 6  ;;  %v12813_v59 = vrot.slane %v3045_v17, 5  ;;  %16474 = vst [vmem:[#allocation27_spill] sm:$0xff] %v12816_v22  ;;  %v16475_v48 = vrot.slane %v12748_v34, 7 }
 0x4b7   : > { %6288 = vrot.lane.b32.xlu1 %v6241_v33, %s16467_s19  ;;  %v4167_v1 = vpop.permute.xlu0 %4166  ;;  %v6236_v20 = vrot.slane %v16471_v13, 4  ;;  %v3372_v33 = vld [vmem:[#allocation3 + $0x20] sm:$0xf]  ;;  %v5277_v13 = vrot.slane %v16476_v63, 4  ;;  %v12827_v12 = vld [vmem:[#allocation3 + $0x24] sm:$0xf] }
 0x4b8   : > { %4219 = vst.msk [vmem:[#allocation4 + $0x10] sm:$0xf] %vm16264_vm2, %v4167_v1  ;;  %v10429_v1 = vld [vmem:[%s16469_s4] sm:$0xff]   ;;  %16477 = vst [vmem:[#allocation28_spill] sm:$0xff] %v12827_v12  ;;  %v3465_v58 = vshrl.u32 %v3372_v33, 16  ;;  %v16480_v63 = vrot.slane %v12722_v60, 6 }
 0x4b9   : > { %v12775_v52 = vpop.permute.xlu1 %4712  ;;  %4329 = vst.msk [vmem:[#allocation4 + $0x10] sm:$0xf] %vm16461_vm10, %v12541_v25  ;;  %7745 = vrot.lane.b32.xlu0 %v7695_v30, %s16470_s13  ;;  %8034 = vmatpush1.bf16.msra.mxu0 %v10429_v1  ;;  %v6238_v5 = vsel %vm11849_vm12, %v6236_v20, %v6237_v26  ;;  %v4829_v30 = vrot.slane %v16473_v15, 4  ;;  %v6683_v1 = vsel %vm11929_vm11, %v6681_v53, %v16475_v48  ;;  %v3468_v20 = vshll.u32 %v3372_v33, 16  ;;  %v6910_v15 = vld [vmem:[#allocation3 + $0x1c] sm:$0xf] }
 0x4ba   : > { %8035 = vmatprep.subr.bf16.mxu0 %v16252_v24  ;;  %v12833_v24 = vrot.slane %v3049_v54, 4  ;;  %v6911_v53 = vld [vmem:[#allocation3 + $0x20] sm:$0xf]  ;;  %v16482_v22 = vrot.slane %v12785_v46, 7  ;;  %v3467_v3 = vrot.slane %v3465_v58, 5  ;;  %v10431_v54 = vld [vmem:[%s16469_s4 + $0x10] sm:$0xff]  }
 0x4bb   : > { %4879 = vrot.lane.b32.xlu1 %v4834_v21, %s16472_s25  ;;  %v12805_v25 = vpop.permute.xlu0 %5689  ;;  %v4831_v17 = vsel %vm11849_vm12, %v4829_v30, %v16480_v63  ;;  %v7386_v26 = vld [vmem:[#allocation3 + $0x20] sm:$0xf]  ;;  %v6929_v63 = vshrl.u32 %v6910_v15, 16  ;;  %v3470_v34 = vrot.slane %v3468_v20, 6  ;;  %v6938_v29 = vshll.u32 %v6911_v53, 16 }
 0x4bc   : > { %16478 = vst [vmem:[#allocation29_spill] sm:$0xff] %v12833_v24  ;;  %v10430_v33 = vld [vmem:[%s16469_s4 + $0x8] sm:$0xff]   ;;  %v3867_v30 = vrot.slane %v16482_v22, 4  ;;  %v6942_v0 = vshrl.u32 %v6911_v53, 16  ;;  %vm16278_vm10 = vcmask 782032   ;;  %v7413_v22 = vshrl.u32 %v7386_v26, 16 }
 0x4bd   : > { %v12818_v21 = vpop.permute.xlu1 %3300  ;;  %6286 = vrot.lane.b32.xlu0 %v6238_v5, %s16467_s19  ;;  %v6932_v5 = vshll.u32 %v6910_v15, 16  ;;  %8036 = vmatpush1.bf16.msra.mxu0 %v10430_v33  ;;  %v7416_v24 = vshll.u32 %v7386_v26, 16  ;;  %v16484_v15 = vmov 0   ;;  %v7387_v58 = vld [vmem:[#allocation3 + $0x24] sm:$0xf]  ;;  %v16485_v53 = vrot.slane %v12741_v44, 7 }
 0x4be   : > { %8037 = vmatprep.subr.bf16.mxu0 %v16484_v15  ;;  %v6931_v10 = vrot.slane %v6929_v63, 4  ;;  %vm16487_vm2 = vcmask 486832   ;;  %v16488_v26 = vrot.slane %v12827_v12, 7  ;;  %vm16492_vm0 = vcmask 486832  }
 0x4bf   : > { %6732 = vrot.lane.b32.xlu1 %v6683_v1, %s16479_s28  ;;  %v12836_v48 = vpop.permute.xlu0 %4280  ;;  %v16481_v1 = vrot.slane %v12772_v14, 7  ;;  %v7418_v63 = vrot.slane %v7416_v24, 6 }
 0x4c0   : > { %v3869_v44 = vsel %vm11929_vm11, %v3867_v30, %v16488_v26  ;;  %v5926_v30 = vld [vmem:[#allocation3 + $0x24] sm:$0xf] }
 0x4c1   : > { %v12848_v51 = vpop.permute.xlu1 %3740  ;;  %v5279_v60 = vsel %vm11929_vm11, %v5277_v13, %v16481_v1  ;;  %4877 = vrot.lane.b32.xlu0 %v4831_v17, %s16472_s25  ;;  %v16483_v13 = vrot.slane %v12341_v37, 7  ;;  %v6934_v37 = vrot.slane %v6932_v5, 5  ;;  %8038 = vmatpush1.bf16.msra.mxu0 %v10431_v54  ;;  %v7415_v5 = vrot.slane %v7413_v22, 5  ;;  %v10432_v22 = vld [vmem:[%s16469_s4 + $0x18] sm:$0xff]  }
 0x4c2   : > { %8039 = vmatprep.subr.bf16.mxu0 %v16484_v15 }
 0x4c3   : > { %5326 = vrot.lane.b32.xlu1 %v5279_v60, %s16442_s1  ;;  %v6678_v1 = vrot.slane %v16483_v13, 4  ;;  %v4548_v17 = vpop.permute.xlu0 %4547  ;;  %v16486_v60 = vrot.slane %v12364_v9, 7  ;;  %v5925_v13 = vld [vmem:[#allocation3 + $0x20] sm:$0xf]  ;;  %v6944_v9 = vrot.slane %v6942_v0, 4  ;;  %v6935_v54 = vor.u32 %v6934_v37, %v6931_v10 }
 0x4c4   : > { %4600 = vst.msk [vmem:[#allocation4 + $0x10] sm:$0xf] %vm16280_vm9, %v4548_v17  ;;  %v12879_v17 = vor.u32 %v3470_v34, %v3467_v3  ;;  %v5973_v12 = vshll.u32 %v5925_v13, 16  ;;  %v16490_v34 = vrot.slane %v12384_v7, 7  ;;  %v12904_v10 = vld [vmem:[#allocation3 + $0x2c] sm:$0xf]  ;;  %v12915_v37 = vor.u32 %v7418_v63, %v7415_v5 }
 0x4c5   : > { %v5851_v20 = vpop.permute.xlu1 %5850  ;;  %v6680_v33 = vsel %vm11929_vm11, %v6678_v1, %v16485_v53  ;;  %v5274_v14 = vrot.slane %v16486_v60, 4  ;;  %4763 = vst.msk [vmem:[#allocation4 + $0x10] sm:$0xf] %vm16487_vm2, %v12671_v40  ;;  %v12881_v1 = vrot.slane %v6938_v29, 5  ;;  %v7423_v40 = vshrl.u32 %v7387_v58, 16  ;;  %8040 = vmatpush1.bf16.msra.mxu0 %v10432_v22 }
 0x4c6   : > { %5904 = vst.msk [vmem:[#allocation4 + $0x8] sm:$0xf] %vm16278_vm10, %v5851_v20  ;;  %6730 = vrot.lane.b32.xlu0 %v6680_v33, %s16479_s28  ;;  %v7426_v53 = vshll.u32 %v7387_v58, 16  ;;  %v3463_v33 = vrot.slane %v12676_v38, 4  ;;  %v5970_v60 = vshrl.u32 %v5925_v13, 16  ;;  %v16489_v29 = vrot.slane %v12766_v36, 7  ;;  %8041 = vmatprep.subr.bf16.mxu0 %v16484_v15 }
 0x4c7   : > { %3914 = vrot.lane.b32.xlu1 %v3869_v44, %s16443_s22  ;;  %v3133_v20 = vpop.permute.xlu0 %3132  ;;  %v3864_v24 = vrot.slane %v16490_v34, 4  ;;  %vm16491_vm2 = vcmask 142432   ;;  %v6945_v7 = vor.u32 %v6944_v9, %v12881_v1  ;;  %v6359_v38 = vld [vmem:[#allocation3 + $0x20] sm:$0xf]  ;;  %v12913_v58 = vld [vmem:[#allocation3 + $0x24] sm:$0xf] }
 0x4c8   : > { %3183 = vst.msk [vmem:[#allocation4 + $0x20] sm:$0xf] %vm16279_vm4, %v3133_v20  ;;  %v5276_v0 = vsel %vm11929_vm11, %v5274_v14, %v16489_v29  ;;  %v3472_v14 = vsel %vm11904_vm8, %v3463_v33, %v12879_v17  ;;  %v7425_v13 = vrot.slane %v7423_v40, 5  ;;  %v7428_v26 = vrot.slane %v7426_v53, 6  ;;  %v6360_v5 = vld [vmem:[#allocation3 + $0x24] sm:$0xf] }
 0x4c9   : > { %v4550_v3 = vpop.permute.xlu1 %4549  ;;  %3349 = vst.msk [vmem:[#allocation4 + $0x20] sm:$0xf] %vm16491_vm2, %v12690_v55  ;;  %v16493_v55 = vrot.slane %v12785_v46, 7  ;;  %v5972_v9 = vrot.slane %v5970_v60, 5  ;;  %v5975_v20 = vrot.slane %v5973_v12, 6  ;;  %v5980_v33 = vshrl.u32 %v5926_v30, 16 }
 0x4ca   : > { %4601 = vst.msk [vmem:[#allocation4 + $0x18] sm:$0xf] %vm16280_vm9, %v4550_v3  ;;  %5324 = vrot.lane.b32.xlu0 %v5276_v0, %s16442_s1  ;;  %v5983_v3 = vshll.u32 %v5926_v30, 16  ;;  %v10433_v46 = vld [vmem:[%s16469_s4 + $0x20] sm:$0xff]   ;;  %v6936_v29 = vrot.slane %v6935_v54, 4  ;;  %v6405_v63 = vshrl.u32 %v6359_v38, 16  ;;  %v12937_v30 = vor.u32 %v7428_v26, %v7425_v13 }
 0x4cb   : > { %4764 = vst.msk [vmem:[#allocation4 + $0x18] sm:$0xf] %vm16492_vm0, %v12775_v52  ;;  %3578 = vrot.lane.b32.xlu1 %v3472_v14, %s16459_s17  ;;  %v3866_v36 = vsel %vm11929_vm11, %v3864_v24, %v16493_v55  ;;  %v3573_v44 = vpop.permute.xlu0 %3572  ;;  %vm16494_vm0 = vcmask 191632   ;;  %v6408_v40 = vshll.u32 %v6359_v38, 16  ;;  %v6968_v53 = vshll.u32 %v12904_v10, 16  ;;  %8042 = vmatpush1.bf16.msra.mxu0 %v10433_v46 }
 0x4cc   : > { %3623 = vst.msk [vmem:[#allocation4 + $0x20] sm:$0xf] %vm16494_vm0, %v3573_v44  ;;  %vm16495_vm2 = vcmask 240832   ;;  %v6803_v12 = vld [vmem:[#allocation3 + $0x28] sm:$0xf]  ;;  %v6946_v60 = vrot.slane %v6945_v7, 4  ;;  %8043 = vmatprep.subr.bf16.mxu0 %v16484_v15 }
 0x4cd   : > { %v3135_v52 = vpop.permute.xlu1 %3134  ;;  %3789 = vst.msk [vmem:[#allocation4 + $0x20] sm:$0xf] %vm16495_vm2, %v12708_v28  ;;  %v16496_v0 = vrot.slane %v12572_v57, 5  ;;  %v16269_v24 = vrot.slane %v12913_v58, 5  ;;  %vm16497_vm0 = vcmask 142432   ;;  %v6941_v28 = vsel %vm11880_vm1, %v6936_v29, %v12881_v1  ;;  %16498 = vst [vmem:[#allocation30_spill] sm:$0xff] %v12937_v30 }
 0x4ce   : > { %3184 = vst.msk [vmem:[#allocation4 + $0x28] sm:$0xf] %vm16279_vm4, %v3135_v52  ;;  %3912 = vrot.lane.b32.xlu0 %v3866_v36, %s16443_s22  ;;  %v7421_v54 = vrot.slane %v12915_v37, 4  ;;  %v4948_v22 = vld [vmem:[#allocation3 + $0x20] sm:$0xf]  ;;  %v6972_v14 = vshrl.u32 %v12904_v10, 16 }
 0x4cf   : > { %v4672_v34 = vrot.slane %v16496_v0, 4  ;;  %3350 = vst.msk [vmem:[#allocation4 + $0x28] sm:$0xf] %vm16497_vm0, %v12818_v21  ;;  %6842 = vrot.lane.b32.xlu1 %v6803_v12, %s16460_s27  ;;  %v10434_v57 = vld [vmem:[%s16469_s4 + $0x28] sm:$0xff]   ;;  %v12943_v7 = vpop.permute.xlu0 %6836  ;;  %v12945_v21 = vor.u32 %v5975_v20, %v5972_v9  ;;  %v5982_v38 = vrot.slane %v5980_v33, 5  ;;  %v5985_v55 = vrot.slane %v5983_v3, 6 }
 0x4d0   : > { %v6415_v36 = vshrl.u32 %v6360_v5, 16  ;;  %v7385_v1 = vld [vmem:[#allocation3 + $0x1c] sm:$0xe]  ;;  %v12950_v26 = vld [vmem:[#allocation3 + $0x24] sm:$0xf]  ;;  %v6407_v10 = vrot.slane %v6405_v63, 6  ;;  %v6951_v9 = vsel %vm11880_vm1, %v6946_v60, %v12636_v16  ;;  %8044 = vmatpush1.bf16.msra.mxu0 %v10434_v57  ;;  %v7430_v60 = vsel %vm11904_vm8, %v7421_v54, %v12937_v30 }
 0x4d1   : > { %v12948_v13 = vpop.permute.xlu1 %6284  ;;  %v6410_v44 = vrot.slane %v6408_v40, 7  ;;  %v6418_v46 = vshll.u32 %v6360_v5, 16  ;;  %v12952_v52 = vrot.slane %v6968_v53, 5  ;;  %v4674_v20 = vsel %vm11854_vm14, %v4672_v34, %v16269_v24  ;;  %v4949_v53 = vld [vmem:[#allocation3 + $0x24] sm:$0xf]  ;;  %8045 = vmatprep.subr.bf16.mxu0 %v16484_v15 }
 0x4d2   : > { %7107 = vrot.lane.b32.xlu0 %v6941_v28, %s16267_s12  ;;  %v5015_v33 = vshrl.u32 %v4948_v22, 16  ;;  %v5018_v3 = vshll.u32 %v4948_v22, 16  ;;  %v16500_v29 = vrot.slane %v12586_v31, 5  ;;  %v7404_v63 = vshrl.u32 %v7385_v1, 16  ;;  %v10435_v31 = vld [vmem:[%s16469_s4 + $0x30] sm:$0xff]  }
 0x4d3   : > { %16499 = vst [vmem:[#allocation31_spill] sm:$0xff] %v12952_v52  ;;  %7109 = vrot.lane.b32.xlu1 %v6951_v9, %s16267_s12  ;;  %v7407_v40 = vshll.u32 %v7385_v1, 16  ;;  %v12965_v12 = vrot.slane %v6972_v14, 4  ;;  %v5849_v0 = vpop.permute.xlu0 %5848  ;;  %v5978_v28 = vrot.slane %v12945_v21, 4  ;;  %v12972_v22 = vor.u32 %v5985_v55, %v5982_v38  ;;  %v12985_v38 = vld [vmem:[#allocation3 + $0x24] sm:$0xf] }
 0x4d4   : > { %v3262_v5 = vrot.slane %v16500_v29, 4  ;;  %5903 = vst.msk [vmem:[#allocation4] sm:$0xf] %vm16278_vm10, %v5849_v0  ;;  %v12979_v57 = vor.u32 %v6410_v44, %v6407_v10  ;;  %v6417_v1 = vrot.slane %v6415_v36, 6  ;;  %v6420_v9 = vrot.slane %v6418_v46, 7  ;;  %s16273_s12 = smov 10   ;;  %8046 = vmatpush1.bf16.msra.mxu0 %v10435_v31 }
 0x4d5   : > { %16501 = vst [vmem:[#allocation32_spill] sm:$0xff] %v12965_v12  ;;  %v4876_v14 = vpop.permute.xlu1 %4875  ;;  %vm16502_vm2 = vcmask 536032   ;;  %v5017_v55 = vrot.slane %v5015_v33, 6  ;;  %v5020_v29 = vrot.slane %v5018_v3, 7  ;;  %v5025_v24 = vshrl.u32 %v4949_v53, 16  ;;  %v10436_v46 = vld [vmem:[%s16469_s4 + $0x38] sm:$0xff]   ;;  %8047 = vmatprep.subr.bf16.mxu0 %v16484_v15 }
 0x4d6   : > { %4927 = vst.msk [vmem:[#allocation4 + $0x18] sm:$0xf] %vm16502_vm2, %v4876_v14  ;;  %4718 = vrot.lane.b32.xlu0 %v4674_v20, %s16503_s10  ;;  %v5028_v34 = vshll.u32 %v4949_v53, 16  ;;  %v7406_v10 = vrot.slane %v7404_v63, 5  ;;  %v7409_v44 = vrot.slane %v7407_v40, 6  ;;  %v16504_v20 = vrot.slane %v12950_v26, 5  ;;  %vm16507_vm0 = vmmov %vm16502_vm2 }
 0x4d7   : > { %7584 = vrot.lane.b32.xlu1 %v7430_v60, %s16273_s12  ;;  %v5396_v36 = vld [vmem:[#allocation3 + $0x24] sm:$0xf]  ;;  %v12991_v0 = vpop.permute.xlu0 %6282  ;;  %v16505_v3 = vrot.slane %v12602_v11, 6  ;;  %v5987_v40 = vsel %vm11904_vm8, %v5978_v28, %v12972_v22  ;;  %v16276_v60 = vrot.slane %v12985_v38, 6  ;;  %v6413_v31 = vrot.slane %v12979_v57, 4  ;;  %v10437_v28 = vld [vmem:[%s16469_s4 + $0x40] sm:$0xff]  }
 0x4d8   : > { %v3264_v33 = vsel %vm11854_vm14, %v3262_v5, %v16504_v20  ;;  %v13007_v14 = vor.u32 %v6420_v9, %v6417_v1  ;;  %v13009_v54 = vld [vmem:[#allocation3 + $0x20] sm:$0xf]  ;;  %v13012_v11 = vor.u32 %v5020_v29, %v5017_v55  ;;  %v5027_v5 = vrot.slane %v5025_v24, 6  ;;  %v3982_v30 = vld [vmem:[#allocation3 + $0x24] sm:$0xf]  ;;  %8048 = vmatpush1.bf16.msra.mxu0 %v10436_v46  ;;  %s16508_s12 = smov 108  }
 0x4d9   : > { %v3702_v53 = vrot.slane %v16505_v3, 4  ;;  %v13000_v63 = vpop.permute.xlu1 %6728  ;;  %v5030_v20 = vrot.slane %v5028_v34, 7  ;;  %v5460_v3 = vshrl.u32 %v5396_v36, 16  ;;  %v7410_v12 = vor.u32 %v7409_v44, %v7406_v10  ;;  %8049 = vmatprep.subr.bf16.mxu0 %v16484_v15  ;;  %v13030_v29 = vld [vmem:[#allocation3 + $0x20] sm:$0xf] }
 0x4da   : > { %3306 = vrot.lane.b32.xlu0 %v3264_v33, %s16452_s23  ;;  %v5451_v9 = vshrl.u32 %v13009_v54, 16  ;;  %v6422_v34 = vsel %vm12170_vm15, %v6413_v31, %v13007_v14  ;;  %v2899_v10 = vld [vmem:[#allocation3 + $0x30] sm:$0xf]  ;;  %v5023_v44 = vrot.slane %v13012_v11, 4  ;;  %vm16509_vm2 = vcmask 1042432  }
 0x4db   : > { %6125 = vrot.lane.b32.xlu1 %v5987_v40, %s16506_s29  ;;  %v4874_v1 = vpop.permute.xlu0 %4873  ;;  %v3704_v24 = vsel %vm11849_vm12, %v3702_v53, %v16276_v60  ;;  %v13034_v46 = vor.u32 %v5030_v20, %v5027_v5  ;;  %v13036_v33 = vrot.slane %v5460_v3, 7  ;;  %v4065_v40 = vshrl.u32 %v3982_v30, 16  ;;  %2917 = vst.msk [vmem:[#allocation4 + $0x60] sm:$0xf] %vm2861_vm6, %v2899_v10  ;;  %v2900_v10 = vld [vmem:[#allocation3 + $0x34] sm:$0xf] }
 0x4dc   : > { %4926 = vst.msk [vmem:[#allocation4 + $0x10] sm:$0xf] %vm16507_vm0, %v4874_v1  ;;  %v7411_v53 = vrot.slane %v7410_v12, 4  ;;  %8050 = vmatpush1.bf16.msra.mxu0 %v10437_v28  ;;  %v10438_v31 = vld [vmem:[%s16469_s4 + $0x48] ss:$0 sps:$4 sm:$0x77]  }
 0x4dd   : > { %v13021_v55 = vpop.permute.xlu1 %5322  ;;  %v5463_v60 = vshll.u32 %v5396_v36, 16  ;;  %v4056_v5 = vshrl.u32 %v13030_v29, 16  ;;  %8051 = vmatprep.subr.bf16.mxu0 %v16484_v15  ;;  %v8031_v12 = vsel %vm16509_vm2, %v10438_v31, 0  ;;  %v5032_v28 = vsel %vm12170_vm15, %v5023_v44, %v13034_v46  ;;  %2918 = vst.msk [vmem:[#allocation4 + $0x68] sm:$0xf] %vm2861_vm6, %v2900_v10 }
 0x4de   : > { %3746 = vrot.lane.b32.xlu0 %v3704_v24, %s16454_s2  ;;  %v5453_v24 = vrot.slane %v5451_v9, 7  ;;  %v7420_v3 = vsel %vm11904_vm8, %v7411_v53, %v12915_v37  ;;  %v13056_v36 = vrot.slane %v4065_v40, 7  ;;  %v4068_v31 = vshll.u32 %v3982_v30, 16  ;;  %v4356_v40 = vld [vmem:[#allocation3 + $0x30] sm:$0xf] }
 0x4df   : > { %6565 = vrot.lane.b32.xlu1 %v6422_v34, %s16508_s12  ;;  %v13043_v1 = vpop.permute.xlu0 %6726  ;;  %v5465_v9 = vor.u32 %v5463_v60, %v13036_v33  ;;  %v5968_v34 = vrot.slane %v12453_v41, 4  ;;  %v4058_v53 = vrot.slane %v4056_v5, 7  ;;  %vm16511_vm0 = vcmask 191632  }
 0x4e0   : > { %8052 = vmatpush1.bf16.msra.mxu0 %v8031_v12  ;;  %v5458_v37 = vrot.slane %v5453_v24, 4  ;;  %v4070_v44 = vor.u32 %v4068_v31, %v13056_v36  ;;  %vm16512_vm2 = vcmask 240832   ;;  %v6403_v30 = vrot.slane %v12481_v19, 4 }
 0x4e1   : > { %v3911_v20 = vpop.permute.xlu1 %3910  ;;  %v5977_v60 = vsel %vm11904_vm8, %v5968_v34, %v12945_v21  ;;  %vm16513_vm10 = vcmask 290032   ;;  %v4063_v5 = vrot.slane %v4058_v53, 4  ;;  %v2936_v34 = vld [vmem:[#allocation3 + $0x30] sm:$0xf]  ;;  %v5013_v19 = vrot.slane %v12510_v18, 4 }
 0x4e2   : > { %7582 = vrot.lane.b32.xlu0 %v7420_v3, %s16510_s8  ;;  %v5466_v41 = vsel %vm11974_vm3, %v5458_v37, %v5465_v9  ;;  %v4464_v9 = vshll.u32 %v4356_v40, 16  ;;  %v4468_v37 = vshrl.u32 %v4356_v40, 16  ;;  %v5449_v18 = vrot.slane %v12512_v6, 4  ;;  %v4245_v6 = vld [vmem:[#allocation3 + $0x2c] sm:$0xf] }
 0x4e3   : > { %5159 = vrot.lane.b32.xlu1 %v5032_v28, %s16445_s0  ;;  %v13060_v15 = vpop.permute.xlu0 %5320  ;;  %v6412_v28 = vsel %vm12170_vm15, %v6403_v30, %v12979_v57  ;;  %v5022_v57 = vsel %vm12170_vm15, %v5013_v19, %v13012_v11  ;;  %v13100_v11 = vld [vmem:[#allocation3 + $0x28] sm:$0xf]  ;;  %vm16282_vm4 = vcmask 978832   ;;  %vm6890_vm9 = vcmask 1028032  }
 0x4e4   : > { %v13104_v40 = vrot.slane %v4468_v37, 4 }
 0x4e5   : > { %v3575_v3 = vpop.permute.xlu1 %3574 }
 0x4e6   : > { %3624 = vst.msk [vmem:[#allocation4 + $0x28] sm:$0xf] %vm16511_vm0, %v3575_v3  ;;  %6123 = vrot.lane.b32.xlu0 %v5977_v60, %s16506_s29  ;;  %vm16514_vm0 = vmmov %vm16513_vm10  ;;  %v3065_v60 = vshll.u32 %v2936_v34, 16 }
 0x4e7   : > { %3790 = vst.msk [vmem:[#allocation4 + $0x28] sm:$0xf] %vm16512_vm2, %v12848_v51  ;;  %5585 = vrot.lane.b32.xlu1 %v5466_v41, %s16446_s20  ;;  %v3909_v21 = vpop.permute.xlu0 %3908  ;;  %v4071_v51 = vsel %vm11974_vm3, %v4063_v5, %v4070_v44  ;;  %vm16281_vm2 = vcmask 831232   ;;  %v5656_v41 = vld [vmem:[#allocation3 + $0x2c] sm:$0xf]  ;;  %v13093_v44 = vrot.slane %v4464_v9, 5 }
 0x4e8   : > { %3960 = vst.msk [vmem:[#allocation4 + $0x28] sm:$0xf] %vm16513_vm10, %v3911_v20  ;;  %v5454_v20 = vshll.u32 %v13009_v54, 16  ;;  %vm16320_vm10 = vcmask 880432   ;;  %v4059_v54 = vshll.u32 %v13030_v29, 16  ;;  %16515 = vst [vmem:[#allocation33_spill] sm:$0xff] %v13104_v40 }
 0x4e9   : > { %3959 = vst.msk [vmem:[#allocation4 + $0x20] sm:$0xf] %vm16514_vm0, %v3909_v21  ;;  %v6839_v12 = vpop.permute.xlu1 %6838  ;;  %vm6613_vm0 = vcmask 929632   ;;  %v16290_v29 = vrot.slane %v13100_v11, 5  ;;  %v4054_v9 = vrot.slane %v12526_v8, 4 }
 0x4ea   : > { %6563 = vrot.lane.b32.xlu0 %v6412_v28, %s16508_s12  ;;  %v5456_v3 = vor.u32 %v5454_v20, %v5453_v24  ;;  %v3069_v24 = vshrl.u32 %v2936_v34, 16  ;;  %v4061_v28 = vor.u32 %v4059_v54, %v4058_v53  ;;  %v13119_v53 = vld [vmem:[#allocation3 + $0x28] sm:$0xf]  ;;  %v16517_v20 = vrot.slane %v12913_v58, 5  ;;  %v4353_v54 = vld [vmem:[#allocation3 + $0x24] sm:$0xf] }
 0x4eb   : > { %4176 = vrot.lane.b32.xlu1 %v4071_v51, %s16447_s30  ;;  %v13086_v10 = vpop.permute.xlu0 %4714  ;;  %v13142_v58 = vld [vmem:[#allocation3 + $0x28] sm:$0xf] }
 0x4ec   : > { %v5457_v5 = vsel %vm11974_vm3, %v5449_v18, %v5456_v3  ;;  %v13121_v34 = vrot.slane %v3069_v24, 4  ;;  %v4675_v37 = vrot.slane %v16517_v20, 4  ;;  %v13144_v3 = vld [vmem:[#allocation3 + $0x28] sm:$0xf] }
 0x4ed   : > { %v6122_v31 = vpop.permute.xlu1 %6121  ;;  %v13164_v20 = vld [vmem:[#allocation3 + $0x28] sm:$0xf] }
 0x4ee   : > { %6175 = vst.msk [vmem:[#allocation4 + $0x8] sm:$0xf] %vm16281_vm2, %v6122_v31  ;;  %5157 = vrot.lane.b32.xlu0 %v5022_v57, %s16445_s0  ;;  %16516 = vst [vmem:[#allocation34_spill] sm:$0xff] %v13121_v34  ;;  %v4062_v57 = vsel %vm11974_vm3, %v4054_v9, %v4061_v28  ;;  %v4677_v8 = vsel %vm11854_vm14, %v4675_v37, %v16290_v29  ;;  %v3373_v28 = vld [vmem:[#allocation3 + $0x24] sm:$0xf] }
 0x4ef   : > { %5699 = vrot.lane.b32.xlu1 %v5656_v41, %s16448_s15  ;;  %6338 = vst.msk [vmem:[#allocation4 + $0x8] sm:$0xf] %vm16320_vm10, %v12948_v13  ;;  %v13102_v30 = vpop.permute.xlu0 %3302  ;;  %v13108_v13 = vrot.slane %v3065_v60, 5  ;;  %v16518_v41 = vrot.slane %v12950_v26, 5  ;;  %v16288_v26 = vrot.slane %v13142_v58, 6 }
 0x4f0   : > { %v13162_v9 = vld [vmem:[#allocation3 + $0x2c] sm:$0xf]  ;;  %v2938_v29 = vld [vmem:[#allocation3 + $0x38] sm:$0xf] }
 0x4f1   : > { %v6562_v21 = vpop.permute.xlu1 %6561  ;;  %v3265_v18 = vrot.slane %v16518_v41, 4  ;;  %v2901_v41 = vld [vmem:[#allocation3 + $0x38] sm:$0xf] }
 0x4f2   : > { %6615 = vst.msk [vmem:[#allocation4 + $0x8] sm:$0xf] %vm6613_vm0, %v6562_v21  ;;  %5583 = vrot.lane.b32.xlu0 %v5457_v5, %s16446_s20  ;;  %v5655_v21 = vld [vmem:[#allocation3 + $0x28] sm:$0xf]  ;;  %v7266_v5 = vrot.slane %v13144_v3, 5  ;;  %v16532_v3 = vrot.slane %v12644_v2, 5 }
 0x4f3   : > { %6782 = vst.msk [vmem:[#allocation4 + $0x8] sm:$0xf] %vm16282_vm4, %v13000_v63  ;;  %4290 = vrot.lane.b32.xlu1 %v4245_v6, %s16449_s16  ;;  %v13124_v19 = vpop.permute.xlu0 %3742  ;;  %v4434_v6 = vshll.u32 %v4353_v54, 16  ;;  %v6916_v63 = vld [vmem:[#allocation3 + $0x34] sm:$0xf] }
 0x4f4   : > { %6892 = vst.msk [vmem:[#allocation4 + $0x8] sm:$0xf] %vm6890_vm9, %v6839_v12  ;;  %v16289_v12 = vrot.slane %v13119_v53, 5 }
 0x4f5   : > { %v5156_v31 = vpop.permute.xlu1 %5155  ;;  %2919 = vst.msk [vmem:[#allocation4 + $0x70] sm:$0xf] %vm2861_vm6, %v2901_v41 }
 0x4f6   : > { %5207 = vst.msk [vmem:[#allocation4 + $0x18] sm:$0xf] %vm16384_vm13, %v5156_v31  ;;  %4174 = vrot.lane.b32.xlu0 %v4062_v57, %s16447_s30  ;;  %v16520_v31 = vrot.slane %v12985_v38, 6 }
 0x4f7   : > { %5374 = vst.msk [vmem:[#allocation4 + $0x18] sm:$0xf] %vm16317_vm7, %v13021_v55  ;;  %4720 = vrot.lane.b32.xlu1 %v4677_v8, %s16503_s10  ;;  %v6120_v60 = vpop.permute.xlu0 %6119  ;;  %v3267_v55 = vsel %vm11854_vm14, %v3265_v18, %v16289_v12  ;;  %v4438_v8 = vshrl.u32 %v4353_v54, 16  ;;  %v5809_v54 = vrot.slane %v13164_v20, 5  ;;  %v16537_v20 = vld [vmem:[#allocation22_spill] sm:$0xff] }
 0x4f8   : > { %6174 = vst.msk [vmem:[#allocation4] sm:$0xf] %vm16281_vm2, %v6120_v60  ;;  %vm16519_vm2 = vcmask 732832   ;;  %v3705_v57 = vrot.slane %v16520_v31, 4  ;;  %v2933_v60 = vld [vmem:[#allocation3 + $0x24] sm:$0xf] }
 0x4f9   : > { %v5582_v24 = vpop.permute.xlu1 %5581  ;;  %6337 = vst.msk [vmem:[#allocation4] sm:$0xf] %vm16320_vm10, %v12991_v0  ;;  %v4244_v0 = vld [vmem:[#allocation3 + $0x28] sm:$0xf]  ;;  %v4440_v31 = vrot.slane %v4438_v8, 4 }
 0x4fa   : > { %5633 = vst.msk [vmem:[#allocation4 + $0x18] sm:$0xf] %vm16285_vm5, %v5582_v24  ;;  %5697 = vrot.lane.b32.xlu0 %v5655_v21, %s16448_s15  ;;  %v3475_v21 = vshrl.u32 %v3373_v28, 16  ;;  %v3707_v38 = vsel %vm11849_vm12, %v3705_v57, %v16288_v26  ;;  %v6988_v57 = vshll.u32 %v6916_v63, 16 }
 0x4fb   : > { %5743 = vst.msk [vmem:[#allocation4 + $0x18] sm:$0xf] %vm16519_vm2, %v12725_v56  ;;  %3308 = vrot.lane.b32.xlu1 %v3267_v55, %s16452_s23  ;;  %v6560_v37 = vpop.permute.xlu0 %6559  ;;  %v16521_v56 = vor.u32 %v12331_v35, %v12328_v4  ;;  %v3478_v55 = vshll.u32 %v3373_v28, 16  ;;  %vm16522_vm2 = vcmask 339232   ;;  %v7268_v4 = vrot.slane %v7266_v5, 4 }
 0x4fc   : > { %6614 = vst.msk [vmem:[#allocation4] sm:$0xf] %vm6613_vm0, %v6560_v37  ;;  %v16287_v35 = vrot.slane %v13162_v9, 5  ;;  %v3035_v28 = vshll.u32 %v2933_v60, 16 }
 0x4fd   : > { %v4173_v18 = vpop.permute.xlu1 %4172  ;;  %v4432_v24 = vrot.slane %v16521_v56, 4  ;;  %6781 = vst.msk [vmem:[#allocation4] sm:$0xf] %vm16282_vm4, %v13043_v1  ;;  %vm16523_vm4 = vcmask 388432   ;;  %v4436_v1 = vrot.slane %v4434_v6, 5  ;;  %v3477_v56 = vrot.slane %v3475_v21, 5 }
 0x4fe   : > { %4222 = vst.msk [vmem:[#allocation4 + $0x28] sm:$0xf] %vm16522_vm2, %v4173_v18  ;;  %4288 = vrot.lane.b32.xlu0 %v4244_v0, %s16449_s16  ;;  %v13190_v0 = vld [vmem:[#allocation3 + $0x2c] sm:$0xf]  ;;  %v2902_v6 = vld [vmem:[#allocation3 + $0x3c] sm:$0xf]  ;;  %v7270_v8 = vsel %vm11854_vm14, %v7268_v4, %v16287_v35 }
 0x4ff   : > { %6891 = vst.msk [vmem:[#allocation4] sm:$0xf] %vm6890_vm9, %v12943_v7  ;;  %3748 = vrot.lane.b32.xlu1 %v3707_v38, %s16454_s2  ;;  %v5154_v37 = vpop.permute.xlu0 %5153  ;;  %v4437_v18 = vsel %vm11880_vm1, %v4432_v24, %v4436_v1  ;;  %v16524_v7 = vor.u32 %v12556_v45, %v12551_v49  ;;  %v3480_v38 = vrot.slane %v3478_v55, 6  ;;  %v5811_v24 = vrot.slane %v5809_v54, 4  ;;  %v13212_v21 = vld [vmem:[#allocation3 + $0x28] sm:$0xf] }
 0x500   : > { %4332 = vst.msk [vmem:[#allocation4 + $0x28] sm:$0xf] %vm16523_vm4, %v12751_v27  ;;  %v6992_v49 = vshrl.u32 %v6916_v63, 16  ;;  %v3037_v45 = vrot.slane %v3035_v28, 5  ;;  %v3039_v55 = vshrl.u32 %v2933_v60, 16  ;;  %v3473_v63 = vrot.slane %v12879_v17, 4 }
 0x501   : > { %5206 = vst.msk [vmem:[#allocation4 + $0x10] sm:$0xf] %vm16384_vm13, %v5154_v37  ;;  %v13193_v41 = vpop.permute.xlu1 %5695  ;;  %v3033_v27 = vrot.slane %v16524_v7, 4  ;;  %v16286_v37 = vrot.slane %v13190_v0, 5  ;;  %v13214_v7 = vrot.slane %v6988_v57, 5  ;;  %vm16526_vm4 = vcmask 732832  }
 0x502   : > { %5373 = vst.msk [vmem:[#allocation4 + $0x10] sm:$0xf] %vm16317_vm7, %v13060_v15  ;;  %4555 = vrot.lane.b32.xlu0 %v4437_v18, %s16440_s21  ;;  %v4441_v18 = vor.u32 %v4440_v31, %v4436_v1  ;;  %v7700_v1 = vrot.slane %v13212_v21, 6  ;;  %v13232_v28 = vrot.slane %v6992_v49, 4  ;;  %v13235_v31 = vld [vmem:[#allocation3 + $0x2c] sm:$0xf] }
 0x503   : > { %2920 = vst.msk [vmem:[#allocation4 + $0x78] sm:$0xf] %vm2861_vm6, %v2902_v6  ;;  %7317 = vrot.lane.b32.xlu1 %v7270_v8, %s16463_s14  ;;  %v5580_v15 = vpop.permute.xlu0 %5579  ;;  %16525 = vst [vmem:[#allocation35_spill] sm:$0xff] %v13214_v7  ;;  %v3038_v51 = vsel %vm11880_vm1, %v3033_v27, %v3037_v45  ;;  %v13222_v6 = vor.u32 %v3480_v38, %v3477_v56  ;;  %v5813_v60 = vsel %vm11854_vm14, %v5811_v24, %v16286_v37  ;;  %v13253_v49 = vld [vmem:[#allocation3 + $0x28] sm:$0xf]  ;;  %vm16318_vm7 = vcmask 76832  }
 0x504   : > { %5632 = vst.msk [vmem:[#allocation4 + $0x10] sm:$0xf] %vm16285_vm5, %v5580_v15  ;;  %16527 = vst [vmem:[#allocation36_spill] sm:$0xff] %v13232_v28  ;;  %v4442_v57 = vrot.slane %v4441_v18, 4  ;;  %v3041_v27 = vrot.slane %v3039_v55, 4  ;;  %v7702_v8 = vrot.slane %v7700_v1, 4 }
 0x505   : > { %v13217_v4 = vpop.permute.xlu1 %4286  ;;  %5742 = vst.msk [vmem:[#allocation4 + $0x10] sm:$0xf] %vm16526_vm4, %v12805_v25  ;;  %16528 = vst [vmem:[#allocation37_spill] sm:$0xff] %v13235_v31  ;;  %v3482_v56 = vsel %vm11904_vm8, %v3473_v63, %v13222_v6  ;;  %vm16529_vm4 = vcmask 388432   ;;  %v16283_v24 = vrot.slane %v13235_v31, 6  ;;  %v6243_v63 = vrot.slane %v13253_v49, 6 }
 0x506   : > { %3140 = vrot.lane.b32.xlu0 %v3038_v51, %s16441_s24  ;;  %v4447_v38 = vsel %vm11880_vm1, %v4442_v57, %v12801_v23  ;;  %v3042_v15 = vor.u32 %v3041_v27, %v3037_v45  ;;  %v6804_v18 = vld [vmem:[#allocation3 + $0x2c] sm:$0xf]  ;;  %v13270_v45 = vld [vmem:[#allocation3 + $0x28] sm:$0xf]  ;;  %vm16541_vm5 = vcmask 782032  }
 0x507   : > { %5858 = vrot.lane.b32.xlu1 %v5813_v60, %s16457_s3  ;;  %v4171_v17 = vpop.permute.xlu0 %4170  ;;  %v16530_v60 = vrot.slane %v12623_v47, 5  ;;  %v13268_v57 = vld [vmem:[#allocation3 + $0x2c] sm:$0xf]  ;;  %v6245_v49 = vrot.slane %v6243_v63, 4  ;;  %v7388_v28 = vld [vmem:[#allocation3 + $0x28] sm:$0xf] }
 0x508   : > { %4221 = vst.msk [vmem:[#allocation4 + $0x20] sm:$0xf] %vm16522_vm2, %v4171_v17  ;;  %16531 = vst [vmem:[#allocation38_spill] sm:$0xff] %v13268_v57  ;;  %v13291_v25 = vld [vmem:[#allocation3 + $0x2c] sm:$0xf]  ;;  %vm16534_vm2 = vcmask 437632  }
 0x509   : > { %v13240_v51 = vpop.permute.xlu1 %4716  ;;  %4331 = vst.msk [vmem:[#allocation4 + $0x20] sm:$0xf] %vm16529_vm4, %v12836_v48  ;;  %v7704_v48 = vsel %vm11849_vm12, %v7702_v8, %v16283_v24  ;;  %v7265_v17 = vrot.slane %v16530_v60, 4  ;;  %v13286_v60 = vld [vmem:[#allocation3 + $0x28] sm:$0xf]  ;;  %16533 = vst [vmem:[#allocation39_spill] sm:$0xff] %v13291_v25 }
 0x50a   : > { %3580 = vrot.lane.b32.xlu0 %v3482_v56, %s16459_s17  ;;  %v3043_v56 = vrot.slane %v3042_v15, 4  ;;  %v5808_v15 = vrot.slane %v16532_v3, 4  ;;  %vm16535_vm4 = vcmask 486832   ;;  %v13309_v3 = vld [vmem:[#allocation3 + $0x2c] sm:$0xf] }
 0x50b   : > { %4557 = vrot.lane.b32.xlu1 %v4447_v38, %s16440_s21  ;;  %v13255_v21 = vpop.permute.xlu0 %5693  ;;  %v7267_v8 = vsel %vm11854_vm14, %v7265_v17, %v7266_v5  ;;  %16536 = vst [vmem:[#allocation40_spill] sm:$0xff] %v13309_v3  ;;  %v7389_v7 = vld [vmem:[#allocation3 + $0x2c] sm:$0xf] }
 0x50c   : > { %v3048_v47 = vsel %vm11880_vm1, %v3043_v56, %v12813_v59  ;;  %v5810_v56 = vsel %vm11854_vm14, %v5808_v15, %v5809_v54  ;;  %v16538_v54 = vrot.slane %v16537_v20, 6  ;;  %v13331_v20 = vld [vmem:[#allocation3 + $0x2c] sm:$0xf] }
 0x50d   : > { %v13257_v55 = vpop.permute.xlu1 %3304  ;;  %16542 = vst [vmem:[#allocation22_spill] sm:$0xff] %v13331_v20 }
 0x50e   : > { %6844 = vrot.lane.b32.xlu0 %v6804_v18, %s16460_s27  ;;  %v16284_v18 = vrot.slane %v13268_v57, 6  ;;  %v7699_v15 = vrot.slane %v16538_v54, 4  ;;  %v4358_v54 = vld [vmem:[#allocation3 + $0x38] sm:$0xf] }
 0x50f   : > { %7751 = vrot.lane.b32.xlu1 %v7704_v48, %s16470_s13  ;;  %v13272_v27 = vpop.permute.xlu0 %4284  ;;  %v4836_v48 = vrot.slane %v13270_v45, 6  ;;  %v16292_v45 = vrot.slane %v13286_v60, 7 }
 0x510   : > { %v6247_v2 = vsel %vm11849_vm12, %v6245_v49, %v16284_v18  ;;  %v7701_v49 = vsel %vm11849_vm12, %v7699_v15, %v7700_v1  ;;  %v16543_v15 = vld [vmem:[#allocation23_spill] sm:$0xff] }
 0x511   : > { %v13274_v38 = vpop.permute.xlu1 %3744  ;;  %v6687_v18 = vrot.slane %v16292_v45, 4  ;;  %v4484_v45 = vshll.u32 %v4358_v54, 16 }
 0x512   : > { %7315 = vrot.lane.b32.xlu0 %v7267_v8, %s16463_s14  ;;  %v4838_v8 = vrot.slane %v4836_v48, 4 }
 0x513   : > { %3142 = vrot.lane.b32.xlu1 %v3048_v47, %s16441_s24  ;;  %v4552_v5 = vpop.permute.xlu0 %4551  ;;  %v16291_v47 = vrot.slane %v13291_v25, 6 }
 0x514   : > { %4602 = vst.msk [vmem:[#allocation4 + $0x20] sm:$0xf] %vm16534_vm2, %v4552_v5  ;;  %v13314_v5 = vld [vmem:[#allocation3 + $0x28] sm:$0xf]  ;;  %vm16539_vm2 = vcmask 93232  }
 0x515   : > { %v13294_v17 = vpop.permute.xlu1 %7313  ;;  %4765 = vst.msk [vmem:[#allocation4 + $0x20] sm:$0xf] %vm16535_vm4, %v13086_v10  ;;  %v2903_v10 = vld [vmem:[#allocation3 + $0x40] sm:$0xf]  ;;  %vm16540_vm4 = vcmask 142432   ;;  %v16294_v1 = vrot.slane %v13314_v5, 7 }
 0x516   : > { %5856 = vrot.lane.b32.xlu0 %v5810_v56, %s16457_s3  ;;  %2921 = vst.msk [vmem:[#allocation4 + $0x80] sm:$0xf] %vm2861_vm6, %v2903_v10  ;;  %v16544_v10 = vrot.slane %v16543_v15, 6  ;;  %vm16549_vm6 = vcmask 240832  }
 0x517   : > { %6292 = vrot.lane.b32.xlu1 %v6247_v2, %s16467_s19  ;;  %v3137_v24 = vpop.permute.xlu0 %3136  ;;  %v16293_v2 = vrot.slane %v13309_v3, 7  ;;  %v7433_v3 = vshrl.u32 %v7388_v28, 16 }
 0x518   : > { %3185 = vst.msk [vmem:[#allocation4 + $0x30] sm:$0xf] %vm16539_vm2, %v3137_v24  ;;  %v4840_v24 = vsel %vm11849_vm12, %v4838_v8, %v16291_v47  ;;  %v6242_v37 = vrot.slane %v16544_v10, 4  ;;  %v13349_v10 = vld [vmem:[#allocation3 + $0x2c] sm:$0xf]  ;;  %vm16550_vm2 = vcmask 437632  }
 0x519   : > { %v5855_v56 = vpop.permute.xlu1 %5854  ;;  %3351 = vst.msk [vmem:[#allocation4 + $0x30] sm:$0xf] %vm16540_vm4, %v13102_v30  ;;  %v13337_v30 = vld [vmem:[#allocation3 + $0x28] sm:$0xf]  ;;  %16548 = vst [vmem:[#allocation23_spill] sm:$0xff] %v13349_v10  ;;  %vm16551_vm4 = vcmask 486832  }
 0x51a   : > { %5906 = vst.msk [vmem:[#allocation4 + $0x18] sm:$0xf] %vm16541_vm5, %v5855_v56  ;;  %7749 = vrot.lane.b32.xlu0 %v7701_v49, %s16470_s13  ;;  %v3374_v56 = vld [vmem:[#allocation3 + $0x28] sm:$0xf]  ;;  %v16545_v49 = vld [vmem:[#allocation24_spill] sm:$0xff]  ;;  %vm16547_vm5 = vcmask 191632   ;;  %v6244_v47 = vsel %vm11849_vm12, %v6242_v37, %v6243_v63 }
 0x51b   : > { %4883 = vrot.lane.b32.xlu1 %v4840_v24, %s16472_s25  ;;  %v3577_v35 = vpop.permute.xlu0 %3576  ;;  %v16546_v26 = vrot.slane %v16545_v49, 6  ;;  %v6689_v24 = vsel %vm11929_vm11, %v6687_v18, %v16293_v2  ;;  %v3485_v37 = vshrl.u32 %v3374_v56, 16  ;;  %v3488_v63 = vshll.u32 %v3374_v56, 16  ;;  %v6913_v18 = vld [vmem:[#allocation3 + $0x28] sm:$0xf] }
 0x51c   : > { %3625 = vst.msk [vmem:[#allocation4 + $0x30] sm:$0xf] %vm16547_vm5, %v3577_v35  ;;  %v4488_v49 = vshrl.u32 %v4358_v54, 16  ;;  %v3085_v2 = vshll.u32 %v2938_v29, 16  ;;  %v6958_v34 = vshll.u32 %v6913_v18, 16  ;;  %v6962_v40 = vshrl.u32 %v6913_v18, 16 }
 0x51d   : > { %v4835_v12 = vrot.slane %v16546_v26, 4  ;;  %v4554_v8 = vpop.permute.xlu1 %4553  ;;  %3791 = vst.msk [vmem:[#allocation4 + $0x30] sm:$0xf] %vm16549_vm6, %v13124_v19  ;;  %v5283_v26 = vrot.slane %v16294_v1, 4  ;;  %v16555_v54 = vrot.slane %v13331_v20, 7  ;;  %v3490_v35 = vrot.slane %v3488_v63, 6 }
 0x51e   : > { %4603 = vst.msk [vmem:[#allocation4 + $0x28] sm:$0xf] %vm16550_vm2, %v4554_v8  ;;  %6290 = vrot.lane.b32.xlu0 %v6244_v47, %s16467_s19  ;;  %v16552_v8 = vld [vmem:[#allocation25_spill] sm:$0xff]  ;;  %v7436_v18 = vshll.u32 %v7388_v28, 16  ;;  %v16559_v20 = vrot.slane %v13286_v60, 7  ;;  %vm16561_vm5 = vcmask 93232  }
 0x51f   : > { %4766 = vst.msk [vmem:[#allocation4 + $0x28] sm:$0xf] %vm16551_vm4, %v13240_v51  ;;  %6736 = vrot.lane.b32.xlu1 %v6689_v24, %s16479_s28  ;;  %v13361_v19 = vpop.permute.xlu0 %6840  ;;  %v4837_v47 = vsel %vm11849_vm12, %v4835_v12, %v4836_v48  ;;  %v16553_v15 = vrot.slane %v16552_v8, 7  ;;  %v13370_v51 = vrot.slane %v4484_v45, 5  ;;  %v3089_v24 = vshrl.u32 %v2938_v29, 16 }
 0x520   : > { %v5285_v12 = vsel %vm11929_vm11, %v5283_v26, %v16555_v54  ;;  %v16556_v48 = vrot.slane %v13337_v30, 7  ;;  %v3487_v8 = vrot.slane %v3485_v37, 5  ;;  %v13380_v45 = vrot.slane %v3085_v2, 5  ;;  %v5927_v63 = vld [vmem:[#allocation3 + $0x28] sm:$0xf] }
 0x521   : > { %v6684_v1 = vrot.slane %v16553_v15, 4  ;;  %v13368_v56 = vpop.permute.xlu1 %7747  ;;  %16554 = vst [vmem:[#allocation24_spill] sm:$0xff] %v13370_v51  ;;  %v13382_v29 = vrot.slane %v4488_v49, 4  ;;  %v6964_v37 = vrot.slane %v6962_v40, 4  ;;  %v13394_v28 = vrot.slane %v3089_v24, 4 }
 0x522   : > { %4881 = vrot.lane.b32.xlu0 %v4837_v47, %s16472_s25  ;;  %v3873_v15 = vrot.slane %v16556_v48, 4  ;;  %16557 = vst [vmem:[#allocation25_spill] sm:$0xff] %v13380_v45  ;;  %v13390_v48 = vrot.slane %v6958_v34, 5  ;;  %v16562_v2 = vrot.slane %v13349_v10, 7  ;;  %v13404_v49 = vor.u32 %v3490_v35, %v3487_v8 }
 0x523   : > { %5330 = vrot.lane.b32.xlu1 %v5285_v12, %s16442_s1  ;;  %16558 = vst [vmem:[#allocation41_spill] sm:$0xff] %v13382_v29  ;;  %v13384_v47 = vpop.permute.xlu0 %7311  ;;  %v6686_v26 = vsel %vm11929_vm11, %v6684_v1, %v16559_v20  ;;  %16560 = vst [vmem:[#allocation42_spill] sm:$0xff] %v13394_v28  ;;  %v16563_v20 = vld [vmem:[#allocation26_spill] sm:$0xff]  ;;  %v7443_v40 = vshrl.u32 %v7389_v7, 16  ;;  %vm16565_vm6 = vcmask 142432   ;;  %v7435_v24 = vrot.slane %v7433_v3, 5 }
 0x524   : > { %v3875_v60 = vsel %vm11929_vm11, %v3873_v15, %v16562_v2  ;;  %v16564_v1 = vrot.slane %v16563_v20, 7  ;;  %v7446_v12 = vshll.u32 %v7389_v7, 16  ;;  %v3483_v15 = vrot.slane %v13222_v6, 4  ;;  %v5928_v7 = vld [vmem:[#allocation3 + $0x2c] sm:$0xf] }
 0x525   : > { %v3139_v54 = vpop.permute.xlu1 %3138  ;;  %v5990_v2 = vshrl.u32 %v5927_v63, 16  ;;  %v5993_v20 = vshll.u32 %v5927_v63, 16  ;;  %vm16566_vm2 = vcmask 782032   ;;  %v16567_v8 = vrot.slane %v13314_v5, 7 }
 0x526   : > { %3186 = vst.msk [vmem:[#allocation4 + $0x38] sm:$0xf] %vm16561_vm5, %v3139_v54  ;;  %6734 = vrot.lane.b32.xlu0 %v6686_v26, %s16479_s28  ;;  %v5280_v34 = vrot.slane %v16564_v1, 4  ;;  %v7438_v54 = vrot.slane %v7436_v18, 6  ;;  %v6965_v3 = vor.u32 %v6964_v37, %v13390_v48  ;;  %v3492_v6 = vsel %vm11904_vm8, %v3483_v15, %v13404_v49  ;;  %v16568_v18 = vld [vmem:[#allocation28_spill] sm:$0xff] }
 0x527   : > { %3352 = vst.msk [vmem:[#allocation4 + $0x38] sm:$0xf] %vm16565_vm6, %v13257_v55  ;;  %3918 = vrot.lane.b32.xlu1 %v3875_v60, %s16443_s22  ;;  %v5853_v29 = vpop.permute.xlu0 %5852  ;;  %v7445_v5 = vrot.slane %v7443_v40, 5  ;;  %v7448_v1 = vrot.slane %v7446_v12, 6  ;;  %v6361_v26 = vld [vmem:[#allocation3 + $0x28] sm:$0xf] }
 0x528   : > { %5905 = vst.msk [vmem:[#allocation4 + $0x10] sm:$0xf] %vm16566_vm2, %v5853_v29  ;;  %v5282_v55 = vsel %vm11929_vm11, %v5280_v34, %v16567_v8  ;;  %v16569_v29 = vrot.slane %v16568_v18, 7  ;;  %v13427_v60 = vor.u32 %v7438_v54, %v7435_v24  ;;  %v13431_v37 = vld [vmem:[#allocation3 + $0x2c] sm:$0xf]  ;;  %v5992_v8 = vrot.slane %v5990_v2, 5 }
 0x529   : > { %v13413_v35 = vpop.permute.xlu1 %6288  ;;  %v6000_v28 = vshrl.u32 %v5928_v7, 16  ;;  %v6003_v45 = vshll.u32 %v5928_v7, 16  ;;  %v16570_v15 = vrot.slane %v13337_v30, 7  ;;  %v6805_v18 = vld [vmem:[#allocation3 + $0x30] sm:$0xf]  ;;  %v16571_v24 = vld [vmem:[#allocation21_spill] sm:$0xff] }
 0x52a   : > { %5328 = vrot.lane.b32.xlu0 %v5282_v55, %s16442_s1  ;;  %v3870_v63 = vrot.slane %v16569_v29, 4  ;;  %v5995_v55 = vrot.slane %v5993_v20, 6  ;;  %v16572_v40 = vor.u32 %v16571_v24, %v12636_v16  ;;  %v6966_v54 = vrot.slane %v6965_v3, 4  ;;  %v6362_v2 = vld [vmem:[#allocation3 + $0x2c] sm:$0xf] }
 0x52b   : > { %3582 = vrot.lane.b32.xlu1 %v3492_v6, %s16459_s17  ;;  %v13429_v34 = vpop.permute.xlu0 %7745  ;;  %vm16573_vm4 = vcmask 536032   ;;  %v6425_v20 = vshrl.u32 %v6361_v26, 16  ;;  %v6428_v29 = vshll.u32 %v6361_v26, 16  ;;  %v4950_v7 = vld [vmem:[#allocation3 + $0x28] sm:$0xf]  ;;  %v7441_v3 = vrot.slane %v13427_v60, 4 }
 0x52c   : > { %v3872_v6 = vsel %vm11929_vm11, %v3870_v63, %v16570_v15  ;;  %v6956_v12 = vrot.slane %v16572_v40, 4  ;;  %v16574_v63 = vrot.slane %v13100_v11, 5  ;;  %v13454_v26 = vld [vmem:[#allocation3 + $0x2c] sm:$0xf]  ;;  %v13456_v40 = vor.u32 %v5995_v55, %v5992_v8  ;;  %vm16579_vm5 = vmmov %vm16573_vm4 }
 0x52d   : > { %v4880_v51 = vpop.permute.xlu1 %4879  ;;  %v6005_v10 = vrot.slane %v6003_v45, 6  ;;  %v6971_v11 = vsel %vm11880_vm1, %v6966_v54, %v12952_v52  ;;  %v6427_v16 = vrot.slane %v6425_v20, 6  ;;  %v16577_v45 = vrot.slane %v13431_v37, 5 }
 0x52e   : > { %4929 = vst.msk [vmem:[#allocation4 + $0x28] sm:$0xf] %vm16573_vm4, %v4880_v51  ;;  %3916 = vrot.lane.b32.xlu0 %v3872_v6, %s16443_s22  ;;  %v6961_v30 = vsel %vm11880_vm1, %v6956_v12, %v13390_v48  ;;  %v4678_v15 = vrot.slane %v16574_v63, 4  ;;  %v6918_v51 = vld [vmem:[#allocation3 + $0x3c] sm:$0xf]  ;;  %v13452_v6 = vor.u32 %v7448_v1, %v7445_v5  ;;  %v6435_v48 = vshrl.u32 %v6362_v2, 16 }
 0x52f   : > { %6846 = vrot.lane.b32.xlu1 %v6805_v18, %s16460_s27  ;;  %v13450_v24 = vpop.permute.xlu0 %6286  ;;  %v6002_v18 = vrot.slane %v6000_v28, 5  ;;  %v5035_v12 = vshrl.u32 %v4950_v7, 16  ;;  %v5038_v63 = vshll.u32 %v4950_v7, 16  ;;  %v6430_v5 = vrot.slane %v6428_v29, 7 }
 0x530   : > { %16575 = vst [vmem:[#allocation26_spill] sm:$0xff] %v13452_v6  ;;  %v6438_v1 = vshll.u32 %v6362_v2, 16  ;;  %v7008_v57 = vshll.u32 %v6918_v51, 16  ;;  %v4680_v28 = vsel %vm11854_vm14, %v4678_v15, %v16577_v45  ;;  %v16578_v8 = vrot.slane %v13119_v53, 5  ;;  %v13481_v15 = vld [vmem:[#allocation3 + $0x2c] sm:$0xf] }
 0x531   : > { %v13458_v25 = vpop.permute.xlu1 %6732  ;;  %v7450_v20 = vsel %vm11904_vm8, %v7441_v3, %v13452_v6  ;;  %v5998_v2 = vrot.slane %v13456_v40, 4  ;;  %v13476_v29 = vor.u32 %v6005_v10, %v6002_v18  ;;  %v5037_v53 = vrot.slane %v5035_v12, 6  ;;  %v5398_v10 = vld [vmem:[#allocation3 + $0x2c] sm:$0xf] }
 0x532   : > { %7111 = vrot.lane.b32.xlu0 %v6961_v30, %s16576_s26  ;;  %v3268_v55 = vrot.slane %v16578_v8, 4  ;;  %v7012_v30 = vshrl.u32 %v6918_v51, 16  ;;  %v5040_v45 = vrot.slane %v5038_v63, 7  ;;  %v5045_v8 = vshrl.u32 %v4951_v42, 16 }
 0x533   : > { %7113 = vrot.lane.b32.xlu1 %v6971_v11, %s16576_s26  ;;  %v4878_v7 = vpop.permute.xlu0 %4877  ;;  %v5048_v54 = vshll.u32 %v4951_v42, 16  ;;  %v13484_v52 = vor.u32 %v6430_v5, %v6427_v16  ;;  %v6437_v3 = vrot.slane %v6435_v48, 6  ;;  %v6440_v6 = vrot.slane %v6438_v1, 7 }
 0x534   : > { %4928 = vst.msk [vmem:[#allocation4 + $0x20] sm:$0xf] %vm16579_vm5, %v4878_v7  ;;  %v13486_v31 = vrot.slane %v7008_v57, 5  ;;  %v16581_v18 = vrot.slane %v13454_v26, 5  ;;  %v16582_v42 = vrot.slane %v13142_v58, 6  ;;  %v16316_v16 = vrot.slane %v13481_v15, 6 }
 0x535   : > { %v13479_v11 = vpop.permute.xlu1 %5326  ;;  %v13498_v5 = vrot.slane %v7012_v30, 4  ;;  %v6007_v57 = vsel %vm11904_vm8, %v5998_v2, %v13476_v29  ;;  %v13503_v1 = vor.u32 %v5040_v45, %v5037_v53  ;;  %v5050_v7 = vrot.slane %v5048_v54, 7 }
 0x536   : > { %4722 = vrot.lane.b32.xlu0 %v4680_v28, %s16503_s10  ;;  %16580 = vst [vmem:[#allocation28_spill] sm:$0xff] %v13486_v31  ;;  %v3270_v12 = vsel %vm11854_vm14, %v3268_v55, %v16581_v18  ;;  %v3708_v63 = vrot.slane %v16582_v42, 4  ;;  %v5047_v28 = vrot.slane %v5045_v8, 6  ;;  %v6433_v58 = vrot.slane %v13484_v52, 4  ;;  %v3984_v42 = vld [vmem:[#allocation3 + $0x2c] sm:$0xf] }
 0x537   : > { %7588 = vrot.lane.b32.xlu1 %v7450_v20, %s16510_s8  ;;  %16583 = vst [vmem:[#allocation21_spill] sm:$0xff] %v13498_v5  ;;  %v13505_v20 = vld [vmem:[#allocation3 + $0x28] sm:$0xf]  ;;  %v13509_v55 = vor.u32 %v6440_v6, %v6437_v3  ;;  %v5478_v18 = vshrl.u32 %v5398_v10, 16  ;;  %v5043_v6 = vrot.slane %v13503_v1, 4  ;;  %vm16584_vm6 = vcmask 191632  }
 0x538   : > { %v13489_v51 = vpop.permute.xlu0 %6730  ;;  %v5469_v53 = vshrl.u32 %v13505_v20, 16  ;;  %v3710_v45 = vsel %vm11849_vm12, %v3708_v63, %v16316_v16  ;;  %v13522_v8 = vor.u32 %v5050_v7, %v5047_v28  ;;  %v13524_v3 = vld [vmem:[#allocation3 + $0x28] sm:$0xf]  ;;  %v4083_v30 = vshrl.u32 %v3984_v42, 16  ;;  %v16586_v63 = vld [vmem:[#allocation30_spill] sm:$0xff] }
 0x539   : > { %v3915_v48 = vpop.permute.xlu1 %3914  ;;  %vm16585_vm2 = vcmask 240832   ;;  %v7431_v28 = vrot.slane %v16586_v63, 4  ;;  %vm16587_vm4 = vcmask 290032   ;;  %v5481_v16 = vshll.u32 %v5398_v10, 16 }
 0x53a   : > { %3310 = vrot.lane.b32.xlu0 %v3270_v12, %s16452_s23  ;;  %v6442_v12 = vsel %vm12170_vm15, %v6433_v58, %v13509_v55  ;;  %vm16588_vm5 = vmmov %vm16587_vm4 }
 0x53b   : > { %6129 = vrot.lane.b32.xlu1 %v6007_v57, %s16506_s29  ;;  %v13531_v57 = vrot.slane %v5478_v18, 7  ;;  %v7440_v18 = vsel %vm11904_vm8, %v7431_v28, %v13427_v60  ;;  %v4086_v28 = vshll.u32 %v3984_v42, 16 }
 0x53c   : > { %v13514_v2 = vpop.permute.xlu0 %5324 }
 0x53d   : > { %v3579_v54 = vpop.permute.xlu1 %3578  ;;  %v5483_v10 = vor.u32 %v5481_v16, %v13531_v57 }
 0x53e   : > { %3626 = vst.msk [vmem:[#allocation4 + $0x38] sm:$0xf] %vm16584_vm6, %v3579_v54  ;;  %3750 = vrot.lane.b32.xlu0 %v3710_v45, %s16454_s2  ;;  %v5471_v54 = vrot.slane %v5469_v53, 7  ;;  %v4074_v45 = vshrl.u32 %v13524_v3, 16  ;;  %vm7198_vm6 = vcmask 1044464   ;;  %v5988_v53 = vrot.slane %v12972_v22, 4 }
 0x53f   : > { %3792 = vst.msk [vmem:[#allocation4 + $0x38] sm:$0xf] %vm16585_vm2, %v13274_v38  ;;  %6569 = vrot.lane.b32.xlu1 %v6442_v12, %s16508_s12  ;;  %v5052_v38 = vsel %vm12170_vm15, %v5043_v6, %v13522_v8  ;;  %vm7199_vm2 = vcmask 31748  }
 0x540   : > { %3962 = vst.msk [vmem:[#allocation4 + $0x38] sm:$0xf] %vm16587_vm4, %v3915_v48  ;;  %v3913_v7 = vpop.permute.xlu0 %3912  ;;  %v13550_v48 = vrot.slane %v4083_v30, 7  ;;  %vm7161_vm4 = vcmask 1031168   ;;  %v5476_v63 = vrot.slane %v5471_v54, 4  ;;  %v4076_v60 = vrot.slane %v4074_v45, 7 }
 0x541   : > { %3961 = vst.msk [vmem:[#allocation4 + $0x30] sm:$0xf] %vm16588_vm5, %v3913_v7  ;;  %v13540_v58 = vpop.permute.xlu1 %6842  ;;  %vm13554_vm5 = vmor %vm7199_vm2, %vm7198_vm6  ;;  %v5997_v16 = vsel %vm11904_vm8, %v5988_v53, %v13456_v40  ;;  %vm16386_vm6 = vcmask 126032   ;;  %vm16319_vm2 = vcmask 175232   ;;  %v15827_v7 = vld [vmem:[%s16157_s5] ss:$0 sm:$0xff] }
 0x542   : > { %7586 = vrot.lane.b32.xlu0 %v7440_v18, %s16510_s8  ;;  %v5484_v22 = vsel %vm11974_vm3, %v5476_v63, %v5483_v10  ;;  %v4088_v45 = vor.u32 %v4086_v28, %v13550_v48  ;;  %v5033_v63 = vrot.slane %v13034_v46, 4  ;;  %v5467_v46 = vrot.slane %v13036_v33, 4 }
 0x543   : > { %5163 = vrot.lane.b32.xlu1 %v5052_v38, %s16445_s0  ;;  %v6423_v38 = vrot.slane %v13007_v14, 4 }
 0x544   : > { %v7108_v12 = vpop.permute.xlu0 %7107 }
 0x545   : > { %v7143_v6 = vrot.slane %v7108_v12, 4  ;;  %v7110_v18 = vpop.permute.xlu1 %7109  ;;  %v6432_v14 = vsel %vm12170_vm15, %v6423_v38, %v13484_v52 }
 0x546   : > { %v7144_v30 = vrot.slane %v7110_v18, 4  ;;  %6127 = vrot.lane.b32.xlu0 %v5997_v16, %s16506_s29  ;;  %v4081_v16 = vrot.slane %v4076_v60, 4 }
 0x547   : > { %v7162_v42 = vsel %vm7161_vm4, %v7143_v6, %v7108_v12  ;;  %5589 = vrot.lane.b32.xlu1 %v5484_v22, %s16446_s20  ;;  %v2940_v22 = vld [vmem:[#allocation3 + $0x40] sm:$0xf] }
 0x548   : > { %7201 = vst.msk [vmem:[#allocation4] sm:$0xff] %vm13554_vm5, %v7162_v42  ;;  %v7163_v40 = vsel %vm7161_vm4, %v7144_v30, %v7110_v18  ;;  %v13571_v53 = vpop.permute.xlu0 %4718  ;;  %v4089_v12 = vsel %vm11974_vm3, %v4081_v16, %v4088_v45  ;;  %v5658_v18 = vld [vmem:[#allocation3 + $0x34] sm:$0xf]  ;;  %v4360_v30 = vld [vmem:[#allocation3 + $0x40] sm:$0xf] }
 0x549   : > { %7202 = vst.msk [vmem:[#allocation4 + $0x8] sm:$0xff] %vm13554_vm5, %v7163_v40  ;;  %v7585_v10 = vpop.permute.xlu1 %7584  ;;  %v4504_v38 = vshll.u32 %v4360_v30, 16  ;;  %v3105_v40 = vshll.u32 %v2940_v22, 16  ;;  %v13616_v16 = vld [vmem:[#allocation3 + $0x30] sm:$0xf] }
 0x54a   : > { %7366 = vst.msk [vmem:[#allocation4 + $0x4] sm:$0xf] %vm16318_vm7, %v13384_v47  ;;  %7367 = vst.msk [vmem:[#allocation4 + $0xc] sm:$0xf] %vm16318_vm7, %v13294_v17  ;;  %6567 = vrot.lane.b32.xlu0 %v6432_v14, %s16508_s12  ;;  %v5472_v47 = vshll.u32 %v13505_v20, 16  ;;  %v5042_v17 = vsel %vm12170_vm15, %v5033_v63, %v13503_v1  ;;  %vm16591_vm7 = vcmask 831232  }
 0x54b   : > { %7638 = vst.msk [vmem:[#allocation4 + $0xc] sm:$0xf] %vm16386_vm6, %v7585_v10  ;;  %4180 = vrot.lane.b32.xlu1 %v4089_v12, %s16447_s30  ;;  %v13603_v20 = vld [vmem:[#allocation3 + $0x30] sm:$0xf]  ;;  %v4508_v10 = vshrl.u32 %v4360_v30, 16  ;;  %v16593_v14 = vrot.slane %v13431_v37, 5 }
 0x54c   : > { %7801 = vst.msk [vmem:[#allocation4 + $0xc] sm:$0xf] %vm16319_vm2, %v13368_v56  ;;  %v13591_v52 = vpop.permute.xlu0 %3306  ;;  %v5474_v6 = vor.u32 %v5472_v47, %v5471_v54  ;;  %v4077_v56 = vshll.u32 %v13524_v3, 16  ;;  %v16329_v33 = vrot.slane %v13603_v20, 5  ;;  %v4072_v3 = vrot.slane %v13056_v36, 4 }
 0x54d   : > { %v6126_v28 = vpop.permute.xlu1 %6125  ;;  %v4681_v12 = vrot.slane %v16593_v14, 4  ;;  %v3109_v63 = vshrl.u32 %v2940_v22, 16  ;;  %v16328_v37 = vrot.slane %v13616_v16, 5  ;;  %v16598_v30 = vrot.slane %v13454_v26, 5  ;;  %v13671_v14 = vld [vmem:[#allocation3 + $0x34] sm:$0xf] }
 0x54e   : > { %6177 = vst.msk [vmem:[#allocation4 + $0x18] sm:$0xf] %vm16591_vm7, %v6126_v28  ;;  %5161 = vrot.lane.b32.xlu0 %v5042_v17, %s16445_s0  ;;  %v5475_v45 = vsel %vm11974_vm3, %v5467_v46, %v5474_v6  ;;  %v4079_v42 = vor.u32 %v4077_v56, %v4076_v60  ;;  %vm16592_vm7 = vcmask 978832   ;;  %v13625_v28 = vrot.slane %v4504_v38, 5  ;;  %v13641_v17 = vld [vmem:[#allocation3 + $0x30] sm:$0xf] }
 0x54f   : > { %6340 = vst.msk [vmem:[#allocation4 + $0x18] sm:$0xf] %vm16320_vm10, %v13413_v35  ;;  %5703 = vrot.lane.b32.xlu1 %v5658_v18, %s16448_s15  ;;  %v4247_v35 = vld [vmem:[#allocation3 + $0x34] sm:$0xf]  ;;  %v4683_v36 = vsel %vm11854_vm14, %v4681_v12, %v16329_v33  ;;  %v13645_v6 = vrot.slane %v4508_v10, 4  ;;  %v3271_v46 = vrot.slane %v16598_v30, 4 }
 0x550   : > { %v13605_v1 = vpop.permute.xlu0 %3746  ;;  %16594 = vst [vmem:[#allocation30_spill] sm:$0xff] %v13625_v28  ;;  %v4355_v56 = vld [vmem:[#allocation3 + $0x2c] sm:$0xf]  ;;  %v13649_v22 = vrot.slane %v3109_v63, 4  ;;  %v16327_v38 = vrot.slane %v13641_v17, 6 }
 0x551   : > { %v6566_v54 = vpop.permute.xlu1 %6565  ;;  %16597 = vst [vmem:[#allocation44_spill] sm:$0xff] %v13645_v6  ;;  %v3273_v26 = vsel %vm11854_vm14, %v3271_v46, %v16328_v37  ;;  %v13673_v12 = vld [vmem:[#allocation3 + $0x30] sm:$0xf]  ;;  %v2935_v30 = vld [vmem:[#allocation3 + $0x2c] sm:$0xf] }
 0x552   : > { %6617 = vst.msk [vmem:[#allocation4 + $0x18] sm:$0xf] %vm6613_vm0, %v6566_v54  ;;  %5587 = vrot.lane.b32.xlu0 %v5475_v45, %s16446_s20  ;;  %16599 = vst [vmem:[#allocation45_spill] sm:$0xff] %v13649_v22  ;;  %v5657_v45 = vld [vmem:[#allocation3 + $0x30] sm:$0xf] }
 0x553   : > { %6784 = vst.msk [vmem:[#allocation4 + $0x18] sm:$0xf] %vm16592_vm7, %v13458_v25  ;;  %4294 = vrot.lane.b32.xlu1 %v4247_v35, %s16449_s16  ;;  %v4080_v25 = vsel %vm11974_vm3, %v4072_v3, %v4079_v42  ;;  %vm16596_vm7 = vcmask 634432   ;;  %v16603_v3 = vrot.slane %v13481_v15, 6  ;;  %v13794_v42 = vld [vmem:[#allocation3 + $0x30] sm:$0xf] }
 0x554   : > { %6894 = vst.msk [vmem:[#allocation4 + $0x18] sm:$0xf] %vm6890_vm9, %v13540_v58  ;;  %v7583_v60 = vpop.permute.xlu0 %7582  ;;  %v13636_v58 = vrot.slane %v3105_v40, 5  ;;  %v2904_v28 = vld [vmem:[#allocation3 + $0x44] sm:$0x3] }
 0x555   : > { %7637 = vst.msk [vmem:[#allocation4 + $0x4] sm:$0xf] %vm16386_vm6, %v7583_v60  ;;  %v5160_v47 = vpop.permute.xlu1 %5159  ;;  %v3711_v10 = vrot.slane %v16603_v3, 4  ;;  %v4454_v60 = vshll.u32 %v4355_v56, 16  ;;  %v5815_v3 = vrot.slane %v13673_v12, 5  ;;  %v16623_v12 = vld [vmem:[#allocation37_spill] sm:$0xff] }
 0x556   : > { %7800 = vst.msk [vmem:[#allocation4 + $0x4] sm:$0xf] %vm16319_vm2, %v13429_v34  ;;  %4178 = vrot.lane.b32.xlu0 %v4080_v25, %s16447_s30  ;;  %16595 = vst [vmem:[#allocation43_spill] sm:$0xff] %v13636_v58  ;;  %v13643_v34 = vld [vmem:[#allocation3 + $0x30] sm:$0xf]  ;;  %vm16600_vm2 = vcmask 831232  }
 0x557   : > { %5209 = vst.msk [vmem:[#allocation4 + $0x28] sm:$0xf] %vm16384_vm13, %v5160_v47  ;;  %4724 = vrot.lane.b32.xlu1 %v4683_v36, %s16503_s10  ;;  %v7272_v35 = vrot.slane %v13643_v34, 5  ;;  %v16604_v47 = vld [vmem:[#allocation27_spill] sm:$0xff] }
 0x558   : > { %5376 = vst.msk [vmem:[#allocation4 + $0x28] sm:$0xf] %vm16596_vm7, %v13479_v11  ;;  %v6124_v18 = vpop.permute.xlu0 %6123  ;;  %v3375_v11 = vld [vmem:[#allocation3 + $0x2c] sm:$0xf]  ;;  %vm16601_vm7 = vcmask 683632   ;;  %v16605_v25 = vor.u32 %v16604_v47, %v12801_v23  ;;  %v3713_v23 = vsel %vm11849_vm12, %v3711_v10, %v16327_v38 }
 0x559   : > { %6176 = vst.msk [vmem:[#allocation4 + $0x10] sm:$0xf] %vm16600_vm2, %v6124_v18  ;;  %v5586_v54 = vpop.permute.xlu1 %5585  ;;  %vm16602_vm2 = vcmask 732832   ;;  %v4458_v18 = vshrl.u32 %v4355_v56, 16  ;;  %v7274_v56 = vrot.slane %v7272_v35, 4 }
 0x55a   : > { %6339 = vst.msk [vmem:[#allocation4 + $0x10] sm:$0xf] %vm16320_vm10, %v13450_v24  ;;  %5701 = vrot.lane.b32.xlu0 %v5657_v45, %s16448_s15  ;;  %v4246_v24 = vld [vmem:[#allocation3 + $0x30] sm:$0xf]  ;;  %v4452_v36 = vrot.slane %v16605_v25, 4  ;;  %v3498_v45 = vshll.u32 %v3375_v11, 16 }
 0x55b   : > { %5635 = vst.msk [vmem:[#allocation4 + $0x28] sm:$0xf] %vm16601_vm7, %v5586_v54  ;;  %3312 = vrot.lane.b32.xlu1 %v3273_v26, %s16452_s23  ;;  %vm16322_vm7 = vcmask 179200   ;;  %v10439_v54 = vld [vmem:[#allocation4] ss:$8 sps:$4 sm:$0xff]   ;;  %vm16607_vm10 = vcmask 339232  }
 0x55c   : > { %5745 = vst.msk [vmem:[#allocation4 + $0x28] sm:$0xf] %vm16602_vm2, %v13193_v41  ;;  %v6564_v63 = vpop.permute.xlu0 %6563  ;;  %v3495_v41 = vshrl.u32 %v3375_v11, 16  ;;  %vm16606_vm2 = vcmask 978832   ;;  %v16326_v26 = vrot.slane %v13671_v14, 5  ;;  %v3055_v11 = vshll.u32 %v2935_v30, 16 }
 0x55d   : > { %6616 = vst.msk [vmem:[#allocation4 + $0x10] sm:$0xf] %vm6613_vm0, %v6564_v63  ;;  %v4177_v46 = vpop.permute.xlu1 %4176  ;;  %v10441_v15 = vld [vmem:[#allocation4 + $0x4] ss:$8 sps:$4 sm:$0xff]   ;;  %v4460_v63 = vrot.slane %v4458_v18, 4 }
 0x55e   : > { %6783 = vst.msk [vmem:[#allocation4 + $0x10] sm:$0xf] %vm16606_vm2, %v13489_v51  ;;  %4292 = vrot.lane.b32.xlu0 %v4246_v24, %s16449_s16  ;;  %vm16608_vm2 = vcmask 388432   ;;  %9387 = vmatprep.mubr.msk.bf16.mxu0 %vm16322_vm7, %v10441_v15  ;;  %v4456_v51 = vrot.slane %v4454_v60, 5  ;;  %v13697_v24 = vld [vmem:[#allocation3 + $0x34] sm:$0xf]  ;;  %v7276_v18 = vsel %vm11854_vm14, %v7274_v56, %v16326_v26 }
 0x55f   : > { %4224 = vst.msk [vmem:[#allocation4 + $0x38] sm:$0xf] %vm16607_vm10, %v4177_v46  ;;  %3752 = vrot.lane.b32.xlu1 %v3713_v23, %s16454_s2  ;;  %8066 = vmatmul.mubr.bf16.vlgmr.msra.gmra.mrb[196].mxu0 %v10439_v54  ;;  %v16609_v25 = vld [vmem:[#allocation29_spill] sm:$0xff]  ;;  %v3497_v23 = vrot.slane %v3495_v41, 5  ;;  %v3500_v15 = vrot.slane %v3498_v45, 6  ;;  %vm16611_vm10 = vcmask 634432  }
 0x560   : > { %6893 = vst.msk [vmem:[#allocation4 + $0x10] sm:$0xf] %vm6890_vm9, %v13361_v19  ;;  %v5158_v10 = vpop.permute.xlu0 %5157  ;;  %v4457_v19 = vsel %vm11880_vm1, %v4452_v36, %v4456_v51  ;;  %v6920_v60 = vld [vmem:[#allocation3 + $0x44] sm:$0xf]  ;;  %v5817_v36 = vrot.slane %v5815_v3, 4  ;;  %v16325_v54 = vrot.slane %v13697_v24, 5 }
 0x561   : > { %4334 = vst.msk [vmem:[#allocation4 + $0x38] sm:$0xf] %vm16608_vm2, %v13217_v4  ;;  %v13700_v47 = vpop.permute.xlu1 %5699  ;;  %v16610_v4 = vor.u32 %v16609_v25, %v12813_v59  ;;  %v3057_v59 = vrot.slane %v3055_v11, 5  ;;  %v13718_v41 = vld [vmem:[#allocation3 + $0x30] sm:$0xf]  ;;  %v7028_v25 = vshll.u32 %v6920_v60, 16  ;;  %v13726_v40 = vor.u32 %v3500_v15, %v3497_v23 }
 0x562   : > { %5208 = vst.msk [vmem:[#allocation4 + $0x20] sm:$0xf] %vm16384_vm13, %v5158_v10  ;;  %4559 = vrot.lane.b32.xlu0 %v4457_v19, %s16440_s21  ;;  %v3059_v10 = vshrl.u32 %v2935_v30, 16  ;;  %vm16612_vm2 = vcmask 683632   ;;  %v5819_v30 = vsel %vm11854_vm14, %v5817_v36, %v16325_v54  ;;  %v7032_v11 = vshrl.u32 %v6920_v60, 16 }
 0x563   : > { %v3053_v46 = vrot.slane %v16610_v4, 4  ;;  %5375 = vst.msk [vmem:[#allocation4 + $0x20] sm:$0xf] %vm16611_vm10, %v13514_v2  ;;  %7321 = vrot.lane.b32.xlu1 %v7276_v18, %s16463_s14  ;;  %v4461_v2 = vor.u32 %v4460_v63, %v4456_v51  ;;  %v3493_v4 = vrot.slane %v13404_v49, 4  ;;  %vm16613_vm10 = vcmask 732832  }
 0x564   : > { %v5584_v45 = vpop.permute.xlu0 %5583  ;;  %v7706_v51 = vrot.slane %v13718_v41, 6  ;;  %v13737_v63 = vld [vmem:[#allocation3 + $0x34] sm:$0xf]  ;;  %v3061_v23 = vrot.slane %v3059_v10, 4  ;;  %v13739_v15 = vrot.slane %v7028_v25, 5  ;;  %vm16628_vm7 = vcmask 782032  }
 0x565   : > { %5634 = vst.msk [vmem:[#allocation4 + $0x20] sm:$0xf] %vm16612_vm2, %v5584_v45  ;;  %v13721_v19 = vpop.permute.xlu1 %4290  ;;  %v3058_v56 = vsel %vm11880_vm1, %v3053_v46, %v3057_v59  ;;  %v4462_v46 = vrot.slane %v4461_v2, 4  ;;  %vm16615_vm2 = vcmask 339232   ;;  %v3502_v18 = vsel %vm11904_vm8, %v3493_v4, %v13726_v40  ;;  %v6200_v10 = vld [vmem:[#allocation3 + $0x30] sm:$0xf] }
 0x566   : > { %5744 = vst.msk [vmem:[#allocation4 + $0x20] sm:$0xf] %vm16613_vm10, %v13255_v21  ;;  %3144 = vrot.lane.b32.xlu0 %v3058_v56, %s16441_s24  ;;  %16614 = vst [vmem:[#allocation27_spill] sm:$0xff] %v13739_v15  ;;  %vm16616_vm10 = vcmask 388432   ;;  %v7708_v36 = vrot.slane %v7706_v51, 4  ;;  %v16323_v41 = vrot.slane %v13737_v63, 6  ;;  %v3062_v25 = vor.u32 %v3061_v23, %v3057_v59 }
 0x567   : > { %5862 = vrot.lane.b32.xlu1 %v5819_v30, %s16457_s3  ;;  %v4467_v60 = vsel %vm11880_vm1, %v4462_v46, %v13093_v44  ;;  %v13754_v45 = vrot.slane %v7032_v11, 4  ;;  %v6806_v4 = vld [vmem:[#allocation3 + $0x34] sm:$0xf]  ;;  %v6249_v11 = vrot.slane %v6200_v10, 6  ;;  %v13773_v23 = vld [vmem:[#allocation3 + $0x30] sm:$0xf] }
 0x568   : > { %v4175_v49 = vpop.permute.xlu0 %4174  ;;  %v7710_v30 = vsel %vm11849_vm12, %v7708_v36, %v16323_v41  ;;  %v13771_v59 = vld [vmem:[#allocation3 + $0x34] sm:$0xf] }
 0x569   : > { %4223 = vst.msk [vmem:[#allocation4 + $0x30] sm:$0xf] %vm16615_vm2, %v4175_v49  ;;  %v13742_v21 = vpop.permute.xlu1 %4720  ;;  %16617 = vst [vmem:[#allocation29_spill] sm:$0xff] %v13754_v45  ;;  %v16618_v49 = vrot.slane %v13162_v9, 5  ;;  %v6251_v10 = vrot.slane %v6249_v11, 4  ;;  %vm16621_vm2 = vcmask 437632  }
 0x56a   : > { %4333 = vst.msk [vmem:[#allocation4 + $0x30] sm:$0xf] %vm16616_vm10, %v13272_v27  ;;  %3584 = vrot.lane.b32.xlu0 %v3502_v18, %s16459_s17  ;;  %v13792_v34 = vld [vmem:[#allocation3 + $0x34] sm:$0xf]  ;;  %vm16622_vm10 = vcmask 486832   ;;  %v16640_v45 = vld [vmem:[#allocation40_spill] sm:$0xff] }
 0x56b   : > { %4561 = vrot.lane.b32.xlu1 %v4467_v60, %s16440_s21  ;;  %v7271_v46 = vrot.slane %v16618_v49, 4  ;;  %v3063_v60 = vrot.slane %v3062_v25, 4  ;;  %v16619_v25 = vrot.slane %v13190_v0, 5  ;;  %16620 = vst [vmem:[#allocation46_spill] sm:$0xff] %v13792_v34 }
 0x56c   : > { %v13757_v2 = vpop.permute.xlu0 %5697 }
 0x56d   : > { %v13761_v56 = vpop.permute.xlu1 %3308  ;;  %v7273_v36 = vsel %vm11854_vm14, %v7271_v46, %v7272_v35  ;;  %v3068_v9 = vsel %vm11880_vm1, %v3063_v60, %v13108_v13  ;;  %v5814_v49 = vrot.slane %v16619_v25, 4  ;;  %v13812_v25 = vld [vmem:[#allocation3 + $0x30] sm:$0xf] }
 0x56e   : > { %6848 = vrot.lane.b32.xlu0 %v6806_v4, %s16460_s27  ;;  %v16321_v4 = vrot.slane %v13771_v59, 6 }
 0x56f   : > { %7755 = vrot.lane.b32.xlu1 %v7710_v30, %s16470_s13  ;;  %v4842_v30 = vrot.slane %v13773_v23, 6  ;;  %v5816_v60 = vsel %vm11854_vm14, %v5814_v49, %v5815_v3  ;;  %v16624_v3 = vrot.slane %v16623_v12, 6 }
 0x570   : > { %v13775_v18 = vpop.permute.xlu0 %4288  ;;  %v6253_v0 = vsel %vm11849_vm12, %v6251_v10, %v16321_v4  ;;  %v16331_v4 = vrot.slane %v13812_v25, 7 }
 0x571   : > { %v13777_v27 = vpop.permute.xlu1 %3748  ;;  %v4844_v23 = vrot.slane %v4842_v30, 4  ;;  %v7705_v49 = vrot.slane %v16624_v3, 4  ;;  %v13832_v3 = vld [vmem:[#allocation3 + $0x34] sm:$0xf] }
 0x572   : > { %7319 = vrot.lane.b32.xlu0 %v7273_v36, %s16463_s14  ;;  %v16324_v36 = vrot.slane %v13792_v34, 6  ;;  %16629 = vst [vmem:[#allocation47_spill] sm:$0xff] %v13832_v3  ;;  %v16337_v54 = vrot.slane %v13832_v3, 7 }
 0x573   : > { %3146 = vrot.lane.b32.xlu1 %v3068_v9, %s16441_s24  ;;  %v6691_v9 = vrot.slane %v13794_v42, 7  ;;  %v7707_v10 = vsel %vm11849_vm12, %v7705_v49, %v7706_v51  ;;  %v13834_v51 = vld [vmem:[#allocation3 + $0x30] sm:$0xf] }
 0x574   : > { %v4556_v35 = vpop.permute.xlu0 %4555  ;;  %v4846_v42 = vsel %vm11849_vm12, %v4844_v23, %v16324_v36  ;;  %v16630_v49 = vld [vmem:[#allocation38_spill] sm:$0xff]  ;;  %v5289_v36 = vrot.slane %v16331_v4, 4  ;;  %v16338_v26 = vrot.slane %v13834_v51, 7  ;;  %v16651_v31 = vrot.slane %v13834_v51, 7 }
 0x575   : > { %4604 = vst.msk [vmem:[#allocation4 + $0x30] sm:$0xf] %vm16621_vm2, %v4556_v35  ;;  %v13797_v46 = vpop.permute.xlu1 %7317  ;;  %vm16626_vm2 = vcmask 93232  }
 0x576   : > { %4767 = vst.msk [vmem:[#allocation4 + $0x30] sm:$0xf] %vm16622_vm10, %v13571_v53  ;;  %5860 = vrot.lane.b32.xlu0 %v5816_v60, %s16457_s3  ;;  %v13817_v53 = vld [vmem:[#allocation3 + $0x34] sm:$0xf]  ;;  %vm16627_vm10 = vcmask 142432  }
 0x577   : > { %6296 = vrot.lane.b32.xlu1 %v6253_v0, %s16467_s19  ;;  %16625 = vst [vmem:[#allocation37_spill] sm:$0xff] %v13817_v53  ;;  %v6693_v0 = vrot.slane %v6691_v9, 4  ;;  %v16330_v12 = vrot.slane %v13817_v53, 7 }
 0x578   : > { %v3141_v35 = vpop.permute.xlu0 %3140 }
 0x579   : > { %3187 = vst.msk [vmem:[#allocation4 + $0x40] sm:$0xf] %vm16626_vm2, %v3141_v35  ;;  %v5859_v60 = vpop.permute.xlu1 %5858  ;;  %vm16633_vm2 = vcmask 240832  }
 0x57a   : > { %3353 = vst.msk [vmem:[#allocation4 + $0x40] sm:$0xf] %vm16627_vm10, %v13591_v52  ;;  %7753 = vrot.lane.b32.xlu0 %v7707_v10, %s16470_s13  ;;  %v16631_v52 = vrot.slane %v16630_v49, 6  ;;  %vm16634_vm10 = vcmask 437632  }
 0x57b   : > { %5908 = vst.msk [vmem:[#allocation4 + $0x28] sm:$0xf] %vm16628_vm7, %v5859_v60  ;;  %4887 = vrot.lane.b32.xlu1 %v4846_v42, %s16472_s25  ;;  %v3376_v60 = vld [vmem:[#allocation3 + $0x30] sm:$0xf]  ;;  %vm16632_vm7 = vcmask 191632   ;;  %v6695_v42 = vsel %vm11929_vm11, %v6693_v0, %v16330_v12 }
 0x57c   : > { %v6248_v35 = vrot.slane %v16631_v52, 4  ;;  %v3581_v41 = vpop.permute.xlu0 %3580  ;;  %v3505_v49 = vshrl.u32 %v3376_v60, 16  ;;  %v3508_v52 = vshll.u32 %v3376_v60, 16  ;;  %v5291_v60 = vsel %vm11929_vm11, %v5289_v36, %v16337_v54  ;;  %v7391_v36 = vld [vmem:[#allocation3 + $0x34] sm:$0xf] }
 0x57d   : > { %3627 = vst.msk [vmem:[#allocation4 + $0x40] sm:$0xf] %vm16632_vm7, %v3581_v41  ;;  %v4558_v10 = vpop.permute.xlu1 %4557  ;;  %vm16637_vm7 = vcmask 486832  }
 0x57e   : > { %v6250_v23 = vsel %vm11849_vm12, %v6248_v35, %v6249_v11  ;;  %3793 = vst.msk [vmem:[#allocation4 + $0x40] sm:$0xf] %vm16633_vm2, %v13605_v1  ;;  %v13854_v11 = vld [vmem:[#allocation3 + $0x34] sm:$0xf]  ;;  %vm16644_vm2 = vcmask 93232  }
 0x57f   : > { %4605 = vst.msk [vmem:[#allocation4 + $0x38] sm:$0xf] %vm16634_vm10, %v4558_v10  ;;  %6294 = vrot.lane.b32.xlu0 %v6250_v23, %s16467_s19  ;;  %16636 = vst [vmem:[#allocation38_spill] sm:$0xff] %v13854_v11  ;;  %6740 = vrot.lane.b32.xlu1 %v6695_v42, %s16479_s28  ;;  %v16638_v35 = vld [vmem:[#allocation39_spill] sm:$0xff]  ;;  %v6915_v10 = vld [vmem:[#allocation3 + $0x30] sm:$0xf] }
 0x580   : > { %4768 = vst.msk [vmem:[#allocation4 + $0x38] sm:$0xf] %vm16637_vm7, %v13742_v21  ;;  %v16639_v1 = vrot.slane %v16638_v35, 6  ;;  %v13861_v37 = vpop.permute.xlu0 %6844  ;;  %v7390_v23 = vld [vmem:[#allocation3 + $0x30] sm:$0xf]  ;;  %v3879_v21 = vrot.slane %v16338_v26, 4 }
 0x581   : > { %v13863_v33 = vpop.permute.xlu1 %7751  ;;  %v3507_v35 = vrot.slane %v3505_v49, 5  ;;  %v6978_v12 = vshll.u32 %v6915_v10, 16  ;;  %v6982_v4 = vshrl.u32 %v6915_v10, 16  ;;  %v7453_v22 = vshrl.u32 %v7390_v23, 16  ;;  %v16642_v42 = vld [vmem:[#allocation22_spill] sm:$0xff] }
 0x582   : > { %v4841_v38 = vrot.slane %v16639_v1, 4  ;;  %v3510_v1 = vrot.slane %v3508_v52, 6  ;;  %v7456_v6 = vshll.u32 %v7390_v23, 16  ;;  %v5929_v52 = vld [vmem:[#allocation3 + $0x30] sm:$0xf]  ;;  %vm16646_vm10 = vcmask 142432  }
 0x583   : > { %5334 = vrot.lane.b32.xlu1 %v5291_v60, %s16442_s1  ;;  %v6980_v60 = vrot.slane %v6978_v12, 5  ;;  %v6010_v5 = vshrl.u32 %v5929_v52, 16  ;;  %v6013_v58 = vshll.u32 %v5929_v52, 16  ;;  %vm16647_vm7 = vcmask 782032   ;;  %v5930_v12 = vld [vmem:[#allocation3 + $0x34] sm:$0xf] }
 0x584   : > { %v4843_v0 = vsel %vm11849_vm12, %v4841_v38, %v4842_v30  ;;  %v16641_v38 = vrot.slane %v16640_v45, 7  ;;  %v13878_v15 = vpop.permute.xlu0 %7315  ;;  %v16645_v45 = vrot.slane %v13854_v11, 7  ;;  %v13890_v23 = vor.u32 %v3510_v1, %v3507_v35  ;;  %v16649_v35 = vld [vmem:[#allocation23_spill] sm:$0xff] }
 0x585   : > { %4885 = vrot.lane.b32.xlu0 %v4843_v0, %s16472_s25  ;;  %v3143_v54 = vpop.permute.xlu1 %3142  ;;  %v16643_v0 = vrot.slane %v16642_v42, 7  ;;  %v7458_v42 = vrot.slane %v7456_v6, 6  ;;  %v16650_v1 = vrot.slane %v16649_v35, 7  ;;  %v16652_v35 = vld [vmem:[#allocation32_spill] sm:$0xff]  ;;  %v13940_v11 = vld [vmem:[#allocation3 + $0x34] sm:$0xf] }
 0x586   : > { %v6690_v30 = vrot.slane %v16641_v38, 4  ;;  %3188 = vst.msk [vmem:[#allocation4 + $0x48] sm:$0xf] %vm16644_vm2, %v3143_v54  ;;  %v3881_v10 = vsel %vm11929_vm11, %v3879_v21, %v16645_v45  ;;  %v6984_v38 = vrot.slane %v6982_v4, 4  ;;  %v7466_v54 = vshll.u32 %v7391_v36, 16 }
 0x587   : > { %v5286_v49 = vrot.slane %v16643_v0, 4  ;;  %3354 = vst.msk [vmem:[#allocation4 + $0x48] sm:$0xf] %vm16646_vm10, %v13761_v56  ;;  %3922 = vrot.lane.b32.xlu1 %v3881_v10, %s16443_s22  ;;  %v16648_v4 = vrot.slane %v13812_v25, 7  ;;  %vm2922_vm2 = vcmask 41984   ;;  %vm16655_vm10 = vcmask 536032  }
 0x588   : > { %v6692_v26 = vsel %vm11929_vm11, %v6690_v30, %v6691_v9  ;;  %v7455_v9 = vrot.slane %v7453_v22, 5  ;;  %v7463_v30 = vshrl.u32 %v7391_v36, 16  ;;  %v5857_v0 = vpop.permute.xlu0 %5856  ;;  %v6985_v22 = vor.u32 %v6984_v38, %v6980_v60  ;;  %2923 = vst.msk [vmem:[#allocation4 + $0x88] sm:$0x3] %vm2922_vm2, %v2904_v28  ;;  %v13914_v10 = vld [vmem:[#allocation3 + $0x34] sm:$0xf] }
 0x589   : > { %6738 = vrot.lane.b32.xlu0 %v6692_v26, %s16479_s28  ;;  %v3503_v26 = vrot.slane %v13726_v40, 4  ;;  %5907 = vst.msk [vmem:[#allocation4 + $0x20] sm:$0xf] %vm16647_vm7, %v5857_v0  ;;  %v13897_v21 = vpop.permute.xlu1 %6292  ;;  %v5288_v56 = vsel %vm11929_vm11, %v5286_v49, %v16648_v4  ;;  %v6363_v40 = vld [vmem:[#allocation3 + $0x30] sm:$0xf]  ;;  %v3876_v36 = vrot.slane %v16650_v1, 4  ;;  %vm16662_vm7 = vmmov %vm16655_vm10 }
 0x58a   : > { %v13910_v52 = vor.u32 %v7458_v42, %v7455_v9  ;;  %v7465_v25 = vrot.slane %v7463_v30, 5  ;;  %v7468_v45 = vrot.slane %v7466_v54, 6  ;;  %v6012_v0 = vrot.slane %v6010_v5, 5  ;;  %v16653_v9 = vld [vmem:[#allocation31_spill] sm:$0xff] }
 0x58b   : > { %v3512_v6 = vsel %vm11904_vm8, %v3503_v26, %v13890_v23  ;;  %v6015_v4 = vrot.slane %v6013_v58, 6  ;;  %v6020_v26 = vshrl.u32 %v5930_v12, 16  ;;  %v6023_v38 = vshll.u32 %v5930_v12, 16  ;;  %v6807_v5 = vld [vmem:[#allocation3 + $0x38] sm:$0xf] }
 0x58c   : > { %3586 = vrot.lane.b32.xlu1 %v3512_v6, %s16459_s17  ;;  %v13912_v49 = vpop.permute.xlu0 %7749  ;;  %v3878_v6 = vsel %vm11929_vm11, %v3876_v36, %v16651_v31  ;;  %v16654_v42 = vor.u32 %v16652_v35, %v16653_v9  ;;  %v6445_v54 = vshrl.u32 %v6363_v40, 16  ;;  %v6448_v28 = vshll.u32 %v6363_v40, 16  ;;  %v6364_v1 = vld [vmem:[#allocation3 + $0x34] sm:$0xf]  ;;  %v4952_v40 = vld [vmem:[#allocation3 + $0x30] sm:$0xf] }
 0x58d   : > { %5332 = vrot.lane.b32.xlu0 %v5288_v56, %s16442_s1  ;;  %v4884_v56 = vpop.permute.xlu1 %4883  ;;  %v6986_v58 = vrot.slane %v6985_v22, 4  ;;  %v16656_v31 = vrot.slane %v13603_v20, 5  ;;  %v13931_v35 = vor.u32 %v7468_v45, %v7465_v25  ;;  %v6022_v22 = vrot.slane %v6020_v26, 5  ;;  %v16658_v25 = vld [vmem:[#allocation35_spill] sm:$0xff] }
 0x58e   : > { %v6976_v30 = vrot.slane %v16654_v42, 4  ;;  %4931 = vst.msk [vmem:[#allocation4 + $0x38] sm:$0xf] %vm16655_vm10, %v4884_v56  ;;  %v7461_v56 = vrot.slane %v13910_v52, 4  ;;  %v6025_v42 = vrot.slane %v6023_v38, 6  ;;  %v6450_v20 = vrot.slane %v6448_v28, 7 }
 0x58f   : > { %v4684_v12 = vrot.slane %v16656_v31, 4  ;;  %16657 = vst [vmem:[#allocation39_spill] sm:$0xff] %v13931_v35  ;;  %v6458_v31 = vshll.u32 %v6364_v1, 16  ;;  %v6991_v45 = vsel %vm11880_vm1, %v6986_v58, %v16658_v25  ;;  %v5055_v36 = vshrl.u32 %v4952_v40, 16  ;;  %v4953_v26 = vld [vmem:[#allocation3 + $0x34] sm:$0xf] }
 0x590   : > { %6850 = vrot.lane.b32.xlu1 %v6807_v5, %s16460_s27  ;;  %v6981_v51 = vsel %vm11880_vm1, %v6976_v30, %v6980_v60  ;;  %v13933_v9 = vpop.permute.xlu0 %6290  ;;  %v6447_v60 = vrot.slane %v6445_v54, 6  ;;  %v6455_v30 = vshrl.u32 %v6364_v1, 16  ;;  %v5058_v3 = vshll.u32 %v4952_v40, 16 }
 0x591   : > { %3920 = vrot.lane.b32.xlu0 %v3878_v6, %s16443_s22  ;;  %v13936_v6 = vor.u32 %v6015_v4, %v6012_v0  ;;  %v13938_v5 = vpop.permute.xlu1 %6736  ;;  %v16659_v0 = vrot.slane %v13914_v10, 5  ;;  %v7470_v54 = vsel %vm11904_vm8, %v7461_v56, %v13931_v35  ;;  %v16660_v28 = vrot.slane %v13616_v16, 5  ;;  %v13966_v56 = vld [vmem:[#allocation3 + $0x34] sm:$0xf] }
 0x592   : > { %v6460_v25 = vrot.slane %v6458_v31, 7  ;;  %v5057_v16 = vrot.slane %v5055_v36, 6  ;;  %v5065_v35 = vshrl.u32 %v4953_v26, 16  ;;  %v5068_v58 = vshll.u32 %v4953_v26, 16 }
 0x593   : > { %v4686_v4 = vsel %vm11854_vm14, %v4684_v12, %v16659_v0  ;;  %v3274_v1 = vrot.slane %v16660_v28, 4  ;;  %v13963_v12 = vor.u32 %v6450_v20, %v6447_v60  ;;  %v6457_v0 = vrot.slane %v6455_v30, 6 }
 0x594   : > { %7117 = vrot.lane.b32.xlu1 %v6991_v45, %s16576_s26  ;;  %v4882_v38 = vpop.permute.xlu0 %4881  ;;  %v6018_v45 = vrot.slane %v13936_v6, 4  ;;  %v5060_v28 = vrot.slane %v5058_v3, 7  ;;  %v16664_v20 = vrot.slane %v13641_v17, 6  ;;  %v5070_v17 = vrot.slane %v5068_v58, 7 }
 0x595   : > { %7115 = vrot.lane.b32.xlu0 %v6981_v51, %s16576_s26  ;;  %v13957_v51 = vor.u32 %v6025_v42, %v6022_v22  ;;  %4930 = vst.msk [vmem:[#allocation4 + $0x30] sm:$0xf] %vm16662_vm7, %v4882_v38  ;;  %v13960_v40 = vpop.permute.xlu1 %5330  ;;  %v5400_v22 = vld [vmem:[#allocation3 + $0x34] sm:$0xf]  ;;  %v16663_v38 = vrot.slane %v13940_v11, 5  ;;  %v13982_v26 = vor.u32 %v6460_v25, %v6457_v0  ;;  %v16666_v25 = vrot.slane %v13966_v56, 6 }
 0x596   : > { %v3714_v30 = vrot.slane %v16664_v20, 4  ;;  %v13987_v53 = vor.u32 %v5060_v28, %v5057_v16  ;;  %v3986_v20 = vld [vmem:[#allocation3 + $0x34] sm:$0xf]  ;;  %vm16667_vm2 = vcmask 191632   ;;  %vm16668_vm10 = vcmask 240832  }
 0x597   : > { %16661 = vst [vmem:[#allocation40_spill] sm:$0xff] %v13957_v51  ;;  %v3276_v60 = vsel %vm11854_vm14, %v3274_v1, %v16663_v38  ;;  %v6027_v3 = vsel %vm11904_vm8, %v6018_v45, %v13957_v51  ;;  %16665 = vst [vmem:[#allocation22_spill] sm:$0xff] %v13982_v26  ;;  %v5067_v1 = vrot.slane %v5065_v35, 6  ;;  %v5496_v38 = vshrl.u32 %v5400_v22, 16  ;;  %v14000_v35 = vld [vmem:[#allocation3 + $0x30] sm:$0xf] }
 0x598   : > { %7592 = vrot.lane.b32.xlu1 %v7470_v54, %s16510_s8  ;;  %v13969_v42 = vpop.permute.xlu0 %6734  ;;  %v13984_v54 = vld [vmem:[#allocation3 + $0x30] sm:$0xf]  ;;  %v3716_v0 = vsel %vm11849_vm12, %v3714_v30, %v16666_v25  ;;  %v5063_v58 = vrot.slane %v13987_v53, 4  ;;  %vm16670_vm7 = vcmask 290032  }
 0x599   : > { %4726 = vrot.lane.b32.xlu0 %v4686_v4, %s16503_s10  ;;  %v3919_v31 = vpop.permute.xlu1 %3918  ;;  %v6453_v4 = vrot.slane %v13963_v12, 4  ;;  %v5487_v45 = vshrl.u32 %v13984_v54, 16  ;;  %v14005_v28 = vor.u32 %v5070_v17, %v5067_v1  ;;  %v16669_v30 = vld [vmem:[#allocation26_spill] sm:$0xff] }
 0x59b   : > { %v6462_v16 = vsel %vm12170_vm15, %v6453_v4, %v13982_v26  ;;  %v7451_v4 = vrot.slane %v16669_v30, 4  ;;  %v5499_v26 = vshll.u32 %v5400_v22, 16  ;;  %v6008_v22 = vrot.slane %v13476_v29, 4 }
 0x59c   : > { %6133 = vrot.lane.b32.xlu1 %v6027_v3, %s16506_s29  ;;  %v13990_v34 = vpop.permute.xlu0 %5328  ;;  %v4101_v3 = vshrl.u32 %v3986_v20, 16 }
 0x59d   : > { %3314 = vrot.lane.b32.xlu0 %v3276_v60, %s16452_s23  ;;  %v3583_v36 = vpop.permute.xlu1 %3582  ;;  %v14007_v60 = vrot.slane %v5496_v38, 7  ;;  %v7460_v17 = vsel %vm11904_vm8, %v7451_v4, %v13910_v52  ;;  %v6017_v4 = vsel %vm11904_vm8, %v6008_v22, %v13936_v6 }
 0x59e   : > { %3628 = vst.msk [vmem:[#allocation4 + $0x48] sm:$0xf] %vm16667_vm2, %v3583_v36  ;;  %v5489_v36 = vrot.slane %v5487_v45, 7  ;;  %vm16671_vm2 = vmmov %vm16670_vm7  ;;  %v14024_v38 = vrot.slane %v4101_v3, 7 }
 0x59f   : > { %3794 = vst.msk [vmem:[#allocation4 + $0x48] sm:$0xf] %vm16668_vm10, %v13777_v27  ;;  %v5072_v27 = vsel %vm12170_vm15, %v5063_v58, %v14005_v28  ;;  %vm16672_vm10 = vcmask 76832  }
 0x5a0   : > { %6573 = vrot.lane.b32.xlu1 %v6462_v16, %s16508_s12  ;;  %3964 = vst.msk [vmem:[#allocation4 + $0x48] sm:$0xf] %vm16670_vm7, %v3919_v31  ;;  %v3917_v25 = vpop.permute.xlu0 %3916  ;;  %v5501_v31 = vor.u32 %v5499_v26, %v14007_v60  ;;  %v5494_v16 = vrot.slane %v5489_v36, 4  ;;  %vm16673_vm7 = vmmov %vm16672_vm10 }
 0x5a1   : > { %3754 = vrot.lane.b32.xlu0 %v3716_v0, %s16454_s2  ;;  %v4092_v0 = vshrl.u32 %v14000_v35, 16  ;;  %3963 = vst.msk [vmem:[#allocation4 + $0x40] sm:$0xf] %vm16671_vm2, %v3917_v25  ;;  %v6847_v1 = vpop.permute.xlu1 %6846  ;;  %v4104_v25 = vshll.u32 %v3986_v20, 16  ;;  %v6443_v20 = vrot.slane %v13509_v55, 4  ;;  %vm16674_vm2 = vcmask 175232  }
 0x5a2   : > { %v5502_v26 = vsel %vm11974_vm3, %v5494_v16, %v5501_v31  ;;  %v5490_v31 = vshll.u32 %v13984_v54, 16  ;;  %v5660_v16 = vld [vmem:[#allocation3 + $0x3c] sm:$0xf]  ;;  %v14073_v54 = vld [vmem:[#allocation3 + $0x38] sm:$0xf] }
 0x5a3   : > { %v4094_v30 = vrot.slane %v4092_v0, 7  ;;  %v4106_v58 = vor.u32 %v4104_v25, %v14024_v38 }
 0x5a4   : > { %5167 = vrot.lane.b32.xlu1 %v5072_v27, %s16445_s0  ;;  %v7112_v45 = vpop.permute.xlu0 %7111 }
 0x5a5   : > { %7590 = vrot.lane.b32.xlu0 %v7460_v17, %s16510_s8  ;;  %v7145_v51 = vrot.slane %v7112_v45, 4  ;;  %v7114_v52 = vpop.permute.xlu1 %7113  ;;  %v4099_v0 = vrot.slane %v4094_v30, 4 }
 0x5a6   : > { %v7146_v17 = vrot.slane %v7114_v52, 4 }
 0x5a7   : > { %v7164_v29 = vsel %vm7161_vm4, %v7145_v51, %v7112_v45  ;;  %v6452_v51 = vsel %vm12170_vm15, %v6443_v20, %v13963_v12  ;;  %v4107_v55 = vsel %vm11974_vm3, %v4099_v0, %v4106_v58  ;;  %v5492_v45 = vor.u32 %v5490_v31, %v5489_v36  ;;  %v4357_v0 = vld [vmem:[#allocation3 + $0x34] sm:$0xf]  ;;  %v4248_v31 = vld [vmem:[#allocation3 + $0x38] sm:$0xf] }
 0x5a8   : > { %5593 = vrot.lane.b32.xlu1 %v5502_v26, %s16446_s20  ;;  %7203 = vst.msk [vmem:[#allocation4 + $0x10] sm:$0xff] %vm13554_vm5, %v7164_v29  ;;  %v7165_v3 = vsel %vm7161_vm4, %v7146_v17, %v7114_v52  ;;  %v14041_v6 = vpop.permute.xlu0 %4722  ;;  %v16681_v20 = vrot.slane %v13940_v11, 5 }
 0x5a9   : > { %6131 = vrot.lane.b32.xlu0 %v6017_v4, %s16506_s29  ;;  %7368 = vst.msk [vmem:[#allocation4 + $0x14] sm:$0xf] %vm16672_vm10, %v13878_v15  ;;  %v7589_v27 = vpop.permute.xlu1 %7588  ;;  %v5053_v15 = vrot.slane %v13522_v8, 4  ;;  %vm16675_vm10 = vcmask 831232   ;;  %v5485_v8 = vrot.slane %v13531_v57, 4  ;;  %v4688_v4 = vrot.slane %v14073_v54, 5 }
 0x5aa   : > { %7204 = vst.msk [vmem:[#allocation4 + $0x18] sm:$0xff] %vm13554_vm5, %v7165_v3  ;;  %v4090_v57 = vrot.slane %v13550_v48, 4  ;;  %v3277_v3 = vrot.slane %v16681_v20, 4 }
 0x5ab   : > { %7369 = vst.msk [vmem:[#allocation4 + $0x1c] sm:$0xf] %vm16673_vm7, %v13797_v46  ;;  %v5062_v46 = vsel %vm12170_vm15, %v5053_v15, %v13987_v53  ;;  %vm16676_vm7 = vcmask 880432   ;;  %v5493_v36 = vsel %vm11974_vm3, %v5485_v8, %v5492_v45 }
 0x5ac   : > { %7640 = vst.msk [vmem:[#allocation4 + $0x1c] sm:$0xf] %vm16386_vm6, %v7589_v27  ;;  %4184 = vrot.lane.b32.xlu1 %v4107_v55, %s16447_s30  ;;  %v14061_v12 = vpop.permute.xlu0 %3310  ;;  %v3377_v55 = vld [vmem:[#allocation3 + $0x34] sm:$0xf] }
 0x5ad   : > { %6571 = vrot.lane.b32.xlu0 %v6452_v51, %s16508_s12  ;;  %7803 = vst.msk [vmem:[#allocation4 + $0x1c] sm:$0xf] %vm16674_vm2, %v13863_v33  ;;  %v6130_v22 = vpop.permute.xlu1 %6129  ;;  %v4095_v33 = vshll.u32 %v14000_v35, 16  ;;  %vm16677_vm2 = vcmask 978832   ;;  %v14086_v35 = vld [vmem:[#allocation3 + $0x38] sm:$0xf] }
 0x5ae   : > { %6179 = vst.msk [vmem:[#allocation4 + $0x28] sm:$0xf] %vm16675_vm10, %v6130_v22  ;;  %vm16679_vm10 = vcmask 175232   ;;  %v5659_v51 = vld [vmem:[#allocation3 + $0x38] sm:$0xf] }
 0x5af   : > { %6342 = vst.msk [vmem:[#allocation4 + $0x28] sm:$0xf] %vm16676_vm7, %v13897_v21  ;;  %v4097_v52 = vor.u32 %v4095_v33, %v4094_v30  ;;  %v4249_v21 = vld [vmem:[#allocation3 + $0x3c] sm:$0xf]  ;;  %v16678_v30 = vrot.slane %v13914_v10, 5  ;;  %v16362_v10 = vrot.slane %v14086_v35, 5 }
 0x5b0   : > { %5707 = vrot.lane.b32.xlu1 %v5660_v16, %s16448_s15  ;;  %v14075_v25 = vpop.permute.xlu0 %3750  ;;  %vm16680_vm7 = vcmask 634432   ;;  %v14126_v22 = vld [vmem:[#allocation3 + $0x3c] sm:$0xf]  ;;  %v16686_v16 = vrot.slane %v13966_v56, 6  ;;  %v16687_v33 = vld [vmem:[#allocation33_spill] sm:$0xff] }
 0x5b1   : > { %5165 = vrot.lane.b32.xlu0 %v5062_v46, %s16445_s0  ;;  %v6570_v53 = vpop.permute.xlu1 %6569  ;;  %v4687_v26 = vrot.slane %v16678_v30, 4  ;;  %v4098_v29 = vsel %vm11974_vm3, %v4090_v57, %v4097_v52  ;;  %v14128_v46 = vld [vmem:[#allocation3 + $0x38] sm:$0xf]  ;;  %v4478_v52 = vshrl.u32 %v4357_v0, 16  ;;  %v3515_v57 = vshrl.u32 %v3377_v55, 16 }
 0x5b2   : > { %6619 = vst.msk [vmem:[#allocation4 + $0x28] sm:$0xf] %vm6613_vm0, %v6570_v53  ;;  %v3717_v8 = vrot.slane %v16686_v16, 4  ;;  %v16688_v53 = vor.u32 %v16687_v33, %v13093_v44  ;;  %v10444_v30 = vld [vmem:[#allocation4 + $0x10] ss:$8 sps:$4 sm:$0xff]  }
 0x5b3   : > { %6786 = vst.msk [vmem:[#allocation4 + $0x28] sm:$0xf] %vm16677_vm2, %v13938_v5  ;;  %v4689_v48 = vsel %vm11854_vm14, %v4687_v26, %v4688_v4  ;;  %v14106_v5 = vld [vmem:[#allocation3 + $0x38] sm:$0xf]  ;;  %vm16682_vm2 = vcmask 831232   ;;  %v3518_v26 = vshll.u32 %v3377_v55, 16 }
 0x5b4   : > { %4298 = vrot.lane.b32.xlu1 %v4249_v21, %s16449_s16  ;;  %6896 = vst.msk [vmem:[#allocation4 + $0x28] sm:$0xf] %vm6890_vm9, %v6847_v1  ;;  %v7587_v17 = vpop.permute.xlu0 %7586  ;;  %v14108_v1 = vld [vmem:[#allocation3 + $0x38] sm:$0xf]  ;;  %v16360_v11 = vrot.slane %v14106_v5, 6  ;;  %v3517_v55 = vrot.slane %v3515_v57, 5 }
 0x5b5   : > { %5591 = vrot.lane.b32.xlu0 %v5493_v36, %s16446_s20  ;;  %7639 = vst.msk [vmem:[#allocation4 + $0x14] sm:$0xf] %vm16386_vm6, %v7587_v17  ;;  %v5164_v58 = vpop.permute.xlu1 %5163  ;;  %v7278_v15 = vrot.slane %v14108_v1, 5  ;;  %v4472_v36 = vrot.slane %v16688_v53, 4  ;;  %v2937_v21 = vld [vmem:[#allocation3 + $0x34] sm:$0xf] }
 0x5b6   : > { %7802 = vst.msk [vmem:[#allocation4 + $0x14] sm:$0xf] %vm16679_vm10, %v13912_v49  ;;  %vm16683_vm10 = vcmask 880432   ;;  %v3719_v44 = vsel %vm11849_vm12, %v3717_v8, %v16360_v11  ;;  %v14175_v16 = vld [vmem:[#allocation3 + $0x38] sm:$0xf]  ;;  %v3079_v33 = vshrl.u32 %v2937_v21, 16 }
 0x5b7   : > { %5211 = vst.msk [vmem:[#allocation4 + $0x38] sm:$0xf] %vm16384_vm13, %v5164_v58  ;;  %v7280_v56 = vrot.slane %v7278_v15, 4  ;;  %v16359_v58 = vrot.slane %v14126_v22, 5  ;;  %v14243_v1 = vld [vmem:[#allocation3 + $0x3c] sm:$0xf] }
 0x5b8   : > { %5378 = vst.msk [vmem:[#allocation4 + $0x38] sm:$0xf] %vm16680_vm7, %v13960_v40  ;;  %4728 = vrot.lane.b32.xlu1 %v4689_v48, %s16503_s10  ;;  %v6128_v49 = vpop.permute.xlu0 %6127  ;;  %vm16684_vm7 = vcmask 683632   ;;  %v3279_v40 = vsel %vm11854_vm14, %v3277_v3, %v16362_v10  ;;  %v3075_v48 = vshll.u32 %v2937_v21, 16  ;;  %v4480_v3 = vrot.slane %v4478_v52, 4 }
 0x5b9   : > { %4182 = vrot.lane.b32.xlu0 %v4098_v29, %s16447_s30  ;;  %6178 = vst.msk [vmem:[#allocation4 + $0x20] sm:$0xf] %vm16682_vm2, %v6128_v49  ;;  %v5590_v27 = vpop.permute.xlu1 %5589  ;;  %vm16685_vm2 = vcmask 732832   ;;  %v5821_v29 = vrot.slane %v14128_v46, 5  ;;  %v14154_v49 = vld [vmem:[#allocation3 + $0x3c] sm:$0xf] }
 0x5ba   : > { %6341 = vst.msk [vmem:[#allocation4 + $0x20] sm:$0xf] %vm16683_vm10, %v13933_v9  ;;  %v4474_v9 = vshll.u32 %v4357_v0, 16  ;;  %vm16689_vm10 = vcmask 978832   ;;  %v3513_v52 = vrot.slane %v13890_v23, 4  ;;  %v16706_v46 = vrot.slane %v13737_v63, 6 }
 0x5bb   : > { %5637 = vst.msk [vmem:[#allocation4 + $0x38] sm:$0xf] %vm16684_vm7, %v5590_v27  ;;  %vm16690_vm7 = vcmask 339232   ;;  %v16693_v27 = vld [vmem:[#allocation34_spill] sm:$0xff] }
 0x5bc   : > { %5747 = vst.msk [vmem:[#allocation4 + $0x38] sm:$0xf] %vm16685_vm2, %v13700_v47  ;;  %3316 = vrot.lane.b32.xlu1 %v3279_v40, %s16452_s23  ;;  %v6568_v45 = vpop.permute.xlu0 %6567  ;;  %vm16691_vm2 = vcmask 388432   ;;  %v3520_v40 = vrot.slane %v3518_v26, 6  ;;  %v3081_v26 = vrot.slane %v3079_v33, 4 }
 0x5bd   : > { %5705 = vrot.lane.b32.xlu0 %v5659_v51, %s16448_s15  ;;  %6618 = vst.msk [vmem:[#allocation4 + $0x20] sm:$0xf] %vm6613_vm0, %v6568_v45  ;;  %v4181_v47 = vpop.permute.xlu1 %4180  ;;  %v10442_v17 = vld [vmem:[#allocation4 + $0x14] ss:$8 sps:$4 sm:$0xff]   ;;  %v16358_v45 = vrot.slane %v14154_v49, 5 }
 0x5be   : > { %6785 = vst.msk [vmem:[#allocation4 + $0x20] sm:$0xf] %vm16689_vm10, %v13969_v42  ;;  %vm16692_vm10 = vcmask 179200   ;;  %v4476_v42 = vrot.slane %v4474_v9, 5  ;;  %v5823_v9 = vrot.slane %v5821_v29, 4  ;;  %v14183_v57 = vor.u32 %v3520_v40, %v3517_v55 }
 0x5bf   : > { %4226 = vst.msk [vmem:[#allocation4 + $0x48] sm:$0xf] %vm16690_vm7, %v4181_v47  ;;  %9388 = vmatprep.mubr.msk.bf16.mxu0 %vm16692_vm10, %v10442_v17  ;;  %vm16695_vm7 = vcmask 634432   ;;  %vm16697_vm10 = vcmask 732832   ;;  %v7712_v47 = vrot.slane %v14175_v16, 6  ;;  %v16701_v40 = vrot.slane %v13671_v14, 5 }
 0x5c0   : > { %6895 = vst.msk [vmem:[#allocation4 + $0x20] sm:$0xf] %vm6890_vm9, %v13861_v37  ;;  %3756 = vrot.lane.b32.xlu1 %v3719_v44, %s16454_s2  ;;  %v5162_v20 = vpop.permute.xlu0 %5161  ;;  %8074 = vmatmul.mubr.bf16.gmra.mrb[200].mxu0 %v10444_v30  ;;  %v4477_v37 = vsel %vm11880_vm1, %v4472_v36, %v4476_v42  ;;  %v5825_v21 = vsel %vm11854_vm14, %v5823_v9, %v16358_v45  ;;  %v14194_v17 = vld [vmem:[#allocation3 + $0x3c] sm:$0xf]  ;;  %v14224_v16 = vld [vmem:[#allocation3 + $0x38] sm:$0xf] }
 0x5c1   : > { %4296 = vrot.lane.b32.xlu0 %v4248_v31, %s16449_s16  ;;  %4336 = vst.msk [vmem:[#allocation4 + $0x48] sm:$0xf] %vm16691_vm2, %v13721_v19  ;;  %v14157_v0 = vpop.permute.xlu1 %5703  ;;  %v16694_v19 = vor.u32 %v16693_v27, %v13108_v13  ;;  %v7282_v31 = vsel %vm11854_vm14, %v7280_v56, %v16359_v58  ;;  %v3077_v13 = vrot.slane %v3075_v48, 5  ;;  %vm16696_vm2 = vcmask 683632   ;;  %v16700_v56 = vld [vmem:[#allocation24_spill] sm:$0xff]  ;;  %v16722_v58 = vld [vmem:[#allocation47_spill] sm:$0xff] }
 0x5c2   : > { %5210 = vst.msk [vmem:[#allocation4 + $0x30] sm:$0xf] %vm16384_vm13, %v5162_v20  ;;  %v7714_v48 = vrot.slane %v7712_v47, 4  ;;  %v16356_v20 = vrot.slane %v14194_v17, 6  ;;  %v14222_v9 = vld [vmem:[#allocation3 + $0x3c] sm:$0xf] }
 0x5c3   : > { %v3073_v51 = vrot.slane %v16694_v19, 4  ;;  %5377 = vst.msk [vmem:[#allocation4 + $0x30] sm:$0xf] %vm16695_vm7, %v13990_v34  ;;  %v4481_v34 = vor.u32 %v4480_v3, %v4476_v42  ;;  %vm16698_vm7 = vcmask 339232   ;;  %v6202_v3 = vld [vmem:[#allocation3 + $0x38] sm:$0xf]  ;;  %v3082_v27 = vor.u32 %v3081_v26, %v3077_v13 }
 0x5c4   : > { %7325 = vrot.lane.b32.xlu1 %v7282_v31, %s16463_s14  ;;  %v5588_v8 = vpop.permute.xlu0 %5587  ;;  %v6255_v55 = vrot.slane %v6202_v3, 6  ;;  %v7277_v31 = vrot.slane %v16701_v40, 4 }
 0x5c5   : > { %4563 = vrot.lane.b32.xlu0 %v4477_v37, %s16440_s21  ;;  %5636 = vst.msk [vmem:[#allocation4 + $0x30] sm:$0xf] %vm16696_vm2, %v5588_v8  ;;  %v14178_v53 = vpop.permute.xlu1 %4294  ;;  %v3078_v36 = vsel %vm11880_vm1, %v3073_v51, %v3077_v13  ;;  %v4482_v23 = vrot.slane %v4481_v34, 4  ;;  %vm16699_vm2 = vcmask 388432   ;;  %v6808_v51 = vld [vmem:[#allocation3 + $0x3c] sm:$0xf] }
 0x5c6   : > { %5746 = vst.msk [vmem:[#allocation4 + $0x30] sm:$0xf] %vm16697_vm10, %v13757_v2  ;;  %v3522_v2 = vsel %vm11904_vm8, %v3513_v52, %v14183_v57  ;;  %v3083_v8 = vrot.slane %v3082_v27, 4  ;;  %v7279_v34 = vsel %vm11854_vm14, %v7277_v31, %v7278_v15  ;;  %v6257_v52 = vrot.slane %v6255_v55, 4 }
 0x5c7   : > { %v4487_v42 = vsel %vm11880_vm1, %v4482_v23, %v16700_v56  ;;  %v16703_v23 = vrot.slane %v13697_v24, 5  ;;  %vm16704_vm10 = vcmask 437632   ;;  %v16354_v27 = vrot.slane %v14243_v1, 6 }
 0x5c8   : > { %5866 = vrot.lane.b32.xlu1 %v5825_v21, %s16457_s3  ;;  %v4179_v30 = vpop.permute.xlu0 %4178  ;;  %v16355_v21 = vrot.slane %v14222_v9, 6 }
 0x5c9   : > { %3148 = vrot.lane.b32.xlu0 %v3078_v36, %s16441_s24  ;;  %4225 = vst.msk [vmem:[#allocation4 + $0x40] sm:$0xf] %vm16698_vm7, %v4179_v30  ;;  %v14197_v44 = vpop.permute.xlu1 %4724  ;;  %v16702_v36 = vld [vmem:[#allocation25_spill] sm:$0xff]  ;;  %v4848_v30 = vrot.slane %v14224_v16, 6  ;;  %v5820_v26 = vrot.slane %v16703_v23, 4  ;;  %vm16705_vm7 = vcmask 486832  }
 0x5ca   : > { %4335 = vst.msk [vmem:[#allocation4 + $0x40] sm:$0xf] %vm16699_vm2, %v13775_v18  ;;  %v7716_v18 = vsel %vm11849_vm12, %v7714_v48, %v16356_v20  ;;  %v3088_v14 = vsel %vm11880_vm1, %v3083_v8, %v16702_v36  ;;  %v6259_v24 = vsel %vm11849_vm12, %v6257_v52, %v16355_v21  ;;  %vm16708_vm2 = vcmask 93232   ;;  %v14283_v52 = vld [vmem:[#allocation3 + $0x3c] sm:$0xf] }
 0x5cb   : > { %v5822_v48 = vsel %vm11854_vm14, %v5820_v26, %v5821_v29  ;;  %v4850_v3 = vrot.slane %v4848_v30, 4  ;;  %v7711_v29 = vrot.slane %v16706_v46, 4  ;;  %16711 = vst [vmem:[#allocation32_spill] sm:$0xff] %v14283_v52  ;;  %v3378_v26 = vld [vmem:[#allocation3 + $0x38] sm:$0xf] }
 0x5cc   : > { %4565 = vrot.lane.b32.xlu1 %v4487_v42, %s16440_s21  ;;  %v14210_v37 = vpop.permute.xlu0 %5701 }
 0x5cd   : > { %3588 = vrot.lane.b32.xlu0 %v3522_v2, %s16459_s17  ;;  %v14212_v19 = vpop.permute.xlu1 %3312  ;;  %v14245_v2 = vld [vmem:[#allocation3 + $0x38] sm:$0xf]  ;;  %v7713_v16 = vsel %vm11849_vm12, %v7711_v29, %v7712_v47  ;;  %v4852_v63 = vsel %vm11849_vm12, %v4850_v3, %v16354_v27  ;;  %v16357_v3 = vrot.slane %v14283_v52, 7  ;;  %v3525_v29 = vshrl.u32 %v3378_v26, 16 }
 0x5ce   : > { %v14285_v47 = vld [vmem:[#allocation3 + $0x38] sm:$0xf] }
 0x5cf   : > { %v3883_v46 = vrot.slane %v14285_v47, 7 }
 0x5d0   : > { %7759 = vrot.lane.b32.xlu1 %v7716_v18, %s16470_s13  ;;  %v14226_v13 = vpop.permute.xlu0 %4292  ;;  %v14263_v18 = vld [vmem:[#allocation3 + $0x38] sm:$0xf] }
 0x5d1   : > { %6852 = vrot.lane.b32.xlu0 %v6808_v51, %s16460_s27  ;;  %v14228_v33 = vpop.permute.xlu1 %3752  ;;  %v6697_v51 = vrot.slane %v14245_v2, 7  ;;  %v5293_v8 = vrot.slane %v14263_v18, 7 }
 0x5d4   : > { %3150 = vrot.lane.b32.xlu1 %v3088_v14, %s16441_s24  ;;  %v4560_v15 = vpop.permute.xlu0 %4559 }
 0x5d5   : > { %7323 = vrot.lane.b32.xlu0 %v7279_v34, %s16463_s14  ;;  %4606 = vst.msk [vmem:[#allocation4 + $0x40] sm:$0xf] %vm16704_vm10, %v4560_v15  ;;  %v14248_v42 = vpop.permute.xlu1 %7321  ;;  %vm16709_vm10 = vcmask 142432   ;;  %v6699_v34 = vrot.slane %v6697_v51, 4 }
 0x5d6   : > { %4769 = vst.msk [vmem:[#allocation4 + $0x40] sm:$0xf] %vm16705_vm7, %v14041_v6  ;;  %v14268_v6 = vld [vmem:[#allocation3 + $0x3c] sm:$0xf]  ;;  %vm16710_vm7 = vcmask 782032  }
 0x5d7   : > { %16707 = vst [vmem:[#allocation23_spill] sm:$0xff] %v14268_v6  ;;  %v16353_v14 = vrot.slane %v14268_v6, 7 }
 0x5d8   : > { %6300 = vrot.lane.b32.xlu1 %v6259_v24, %s16467_s19  ;;  %v3145_v40 = vpop.permute.xlu0 %3144  ;;  %v5295_v24 = vrot.slane %v5293_v8, 4 }
 0x5d9   : > { %5864 = vrot.lane.b32.xlu0 %v5822_v48, %s16457_s3  ;;  %3189 = vst.msk [vmem:[#allocation4 + $0x50] sm:$0xf] %vm16708_vm2, %v3145_v40  ;;  %v5863_v31 = vpop.permute.xlu1 %5862  ;;  %vm16713_vm2 = vcmask 191632   ;;  %v3528_v40 = vshll.u32 %v3378_v26, 16 }
 0x5da   : > { %3355 = vst.msk [vmem:[#allocation4 + $0x50] sm:$0xf] %vm16709_vm10, %v14061_v12  ;;  %v16712_v12 = vrot.slane %v13771_v59, 6  ;;  %vm16714_vm10 = vcmask 240832   ;;  %v6701_v59 = vsel %vm11929_vm11, %v6699_v34, %v16353_v14  ;;  %v5297_v26 = vsel %vm11929_vm11, %v5295_v24, %v16357_v3  ;;  %v16720_v14 = vld [vmem:[#allocation37_spill] sm:$0xff] }
 0x5db   : > { %5910 = vst.msk [vmem:[#allocation4 + $0x38] sm:$0xf] %vm16710_vm7, %v5863_v31  ;;  %vm16715_vm7 = vcmask 437632   ;;  %v16718_v31 = vld [vmem:[#allocation46_spill] sm:$0xff]  ;;  %v7393_v24 = vld [vmem:[#allocation3 + $0x3c] sm:$0xf] }
 0x5dc   : > { %4891 = vrot.lane.b32.xlu1 %v4852_v63, %s16472_s25  ;;  %v6254_v23 = vrot.slane %v16712_v12, 4  ;;  %v3585_v2 = vpop.permute.xlu0 %3584  ;;  %v6917_v63 = vld [vmem:[#allocation3 + $0x38] sm:$0xf] }
 0x5dd   : > { %7757 = vrot.lane.b32.xlu0 %v7713_v16, %s16470_s13  ;;  %3629 = vst.msk [vmem:[#allocation4 + $0x50] sm:$0xf] %vm16713_vm2, %v3585_v2  ;;  %v4562_v15 = vpop.permute.xlu1 %4561  ;;  %vm16717_vm2 = vcmask 486832  }
 0x5de   : > { %v6256_v48 = vsel %vm11849_vm12, %v6254_v23, %v6255_v55  ;;  %3795 = vst.msk [vmem:[#allocation4 + $0x50] sm:$0xf] %vm16714_vm10, %v14075_v25  ;;  %v14305_v55 = vld [vmem:[#allocation3 + $0x3c] sm:$0xf]  ;;  %v16719_v25 = vrot.slane %v16718_v31, 6  ;;  %v6998_v31 = vshll.u32 %v6917_v63, 16 }
 0x5df   : > { %4607 = vst.msk [vmem:[#allocation4 + $0x48] sm:$0xf] %vm16715_vm7, %v4562_v15  ;;  %16716 = vst [vmem:[#allocation31_spill] sm:$0xff] %v14305_v55  ;;  %v7392_v23 = vld [vmem:[#allocation3 + $0x38] sm:$0xf]  ;;  %v16361_v15 = vrot.slane %v14305_v55, 7 }
 0x5e0   : > { %4770 = vst.msk [vmem:[#allocation4 + $0x48] sm:$0xf] %vm16717_vm2, %v14197_v44  ;;  %6744 = vrot.lane.b32.xlu1 %v6701_v59, %s16479_s28  ;;  %v4847_v16 = vrot.slane %v16719_v25, 4  ;;  %v14312_v12 = vpop.permute.xlu0 %6848  ;;  %v3885_v44 = vrot.slane %v3883_v46, 4  ;;  %v3530_v59 = vrot.slane %v3528_v40, 6  ;;  %v7002_v25 = vshrl.u32 %v6917_v63, 16 }
 0x5e1   : > { %6298 = vrot.lane.b32.xlu0 %v6256_v48, %s16467_s19  ;;  %v14314_v2 = vpop.permute.xlu1 %7755  ;;  %v3527_v48 = vrot.slane %v3525_v29, 5  ;;  %v7473_v27 = vshrl.u32 %v7392_v23, 16  ;;  %v7476_v21 = vshll.u32 %v7392_v23, 16  ;;  %v5931_v40 = vld [vmem:[#allocation3 + $0x38] sm:$0xf]  ;;  %vm16724_vm10 = vcmask 93232  }
 0x5e2   : > { %v4849_v34 = vsel %vm11849_vm12, %v4847_v16, %v4848_v30  ;;  %v16721_v30 = vrot.slane %v16720_v14, 7  ;;  %v3887_v14 = vsel %vm11929_vm11, %v3885_v44, %v16361_v15  ;;  %v7000_v23 = vrot.slane %v6998_v31, 5 }
 0x5e3   : > { %v14341_v63 = vor.u32 %v3530_v59, %v3527_v48  ;;  %vm16725_vm7 = vcmask 142432   ;;  %v6033_v11 = vshll.u32 %v5931_v40, 16  ;;  %vm16726_vm2 = vcmask 782032   ;;  %v5932_v48 = vld [vmem:[#allocation3 + $0x3c] sm:$0xf]  ;;  %v16727_v59 = vld [vmem:[#allocation38_spill] sm:$0xff] }
 0x5e4   : > { %5338 = vrot.lane.b32.xlu1 %v5297_v26, %s16442_s1  ;;  %v6696_v16 = vrot.slane %v16721_v30, 4  ;;  %v14329_v20 = vpop.permute.xlu0 %7319  ;;  %v7004_v26 = vrot.slane %v7002_v25, 4  ;;  %v7483_v30 = vshrl.u32 %v7393_v24, 16  ;;  %v16728_v31 = vrot.slane %v16727_v59, 7  ;;  %v16730_v59 = vld [vmem:[#allocation35_spill] sm:$0xff] }
 0x5e5   : > { %4889 = vrot.lane.b32.xlu0 %v4849_v34, %s16472_s25  ;;  %v3147_v3 = vpop.permute.xlu1 %3146  ;;  %v16723_v34 = vrot.slane %v16722_v58, 7  ;;  %v7475_v58 = vrot.slane %v7473_v27, 5  ;;  %v6043_v15 = vshll.u32 %v5932_v48, 16 }
 0x5e6   : > { %v6698_v45 = vsel %vm11929_vm11, %v6696_v16, %v6697_v51  ;;  %3190 = vst.msk [vmem:[#allocation4 + $0x58] sm:$0xf] %vm16724_vm10, %v3147_v3  ;;  %v7478_v51 = vrot.slane %v7476_v21, 6  ;;  %v7486_v3 = vshll.u32 %v7393_v24, 16  ;;  %v7005_v27 = vor.u32 %v7004_v26, %v7000_v23 }
 0x5e7   : > { %v5292_v29 = vrot.slane %v16723_v34, 4  ;;  %3356 = vst.msk [vmem:[#allocation4 + $0x58] sm:$0xf] %vm16725_vm7, %v14212_v19  ;;  %v6030_v34 = vshrl.u32 %v5931_v40, 16  ;;  %v3882_v25 = vrot.slane %v16728_v31, 4  ;;  %v7485_v18 = vrot.slane %v7483_v30, 5 }
 0x5e8   : > { %3926 = vrot.lane.b32.xlu1 %v3887_v14, %s16443_s22  ;;  %v5861_v16 = vpop.permute.xlu0 %5860  ;;  %v14361_v24 = vor.u32 %v7478_v51, %v7475_v58  ;;  %v7488_v40 = vrot.slane %v7486_v3, 6  ;;  %vm16732_vm10 = vcmask 536032   ;;  %v6366_v31 = vld [vmem:[#allocation3 + $0x3c] sm:$0xf] }
 0x5e9   : > { %6742 = vrot.lane.b32.xlu0 %v6698_v45, %s16479_s28  ;;  %v3523_v45 = vrot.slane %v14183_v57, 4  ;;  %5909 = vst.msk [vmem:[#allocation4 + $0x30] sm:$0xf] %vm16726_vm2, %v5861_v16  ;;  %v14348_v44 = vpop.permute.xlu1 %6296  ;;  %v5294_v19 = vsel %vm11929_vm11, %v5292_v29, %v5293_v8  ;;  %v6365_v57 = vld [vmem:[#allocation3 + $0x38] sm:$0xf]  ;;  %v6032_v29 = vrot.slane %v6030_v34, 5  ;;  %v3884_v26 = vsel %vm11929_vm11, %v3882_v25, %v3883_v46  ;;  %vm16738_vm7 = vmmov %vm16732_vm10 }
 0x5ea   : > { %v14365_v8 = vld [vmem:[#allocation3 + $0x3c] sm:$0xf]  ;;  %v6035_v16 = vrot.slane %v6033_v11, 6  ;;  %v6465_v30 = vshrl.u32 %v6365_v57, 16  ;;  %v6468_v3 = vshll.u32 %v6365_v57, 16  ;;  %v7006_v11 = vrot.slane %v7005_v27, 4 }
 0x5eb   : > { %v3532_v21 = vsel %vm11904_vm8, %v3523_v45, %v14341_v63  ;;  %v6809_v34 = vld [vmem:[#allocation3 + $0x40] sm:$0xf]  ;;  %v4690_v46 = vrot.slane %v4688_v4, 4  ;;  %v14382_v25 = vor.u32 %v7488_v40, %v7485_v18  ;;  %v4954_v57 = vld [vmem:[#allocation3 + $0x38] sm:$0xf]  ;;  %v6475_v4 = vshrl.u32 %v6366_v31, 16 }
 0x5ec   : > { %3590 = vrot.lane.b32.xlu1 %v3532_v21, %s16459_s17  ;;  %v14363_v14 = vpop.permute.xlu0 %7753  ;;  %v16729_v21 = vld [vmem:[#allocation36_spill] sm:$0xff]  ;;  %v6470_v54 = vrot.slane %v6468_v3, 7  ;;  %v5075_v10 = vshrl.u32 %v4954_v57, 16  ;;  %v16736_v3 = vrot.slane %v14086_v35, 5  ;;  %vm16743_vm2 = vcmask 191632  }
 0x5ed   : > { %5336 = vrot.lane.b32.xlu0 %v5294_v19, %s16442_s1  ;;  %v6040_v19 = vshrl.u32 %v5932_v48, 16  ;;  %v4888_v45 = vpop.permute.xlu1 %4887  ;;  %v16731_v58 = vor.u32 %v16729_v21, %v16730_v59  ;;  %16733 = vst [vmem:[#allocation26_spill] sm:$0xff] %v14382_v25  ;;  %v6045_v59 = vrot.slane %v6043_v15, 6  ;;  %v16734_v18 = vld [vmem:[#allocation28_spill] sm:$0xff]  ;;  %v5078_v48 = vshll.u32 %v4954_v57, 16 }
 0x5ee   : > { %4933 = vst.msk [vmem:[#allocation4 + $0x48] sm:$0xf] %vm16732_vm10, %v4888_v45  ;;  %v7481_v45 = vrot.slane %v14361_v24, 4  ;;  %v7011_v40 = vsel %vm11880_vm1, %v7006_v11, %v16734_v18  ;;  %v16735_v15 = vrot.slane %v14365_v8, 5  ;;  %v5077_v35 = vrot.slane %v5075_v10, 6 }
 0x5ef   : > { %v6996_v51 = vrot.slane %v16731_v58, 4  ;;  %v6042_v27 = vrot.slane %v6040_v19, 5  ;;  %vm16744_vm10 = vcmask 240832  }
 0x5f0   : > { %6854 = vrot.lane.b32.xlu1 %v6809_v34, %s16460_s27  ;;  %v14391_v34 = vld [vmem:[#allocation3 + $0x3c] sm:$0xf] }
 0x5f1   : > { %3924 = vrot.lane.b32.xlu0 %v3884_v26, %s16443_s22  ;;  %v7001_v47 = vsel %vm11880_vm1, %v6996_v51, %v7000_v23  ;;  %v14384_v21 = vpop.permute.xlu0 %6294  ;;  %v14387_v26 = vor.u32 %v6035_v16, %v6032_v29  ;;  %v14389_v58 = vpop.permute.xlu1 %6740  ;;  %v6467_v23 = vrot.slane %v6465_v30, 6  ;;  %v6478_v51 = vshll.u32 %v6366_v31, 16  ;;  %v4955_v16 = vld [vmem:[#allocation3 + $0x3c] sm:$0xf] }
 0x5f2   : > { %v4692_v29 = vsel %vm11854_vm14, %v4690_v46, %v16735_v15  ;;  %v7490_v30 = vsel %vm11904_vm8, %v7481_v45, %v14382_v25  ;;  %v3280_v31 = vrot.slane %v16736_v3, 4  ;;  %v6477_v15 = vrot.slane %v6475_v4, 6  ;;  %v14417_v45 = vld [vmem:[#allocation3 + $0x3c] sm:$0xf] }
 0x5f3   : > { %v14414_v46 = vor.u32 %v6470_v54, %v6467_v23  ;;  %v6480_v18 = vrot.slane %v6478_v51, 7  ;;  %v5080_v3 = vrot.slane %v5078_v48, 7  ;;  %v5085_v25 = vshrl.u32 %v4955_v16, 16 }
 0x5f4   : > { %7121 = vrot.lane.b32.xlu1 %v7011_v40, %s16576_s26  ;;  %v6038_v40 = vrot.slane %v14387_v26, 4  ;;  %v5088_v11 = vshll.u32 %v4955_v16, 16  ;;  %v16740_v54 = vrot.slane %v14106_v5, 6 }
 0x5f5   : > { %7119 = vrot.lane.b32.xlu0 %v7001_v47, %s16576_s26  ;;  %v14408_v47 = vor.u32 %v6045_v59, %v6042_v27  ;;  %v14411_v57 = vpop.permute.xlu1 %5334  ;;  %v5402_v27 = vld [vmem:[#allocation3 + $0x3c] sm:$0xf]  ;;  %v14433_v16 = vor.u32 %v6480_v18, %v6477_v15  ;;  %v14438_v55 = vor.u32 %v5080_v3, %v5077_v35  ;;  %v16742_v18 = vrot.slane %v14417_v45, 6 }
 0x5f6   : > { %v3720_v4 = vrot.slane %v16740_v54, 4  ;;  %v5090_v5 = vrot.slane %v5088_v11, 7  ;;  %v3988_v54 = vld [vmem:[#allocation3 + $0x3c] sm:$0xf] }
 0x5f7   : > { %v4886_v19 = vpop.permute.xlu0 %4885  ;;  %16737 = vst [vmem:[#allocation33_spill] sm:$0xff] %v14408_v47  ;;  %v6047_v10 = vsel %vm11904_vm8, %v6038_v40, %v14408_v47  ;;  %16741 = vst [vmem:[#allocation34_spill] sm:$0xff] %v14433_v16  ;;  %v5083_v11 = vrot.slane %v14438_v55, 4  ;;  %v4122_v47 = vshll.u32 %v3988_v54, 16 }
 0x5f8   : > { %4932 = vst.msk [vmem:[#allocation4 + $0x40] sm:$0xf] %vm16738_vm7, %v4886_v19  ;;  %7596 = vrot.lane.b32.xlu1 %v7490_v30, %s16510_s8  ;;  %v16739_v19 = vrot.slane %v14391_v34, 5  ;;  %v14435_v30 = vld [vmem:[#allocation3 + $0x38] sm:$0xf]  ;;  %v3722_v15 = vsel %vm11849_vm12, %v3720_v4, %v16742_v18  ;;  %vm16746_vm7 = vcmask 290032  }
 0x5f9   : > { %4730 = vrot.lane.b32.xlu0 %v4692_v29, %s16503_s10  ;;  %v3923_v51 = vpop.permute.xlu1 %3922  ;;  %v6473_v29 = vrot.slane %v14414_v46, 4  ;;  %v5505_v40 = vshrl.u32 %v14435_v30, 16  ;;  %v16745_v4 = vld [vmem:[#allocation39_spill] sm:$0xff] }
 0x5fa   : > { %v3282_v23 = vsel %vm11854_vm14, %v3280_v31, %v16739_v19  ;;  %v5087_v31 = vrot.slane %v5085_v25, 6  ;;  %v5514_v19 = vshrl.u32 %v5402_v27, 16  ;;  %v14451_v25 = vld [vmem:[#allocation3 + $0x38] sm:$0xf] }
 0x5fb   : > { %v14420_v59 = vpop.permute.xlu0 %6738  ;;  %v6482_v35 = vsel %vm12170_vm15, %v6473_v29, %v14433_v16  ;;  %v7471_v29 = vrot.slane %v16745_v4, 4  ;;  %v5517_v16 = vshll.u32 %v5402_v27, 16  ;;  %v16748_v27 = vld [vmem:[#allocation40_spill] sm:$0xff] }
 0x5fc   : > { %6137 = vrot.lane.b32.xlu1 %v6047_v10, %s16506_s29  ;;  %v14456_v3 = vor.u32 %v5090_v5, %v5087_v31  ;;  %v4119_v10 = vshrl.u32 %v3988_v54, 16 }
 0x5fd   : > { %3318 = vrot.lane.b32.xlu0 %v3282_v23, %s16452_s23  ;;  %v14458_v23 = vrot.slane %v5514_v19, 7  ;;  %v7480_v5 = vsel %vm11904_vm8, %v7471_v29, %v14361_v24 }
 0x5fe   : > { %v3587_v48 = vpop.permute.xlu1 %3586  ;;  %v14475_v19 = vrot.slane %v4119_v10, 7 }
 0x5ff   : > { %v14441_v52 = vpop.permute.xlu0 %5332  ;;  %3630 = vst.msk [vmem:[#allocation4 + $0x58] sm:$0xf] %vm16743_vm2, %v3587_v48  ;;  %v5507_v48 = vrot.slane %v5505_v40, 7  ;;  %vm16747_vm2 = vmmov %vm16746_vm7  ;;  %v6028_v40 = vrot.slane %v16748_v27, 4 }
 0x600   : > { %3796 = vst.msk [vmem:[#allocation4 + $0x58] sm:$0xf] %vm16744_vm10, %v14228_v33  ;;  %6577 = vrot.lane.b32.xlu1 %v6482_v35, %s16508_s12  ;;  %v5092_v33 = vsel %vm12170_vm15, %v5083_v11, %v14456_v3  ;;  %v4124_v11 = vor.u32 %v4122_v47, %v14475_v19  ;;  %vm16750_vm10 = vcmask 76832  }
 0x601   : > { %3758 = vrot.lane.b32.xlu0 %v3722_v15, %s16454_s2  ;;  %3966 = vst.msk [vmem:[#allocation4 + $0x58] sm:$0xf] %vm16746_vm7, %v3923_v51  ;;  %v4110_v15 = vshrl.u32 %v14451_v25, 16  ;;  %v5519_v51 = vor.u32 %v5517_v16, %v14458_v23  ;;  %v5512_v4 = vrot.slane %v5507_v48, 4  ;;  %v6037_v29 = vsel %vm11904_vm8, %v6028_v40, %v14387_v26  ;;  %vm16751_vm7 = vmmov %vm16750_vm10 }
 0x602   : > { %v6851_v31 = vpop.permute.xlu1 %6850  ;;  %v5508_v40 = vshll.u32 %v14435_v30, 16  ;;  %v14524_v30 = vld [vmem:[#allocation3 + $0x40] sm:$0xf] }
 0x603   : > { %v3921_v18 = vpop.permute.xlu0 %3920  ;;  %v5520_v16 = vsel %vm11974_vm3, %v5512_v4, %v5519_v51 }
 0x604   : > { %3965 = vst.msk [vmem:[#allocation4 + $0x50] sm:$0xf] %vm16747_vm2, %v3921_v18  ;;  %5171 = vrot.lane.b32.xlu1 %v5092_v33, %s16445_s0  ;;  %v4112_v18 = vrot.slane %v4110_v15, 7  ;;  %v16749_v15 = vld [vmem:[#allocation22_spill] sm:$0xff]  ;;  %vm16752_vm2 = vcmask 175232   ;;  %v5510_v4 = vor.u32 %v5508_v40, %v5507_v48 }
 0x605   : > { %7594 = vrot.lane.b32.xlu0 %v7480_v5, %s16510_s8  ;;  %v6463_v54 = vrot.slane %v16749_v15, 4 }
 0x606   : > { %v7118_v24 = vpop.permute.xlu1 %7117  ;;  %v4117_v27 = vrot.slane %v4112_v18, 4 }
 0x607   : > { %v7116_v35 = vpop.permute.xlu0 %7115  ;;  %v7148_v5 = vrot.slane %v7118_v24, 4 }
 0x608   : > { %v7147_v6 = vrot.slane %v7116_v35, 4  ;;  %5597 = vrot.lane.b32.xlu1 %v5520_v16, %s16446_s20  ;;  %v4125_v51 = vsel %vm11974_vm3, %v4117_v27, %v4124_v11  ;;  %v4694_v16 = vrot.slane %v14524_v30, 5 }
 0x609   : > { %6135 = vrot.lane.b32.xlu0 %v6037_v29, %s16506_s29  ;;  %v7167_v33 = vsel %vm7161_vm4, %v7148_v5, %v7118_v24  ;;  %v5662_v24 = vld [vmem:[#allocation3 + $0x44] sm:$0xf] }
 0x60a   : > { %v7166_v10 = vsel %vm7161_vm4, %v7147_v6, %v7116_v35  ;;  %7206 = vst.msk [vmem:[#allocation4 + $0x28] sm:$0xff] %vm13554_vm5, %v7167_v33  ;;  %v7593_v47 = vpop.permute.xlu1 %7592  ;;  %v6472_v6 = vsel %vm12170_vm15, %v6463_v54, %v14414_v46  ;;  %v16759_v33 = vrot.slane %v14391_v34, 5 }
 0x60b   : > { %7205 = vst.msk [vmem:[#allocation4 + $0x20] sm:$0xff] %vm13554_vm5, %v7166_v10  ;;  %v14492_v26 = vpop.permute.xlu0 %4726 }
 0x60c   : > { %7370 = vst.msk [vmem:[#allocation4 + $0x24] sm:$0xf] %vm16750_vm10, %v14329_v20  ;;  %4188 = vrot.lane.b32.xlu1 %v4125_v51, %s16447_s30  ;;  %v5073_v20 = vrot.slane %v14005_v28, 4  ;;  %vm16753_vm10 = vcmask 831232   ;;  %v5503_v28 = vrot.slane %v14007_v60, 4  ;;  %v4108_v60 = vrot.slane %v14024_v38, 4 }
 0x60d   : > { %7371 = vst.msk [vmem:[#allocation4 + $0x2c] sm:$0xf] %vm16751_vm7, %v14248_v42  ;;  %6575 = vrot.lane.b32.xlu0 %v6472_v6, %s16508_s12  ;;  %vm16754_vm7 = vcmask 880432   ;;  %v3283_v27 = vrot.slane %v16759_v33, 4  ;;  %v5661_v51 = vld [vmem:[#allocation3 + $0x40] sm:$0xf] }
 0x60e   : > { %7642 = vst.msk [vmem:[#allocation4 + $0x2c] sm:$0xf] %vm16386_vm6, %v7593_v47  ;;  %v6134_v35 = vpop.permute.xlu1 %6133  ;;  %v5082_v42 = vsel %vm12170_vm15, %v5073_v20, %v14438_v55  ;;  %v5511_v48 = vsel %vm11974_vm3, %v5503_v28, %v5510_v4  ;;  %v4359_v47 = vld [vmem:[#allocation3 + $0x3c] sm:$0xf]  ;;  %v14579_v4 = vld [vmem:[#allocation3 + $0x40] sm:$0xf] }
 0x60f   : > { %7805 = vst.msk [vmem:[#allocation4 + $0x2c] sm:$0xf] %vm16752_vm2, %v14314_v2  ;;  %v14512_v46 = vpop.permute.xlu0 %3314  ;;  %v4113_v2 = vshll.u32 %v14451_v25, 16  ;;  %vm16755_vm2 = vcmask 978832   ;;  %v14537_v25 = vld [vmem:[#allocation3 + $0x40] sm:$0xf] }
 0x610   : > { %6181 = vst.msk [vmem:[#allocation4 + $0x38] sm:$0xf] %vm16753_vm10, %v6134_v35  ;;  %5711 = vrot.lane.b32.xlu1 %v5662_v24, %s16448_s15  ;;  %vm16757_vm10 = vcmask 175232   ;;  %v3379_v20 = vld [vmem:[#allocation3 + $0x3c] sm:$0xf]  ;;  %v16764_v28 = vrot.slane %v14417_v45, 6 }
 0x611   : > { %5169 = vrot.lane.b32.xlu0 %v5082_v42, %s16445_s0  ;;  %6344 = vst.msk [vmem:[#allocation4 + $0x38] sm:$0xf] %vm16754_vm7, %v14348_v44  ;;  %v4115_v5 = vor.u32 %v4113_v2, %v4112_v18  ;;  %v4251_v44 = vld [vmem:[#allocation3 + $0x44] sm:$0xf]  ;;  %v16756_v18 = vrot.slane %v14365_v8, 5  ;;  %v3284_v8 = vrot.slane %v14537_v25, 5 }
 0x612   : > { %v6574_v55 = vpop.permute.xlu1 %6573  ;;  %vm16758_vm7 = vcmask 634432   ;;  %v4250_v35 = vld [vmem:[#allocation3 + $0x40] sm:$0xf]  ;;  %v14577_v42 = vld [vmem:[#allocation3 + $0x44] sm:$0xf]  ;;  %v3723_v2 = vrot.slane %v16764_v28, 4 }
 0x613   : > { %v14526_v29 = vpop.permute.xlu0 %3754  ;;  %6621 = vst.msk [vmem:[#allocation4 + $0x38] sm:$0xf] %vm6613_vm0, %v6574_v55  ;;  %v4693_v10 = vrot.slane %v16756_v18, 4  ;;  %v4116_v54 = vsel %vm11974_vm3, %v4108_v60, %v4115_v5  ;;  %v16765_v55 = vld [vmem:[#allocation41_spill] sm:$0xff]  ;;  %v2939_v60 = vld [vmem:[#allocation3 + $0x3c] sm:$0xf] }
 0x614   : > { %6788 = vst.msk [vmem:[#allocation4 + $0x38] sm:$0xf] %vm16755_vm2, %v14389_v58  ;;  %4302 = vrot.lane.b32.xlu1 %v4251_v44, %s16449_s16  ;;  %v14557_v58 = vld [vmem:[#allocation3 + $0x40] sm:$0xf]  ;;  %vm16760_vm2 = vcmask 831232   ;;  %v4498_v44 = vshrl.u32 %v4359_v47, 16 }
 0x615   : > { %5595 = vrot.lane.b32.xlu0 %v5511_v48, %s16446_s20  ;;  %6898 = vst.msk [vmem:[#allocation4 + $0x38] sm:$0xf] %vm6890_vm9, %v6851_v31  ;;  %v4695_v38 = vsel %vm11854_vm14, %v4693_v10, %v4694_v16  ;;  %v14559_v31 = vld [vmem:[#allocation3 + $0x40] sm:$0xf]  ;;  %v16378_v34 = vrot.slane %v14557_v58, 6  ;;  %v16766_v48 = vor.u32 %v16765_v55, %v16700_v56 }
 0x616   : > { %v5168_v15 = vpop.permute.xlu1 %5167  ;;  %v7284_v40 = vrot.slane %v14559_v31, 5  ;;  %v10447_v10 = vld [vmem:[#allocation4 + $0x20] ss:$8 sps:$4 sm:$0xff]  }
 0x617   : > { %v7591_v11 = vpop.permute.xlu0 %7590  ;;  %5213 = vst.msk [vmem:[#allocation4 + $0x48] sm:$0xf] %vm16384_vm13, %v5168_v15  ;;  %v4492_v5 = vrot.slane %v16766_v48, 4  ;;  %v3538_v15 = vshll.u32 %v3379_v20, 16  ;;  %v3725_v56 = vsel %vm11849_vm12, %v3723_v2, %v16378_v34  ;;  %v14605_v33 = vld [vmem:[#allocation3 + $0x44] sm:$0xf] }
 0x618   : > { %7641 = vst.msk [vmem:[#allocation4 + $0x24] sm:$0xf] %vm16386_vm6, %v7591_v11  ;;  %4732 = vrot.lane.b32.xlu1 %v4695_v38, %s16503_s10  ;;  %v3535_v11 = vshrl.u32 %v3379_v20, 16  ;;  %v7286_v45 = vrot.slane %v7284_v40, 4  ;;  %v5827_v38 = vrot.slane %v14579_v4, 5  ;;  %v16375_v28 = vrot.slane %v14605_v33, 5 }
 0x619   : > { %7804 = vst.msk [vmem:[#allocation4 + $0x24] sm:$0xf] %vm16757_vm10, %v14363_v14  ;;  %4186 = vrot.lane.b32.xlu0 %v4116_v54, %s16447_s30  ;;  %vm16761_vm10 = vcmask 880432   ;;  %v16376_v54 = vrot.slane %v14577_v42, 5  ;;  %v14626_v2 = vld [vmem:[#allocation3 + $0x40] sm:$0xf] }
 0x61a   : > { %5380 = vst.msk [vmem:[#allocation4 + $0x48] sm:$0xf] %vm16758_vm7, %v14411_v57  ;;  %v5594_v6 = vpop.permute.xlu1 %5593  ;;  %vm16762_vm7 = vcmask 683632   ;;  %v3285_v57 = vsel %vm11854_vm14, %v3283_v27, %v3284_v8  ;;  %v3099_v48 = vshrl.u32 %v2939_v60, 16 }
 0x61b   : > { %v6132_v14 = vpop.permute.xlu0 %6131  ;;  %5639 = vst.msk [vmem:[#allocation4 + $0x48] sm:$0xf] %vm16762_vm7, %v5594_v6  ;;  %vm16768_vm7 = vcmask 339232  }
 0x61c   : > { %6180 = vst.msk [vmem:[#allocation4 + $0x30] sm:$0xf] %vm16760_vm2, %v6132_v14  ;;  %vm16763_vm2 = vcmask 732832   ;;  %3320 = vrot.lane.b32.xlu1 %v3285_v57, %s16452_s23  ;;  %v3095_v14 = vshll.u32 %v2939_v60, 16  ;;  %v3537_v57 = vrot.slane %v3535_v11, 5  ;;  %v3533_v11 = vrot.slane %v14341_v63, 4 }
 0x61d   : > { %6343 = vst.msk [vmem:[#allocation4 + $0x30] sm:$0xf] %vm16761_vm10, %v14384_v21  ;;  %5709 = vrot.lane.b32.xlu0 %v5661_v51, %s16448_s15  ;;  %v4494_v21 = vshll.u32 %v4359_v47, 16  ;;  %vm16767_vm10 = vcmask 978832   ;;  %v4500_v47 = vrot.slane %v4498_v44, 4  ;;  %v16771_v51 = vld [vmem:[#allocation42_spill] sm:$0xff] }
 0x61e   : > { %5749 = vst.msk [vmem:[#allocation4 + $0x48] sm:$0xf] %vm16763_vm2, %v14157_v0  ;;  %v4185_v0 = vpop.permute.xlu1 %4184  ;;  %vm16769_vm2 = vcmask 388432  }
 0x61f   : > { %v6572_v24 = vpop.permute.xlu0 %6571  ;;  %4228 = vst.msk [vmem:[#allocation4 + $0x58] sm:$0xf] %vm16768_vm7, %v4185_v0  ;;  %vm16773_vm7 = vcmask 634432  }
 0x620   : > { %6620 = vst.msk [vmem:[#allocation4 + $0x30] sm:$0xf] %vm6613_vm0, %v6572_v24  ;;  %v10445_v18 = vld [vmem:[#allocation4 + $0x24] ss:$8 sps:$4 sm:$0xff]   ;;  %3760 = vrot.lane.b32.xlu1 %v3725_v56, %s16454_s2  ;;  %v5829_v24 = vrot.slane %v5827_v38, 4  ;;  %v3101_v56 = vrot.slane %v3099_v48, 4 }
 0x621   : > { %6787 = vst.msk [vmem:[#allocation4 + $0x30] sm:$0xf] %vm16767_vm10, %v14420_v59  ;;  %4300 = vrot.lane.b32.xlu0 %v4250_v35, %s16449_s16  ;;  %vm16770_vm10 = vcmask 179200   ;;  %v4496_v59 = vrot.slane %v4494_v21, 5  ;;  %v3540_v35 = vrot.slane %v3538_v15, 6  ;;  %v7288_v21 = vsel %vm11854_vm14, %v7286_v45, %v16376_v54 }
 0x622   : > { %6897 = vst.msk [vmem:[#allocation4 + $0x30] sm:$0xf] %vm6890_vm9, %v14312_v12  ;;  %9389 = vmatprep.mubr.msk.bf16.mxu0 %vm16770_vm10, %v10445_v18  ;;  %v14608_v6 = vpop.permute.xlu1 %5707  ;;  %vm16775_vm10 = vcmask 732832   ;;  %v5831_v60 = vsel %vm11854_vm14, %v5829_v24, %v16375_v28  ;;  %v7718_v18 = vrot.slane %v14626_v2, 6 }
 0x623   : > { %4338 = vst.msk [vmem:[#allocation4 + $0x58] sm:$0xf] %vm16769_vm2, %v14178_v53  ;;  %v5166_v27 = vpop.permute.xlu0 %5165  ;;  %8082 = vmatmul.mubr.bf16.gmra.mrb[204].mxu0 %v10447_v10  ;;  %v4497_v12 = vsel %vm11880_vm1, %v4492_v5, %v4496_v59  ;;  %v16772_v53 = vor.u32 %v16771_v51, %v16702_v36  ;;  %v3097_v36 = vrot.slane %v3095_v14, 5  ;;  %vm16774_vm2 = vcmask 683632   ;;  %v14645_v10 = vld [vmem:[#allocation3 + $0x44] sm:$0xf] }
 0x624   : > { %5212 = vst.msk [vmem:[#allocation4 + $0x40] sm:$0xf] %vm16384_vm13, %v5166_v27  ;;  %7329 = vrot.lane.b32.xlu1 %v7288_v21, %s16463_s14  ;;  %v14634_v0 = vor.u32 %v3540_v35, %v3537_v57  ;;  %v7720_v27 = vrot.slane %v7718_v18, 4  ;;  %v16779_v21 = vrot.slane %v14126_v22, 5  ;;  %v16780_v22 = vld [vmem:[#allocation43_spill] sm:$0xff] }
 0x625   : > { %v3093_v20 = vrot.slane %v16772_v53, 4  ;;  %5379 = vst.msk [vmem:[#allocation4 + $0x40] sm:$0xf] %vm16773_vm7, %v14441_v52  ;;  %4567 = vrot.lane.b32.xlu0 %v4497_v12, %s16440_s21  ;;  %v4501_v52 = vor.u32 %v4500_v47, %v4496_v59  ;;  %vm16776_vm7 = vcmask 339232   ;;  %v16778_v59 = vld [vmem:[#allocation30_spill] sm:$0xff]  ;;  %v16374_v47 = vrot.slane %v14645_v10, 6 }
 0x626   : > { %v14629_v5 = vpop.permute.xlu1 %4298  ;;  %v14663_v12 = vld [vmem:[#allocation3 + $0x40] sm:$0xf]  ;;  %v3102_v53 = vor.u32 %v3101_v56, %v3097_v36  ;;  %v7283_v24 = vrot.slane %v16779_v21, 4 }
 0x627   : > { %v5592_v55 = vpop.permute.xlu0 %5591  ;;  %v3098_v44 = vsel %vm11880_vm1, %v3093_v20, %v3097_v36  ;;  %v4502_v63 = vrot.slane %v4501_v52, 4  ;;  %v7722_v57 = vsel %vm11849_vm12, %v7720_v27, %v16374_v47  ;;  %v6261_v35 = vrot.slane %v14663_v12, 6  ;;  %v14680_v36 = vld [vmem:[#allocation3 + $0x40] sm:$0xf] }
 0x628   : > { %5638 = vst.msk [vmem:[#allocation4 + $0x40] sm:$0xf] %vm16774_vm2, %v5592_v55  ;;  %5870 = vrot.lane.b32.xlu1 %v5831_v60, %s16457_s3  ;;  %vm16777_vm2 = vcmask 388432   ;;  %v14678_v55 = vld [vmem:[#allocation3 + $0x44] sm:$0xf]  ;;  %v3103_v52 = vrot.slane %v3102_v53, 4 }
 0x629   : > { %5748 = vst.msk [vmem:[#allocation4 + $0x40] sm:$0xf] %vm16775_vm10, %v14210_v37  ;;  %3152 = vrot.lane.b32.xlu0 %v3098_v44, %s16441_s24  ;;  %v3542_v37 = vsel %vm11904_vm8, %v3533_v11, %v14634_v0  ;;  %v4507_v14 = vsel %vm11880_vm1, %v4502_v63, %v16778_v59  ;;  %v7285_v11 = vsel %vm11854_vm14, %v7283_v24, %v7284_v40  ;;  %v14693_v60 = vld [vmem:[%s16157_s5] ss:$0 sm:$0xff]  ;;  %v6263_v63 = vrot.slane %v6261_v35, 4 }
 0x62a   : > { %v14648_v45 = vpop.permute.xlu1 %4728  ;;  %v16373_v56 = vrot.slane %v14678_v55, 6  ;;  %v4854_v31 = vrot.slane %v14680_v36, 6  ;;  %v14706_v12 = vld [vmem:[#allocation3 + $0x40] sm:$0xf]  ;;  %vm16782_vm10 = vcmask 437632  }
 0x62b   : > { %v4183_v15 = vpop.permute.xlu0 %4182 }
 0x62c   : > { %4227 = vst.msk [vmem:[#allocation4 + $0x50] sm:$0xf] %vm16776_vm7, %v4183_v15  ;;  %4569 = vrot.lane.b32.xlu1 %v4507_v14, %s16440_s21  ;;  %v3108_v15 = vsel %vm11880_vm1, %v3103_v52, %v16780_v22  ;;  %v16781_v14 = vrot.slane %v14154_v49, 5  ;;  %vm16783_vm7 = vcmask 486832   ;;  %v4856_v4 = vrot.slane %v4854_v31, 4 }
 0x62d   : > { %4337 = vst.msk [vmem:[#allocation4 + $0x50] sm:$0xf] %vm16777_vm2, %v14226_v13  ;;  %3592 = vrot.lane.b32.xlu0 %v3542_v37, %s16459_s17  ;;  %v6810_v13 = vld [vmem:[#allocation3 + $0x44] sm:$0xf]  ;;  %vm16786_vm2 = vcmask 93232  }
 0x62e   : > { %v14667_v20 = vpop.permute.xlu1 %3316  ;;  %v14700_v37 = vld [vmem:[#allocation3 + $0x44] sm:$0xf]  ;;  %v5826_v27 = vrot.slane %v16781_v14, 4 }
 0x62f   : > { %v14665_v51 = vpop.permute.xlu0 %5705  ;;  %v16372_v52 = vrot.slane %v14700_v37, 6 }
 0x630   : > { %7763 = vrot.lane.b32.xlu1 %v7722_v57, %s16470_s13  ;;  %v5828_v24 = vsel %vm11854_vm14, %v5826_v27, %v5827_v38  ;;  %v16784_v38 = vrot.slane %v14194_v17, 6  ;;  %v14731_v27 = vld [vmem:[#allocation3 + $0x40] sm:$0xf] }
 0x631   : > { %6856 = vrot.lane.b32.xlu0 %v6810_v13, %s16460_s27  ;;  %v4858_v17 = vsel %vm11849_vm12, %v4856_v4, %v16372_v52  ;;  %v5299_v2 = vrot.slane %v14731_v27, 7  ;;  %v14773_v27 = vld [vmem:[#allocation3 + $0x44] sm:$0xf] }
 0x632   : > { %v14684_v44 = vpop.permute.xlu1 %3756  ;;  %v8067_v40 = vpop.f32.mrb[196].mxu0  ;;  %v7717_v14 = vrot.slane %v16784_v38, 4  ;;  %16796 = vst [vmem:[#allocation46_spill] sm:$0xff] %v14773_v27 }
 0x633   : > { %v14682_v48 = vpop.permute.xlu0 %4296  ;;  %v8068_v13 = vadd.f32 %v14693_v60, %v8067_v40  ;;  %v8069_v57 = vpop.f32.mrb[197].mxu0  ;;  %v6703_v40 = vrot.slane %v14706_v12, 7  ;;  %v5301_v4 = vrot.slane %v5299_v2, 4 }
 0x634   : > { %3154 = vrot.lane.b32.xlu1 %v3108_v15, %s16441_s24  ;;  %v8070_v36 = vpop.f32.mrb[198].mxu0 }
 0x635   : > { %7327 = vrot.lane.b32.xlu0 %v7285_v11, %s16463_s14  ;;  %v8071_v49 = vadd.f32 %v14693_v60, %v8070_v36  ;;  %v6265_v11 = vsel %vm11849_vm12, %v6263_v63, %v16373_v56  ;;  %v8072_v15 = vpop.f32.mrb[199].mxu0  ;;  %10711 = vtanh.f32 %v8068_v13  ;;  %v7719_v63 = vsel %vm11849_vm12, %v7717_v14, %v7718_v18  ;;  %v14753_v36 = vld [vmem:[#allocation3 + $0x40] sm:$0xf] }
 0x636   : > { %v14710_v21 = vpop.permute.xlu1 %7325  ;;  %v6705_v12 = vrot.slane %v6703_v40, 4  ;;  %v16789_v18 = vrot.slane %v14222_v9, 6  ;;  %v3889_v14 = vrot.slane %v14753_v36, 7  ;;  %v16797_v36 = vld [vmem:[#allocation23_spill] sm:$0xff] }
 0x637   : > { %v4564_v53 = vpop.permute.xlu0 %4563  ;;  %10713 = vtanh.f32 %v8071_v49 }
 0x638   : > { %4608 = vst.msk [vmem:[#allocation4 + $0x50] sm:$0xf] %vm16782_vm10, %v4564_v53  ;;  %6304 = vrot.lane.b32.xlu1 %v6265_v11, %s16467_s19  ;;  %vm16787_vm10 = vcmask 142432  }
 0x639   : > { %4771 = vst.msk [vmem:[#allocation4 + $0x50] sm:$0xf] %vm16783_vm7, %v14492_v26  ;;  %5868 = vrot.lane.b32.xlu0 %v5828_v24, %s16457_s3  ;;  %v14729_v26 = vld [vmem:[#allocation3 + $0x44] sm:$0xf]  ;;  %vm16788_vm7 = vcmask 782032   ;;  %v6260_v24 = vrot.slane %v16789_v18, 4 }
 0x63a   : > { %16785 = vst [vmem:[#allocation24_spill] sm:$0xff] %v14729_v26  ;;  %v5867_v57 = vpop.permute.xlu1 %5866  ;;  %v16371_v13 = vrot.slane %v14729_v26, 7  ;;  %v16370_v18 = vrot.slane %v14773_v27, 7  ;;  %v6368_v27 = vld [vmem:[#allocation3 + $0x44] sm:$0xf] }
 0x63b   : > { %v3149_v53 = vpop.permute.xlu0 %3148  ;;  %5912 = vst.msk [vmem:[#allocation4 + $0x48] sm:$0xf] %vm16788_vm7, %v5867_v57  ;;  %v6262_v15 = vsel %vm11849_vm12, %v6260_v24, %v6261_v35  ;;  %vm16793_vm7 = vcmask 437632   ;;  %v14787_v24 = vld [vmem:[#allocation3 + $0x44] sm:$0x7]  ;;  %v6498_v26 = vshll.u32 %v6368_v27, 16 }
 0x63c   : > { %3191 = vst.msk [vmem:[#allocation4 + $0x60] sm:$0xf] %vm16786_vm2, %v3149_v53  ;;  %4895 = vrot.lane.b32.xlu1 %v4858_v17, %s16472_s25  ;;  %vm16791_vm2 = vcmask 191632   ;;  %v6707_v9 = vsel %vm11929_vm11, %v6705_v12, %v16371_v13  ;;  %v16805_v13 = vld [vmem:[#allocation31_spill] sm:$0xff] }
 0x63d   : > { %3357 = vst.msk [vmem:[#allocation4 + $0x60] sm:$0xf] %vm16787_vm10, %v14512_v46  ;;  %7761 = vrot.lane.b32.xlu0 %v7719_v63, %s16470_s13  ;;  %v14751_v46 = vld [vmem:[#allocation3 + $0x44] sm:$0xf]  ;;  %vm16792_vm10 = vcmask 240832  }
 0x63e   : > { %16790 = vst [vmem:[#allocation25_spill] sm:$0xff] %v14751_v46  ;;  %v4566_v11 = vpop.permute.xlu1 %4565  ;;  %v16369_v38 = vrot.slane %v14751_v46, 7 }
 0x63f   : > { %v3589_v49 = vpop.permute.xlu0 %3588  ;;  %4609 = vst.msk [vmem:[#allocation4 + $0x58] sm:$0xf] %vm16793_vm7, %v4566_v11  ;;  %v10712_v57 = vpop.eup %10711  ;;  %vm16803_vm7 = vcmask 142432  }
 0x640   : > { %3631 = vst.msk [vmem:[#allocation4 + $0x60] sm:$0xf] %vm16791_vm2, %v3589_v49  ;;  %vm16794_vm2 = vcmask 486832   ;;  %6748 = vrot.lane.b32.xlu1 %v6707_v9, %s16479_s28  ;;  %v16798_v49 = vrot.slane %v16797_v36, 7 }
 0x641   : > { %3797 = vst.msk [vmem:[#allocation4 + $0x60] sm:$0xf] %vm16792_vm10, %v14526_v29  ;;  %6302 = vrot.lane.b32.xlu0 %v6262_v15, %s16467_s19  ;;  %v16795_v29 = vrot.slane %v14243_v1, 6  ;;  %v10714_v12 = vpop.eup %10713  ;;  %v3891_v1 = vrot.slane %v3889_v14, 4  ;;  %vm16799_vm10 = vcmask 93232  }
 0x642   : > { %4772 = vst.msk [vmem:[#allocation4 + $0x58] sm:$0xf] %vm16794_vm2, %v14648_v45  ;;  %v14777_v63 = vpop.permute.xlu1 %7759  ;;  %v5303_v45 = vsel %vm11929_vm11, %v5301_v4, %v16369_v38  ;;  %v6702_v11 = vrot.slane %v16798_v49, 4  ;;  %v8156_v15 = vpack.c.bf16 %v10714_v12, %v10712_v57  ;;  %v16379_v4 = vrot.slane %v14787_v24, 5  ;;  %v16800_v12 = vld [vmem:[#allocation32_spill] sm:$0xff] }
 0x643   : > { %v4853_v35 = vrot.slane %v16795_v29, 4  ;;  %v14775_v53 = vpop.permute.xlu0 %6852  ;;  %v3893_v57 = vsel %vm11929_vm11, %v3891_v1, %v16370_v18  ;;  %v6919_v49 = vld [vmem:[#allocation3 + $0x40] sm:$0xf]  ;;  %vm16804_vm2 = vcmask 782032  }
 0x644   : > { %5342 = vrot.lane.b32.xlu1 %v5303_v45, %s16442_s1  ;;  %8199 = vmatpush1.bf16.msra.mxu1 %v8156_v15  ;;  %v16801_v45 = vrot.slane %v16800_v12, 7  ;;  %v7018_v12 = vshll.u32 %v6919_v49, 16  ;;  %v7394_v18 = vld [vmem:[#allocation3 + $0x40] sm:$0xf] }
 0x645   : > { %v4855_v17 = vsel %vm11849_vm12, %v4853_v35, %v4854_v31  ;;  %v3380_v31 = vld [vmem:[#allocation3 + $0x40] sm:$0xf]  ;;  %v6704_v35 = vsel %vm11929_vm11, %v6702_v11, %v6703_v40  ;;  %v16802_v11 = vmov 0   ;;  %v7493_v52 = vshrl.u32 %v7394_v18, 16 }
 0x646   : > { %4893 = vrot.lane.b32.xlu0 %v4855_v17, %s16472_s25  ;;  %v3151_v29 = vpop.permute.xlu1 %3150  ;;  %v14797_v17 = vld [vmem:[#allocation3 + $0x44] sm:$0xf]  ;;  %v5298_v36 = vrot.slane %v16801_v45, 4  ;;  %v3545_v38 = vshrl.u32 %v3380_v31, 16  ;;  %v3548_v40 = vshll.u32 %v3380_v31, 16  ;;  %8200 = vmatprep.subr.bf16.mxu1 %v16802_v11  ;;  %v7022_v45 = vshrl.u32 %v6919_v49, 16 }
 0x647   : > { %v14792_v9 = vpop.permute.xlu0 %7323  ;;  %3192 = vst.msk [vmem:[#allocation4 + $0x68] sm:$0xf] %vm16799_vm10, %v3151_v29  ;;  %v16377_v31 = vrot.slane %v14797_v17, 6  ;;  %v7496_v56 = vshll.u32 %v7394_v18, 16  ;;  %v7020_v54 = vrot.slane %v7018_v12, 5  ;;  %vm16807_vm10 = vcmask 536032  }
 0x648   : > { %3358 = vst.msk [vmem:[#allocation4 + $0x68] sm:$0xf] %vm16803_vm7, %v14667_v20  ;;  %3930 = vrot.lane.b32.xlu1 %v3893_v57, %s16443_s22  ;;  %v5300_v29 = vsel %vm11929_vm11, %v5298_v36, %v5299_v2  ;;  %v3547_v20 = vrot.slane %v3545_v38, 5  ;;  %v3550_v57 = vrot.slane %v3548_v40, 6  ;;  %v16806_v2 = vrot.slane %v16805_v13, 7  ;;  %v16808_v18 = vld [vmem:[#allocation21_spill] sm:$0xff]  ;;  %vm16811_vm7 = vmmov %vm16807_vm10 }
 0x649   : > { %v3729_v49 = vrot.slane %v16377_v31, 4  ;;  %v7395_v38 = vld [vmem:[#allocation3 + $0x44] sm:$0xf]  ;;  %v5933_v31 = vld [vmem:[#allocation3 + $0x40] sm:$0xf]  ;;  %v7498_v34 = vrot.slane %v7496_v56, 6 }
 0x64a   : > { %6746 = vrot.lane.b32.xlu0 %v6704_v35, %s16479_s28  ;;  %v14814_v1 = vpop.permute.xlu1 %6300  ;;  %v3289_v35 = vrot.slane %v16379_v4, 4  ;;  %v3888_v36 = vrot.slane %v16806_v2, 4  ;;  %v14831_v13 = vor.u32 %v3550_v57, %v3547_v20  ;;  %v14833_v40 = vld [vmem:[#allocation3 + $0x44] sm:$0xf]  ;;  %v7506_v4 = vshll.u32 %v7395_v38, 16 }
 0x64b   : > { %v5865_v15 = vpop.permute.xlu0 %5864  ;;  %v4696_v57 = vrot.slane %v4694_v16, 4  ;;  %v6050_v56 = vshrl.u32 %v5933_v31, 16 }
 0x64c   : > { %5911 = vst.msk [vmem:[#allocation4 + $0x40] sm:$0xf] %vm16804_vm2, %v5865_v15  ;;  %3324 = vrot.lane.b32.xlu1 %v3289_v35, %s16452_s23  ;;  %v3890_v28 = vsel %vm11929_vm11, %v3888_v36, %v3889_v14  ;;  %v16809_v35 = vld [vmem:[#allocation28_spill] sm:$0xff]  ;;  %v3543_v36 = vrot.slane %v14634_v0, 4  ;;  %vm16817_vm2 = vcmask 191632  }
 0x64d   : > { %v16810_v2 = vor.u32 %v16808_v18, %v16809_v35  ;;  %v6367_v35 = vld [vmem:[#allocation3 + $0x40] sm:$0xf] }
 0x64e   : > { %5340 = vrot.lane.b32.xlu0 %v5300_v29, %s16442_s1  ;;  %v4892_v47 = vpop.permute.xlu1 %4891  ;;  %v7024_v29 = vrot.slane %v7022_v45, 4  ;;  %v7495_v45 = vrot.slane %v7493_v52, 5  ;;  %v3552_v0 = vsel %vm11904_vm8, %v3543_v36, %v14831_v13  ;;  %v6053_v52 = vshll.u32 %v5933_v31, 16  ;;  %v6811_v36 = vld [vmem:[#allocation3 + $0x48] sm:$0xf] }
 0x64f   : > { %v14823_v15 = vpop.permute.xlu0 %7757  ;;  %4935 = vst.msk [vmem:[#allocation4 + $0x58] sm:$0xf] %vm16807_vm10, %v4892_v47  ;;  %v7016_v14 = vrot.slane %v16810_v2, 4  ;;  %v7503_v47 = vshrl.u32 %v7395_v38, 16  ;;  %v3286_v38 = vrot.slane %v3284_v8, 4  ;;  %v6488_v25 = vshll.u32 %v6367_v35, 16 }
 0x650   : > { %3764 = vrot.lane.b32.xlu1 %v3729_v49, %s16454_s2  ;;  %v7025_v18 = vor.u32 %v7024_v29, %v7020_v54  ;;  %v5934_v2 = vld [vmem:[#allocation3 + $0x44] sm:$0xf]  ;;  %v7499_v16 = vor.u32 %v7498_v34, %v7495_v45  ;;  %v7508_v49 = vrot.slane %v7506_v4, 6  ;;  %v6052_v8 = vrot.slane %v6050_v56, 5 }
 0x651   : > { %v7021_v20 = vsel %vm11880_vm1, %v7016_v14, %v7020_v54  ;;  %v7505_v14 = vrot.slane %v7503_v47, 5  ;;  %v6485_v54 = vshrl.u32 %v6367_v35, 16  ;;  %v6055_v34 = vrot.slane %v6053_v52, 6  ;;  %v4956_v47 = vld [vmem:[#allocation3 + $0x40] sm:$0xf] }
 0x652   : > { %3928 = vrot.lane.b32.xlu0 %v3890_v28, %s16443_s22  ;;  %v14842_v28 = vpop.permute.xlu1 %6744  ;;  %v6060_v45 = vshrl.u32 %v5934_v2, 16  ;;  %v6063_v4 = vshll.u32 %v5934_v2, 16  ;;  %v7501_v35 = vrot.slane %v7499_v16, 4  ;;  %v6495_v52 = vshrl.u32 %v6368_v27, 16 }
 0x653   : > { %v14840_v12 = vpop.permute.xlu0 %6298  ;;  %v14873_v11 = vor.u32 %v7508_v49, %v7505_v14  ;;  %v6487_v56 = vrot.slane %v6485_v54, 6  ;;  %v6490_v2 = vrot.slane %v6488_v25, 7  ;;  %v5095_v41 = vshrl.u32 %v4956_v47, 16  ;;  %v4957_v49 = vld [vmem:[#allocation3 + $0x44] sm:$0xf] }
 0x654   : > { %3594 = vrot.lane.b32.xlu1 %v3552_v0, %s16459_s17  ;;  %v7026_v0 = vrot.slane %v7025_v18, 4  ;;  %v16816_v54 = vrot.slane %v14797_v17, 6  ;;  %v6497_v25 = vrot.slane %v6495_v52, 6  ;;  %v5105_v17 = vshrl.u32 %v4957_v49, 16 }
 0x655   : > { %vm16818_vm10 = vcmask 240832  }
 0x656   : > { %7123 = vrot.lane.b32.xlu0 %v7021_v20, %s16576_s26  ;;  %v14857_v29 = vpop.permute.xlu1 %5338  ;;  %v16812_v20 = vrot.slane %v14833_v40, 5 }
 0x657   : > { %v4890_v30 = vpop.permute.xlu0 %4889 }
 0x658   : > { %4934 = vst.msk [vmem:[#allocation4 + $0x50] sm:$0xf] %vm16811_vm7, %v4890_v30  ;;  %v4698_v31 = vsel %vm11854_vm14, %v4696_v57, %v16812_v20  ;;  %6858 = vrot.lane.b32.xlu1 %v6811_v36, %s16460_s27  ;;  %v16813_v30 = vrot.slane %v14787_v24, 5  ;;  %v16814_v57 = vrot.slane %v14557_v58, 6  ;;  %v5098_v36 = vshll.u32 %v4956_v47, 16  ;;  %v16815_v24 = vld [vmem:[#allocation27_spill] sm:$0xff] }
 0x659   : > { %v6056_v58 = vor.u32 %v6055_v34, %v6052_v8  ;;  %v6500_v8 = vrot.slane %v6498_v26, 7  ;;  %v5097_v34 = vrot.slane %v5095_v41, 6  ;;  %vm16820_vm7 = vcmask 290032  }
 0x65a   : > { %4734 = vrot.lane.b32.xlu0 %v4698_v31, %s16503_s10  ;;  %v3288_v46 = vsel %vm11854_vm14, %v3286_v38, %v16813_v30  ;;  %v3726_v20 = vrot.slane %v16814_v57, 4  ;;  %v3927_v31 = vpop.permute.xlu1 %3926  ;;  %v7031_v38 = vsel %vm11880_vm1, %v7026_v0, %v16815_v24  ;;  %v6062_v30 = vrot.slane %v6060_v45, 5  ;;  %vm16821_vm13 = vmmov %vm16820_vm7 }
 0x65b   : > { %v14871_v18 = vpop.permute.xlu0 %6742  ;;  %v6065_v57 = vrot.slane %v6063_v4, 6  ;;  %v6491_v0 = vor.u32 %v6490_v2, %v6487_v56  ;;  %v5100_v45 = vrot.slane %v5098_v36, 7  ;;  %v6058_v4 = vrot.slane %v6056_v58, 4  ;;  %v5404_v56 = vld [vmem:[#allocation3 + $0x44] sm:$0xf] }
 0x65c   : > { %7125 = vrot.lane.b32.xlu1 %v7031_v38, %s16576_s26  ;;  %v3728_v27 = vsel %vm11849_vm12, %v3726_v20, %v16816_v54  ;;  %v5108_v24 = vshll.u32 %v4957_v49, 16  ;;  %v16819_v20 = vld [vmem:[#allocation26_spill] sm:$0xff]  ;;  %v14903_v36 = vor.u32 %v6500_v8, %v6497_v25  ;;  %v5532_v54 = vshrl.u32 %v5404_v56, 16 }
 0x65d   : > { %v14891_v38 = vor.u32 %v6065_v57, %v6062_v30  ;;  %v6493_v2 = vrot.slane %v6491_v0, 4  ;;  %v5101_v30 = vor.u32 %v5100_v45, %v5097_v34 }
 0x65e   : > { %3322 = vrot.lane.b32.xlu0 %v3288_v46, %s16452_s23  ;;  %v7510_v46 = vsel %vm11904_vm8, %v7501_v35, %v14873_v11  ;;  %v3591_v47 = vpop.permute.xlu1 %3590  ;;  %v7491_v35 = vrot.slane %v16819_v20, 4  ;;  %16822 = vst [vmem:[#allocation37_spill] sm:$0xff] %v14903_v36  ;;  %v5110_v49 = vrot.slane %v5108_v24, 7 }
 0x65f   : > { %v14880_v14 = vpop.permute.xlu0 %5336  ;;  %3632 = vst.msk [vmem:[#allocation4 + $0x68] sm:$0xf] %vm16817_vm2, %v3591_v47  ;;  %v6067_v57 = vsel %vm11904_vm8, %v6058_v4, %v14891_v38  ;;  %v3990_v47 = vld [vmem:[#allocation3 + $0x44] sm:$0xf]  ;;  %v6502_v45 = vsel %vm12170_vm15, %v6493_v2, %v14903_v36  ;;  %v5103_v4 = vrot.slane %v5101_v30, 4 }
 0x660   : > { %3798 = vst.msk [vmem:[#allocation4 + $0x68] sm:$0xf] %vm16818_vm10, %v14684_v44  ;;  %7600 = vrot.lane.b32.xlu1 %v7510_v46, %s16510_s8  ;;  %v7500_v52 = vsel %vm11904_vm8, %v7491_v35, %v7499_v16  ;;  %v5403_v44 = vld [vmem:[#allocation3 + $0x40] sm:$0xf]  ;;  %vm16827_vm10 = vcmask 175232  }
 0x661   : > { %3968 = vst.msk [vmem:[#allocation4 + $0x68] sm:$0xf] %vm16820_vm7, %v3927_v31  ;;  %v5107_v31 = vrot.slane %v5105_v17, 6  ;;  %v5523_v20 = vshrl.u32 %v5403_v44, 16  ;;  %v3989_v17 = vld [vmem:[#allocation3 + $0x40] sm:$0xf] }
 0x662   : > { %3762 = vrot.lane.b32.xlu0 %v3728_v27, %s16454_s2  ;;  %v14899_v26 = vpop.permute.xlu1 %6854  ;;  %v16823_v27 = vld [vmem:[#allocation33_spill] sm:$0xff]  ;;  %vm16828_vm7 = vcmask 831232   ;;  %s10849_s2 = smov 112  }
 0x663   : > { %v3925_v41 = vpop.permute.xlu0 %3924  ;;  %v6048_v46 = vrot.slane %v16823_v27, 4  ;;  %v14917_v35 = vor.u32 %v5110_v49, %v5107_v31  ;;  %v5535_v31 = vshll.u32 %v5404_v56, 16  ;;  %v4128_v49 = vshrl.u32 %v3989_v17, 16 }
 0x664   : > { %3967 = vst.msk [vmem:[#allocation4 + $0x60] sm:$0xf] %vm16821_vm13, %v3925_v41  ;;  %6141 = vrot.lane.b32.xlu1 %v6067_v57, %s16506_s29  ;;  %v14919_v41 = vrot.slane %v5532_v54, 7  ;;  %v2941_v57 = vld [vmem:[#allocation3 + $0x44] sm:$0x7]  ;;  %vm16825_vm13 = vcmask 76832  }
 0x665   : > { %v6057_v34 = vsel %vm11904_vm8, %v6048_v46, %v6056_v58  ;;  %v16824_v58 = vld [vmem:[#allocation34_spill] sm:$0xff]  ;;  %vm16826_vm2 = vmmov %vm16825_vm13 }
 0x666   : > { %7598 = vrot.lane.b32.xlu0 %v7500_v52, %s16510_s8  ;;  %v7122_v8 = vpop.permute.xlu1 %7121  ;;  %v4137_v52 = vshrl.u32 %v3990_v47, 16  ;;  %v6483_v46 = vrot.slane %v16824_v58, 4  ;;  %v5537_v56 = vor.u32 %v5535_v31, %v14919_v41  ;;  %v4140_v58 = vshll.u32 %v3990_v47, 16 }
 0x667   : > { %v7120_v16 = vpop.permute.xlu0 %7119  ;;  %v7150_v24 = vrot.slane %v7122_v8, 4  ;;  %v4131_v47 = vshll.u32 %v3989_v17, 16  ;;  %v4126_v17 = vrot.slane %v14475_v19, 4 }
 0x668   : > { %v7149_v25 = vrot.slane %v7120_v16, 4  ;;  %6581 = vrot.lane.b32.xlu1 %v6502_v45, %s16508_s12  ;;  %v3115_v45 = vshll.u32 %v2941_v57, 16 }
 0x669   : > { %v7169_v2 = vsel %vm7161_vm4, %v7150_v24, %v7122_v8  ;;  %v14943_v8 = vrot.slane %v4137_v52, 7  ;;  %v3381_v24 = vld [vmem:[#allocation3 + $0x44] sm:$0xf] }
 0x66a   : > { %6139 = vrot.lane.b32.xlu0 %v6057_v34, %s16506_s29  ;;  %v7168_v27 = vsel %vm7161_vm4, %v7149_v25, %v7120_v16  ;;  %v5525_v34 = vrot.slane %v5523_v20, 7  ;;  %7208 = vst.msk [vmem:[#allocation4 + $0x38] sm:$0xff] %vm13554_vm5, %v7169_v2  ;;  %v7597_v54 = vpop.permute.xlu1 %7596  ;;  %v6492_v16 = vsel %vm12170_vm15, %v6483_v46, %v6491_v0  ;;  %v5093_v25 = vrot.slane %v14456_v3, 4 }
 0x66b   : > { %7207 = vst.msk [vmem:[#allocation4 + $0x30] sm:$0xff] %vm13554_vm5, %v7168_v27  ;;  %v14927_v36 = vpop.permute.xlu0 %4730  ;;  %v3119_v27 = vshrl.u32 %v2941_v57, 16  ;;  %v5526_v20 = vshll.u32 %v5403_v44, 16  ;;  %v4130_v57 = vrot.slane %v4128_v49, 7  ;;  %v14953_v52 = vrot.slane %v3115_v45, 5 }
 0x66c   : > { %7372 = vst.msk [vmem:[#allocation4 + $0x34] sm:$0xf] %vm16825_vm13, %v14792_v9  ;;  %v5112_v9 = vsel %vm12170_vm15, %v5103_v4, %v14917_v35  ;;  %v5102_v3 = vsel %vm12170_vm15, %v5093_v25, %v5101_v30  ;;  %v5530_v0 = vrot.slane %v5525_v34, 4  ;;  %v3555_v2 = vshrl.u32 %v3381_v24, 16 }
 0x66d   : > { %7373 = vst.msk [vmem:[#allocation4 + $0x3c] sm:$0xf] %vm16826_vm2, %v14710_v21  ;;  %5175 = vrot.lane.b32.xlu1 %v5112_v9, %s16445_s0  ;;  %v5528_v4 = vor.u32 %v5526_v20, %v5525_v34  ;;  %v3121_v46 = vrot.slane %v3119_v27, 4  ;;  %v3558_v31 = vshll.u32 %v3381_v24, 16  ;;  %vm16829_vm13 = vcmask 880432  }
 0x66e   : > { %6579 = vrot.lane.b32.xlu0 %v6492_v16, %s16508_s12  ;;  %7644 = vst.msk [vmem:[#allocation4 + $0x3c] sm:$0xf] %vm16386_vm6, %v7597_v54  ;;  %v6138_v44 = vpop.permute.xlu1 %6137  ;;  %v5538_v30 = vsel %vm11974_vm3, %v5530_v0, %v5537_v56  ;;  %v4142_v54 = vor.u32 %v4140_v58, %v14943_v8  ;;  %v4135_v16 = vrot.slane %v4130_v57, 4  ;;  %v4133_v45 = vor.u32 %v4131_v47, %v4130_v57  ;;  %v4252_v58 = vld [vmem:[#allocation3 + $0x48] sm:$0xf] }
 0x66f   : > { %7807 = vst.msk [vmem:[#allocation4 + $0x3c] sm:$0xf] %vm16827_vm10, %v14777_v63  ;;  %v14951_v21 = vpop.permute.xlu0 %3318  ;;  %v5521_v63 = vrot.slane %v14458_v23, 4  ;;  %v3122_v27 = vor.u32 %v3121_v46, %v14953_v52  ;;  %v3557_v9 = vrot.slane %v3555_v2, 5  ;;  %v3560_v23 = vrot.slane %v3558_v31, 6  ;;  %v16837_v31 = vld [vmem:[#allocation44_spill] sm:$0xff] }
 0x670   : > { %6183 = vst.msk [vmem:[#allocation4 + $0x48] sm:$0xf] %vm16828_vm7, %v6138_v44  ;;  %vm16830_vm2 = vcmask 978832   ;;  %v4134_v24 = vsel %vm11974_vm3, %v4126_v17, %v4133_v45  ;;  %vm16831_vm7 = vcmask 585232  }
 0x671   : > { %6346 = vst.msk [vmem:[#allocation4 + $0x48] sm:$0xf] %vm16829_vm13, %v14814_v1  ;;  %5601 = vrot.lane.b32.xlu1 %v5538_v30, %s16446_s20  ;;  %v5529_v49 = vsel %vm11974_vm3, %v5521_v63, %v5528_v4  ;;  %v4143_v1 = vsel %vm11974_vm3, %v4135_v16, %v4142_v54  ;;  %v14982_v0 = vor.u32 %v3560_v23, %v3557_v9  ;;  %vm16832_vm13 = vcmask 634432   ;;  %v5663_v4 = vld [vmem:[#allocation3 + $0x48] sm:$0xf] }
 0x672   : > { %5173 = vrot.lane.b32.xlu0 %v5102_v3, %s16445_s0  ;;  %v6578_v25 = vpop.permute.xlu1 %6577  ;;  %v3123_v3 = vrot.slane %v3122_v27, 4  ;;  %v10450_v2 = vld [vmem:[#allocation4 + $0x30] ss:$8 sps:$4 sm:$0xff]   ;;  %v15014_v63 = vld [vmem:[#allocation3 + $0x48] sm:$0xf] }
 0x673   : > { %v14964_v34 = vpop.permute.xlu0 %3758  ;;  %6623 = vst.msk [vmem:[#allocation4 + $0x48] sm:$0xf] %vm6613_vm0, %v6578_v25  ;;  %v3563_v57 = vrot.slane %v14982_v0, 4  ;;  %v7233_v54 = vld [vmem:[#allocation3 + $0x48] sm:$0xf]  ;;  %v4700_v45 = vrot.slane %v15014_v63, 5 }
 0x674   : > { %6790 = vst.msk [vmem:[#allocation4 + $0x48] sm:$0xf] %vm16830_vm2, %v14842_v28  ;;  %v4361_v28 = vld [vmem:[#allocation3 + $0x44] sm:$0xf]  ;;  %vm16833_vm2 = vcmask 831232   ;;  %v7290_v27 = vrot.slane %v7233_v54, 5 }
 0x675   : > { %4192 = vrot.lane.b32.xlu1 %v4143_v1, %s16447_s30  ;;  %6900 = vst.msk [vmem:[#allocation4 + $0x48] sm:$0xf] %vm6890_vm9, %v14899_v26  ;;  %v4253_v25 = vld [vmem:[#allocation3 + $0x4c] sm:$0x3]  ;;  %v15031_v23 = vld [vmem:[#allocation3 + $0x48] sm:$0xf] }
 0x676   : > { %5599 = vrot.lane.b32.xlu0 %v5529_v49, %s16446_s20  ;;  %v5172_v20 = vpop.permute.xlu1 %5171  ;;  %v16844_v49 = vld [vmem:[#allocation45_spill] sm:$0xff]  ;;  %v4518_v1 = vshrl.u32 %v4361_v28, 16  ;;  %v16852_v54 = vrot.slane %v14577_v42, 5 }
 0x677   : > { %v7595_v56 = vpop.permute.xlu0 %7594  ;;  %5215 = vst.msk [vmem:[#allocation4 + $0x58] sm:$0xf] %vm16831_vm7, %v5172_v20  ;;  %vm16836_vm7 = vcmask 732832   ;;  %v15029_v9 = vld [vmem:[#allocation3 + $0x4c] sm:$0xf] }
 0x678   : > { %7643 = vst.msk [vmem:[#allocation4 + $0x34] sm:$0xf] %vm16386_vm6, %v7595_v56  ;;  %vm16834_vm6 = vcmask 880432   ;;  %v6370_v63 = vld [vmem:[#allocation3 + $0x4c] sm:$0xf] }
 0x679   : > { %7806 = vst.msk [vmem:[#allocation4 + $0x34] sm:$0xf] %vm16827_vm10, %v14823_v15  ;;  %3158 = vrot.lane.b32.xlu1 %v3123_v3, %s16441_s24  ;;  %vm16835_vm10 = vcmask 683632   ;;  %v4514_v15 = vshll.u32 %v4361_v28, 16  ;;  %v7292_v3 = vrot.slane %v7290_v27, 4  ;;  %v5833_v28 = vrot.slane %v15031_v23, 5 }
 0x67a   : > { %4190 = vrot.lane.b32.xlu0 %v4134_v24, %s16447_s30  ;;  %5382 = vst.msk [vmem:[#allocation4 + $0x58] sm:$0xf] %vm16832_vm13, %v14857_v29  ;;  %v5598_v26 = vpop.permute.xlu1 %5597  ;;  %vm16840_vm13 = vcmask 339232   ;;  %v3553_v24 = vrot.slane %v14831_v13, 4  ;;  %v15054_v13 = vld [vmem:[#allocation3 + $0x48] sm:$0xf] }
 0x67b   : > { %v6136_v19 = vpop.permute.xlu0 %6135  ;;  %5641 = vst.msk [vmem:[#allocation4 + $0x58] sm:$0xf] %vm16835_vm10, %v5598_v26  ;;  %vm16842_vm10 = vcmask 179200  }
 0x67c   : > { %6182 = vst.msk [vmem:[#allocation4 + $0x40] sm:$0xf] %vm16833_vm2, %v6136_v19  ;;  %vm16841_vm2 = vcmask 388432   ;;  %v16393_v19 = vrot.slane %v15029_v9, 5 }
 0x67d   : > { %6345 = vst.msk [vmem:[#allocation4 + $0x40] sm:$0xf] %vm16834_vm6, %v14840_v12  ;;  %3598 = vrot.lane.b32.xlu1 %v3563_v57, %s16459_s17  ;;  %v16838_v12 = vor.u32 %v16837_v31, %v16778_v59  ;;  %vm16839_vm6 = vcmask 978832   ;;  %v4516_v59 = vrot.slane %v4514_v15, 5  ;;  %v3562_v57 = vsel %vm11904_vm8, %v3553_v24, %v14982_v0 }
 0x67e   : > { %5713 = vrot.lane.b32.xlu0 %v5663_v4, %s16448_s15  ;;  %5751 = vst.msk [vmem:[#allocation4 + $0x58] sm:$0xf] %vm16836_vm7, %v14608_v6  ;;  %v4189_v44 = vpop.permute.xlu1 %4188  ;;  %v5664_v6 = vld [vmem:[#allocation3 + $0x4c] sm:$0xf]  ;;  %vm16843_vm7 = vcmask 585232   ;;  %v7294_v15 = vsel %vm11854_vm14, %v7292_v3, %v16393_v19 }
 0x67f   : > { %v6576_v29 = vpop.permute.xlu0 %6575  ;;  %v4512_v30 = vrot.slane %v16838_v12, 4  ;;  %4230 = vst.msk [vmem:[#allocation4 + $0x68] sm:$0xf] %vm16840_vm13, %v4189_v44  ;;  %vm16848_vm13 = vcmask 683632   ;;  %v4524_v44 = vshll.u32 %v15054_v13, 16 }
 0x680   : > { %6622 = vst.msk [vmem:[#allocation4 + $0x40] sm:$0xf] %vm6613_vm0, %v6576_v29  ;;  %v10448_v46 = vld [vmem:[#allocation4 + $0x34] ss:$8 sps:$4 sm:$0xff]   ;;  %v5835_v29 = vrot.slane %v5833_v28, 4 }
 0x681   : > { %6789 = vst.msk [vmem:[#allocation4 + $0x40] sm:$0xf] %vm16839_vm6, %v14871_v18  ;;  %5715 = vrot.lane.b32.xlu1 %v5664_v6, %s16448_s15  ;;  %9390 = vmatprep.mubr.msk.bf16.mxu0 %vm16842_vm10, %v10448_v46  ;;  %vm16846_vm6 = vcmask 634432   ;;  %vm16850_vm10 = vcmask 339232   ;;  %v7667_v46 = vld [vmem:[#allocation3 + $0x48] sm:$0xf] }
 0x682   : > { %4304 = vrot.lane.b32.xlu0 %v4252_v58, %s16449_s16  ;;  %6899 = vst.msk [vmem:[#allocation4 + $0x40] sm:$0xf] %vm6890_vm9, %v14775_v53  ;;  %8090 = vmatmul.mubr.bf16.gmra.mrb[208].mxu0 %v10450_v2  ;;  %v15017_v47 = vpop.permute.xlu1 %5711  ;;  %v4517_v53 = vsel %vm11880_vm1, %v4512_v30, %v4516_v59  ;;  %v15081_v30 = vrot.slane %v4524_v44, 5  ;;  %v7724_v6 = vrot.slane %v7667_v46, 6 }
 0x683   : > { %4340 = vst.msk [vmem:[#allocation4 + $0x68] sm:$0xf] %vm16841_vm2, %v14629_v5  ;;  %v5170_v18 = vpop.permute.xlu0 %5169  ;;  %v16845_v5 = vor.u32 %v16844_v49, %v16780_v22  ;;  %v16847_v22 = vrot.slane %v14833_v40, 5  ;;  %vm16849_vm2 = vcmask 732832  }
 0x684   : > { %5214 = vst.msk [vmem:[#allocation4 + $0x50] sm:$0xf] %vm16843_vm7, %v5170_v18  ;;  %vm16851_vm7 = vcmask 388432   ;;  %v7289_v18 = vrot.slane %v16852_v54, 4  ;;  %v15122_v54 = vld [vmem:[#allocation3 + $0x4c] sm:$0xf] }
 0x685   : > { %v3113_v16 = vrot.slane %v16845_v5, 4  ;;  %5381 = vst.msk [vmem:[#allocation4 + $0x50] sm:$0xf] %vm16846_vm6, %v14880_v14  ;;  %4306 = vrot.lane.b32.xlu1 %v4253_v25, %s16449_s16  ;;  %v4699_v56 = vrot.slane %v16847_v22, 4  ;;  %vm16854_vm6 = vcmask 437632   ;;  %s17027_s16 = sld [smem:[#allocation53_spill]] }
 0x686   : > { %4571 = vrot.lane.b32.xlu0 %v4517_v53, %s16440_s21  ;;  %v15036_v14 = vpop.permute.xlu1 %4302  ;;  %v15086_v53 = vld [vmem:[#allocation3 + $0x4c] sm:$0xf]  ;;  %v7291_v25 = vsel %vm11854_vm14, %v7289_v18, %v7290_v27 }
 0x687   : > { %v5596_v17 = vpop.permute.xlu0 %5595  ;;  %v3118_v20 = vsel %vm11880_vm1, %v3113_v16, %v14953_v52  ;;  %v4701_v40 = vsel %vm11854_vm14, %v4699_v56, %v4700_v45  ;;  %v15052_v52 = vld [vmem:[#allocation3 + $0x4c] sm:$0xf]  ;;  %v16391_v42 = vrot.slane %v15086_v53, 6 }
 0x688   : > { %5640 = vst.msk [vmem:[#allocation4 + $0x50] sm:$0xf] %vm16848_vm13, %v5596_v17  ;;  %v16392_v58 = vrot.slane %v15052_v52, 5  ;;  %v15099_v17 = vld [vmem:[#allocation3 + $0x4c] sm:$0xf]  ;;  %vm16855_vm13 = vcmask 486832  }
 0x689   : > { %5750 = vst.msk [vmem:[#allocation4 + $0x50] sm:$0xf] %vm16849_vm2, %v14665_v51  ;;  %4736 = vrot.lane.b32.xlu1 %v4701_v40, %s16503_s10  ;;  %v4520_v51 = vrot.slane %v4518_v1, 4  ;;  %v7726_v1 = vrot.slane %v7724_v6, 4  ;;  %v4795_v40 = vld [vmem:[#allocation3 + $0x48] sm:$0xf] }
 0x68a   : > { %3156 = vrot.lane.b32.xlu0 %v3118_v20, %s16441_s24  ;;  %v15057_v4 = vpop.permute.xlu1 %4732  ;;  %v5837_v12 = vsel %vm11854_vm14, %v5835_v29, %v16392_v58  ;;  %v16853_v20 = vrot.slane %v14605_v33, 5  ;;  %v16390_v29 = vrot.slane %v15099_v17, 6  ;;  %vm16857_vm2 = vcmask 93232  }
 0x68b   : > { %v4187_v26 = vpop.permute.xlu0 %4186  ;;  %v4521_v0 = vor.u32 %v4520_v51, %v4516_v59  ;;  %v6206_v59 = vld [vmem:[#allocation3 + $0x48] sm:$0xf]  ;;  %v7728_v44 = vsel %vm11849_vm12, %v7726_v1, %v16391_v42 }
 0x68c   : > { %4229 = vst.msk [vmem:[#allocation4 + $0x60] sm:$0xf] %vm16850_vm10, %v4187_v26  ;;  %v6267_v22 = vrot.slane %v6206_v59, 6  ;;  %v5832_v24 = vrot.slane %v16853_v20, 4  ;;  %vm16858_vm10 = vcmask 142432  }
 0x68d   : > { %4339 = vst.msk [vmem:[#allocation4 + $0x60] sm:$0xf] %vm16851_vm7, %v14682_v48  ;;  %7333 = vrot.lane.b32.xlu1 %v7294_v15, %s16463_s14  ;;  %v6812_v48 = vld [vmem:[#allocation3 + $0x4c] sm:$0xf]  ;;  %v4522_v5 = vrot.slane %v4521_v0, 4  ;;  %vm16859_vm7 = vcmask 782032  }
 0x68e   : > { %3596 = vrot.lane.b32.xlu0 %v3562_v57, %s16459_s17  ;;  %v15074_v31 = vpop.permute.xlu1 %3320  ;;  %v5834_v57 = vsel %vm11854_vm14, %v5832_v24, %v5833_v28  ;;  %v6269_v0 = vrot.slane %v6267_v22, 4  ;;  %v16856_v28 = vrot.slane %v14645_v10, 6 }
 0x68f   : > { %v15072_v2 = vpop.permute.xlu0 %5709  ;;  %v4527_v23 = vsel %vm11880_vm1, %v4522_v5, %v15081_v30 }
 0x690   : > { %v6271_v10 = vsel %vm11849_vm12, %v6269_v0, %v16390_v29  ;;  %v6369_v29 = vld [vmem:[#allocation3 + $0x48] sm:$0xf] }
 0x691   : > { %5874 = vrot.lane.b32.xlu1 %v5837_v12, %s16457_s3  ;;  %v7723_v12 = vrot.slane %v16856_v28, 4  ;;  %v6508_v58 = vshll.u32 %v6369_v29, 16 }
 0x692   : > { %6860 = vrot.lane.b32.xlu0 %v6812_v48, %s16460_s27  ;;  %v15090_v16 = vpop.permute.xlu1 %3760  ;;  %v4860_v48 = vrot.slane %v4795_v40, 6 }
 0x693   : > { %v15088_v49 = vpop.permute.xlu0 %4300  ;;  %v8075_v56 = vpop.f32.mrb[200].mxu0  ;;  %v7725_v59 = vsel %vm11849_vm12, %v7723_v12, %v7724_v6  ;;  %v16860_v6 = vrot.slane %v14678_v55, 6 }
 0x694   : > { %v8076_v3 = vadd.f32 %v14693_v60, %v8075_v56  ;;  %v8077_v26 = vpop.f32.mrb[201].mxu0  ;;  %v4862_v5 = vrot.slane %v4860_v48, 4  ;;  %v15139_v56 = vld [vmem:[#allocation3 + $0x4c] sm:$0xf] }
 0x695   : > { %4573 = vrot.lane.b32.xlu1 %v4527_v23, %s16440_s21  ;;  %v8078_v15 = vpop.f32.mrb[202].mxu0  ;;  %v6266_v1 = vrot.slane %v16860_v6, 4 }
 0x696   : > { %7331 = vrot.lane.b32.xlu0 %v7291_v25, %s16463_s14  ;;  %v15106_v51 = vpop.permute.xlu1 %7329  ;;  %v8079_v33 = vadd.f32 %v14693_v60, %v8078_v15  ;;  %v8080_v46 = vpop.f32.mrb[203].mxu0  ;;  %10715 = vtanh.f32 %v8076_v3  ;;  %v16389_v25 = vrot.slane %v15122_v54, 6  ;;  %v16388_v3 = vrot.slane %v15139_v56, 7  ;;  %v3821_v15 = vld [vmem:[#allocation3 + $0x48] sm:$0xf] }
 0x697   : > { %v4568_v27 = vpop.permute.xlu0 %4567  ;;  %v6268_v40 = vsel %vm11849_vm12, %v6266_v1, %v6267_v22 }
 0x698   : > { %4610 = vst.msk [vmem:[#allocation4 + $0x60] sm:$0xf] %vm16854_vm6, %v4568_v27  ;;  %10717 = vtanh.f32 %v8079_v33  ;;  %vm16861_vm6 = vcmask 191632   ;;  %v4864_v55 = vsel %vm11849_vm12, %v4862_v5, %v16389_v25 }
 0x699   : > { %4773 = vst.msk [vmem:[#allocation4 + $0x60] sm:$0xf] %vm16855_vm13, %v14927_v36  ;;  %7767 = vrot.lane.b32.xlu1 %v7728_v44, %s16470_s13  ;;  %v6646_v36 = vld [vmem:[#allocation3 + $0x48] sm:$0xf]  ;;  %vm16862_vm13 = vcmask 240832  }
 0x69a   : > { %5872 = vrot.lane.b32.xlu0 %v5834_v57, %s16457_s3  ;;  %v5871_v60 = vpop.permute.xlu1 %5870  ;;  %v6709_v23 = vrot.slane %v6646_v36, 7  ;;  %v15158_v57 = vld [vmem:[#allocation3 + $0x4c] sm:$0xf] }
 0x69b   : > { %v3153_v18 = vpop.permute.xlu0 %3152  ;;  %5914 = vst.msk [vmem:[#allocation4 + $0x58] sm:$0xf] %vm16859_vm7, %v5871_v60  ;;  %16866 = vst [vmem:[#allocation47_spill] sm:$0xff] %v15158_v57  ;;  %v16387_v36 = vrot.slane %v15158_v57, 7  ;;  %v3895_v60 = vrot.slane %v3821_v15, 7  ;;  %vm16870_vm7 = vcmask 93232  }
 0x69c   : > { %3193 = vst.msk [vmem:[#allocation4 + $0x70] sm:$0xf] %vm16857_vm2, %v3153_v18  ;;  %vm16863_vm2 = vcmask 437632   ;;  %v6711_v27 = vrot.slane %v6709_v23, 4  ;;  %v3822_v18 = vld [vmem:[#allocation3 + $0x4c] sm:$0x1] }
 0x69d   : > { %3359 = vst.msk [vmem:[#allocation4 + $0x70] sm:$0xf] %vm16858_vm10, %v14951_v21  ;;  %6308 = vrot.lane.b32.xlu1 %v6271_v10, %s16467_s19  ;;  %v5238_v21 = vld [vmem:[#allocation3 + $0x48] sm:$0xf]  ;;  %vm16864_vm10 = vcmask 486832  }
 0x69e   : > { %7765 = vrot.lane.b32.xlu0 %v7725_v59, %s16470_s13  ;;  %v4570_v24 = vpop.permute.xlu1 %4569  ;;  %v5305_v26 = vrot.slane %v5238_v21, 7  ;;  %v16868_v59 = vld [vmem:[#allocation24_spill] sm:$0xff] }
 0x69f   : > { %v3593_v20 = vpop.permute.xlu0 %3592  ;;  %4611 = vst.msk [vmem:[#allocation4 + $0x68] sm:$0xf] %vm16863_vm2, %v4570_v24  ;;  %v16869_v10 = vrot.slane %v16868_v59, 7  ;;  %v3898_v24 = vrot.slane %v3822_v18, 7  ;;  %vm16878_vm2 = vcmask 536032  }
 0x6a0   : > { %3633 = vst.msk [vmem:[#allocation4 + $0x70] sm:$0xf] %vm16861_vm6, %v3593_v20  ;;  %v10716_v44 = vpop.eup %10715  ;;  %v5307_v12 = vrot.slane %v5305_v26, 4  ;;  %vm16872_vm6 = vcmask 142432  }
 0x6a1   : > { %3799 = vst.msk [vmem:[#allocation4 + $0x70] sm:$0xf] %vm16862_vm13, %v14964_v34  ;;  %4899 = vrot.lane.b32.xlu1 %v4864_v55, %s16472_s25  ;;  %v16865_v34 = vrot.slane %v14700_v37, 6  ;;  %v6713_v37 = vsel %vm11929_vm11, %v6711_v27, %v16388_v3  ;;  %v6708_v5 = vrot.slane %v16869_v10, 4  ;;  %v3897_v27 = vrot.slane %v3895_v60, 4 }
 0x6a2   : > { %6306 = vrot.lane.b32.xlu0 %v6268_v40, %s16467_s19  ;;  %4774 = vst.msk [vmem:[#allocation4 + $0x68] sm:$0xf] %vm16864_vm10, %v15057_v4  ;;  %v15162_v46 = vpop.permute.xlu1 %7763  ;;  %v10718_v28 = vpop.eup %10717  ;;  %v7396_v40 = vld [vmem:[#allocation3 + $0x48] sm:$0xf]  ;;  %v5309_v55 = vsel %vm11929_vm11, %v5307_v12, %v16387_v36  ;;  %v7397_v10 = vld [vmem:[#allocation3 + $0x4c] sm:$0xf]  ;;  %vm16884_vm10 = vmmov %vm16878_vm2 }
 0x6a3   : > { %v4859_v22 = vrot.slane %v16865_v34, 4  ;;  %v15160_v33 = vpop.permute.xlu0 %6856  ;;  %v8157_v6 = vpack.c.bf16 %v10718_v28, %v10716_v44  ;;  %v6710_v20 = vsel %vm11929_vm11, %v6708_v5, %v6709_v23  ;;  %v4634_v34 = vld [vmem:[#allocation3 + $0x4c] sm:$0x7]  ;;  %v16871_v44 = vmov 0  }
 0x6a4   : > { %v16873_v23 = vld [vmem:[#allocation25_spill] sm:$0xff]  ;;  %v7513_v18 = vshrl.u32 %v7396_v40, 16  ;;  %v7516_v59 = vshll.u32 %v7396_v40, 16  ;;  %vm16875_vm13 = vcmask 782032   ;;  %v16876_v40 = vld [vmem:[#allocation46_spill] sm:$0xff] }
 0x6a5   : > { %v4861_v0 = vsel %vm11849_vm12, %v4859_v22, %v4860_v48  ;;  %6752 = vrot.lane.b32.xlu1 %v6713_v37, %s16479_s28  ;;  %v6921_v48 = vld [vmem:[#allocation3 + $0x48] sm:$0xf]  ;;  %8201 = vmatpush1.bf16.msra.mxu1 %v8157_v6  ;;  %v4703_v6 = vrot.slane %v4634_v34, 5  ;;  %v15204_v3 = vld [vmem:[#allocation3 + $0x4c] sm:$0xf] }
 0x6a6   : > { %4897 = vrot.lane.b32.xlu0 %v4861_v0, %s16472_s25  ;;  %v3155_v21 = vpop.permute.xlu1 %3154  ;;  %v7038_v22 = vshll.u32 %v6921_v48, 16  ;;  %v7042_v15 = vshrl.u32 %v6921_v48, 16  ;;  %8202 = vmatprep.subr.bf16.mxu1 %v16871_v44  ;;  %v16874_v0 = vrot.slane %v16873_v23, 7  ;;  %v7518_v34 = vrot.slane %v7516_v59, 6 }
 0x6a7   : > { %v15175_v1 = vpop.permute.xlu0 %7327  ;;  %3194 = vst.msk [vmem:[#allocation4 + $0x78] sm:$0xf] %vm16870_vm7, %v3155_v21  ;;  %v6518_v44 = vshll.u32 %v6370_v63, 16  ;;  %vm16887_vm7 = vcmask 290032  }
 0x6a8   : > { %3360 = vst.msk [vmem:[#allocation4 + $0x78] sm:$0xf] %vm16872_vm6, %v15074_v31  ;;  %v5304_v28 = vrot.slane %v16874_v0, 4  ;;  %v3899_v31 = vsel %vm11929_vm11, %v3897_v27, %v3898_v24  ;;  %v7040_v48 = vrot.slane %v7038_v22, 5  ;;  %v7044_v21 = vrot.slane %v7042_v15, 4 }
 0x6a9   : > { %5346 = vrot.lane.b32.xlu1 %v5309_v55, %s16442_s1  ;;  %v16877_v55 = vrot.slane %v16876_v40, 7  ;;  %v7523_v0 = vshrl.u32 %v7397_v10, 16  ;;  %v4705_v27 = vrot.slane %v4703_v6, 4  ;;  %vm16888_vm6 = vcmask 191632  }
 0x6aa   : > { %6750 = vrot.lane.b32.xlu0 %v6710_v20, %s16479_s28  ;;  %v15192_v12 = vpop.permute.xlu1 %6304  ;;  %v5306_v5 = vsel %vm11929_vm11, %v5304_v28, %v5305_v26  ;;  %v5935_v20 = vld [vmem:[#allocation3 + $0x48] sm:$0xf]  ;;  %v7515_v26 = vrot.slane %v7513_v18, 5  ;;  %v7045_v25 = vor.u32 %v7044_v21, %v7040_v48  ;;  %v4702_v18 = vrot.slane %v4700_v45, 4  ;;  %v6813_v45 = vld [vmem:[#allocation3 + $0x50] sm:$0xf] }
 0x6ab   : > { %v5869_v37 = vpop.permute.xlu0 %5868  ;;  %v3894_v23 = vrot.slane %v16877_v55, 4  ;;  %v6070_v22 = vshrl.u32 %v5935_v20, 16  ;;  %v6073_v15 = vshll.u32 %v5935_v20, 16  ;;  %v7525_v59 = vrot.slane %v7523_v0, 5 }
 0x6ac   : > { %5913 = vst.msk [vmem:[#allocation4 + $0x50] sm:$0xf] %vm16875_vm13, %v5869_v37  ;;  %v7526_v37 = vshll.u32 %v7397_v10, 16  ;;  %v16880_v10 = vld [vmem:[#allocation27_spill] sm:$0xff]  ;;  %v7046_v0 = vrot.slane %v7045_v25, 4  ;;  %vm16889_vm13 = vcmask 240832  }
 0x6ad   : > { %3934 = vrot.lane.b32.xlu1 %v3899_v31, %s16443_s22  ;;  %v3896_v24 = vsel %vm11929_vm11, %v3894_v23, %v3895_v60  ;;  %v16879_v31 = vld [vmem:[#allocation29_spill] sm:$0xff]  ;;  %v7048_v60 = vshll.u32 %v15204_v3, 16  ;;  %v6072_v21 = vrot.slane %v6070_v22, 5 }
 0x6ae   : > { %5344 = vrot.lane.b32.xlu0 %v5306_v5, %s16442_s1  ;;  %v4896_v28 = vpop.permute.xlu1 %4895  ;;  %v5936_v5 = vld [vmem:[#allocation3 + $0x4c] sm:$0xf]  ;;  %v16881_v40 = vor.u32 %v16879_v31, %v16880_v10  ;;  %v7528_v20 = vrot.slane %v7526_v37, 6  ;;  %v4704_v37 = vsel %vm11854_vm14, %v4702_v18, %v4703_v6  ;;  %v7511_v18 = vrot.slane %v14873_v11, 4 }
 0x6af   : > { %v15202_v36 = vpop.permute.xlu0 %7761  ;;  %4937 = vst.msk [vmem:[#allocation4 + $0x68] sm:$0xf] %vm16878_vm2, %v4896_v28  ;;  %v6080_v42 = vshrl.u32 %v5936_v5, 16  ;;  %v6083_v31 = vshll.u32 %v5936_v5, 16  ;;  %vm16890_vm2 = vmmov %vm16887_vm7 }
 0x6b0   : > { %v7036_v55 = vrot.slane %v16881_v40, 4  ;;  %v6075_v40 = vrot.slane %v6073_v15, 6 }
 0x6b1   : > { %4740 = vrot.lane.b32.xlu1 %v4705_v27, %s16503_s10  ;;  %v6505_v27 = vshrl.u32 %v6369_v29, 16  ;;  %v6082_v15 = vrot.slane %v6080_v42, 5  ;;  %v6515_v29 = vshrl.u32 %v6370_v63, 16 }
 0x6b2   : > { %3932 = vrot.lane.b32.xlu0 %v3896_v24, %s16443_s22  ;;  %v7041_v28 = vsel %vm11880_vm1, %v7036_v55, %v7040_v48  ;;  %v7519_v24 = vor.u32 %v7518_v34, %v7515_v26  ;;  %v15221_v10 = vpop.permute.xlu1 %6748  ;;  %v15227_v48 = vrot.slane %v7048_v60, 5  ;;  %v15229_v26 = vor.u32 %v7528_v20, %v7525_v59  ;;  %v4958_v34 = vld [vmem:[#allocation3 + $0x48] sm:$0xf]  ;;  %v4959_v59 = vld [vmem:[#allocation3 + $0x4c] sm:$0xf] }
 0x6b3   : > { %v15217_v23 = vpop.permute.xlu0 %6302  ;;  %v6085_v55 = vrot.slane %v6083_v31, 6  ;;  %v6076_v25 = vor.u32 %v6075_v40, %v6072_v21  ;;  %v6507_v19 = vrot.slane %v6505_v27, 6  ;;  %v5115_v60 = vshrl.u32 %v4958_v34, 16 }
 0x6b4   : > { %16882 = vst [vmem:[#allocation38_spill] sm:$0xff] %v15227_v48  ;;  %16883 = vst [vmem:[#allocation36_spill] sm:$0xff] %v15229_v26  ;;  %v7521_v22 = vrot.slane %v7519_v24, 4  ;;  %v7051_v6 = vsel %vm11880_vm1, %v7046_v0, %v15227_v48  ;;  %v5118_v42 = vshll.u32 %v4958_v34, 16  ;;  %v7520_v31 = vsel %vm11904_vm8, %v7511_v18, %v7519_v24  ;;  %v3992_v48 = vld [vmem:[#allocation3 + $0x4c] sm:$0x3] }
 0x6b5   : > { %6862 = vrot.lane.b32.xlu1 %v6813_v45, %s16460_s27  ;;  %v6510_v45 = vrot.slane %v6508_v58, 7  ;;  %v15247_v21 = vor.u32 %v6085_v55, %v6082_v15  ;;  %v6078_v27 = vrot.slane %v6076_v25, 4  ;;  %v6517_v63 = vrot.slane %v6515_v29, 6 }
 0x6b6   : > { %7127 = vrot.lane.b32.xlu0 %v7041_v28, %s16576_s26  ;;  %v15232_v28 = vpop.permute.xlu1 %5342  ;;  %v7530_v58 = vsel %vm11904_vm8, %v7521_v22, %v15229_v26  ;;  %v6520_v0 = vrot.slane %v6518_v44, 7  ;;  %v5117_v34 = vrot.slane %v5115_v60, 6  ;;  %v5128_v57 = vshll.u32 %v4959_v59, 16  ;;  %v5406_v22 = vld [vmem:[#allocation3 + $0x4c] sm:$0xf] }
 0x6b7   : > { %v6511_v11 = vor.u32 %v6510_v45, %v6507_v19  ;;  %v6068_v24 = vrot.slane %v14891_v38, 4  ;;  %v6087_v44 = vsel %vm11904_vm8, %v6078_v27, %v15247_v21 }
 0x6b8   : > { %v4894_v5 = vpop.permute.xlu0 %4893  ;;  %v15263_v45 = vor.u32 %v6520_v0, %v6517_v63 }
 0x6b9   : > { %4936 = vst.msk [vmem:[#allocation4 + $0x60] sm:$0xf] %vm16884_vm10, %v4894_v5  ;;  %7129 = vrot.lane.b32.xlu1 %v7051_v6, %s16576_s26  ;;  %v5120_v5 = vrot.slane %v5118_v42, 7  ;;  %v5125_v6 = vshrl.u32 %v4959_v59, 16  ;;  %v6077_v19 = vsel %vm11904_vm8, %v6068_v24, %v6076_v25  ;;  %v6513_v29 = vrot.slane %v6511_v11, 4 }
 0x6ba   : > { %4738 = vrot.lane.b32.xlu0 %v4704_v37, %s16503_s10  ;;  %v15249_v40 = vpop.permute.xlu1 %3930  ;;  %v5405_v37 = vld [vmem:[#allocation3 + $0x48] sm:$0xf]  ;;  %16885 = vst [vmem:[#allocation35_spill] sm:$0xff] %v15263_v45  ;;  %v5130_v42 = vrot.slane %v5128_v57, 7  ;;  %v5550_v59 = vshrl.u32 %v5406_v22, 16  ;;  %v5113_v24 = vrot.slane %v14917_v35, 4 }
 0x6bb   : > { %v5541_v55 = vshrl.u32 %v5405_v37, 16  ;;  %v5121_v60 = vor.u32 %v5120_v5, %v5117_v34  ;;  %v5127_v38 = vrot.slane %v5125_v6, 6  ;;  %v6522_v57 = vsel %vm12170_vm15, %v6513_v29, %v15263_v45 }
 0x6bc   : > { %v15240_v20 = vpop.permute.xlu0 %6746  ;;  %v5544_v0 = vshll.u32 %v5405_v37, 16  ;;  %v15280_v35 = vrot.slane %v5550_v59, 7  ;;  %v5553_v37 = vshll.u32 %v5406_v22, 16  ;;  %vm16891_vm10 = vcmask 76832  }
 0x6bd   : > { %7604 = vrot.lane.b32.xlu1 %v7530_v58, %s16510_s8  ;;  %v16886_v58 = vld [vmem:[#allocation37_spill] sm:$0xff]  ;;  %v5543_v62 = vrot.slane %v5541_v55, 7  ;;  %v5123_v5 = vrot.slane %v5121_v60, 4  ;;  %v15278_v6 = vor.u32 %v5130_v42, %v5127_v38  ;;  %v4155_v55 = vshrl.u32 %v3992_v48, 16 }
 0x6be   : > { %7602 = vrot.lane.b32.xlu0 %v7520_v31, %s16510_s8  ;;  %v15256_v18 = vpop.permute.xlu1 %3324  ;;  %v3991_v31 = vld [vmem:[#allocation3 + $0x48] sm:$0xf]  ;;  %v6503_v26 = vrot.slane %v16886_v58, 4  ;;  %v5555_v59 = vor.u32 %v5553_v37, %v15280_v35 }
 0x6bf   : > { %v4146_v34 = vshrl.u32 %v3991_v31, 16  ;;  %v5546_v29 = vor.u32 %v5544_v0, %v5543_v62  ;;  %v5132_v42 = vsel %vm12170_vm15, %v5123_v5, %v15278_v6  ;;  %v5548_v0 = vrot.slane %v5543_v62, 4 }
 0x6c0   : > { %v15254_v15 = vpop.permute.xlu0 %5340  ;;  %v6512_v63 = vsel %vm12170_vm15, %v6503_v26, %v6511_v11  ;;  %v5122_v11 = vsel %vm12170_vm15, %v5113_v24, %v5121_v60  ;;  %v4157_v60 = vrot.slane %v4155_v55, 7  ;;  %v4149_v24 = vshll.u32 %v3991_v31, 16 }
 0x6c1   : > { %6145 = vrot.lane.b32.xlu1 %v6087_v44, %s16506_s29  ;;  %v4528_v44 = vshrl.u32 %v15054_v13, 16  ;;  %v5539_v13 = vrot.slane %v14919_v41, 4  ;;  %v4144_v62 = vrot.slane %v14943_v8, 4 }
 0x6c2   : > { %6143 = vrot.lane.b32.xlu0 %v6077_v19, %s16506_s29  ;;  %v15270_v27 = vpop.permute.xlu1 %3764  ;;  %v4363_v19 = vld [vmem:[#allocation3 + $0x4c] sm:$0x7] }
 0x6c3   : > { %v4534_v45 = vshll.u32 %v4363_v19, 16  ;;  %v4538_v38 = vshrl.u32 %v4363_v19, 16  ;;  %v5547_v41 = vsel %vm11974_vm3, %v5539_v13, %v5546_v29  ;;  %v4530_v19 = vrot.slane %v4528_v44, 4 }
 0x6c4   : > { %v3929_v25 = vpop.permute.xlu0 %3928 }
 0x6c5   : > { %3969 = vst.msk [vmem:[#allocation4 + $0x70] sm:$0xf] %vm16887_vm7, %v3929_v25  ;;  %6585 = vrot.lane.b32.xlu1 %v6522_v57, %s16508_s12  ;;  %v4536_v31 = vrot.slane %v4534_v45, 5  ;;  %v4540_v55 = vrot.slane %v4538_v38, 4  ;;  %v4531_v44 = vor.u32 %v4530_v19, %v15081_v30  ;;  %v5665_v38 = vld [vmem:[#allocation3 + $0x50] sm:$0xf]  ;;  %vm16892_vm7 = vmmov %vm16891_vm10 }
 0x6c6   : > { %6583 = vrot.lane.b32.xlu0 %v6512_v63, %s16508_s12  ;;  %v3595_v25 = vpop.permute.xlu1 %3594  ;;  %v4148_v63 = vrot.slane %v4146_v34, 7  ;;  %v4158_v34 = vshll.u32 %v3992_v48, 16  ;;  %v15331_v30 = vld [vmem:[#allocation3 + $0x50] sm:$0xf] }
 0x6c7   : > { %3634 = vst.msk [vmem:[#allocation4 + $0x78] sm:$0xf] %vm16888_vm6, %v3595_v25  ;;  %v4541_v45 = vor.u32 %v4540_v55, %v4536_v31  ;;  %v4532_v13 = vrot.slane %v4531_v44, 4  ;;  %vm16893_vm6 = vcmask 126032   ;;  %v6814_v55 = vld [vmem:[#allocation3 + $0x54] sm:$0xf] }
 0x6c8   : > { %v7124_v26 = vpop.permute.xlu0 %7123  ;;  %3800 = vst.msk [vmem:[#allocation4 + $0x78] sm:$0xf] %vm16889_vm13, %v15090_v16  ;;  %v4151_v5 = vor.u32 %v4149_v24, %v4148_v63  ;;  %vm16894_vm13 = vcmask 175232  }
 0x6c9   : > { %v7151_v58 = vrot.slane %v7124_v26, 4  ;;  %5179 = vrot.lane.b32.xlu1 %v5132_v42, %s16445_s0  ;;  %3970 = vst.msk [vmem:[#allocation4 + $0x78] sm:$0xf] %vm16890_vm2, %v15249_v40  ;;  %v5556_v40 = vsel %vm11974_vm3, %v5548_v0, %v5555_v59  ;;  %v4542_v42 = vrot.slane %v4541_v45, 4  ;;  %v7235_v59 = vld [vmem:[#allocation3 + $0x50] sm:$0xf]  ;;  %vm16895_vm2 = vmmov %vm16893_vm6  ;;  %v4537_v24 = vsel %vm11880_vm1, %v4532_v13, %v4536_v31 }
 0x6ca   : > { %5177 = vrot.lane.b32.xlu0 %v5122_v11, %s16445_s0  ;;  %v15307_v16 = vpop.permute.xlu1 %6858  ;;  %v4153_v11 = vrot.slane %v4148_v63, 4  ;;  %v4152_v29 = vsel %vm11974_vm3, %v4144_v62, %v4151_v5  ;;  %v7296_v0 = vrot.slane %v7235_v59, 5 }
 0x6cb   : > { %v7170_v22 = vsel %vm7161_vm4, %v7151_v58, %v7124_v26  ;;  %v4160_v26 = vor.u32 %v4158_v34, %v4157_v60  ;;  %v5774_v34 = vld [vmem:[#allocation3 + $0x50] sm:$0xf] }
 0x6cc   : > { %7209 = vst.msk [vmem:[#allocation4 + $0x40] sm:$0xff] %vm13554_vm5, %v7170_v22  ;;  %v15301_v57 = vpop.permute.xlu0 %4734 }
 0x6cd   : > { %7374 = vst.msk [vmem:[#allocation4 + $0x44] sm:$0xf] %vm16891_vm10, %v15175_v1  ;;  %5605 = vrot.lane.b32.xlu1 %v5556_v40, %s16446_s20  ;;  %v4161_v58 = vsel %vm11974_vm3, %v4153_v11, %v4160_v26  ;;  %vm16896_vm10 = vmmov %vm16894_vm13  ;;  %v5839_v40 = vrot.slane %v5774_v34, 5  ;;  %v16902_v26 = vrot.slane %v15029_v9, 5  ;;  %v15363_v11 = vld [vmem:[#allocation3 + $0x54] sm:$0xf] }
 0x6ce   : > { %5603 = vrot.lane.b32.xlu0 %v5547_v41, %s16446_s20  ;;  %v7126_v1 = vpop.permute.xlu1 %7125  ;;  %v5666_v41 = vld [vmem:[#allocation3 + $0x54] sm:$0x3]  ;;  %v6923_v34 = vld [vmem:[#allocation3 + $0x50] sm:$0xf] }
 0x6cf   : > { %v7152_v37 = vrot.slane %v7126_v1, 4  ;;  %v7295_v62 = vrot.slane %v16902_v26, 4 }
 0x6d0   : > { %v15314_v48 = vpop.permute.xlu0 %3322 }
 0x6d1   : > { %4196 = vrot.lane.b32.xlu1 %v4161_v58, %s16447_s30  ;;  %v7171_v8 = vsel %vm7161_vm4, %v7152_v37, %v7126_v1  ;;  %v7669_v1 = vld [vmem:[#allocation3 + $0x50] sm:$0xf]  ;;  %v7297_v45 = vsel %vm11854_vm14, %v7295_v62, %v7296_v0  ;;  %v5842_v37 = vrot.slane %v15363_v11, 5 }
 0x6d2   : > { %4194 = vrot.lane.b32.xlu0 %v4152_v29, %s16447_s30  ;;  %7210 = vst.msk [vmem:[#allocation4 + $0x48] sm:$0xff] %vm13554_vm5, %v7171_v8  ;;  %v7601_v63 = vpop.permute.xlu1 %7600  ;;  %v7730_v58 = vrot.slane %v7669_v1, 6  ;;  %v5240_v62 = vld [vmem:[#allocation3 + $0x50] sm:$0xf]  ;;  %v7058_v1 = vshll.u32 %v6923_v34, 16 }
 0x6d3   : > { %7375 = vst.msk [vmem:[#allocation4 + $0x4c] sm:$0xf] %vm16892_vm7, %v15106_v51  ;;  %v4866_v51 = vrot.slane %v15331_v30, 6  ;;  %vm16897_vm7 = vcmask 831232   ;;  %v16922_v30 = vld [vmem:[#allocation38_spill] sm:$0xff] }
 0x6d4   : > { %v15324_v25 = vpop.permute.xlu0 %3762  ;;  %7646 = vst.msk [vmem:[#allocation4 + $0x4c] sm:$0xf] %vm16893_vm6, %v7601_v63  ;;  %vm16898_vm6 = vcmask 880432   ;;  %v15387_v63 = vld [vmem:[#allocation3 + $0x54] sm:$0xf] }
 0x6d5   : > { %4577 = vrot.lane.b32.xlu1 %v4542_v42, %s16440_s21  ;;  %7809 = vst.msk [vmem:[#allocation4 + $0x4c] sm:$0xf] %vm16894_vm13, %v15162_v46  ;;  %v15348_v46 = vld [vmem:[#allocation3 + $0x54] sm:$0xf]  ;;  %vm16899_vm13 = vmmov %vm16897_vm7  ;;  %v7733_v59 = vrot.slane %v15387_v63, 6 }
 0x6d6   : > { %5717 = vrot.lane.b32.xlu0 %v5665_v38, %s16448_s15  ;;  %v6142_v22 = vpop.permute.xlu1 %6141  ;;  %v7299_v19 = vrot.slane %v15348_v46, 5  ;;  %v6208_v38 = vld [vmem:[#allocation3 + $0x50] sm:$0xf]  ;;  %v5939_v46 = vld [vmem:[#allocation3 + $0x58] sm:$0xf] }
 0x6d7   : > { %6185 = vst.msk [vmem:[#allocation4 + $0x58] sm:$0xf] %vm16897_vm7, %v6142_v22  ;;  %v6651_v63 = vld [vmem:[#allocation3 + $0x5c] sm:$0x1] }
 0x6d8   : > { %v7599_v60 = vpop.permute.xlu0 %7598  ;;  %6348 = vst.msk [vmem:[#allocation4 + $0x58] sm:$0xf] %vm16898_vm6, %v15192_v12  ;;  %v7298_v12 = vrot.slane %v7296_v0, 4  ;;  %v7301_v43 = vrot.slane %v7299_v19, 4 }
 0x6d9   : > { %7645 = vst.msk [vmem:[#allocation4 + $0x44] sm:$0xf] %vm16895_vm2, %v7599_v60  ;;  %5719 = vrot.lane.b32.xlu1 %v5666_v41, %s16448_s15  ;;  %vm16900_vm2 = vmmov %vm16898_vm6  ;;  %vm16904_vm6 = vcmask 585232   ;;  %v6273_v60 = vrot.slane %v6208_v38, 6  ;;  %v15408_v41 = vld [vmem:[#allocation3 + $0x50] sm:$0xf] }
 0x6da   : > { %7808 = vst.msk [vmem:[#allocation4 + $0x44] sm:$0xf] %vm16896_vm10, %v15202_v36  ;;  %4575 = vrot.lane.b32.xlu0 %v4537_v24, %s16440_s21  ;;  %v6582_v31 = vpop.permute.xlu1 %6581  ;;  %v4868_v36 = vrot.slane %v4866_v51, 4  ;;  %vm16901_vm10 = vcmask 978832   ;;  %v7300_v9 = vsel %vm11854_vm14, %v7298_v12, %v7299_v19  ;;  %v15406_v24 = vld [vmem:[#allocation3 + $0x54] sm:$0xf] }
 0x6db   : > { %6625 = vst.msk [vmem:[#allocation4 + $0x58] sm:$0xf] %vm6613_vm0, %v6582_v31  ;;  %vm16903_vm7 = vmmov %vm16901_vm10  ;;  %v6715_v12 = vrot.slane %v15408_v41, 7  ;;  %v16921_v41 = vrot.slane %v15139_v56, 7  ;;  %v5844_v19 = vrot.slane %v5842_v37, 4 }
 0x6dc   : > { %v6140_v5 = vpop.permute.xlu0 %6139  ;;  %6792 = vst.msk [vmem:[#allocation4 + $0x58] sm:$0xf] %vm16901_vm10, %v15221_v10  ;;  %v10453_v10 = vld [vmem:[#allocation4 + $0x40] ss:$8 sps:$4 sm:$0xff]   ;;  %vm16908_vm10 = vmmov %vm16904_vm6 }
 0x6dd   : > { %6184 = vst.msk [vmem:[#allocation4 + $0x50] sm:$0xf] %vm16899_vm13, %v6140_v5  ;;  %4903 = vrot.lane.b32.xlu1 %v4868_v36, %s16472_s25  ;;  %vm16905_vm13 = vcmask 634432   ;;  %v15422_v36 = vld [vmem:[#allocation3 + $0x54] sm:$0xf] }
 0x6de   : > { %6347 = vst.msk [vmem:[#allocation4 + $0x50] sm:$0xf] %vm16900_vm2, %v15217_v23  ;;  %6864 = vrot.lane.b32.xlu0 %v6814_v55, %s16460_s27  ;;  %vm16906_vm2 = vcmask 179200   ;;  %v6276_v55 = vrot.slane %v15406_v24, 6 }
 0x6df   : > { %6902 = vst.msk [vmem:[#allocation4 + $0x58] sm:$0xf] %vm6890_vm9, %v15307_v16  ;;  %v5176_v29 = vpop.permute.xlu1 %5175  ;;  %v5841_v16 = vrot.slane %v5839_v40, 4 }
 0x6e0   : > { %v6580_v23 = vpop.permute.xlu0 %6579  ;;  %5217 = vst.msk [vmem:[#allocation4 + $0x68] sm:$0xf] %vm16904_vm6, %v5176_v29  ;;  %vm16910_vm6 = vcmask 683632   ;;  %v7062_v29 = vshrl.u32 %v6923_v34, 16 }
 0x6e1   : > { %6624 = vst.msk [vmem:[#allocation4 + $0x50] sm:$0xf] %vm6613_vm0, %v6580_v23  ;;  %v10451_v44 = vld [vmem:[#allocation4 + $0x44] ss:$8 sps:$4 sm:$0xff]   ;;  %7337 = vrot.lane.b32.xlu1 %v7300_v9, %s16463_s14  ;;  %v5311_v9 = vrot.slane %v5240_v62, 7  ;;  %v16923_v62 = vld [vmem:[#allocation47_spill] sm:$0xff] }
 0x6e2   : > { %6791 = vst.msk [vmem:[#allocation4 + $0x50] sm:$0xf] %vm16903_vm7, %v15240_v20  ;;  %7335 = vrot.lane.b32.xlu0 %v7297_v45, %s16463_s14  ;;  %9391 = vmatprep.mubr.msk.bf16.mxu0 %vm16906_vm2, %v10451_v44  ;;  %v16907_v20 = vrot.slane %v15052_v52, 5  ;;  %vm16909_vm7 = vmmov %vm16905_vm13  ;;  %v5843_v52 = vsel %vm11854_vm14, %v5841_v16, %v5842_v37  ;;  %v7398_v44 = vld [vmem:[#allocation3 + $0x50] sm:$0xf]  ;;  %v16920_v16 = vrot.slane %v15122_v54, 6 }
 0x6e3   : > { %6901 = vst.msk [vmem:[#allocation4 + $0x50] sm:$0xf] %vm6890_vm9, %v15160_v33  ;;  %8098 = vmatmul.mubr.bf16.gmra.mrb[212].mxu0 %v10453_v10  ;;  %v5602_v13 = vpop.permute.xlu1 %5601  ;;  %vm16913_vm2 = vmmov %vm16910_vm6  ;;  %v6718_v10 = vrot.slane %v15422_v36, 7 }
 0x6e4   : > { %5384 = vst.msk [vmem:[#allocation4 + $0x68] sm:$0xf] %vm16905_vm13, %v15232_v28  ;;  %v5838_v8 = vrot.slane %v16907_v20, 4  ;;  %v5174_v42 = vpop.permute.xlu0 %5173  ;;  %v7732_v28 = vrot.slane %v7730_v58, 4  ;;  %vm16911_vm13 = vcmask 732832  }
 0x6e5   : > { %5216 = vst.msk [vmem:[#allocation4 + $0x60] sm:$0xf] %vm16908_vm10, %v5174_v42  ;;  %5878 = vrot.lane.b32.xlu1 %v5843_v52, %s16457_s3  ;;  %vm16914_vm10 = vmmov %vm16911_vm13  ;;  %v7064_v42 = vrot.slane %v7062_v29, 4  ;;  %v7399_v52 = vld [vmem:[#allocation3 + $0x54] sm:$0xf] }
 0x6e6   : > { %v5840_v33 = vsel %vm11854_vm14, %v5838_v8, %v5839_v40  ;;  %5383 = vst.msk [vmem:[#allocation4 + $0x60] sm:$0xf] %vm16909_vm7, %v15254_v15  ;;  %v16912_v15 = vrot.slane %v15086_v53, 6  ;;  %vm16915_vm7 = vcmask 339232   ;;  %v6275_v53 = vrot.slane %v6273_v60, 4 }
 0x6e7   : > { %5643 = vst.msk [vmem:[#allocation4 + $0x68] sm:$0xf] %vm16910_vm6, %v5602_v13  ;;  %5876 = vrot.lane.b32.xlu0 %v5840_v33, %s16457_s3  ;;  %v4193_v5 = vpop.permute.xlu1 %4192  ;;  %v7052_v40 = vshrl.u32 %v15204_v3, 16  ;;  %vm16916_vm6 = vcmask 388432   ;;  %v15446_v8 = vrot.slane %v7058_v1, 5  ;;  %v7533_v13 = vshrl.u32 %v7398_v44, 16 }
 0x6e8   : > { %5753 = vst.msk [vmem:[#allocation4 + $0x68] sm:$0xf] %vm16911_vm13, %v15017_v47  ;;  %v7729_v22 = vrot.slane %v16912_v15, 4  ;;  %v5600_v0 = vpop.permute.xlu0 %5599  ;;  %v7734_v47 = vsel %vm11849_vm12, %v7732_v28, %v7733_v59  ;;  %vm3196_vm13 = vcmask 91184   ;;  %v7536_v33 = vshll.u32 %v7398_v44, 16 }
 0x6e9   : > { %5642 = vst.msk [vmem:[#allocation4 + $0x60] sm:$0xf] %vm16913_vm2, %v5600_v0  ;;  %7771 = vrot.lane.b32.xlu1 %v7734_v47, %s16470_s13  ;;  %vm3362_vm2 = vcmask 140384   ;;  %v7054_v20 = vrot.slane %v7052_v40, 4  ;;  %v6714_v0 = vrot.slane %v16921_v41, 4  ;;  %v7535_v40 = vrot.slane %v7533_v13, 5 }
 0x6ea   : > { %v7731_v31 = vsel %vm11849_vm12, %v7729_v22, %v7730_v58  ;;  %5752 = vst.msk [vmem:[#allocation4 + $0x60] sm:$0xf] %vm16914_vm10, %v15072_v2  ;;  %v16917_v2 = vrot.slane %v15099_v17, 6  ;;  %vm16918_vm10 = vmmov %vm16915_vm7  ;;  %v6717_v17 = vrot.slane %v6715_v12, 4  ;;  %v5241_v58 = vld [vmem:[#allocation3 + $0x54] sm:$0x1] }
 0x6eb   : > { %4232 = vst.msk [vmem:[#allocation4 + $0x78] sm:$0xf] %vm16915_vm7, %v4193_v5  ;;  %7769 = vrot.lane.b32.xlu0 %v7731_v31, %s16470_s13  ;;  %v3159_v45 = vpop.permute.xlu1 %3158  ;;  %vm16919_vm7 = vmmov %vm16916_vm6  ;;  %v5314_v15 = vrot.slane %v5241_v58, 7  ;;  %v5937_v22 = vld [vmem:[#allocation3 + $0x50] sm:$0xf]  ;;  %v7055_v34 = vor.u32 %v7054_v20, %v16922_v30  ;;  %v7546_v31 = vshll.u32 %v7399_v52, 16  ;;  %v6716_v56 = vsel %vm11929_vm11, %v6714_v0, %v6715_v12 }
 0x6ec   : > { %4342 = vst.msk [vmem:[#allocation4 + $0x78] sm:$0xf] %vm16916_vm6, %v15036_v14  ;;  %v6272_v26 = vrot.slane %v16917_v2, 4  ;;  %v4191_v23 = vpop.permute.xlu0 %4190  ;;  %v6277_v14 = vsel %vm11849_vm12, %v6275_v53, %v6276_v55  ;;  %vm3636_vm6 = vcmask 189584   ;;  %v6719_v54 = vsel %vm11929_vm11, %v6717_v17, %v6718_v10  ;;  %v15463_v5 = vld [vmem:[#allocation3 + $0x54] sm:$0xf] }
 0x6ed   : > { %4231 = vst.msk [vmem:[#allocation4 + $0x70] sm:$0xf] %vm16918_vm10, %v4191_v23  ;;  %6312 = vrot.lane.b32.xlu1 %v6277_v14, %s16467_s19  ;;  %v7065_v53 = vor.u32 %v7064_v42, %v15446_v8  ;;  %v7538_v2 = vrot.slane %v7536_v33, 6  ;;  %v16924_v1 = vrot.slane %v16923_v62, 7  ;;  %v6090_v29 = vshrl.u32 %v5937_v22, 16 }
 0x6ee   : > { %v6274_v3 = vsel %vm11849_vm12, %v6272_v26, %v6273_v60  ;;  %4341 = vst.msk [vmem:[#allocation4 + $0x70] sm:$0xf] %vm16919_vm7, %v15088_v49  ;;  %v4865_v49 = vrot.slane %v16920_v16, 4  ;;  %v5313_v60 = vrot.slane %v5311_v9, 4  ;;  %v7068_v44 = vshll.u32 %v15463_v5, 16 }
 0x6ef   : > { %3197 = vst.msk [vmem:[#allocation4 + $0x88] sm:$0x3] %vm3196_vm13, %v3159_v45  ;;  %6310 = vrot.lane.b32.xlu0 %v6274_v3, %s16467_s19  ;;  %vm3802_vm13 = vcmask 238784   ;;  %v3599_v28 = vpop.permute.xlu1 %3598  ;;  %v5310_v23 = vrot.slane %v16924_v1, 4  ;;  %v6093_v45 = vshll.u32 %v5937_v22, 16  ;;  %v7056_v16 = vrot.slane %v7055_v34, 4 }
 0x6f0   : > { %3363 = vst.msk [vmem:[#allocation4 + $0x88] sm:$0x3] %vm3362_vm2, %v15256_v18  ;;  %v15448_v38 = vpop.permute.xlu0 %5713  ;;  %v4867_v18 = vsel %vm11849_vm12, %v4865_v49, %v4866_v51  ;;  %v7543_v51 = vshrl.u32 %v7399_v52, 16  ;;  %v5938_v3 = vld [vmem:[#allocation3 + $0x54] sm:$0xf]  ;;  %v7548_v58 = vrot.slane %v7546_v31, 6 }
 0x6f1   : > { %3637 = vst.msk [vmem:[#allocation4 + $0x88] sm:$0x3] %vm3636_vm6, %v3599_v28  ;;  %6756 = vrot.lane.b32.xlu1 %v6719_v54, %s16479_s28  ;;  %v6371_v14 = vld [vmem:[#allocation3 + $0x50] sm:$0xf]  ;;  %v5312_v12 = vsel %vm11929_vm11, %v5310_v23, %v5311_v9  ;;  %v15485_v42 = vld [vmem:[%s16157_s5] ss:$0 sm:$0xff] }
 0x6f2   : > { %3803 = vst.msk [vmem:[#allocation4 + $0x88] sm:$0x3] %vm3802_vm13, %v15270_v27  ;;  %v5315_v27 = vsel %vm11929_vm11, %v5313_v60, %v5314_v15  ;;  %v7545_v49 = vrot.slane %v7543_v51, 5  ;;  %v6815_v52 = vld [vmem:[#allocation3 + $0x58] sm:$0xf]  ;;  %v7066_v28 = vrot.slane %v7065_v53, 4 }
 0x6f3   : > { %4901 = vrot.lane.b32.xlu0 %v4867_v18, %s16472_s25  ;;  %v15469_v26 = vpop.permute.xlu1 %5715  ;;  %v7539_v18 = vor.u32 %v7538_v2, %v7535_v40  ;;  %v6100_v54 = vshrl.u32 %v5938_v3, 16  ;;  %vm16925_vm2 = vcmask 437632   ;;  %v6092_v15 = vrot.slane %v6090_v29, 5  ;;  %v6372_v53 = vld [vmem:[#allocation3 + $0x54] sm:$0xf]  ;;  %v16927_v2 = vld [vmem:[#allocation36_spill] sm:$0xff] }
 0x6f4   : > { %v15466_v47 = vpop.permute.xlu0 %4304  ;;  %v6095_v22 = vrot.slane %v6093_v45, 6  ;;  %v6103_v41 = vshll.u32 %v5938_v3, 16  ;;  %v6525_v0 = vshrl.u32 %v6371_v14, 16  ;;  %vm16926_vm10 = vcmask 486832   ;;  %s17030_s25 = sld [smem:[#allocation14_spill]] }
 0x6f5   : > { %5350 = vrot.lane.b32.xlu1 %v5315_v27, %s16442_s1  ;;  %v15495_v51 = vrot.slane %v7068_v44, 5  ;;  %v6528_v31 = vshll.u32 %v6371_v14, 16  ;;  %v7061_v40 = vsel %vm11880_vm1, %v7056_v16, %v15446_v8  ;;  %v15502_v62 = vor.u32 %v7548_v58, %v7545_v49 }
 0x6f6   : > { %v8083_v17 = vpop.f32.mrb[204].mxu0  ;;  %v7541_v29 = vrot.slane %v7539_v18, 4  ;;  %v6102_v45 = vrot.slane %v6100_v54, 5  ;;  %vm16928_vm7 = vcmask 93232   ;;  %v6096_v27 = vor.u32 %v6095_v22, %v6092_v15 }
 0x6f7   : > { %6754 = vrot.lane.b32.xlu0 %v6716_v56, %s16479_s28  ;;  %v8084_v13 = vadd.f32 %v15485_v42, %v8083_v17  ;;  %v8085_v33 = vpop.f32.mrb[205].mxu0  ;;  %v15489_v60 = vpop.permute.xlu1 %4306  ;;  %v7531_v56 = vrot.slane %v16927_v2, 4  ;;  %v7071_v23 = vsel %vm11880_vm1, %v7066_v28, %v15495_v51  ;;  %v6105_v44 = vrot.slane %v6103_v41, 6  ;;  %v5407_v41 = vld [vmem:[#allocation3 + $0x50] sm:$0xf] }
 0x6f8   : > { %v4572_v20 = vpop.permute.xlu0 %4571  ;;  %v8086_v9 = vpop.f32.mrb[206].mxu0  ;;  %v6527_v14 = vrot.slane %v6525_v0, 6  ;;  %v6535_v8 = vshrl.u32 %v6372_v53, 16  ;;  %vm16929_vm6 = vcmask 142432   ;;  %v6530_v17 = vrot.slane %v6528_v31, 7 }
 0x6f9   : > { %4612 = vst.msk [vmem:[#allocation4 + $0x70] sm:$0xf] %vm16925_vm2, %v4572_v20  ;;  %v8087_v30 = vadd.f32 %v15485_v42, %v8086_v9  ;;  %v8088_v34 = vpop.f32.mrb[207].mxu0  ;;  %10719 = vtanh.f32 %v8084_v13  ;;  %6866 = vrot.lane.b32.xlu1 %v6815_v52, %s16460_s27  ;;  %v7540_v13 = vsel %vm11904_vm8, %v7531_v56, %v7539_v18  ;;  %vm16931_vm13 = vcmask 191632   ;;  %v4961_v2 = vld [vmem:[#allocation3 + $0x54] sm:$0x1] }
 0x6fa   : > { %4775 = vst.msk [vmem:[#allocation4 + $0x70] sm:$0xf] %vm16926_vm10, %v15301_v57  ;;  %v4960_v57 = vld [vmem:[#allocation3 + $0x50] sm:$0xf]  ;;  %v6098_v52 = vrot.slane %v6096_v27, 4  ;;  %v15520_v28 = vor.u32 %v6105_v44, %v6102_v45  ;;  %v6537_v54 = vrot.slane %v6535_v8, 6  ;;  %v6531_v9 = vor.u32 %v6530_v17, %v6527_v14 }
 0x6fb   : > { %5348 = vrot.lane.b32.xlu0 %v5312_v12, %s16442_s1  ;;  %10721 = vtanh.f32 %v8087_v30  ;;  %v4737_v3 = vpop.permute.xlu1 %4736  ;;  %v6538_v12 = vshll.u32 %v6372_v53, 16  ;;  %v5135_v16 = vshrl.u32 %v4960_v57, 16  ;;  %v5138_v49 = vshll.u32 %v4960_v57, 16  ;;  %v5408_v30 = vld [vmem:[#allocation3 + $0x54] sm:$0x3]  ;;  %v16934_v45 = vld [vmem:[#allocation35_spill] sm:$0xff] }
 0x6fc   : > { %v3157_v1 = vpop.permute.xlu0 %3156  ;;  %vm16932_vm2 = vcmask 240832   ;;  %v6088_v0 = vrot.slane %v15247_v21, 4  ;;  %v5559_v56 = vshrl.u32 %v5407_v41, 16  ;;  %vm16933_vm10 = vcmask 782032   ;;  %s10848_s1 = smov 80   ;;  %s9473_s10 = sshll.u32 %s17030_s25, 4 }
 0x6fd   : > { %3195 = vst.msk [vmem:[#allocation4 + $0x80] sm:$0xf] %vm16928_vm7, %v3157_v1  ;;  %7133 = vrot.lane.b32.xlu1 %v7071_v23, %s16576_s26  ;;  %v6540_v15 = vrot.slane %v6538_v12, 7  ;;  %v5137_v18 = vrot.slane %v5135_v16, 6  ;;  %v5140_v22 = vrot.slane %v5138_v49, 7  ;;  %v6533_v21 = vrot.slane %v6531_v9, 4 }
 0x6fe   : > { %3361 = vst.msk [vmem:[#allocation4 + $0x80] sm:$0xf] %vm16929_vm6, %v15314_v48  ;;  %v7550_v48 = vsel %vm11904_vm8, %v7541_v29, %v15502_v62  ;;  %v5568_v29 = vshrl.u32 %v5408_v30, 16  ;;  %v5145_v8 = vshll.u32 %v4961_v2, 16  ;;  %v5561_v16 = vrot.slane %v5559_v56, 7 }
 0x6ff   : > { %7131 = vrot.lane.b32.xlu0 %v7061_v40, %s16576_s26  ;;  %v15515_v33 = vpop.permute.xlu1 %7333  ;;  %v6097_v40 = vsel %vm11904_vm8, %v6088_v0, %v6096_v27  ;;  %v15536_v1 = vor.u32 %v6540_v15, %v6537_v54  ;;  %v5141_v23 = vor.u32 %v5140_v22, %v5137_v18  ;;  %v6523_v27 = vrot.slane %v16934_v45, 4  ;;  %v6816_v45 = vld [vmem:[#allocation3 + $0x5c] sm:$0xf] }
 0x700   : > { %v3597_v58 = vpop.permute.xlu0 %3596  ;;  %vm16935_vm7 = vcmask 437632   ;;  %vm16937_vm6 = vcmask 486832   ;;  %v5562_v54 = vshll.u32 %v5407_v41, 16  ;;  %v5147_v15 = vrot.slane %v5145_v8, 7 }
 0x701   : > { %3635 = vst.msk [vmem:[#allocation4 + $0x80] sm:$0xf] %vm16931_vm13, %v3597_v58  ;;  %7608 = vrot.lane.b32.xlu1 %v7550_v48, %s16510_s8  ;;  %v6532_v12 = vsel %vm12170_vm15, %v6523_v27, %v6531_v9  ;;  %v6542_v49 = vsel %vm12170_vm15, %v6533_v21, %v15536_v1  ;;  %v5143_v58 = vrot.slane %v5141_v23, 4  ;;  %v16936_v48 = vmov 0   ;;  %vm16938_vm13 = vmmov %vm16933_vm10  ;;  %v7237_v21 = vld [vmem:[#allocation3 + $0x58] sm:$0xf] }
 0x702   : > { %3801 = vst.msk [vmem:[#allocation4 + $0x80] sm:$0xf] %vm16932_vm2, %v15324_v25  ;;  %v6107_v25 = vsel %vm11904_vm8, %v6098_v52, %v15520_v28  ;;  %v5133_v52 = vrot.slane %v15278_v6, 4  ;;  %v5571_v18 = vshll.u32 %v5408_v30, 16  ;;  %v5557_v6 = vrot.slane %v15280_v35, 4 }
 0x703   : > { %7606 = vrot.lane.b32.xlu0 %v7540_v13, %s16510_s8  ;;  %v10720_v31 = vpop.eup %10719  ;;  %v5875_v53 = vpop.permute.xlu1 %5874  ;;  %v5570_v13 = vrot.slane %v5568_v29, 7  ;;  %v5566_v30 = vrot.slane %v5561_v16, 4  ;;  %vm16939_vm2 = vcmask 536032  }
 0x704   : > { %v15527_v34 = vpop.permute.xlu0 %6860  ;;  %5916 = vst.msk [vmem:[#allocation4 + $0x68] sm:$0xf] %vm16933_vm10, %v5875_v53  ;;  %v5142_v0 = vsel %vm12170_vm15, %v5133_v52, %v5141_v23  ;;  %v15572_v23 = vld [vmem:[#allocation3 + $0x58] sm:$0xf]  ;;  %vm3972_vm10 = vcmask 287984  }
 0x705   : > { %v10722_v57 = vpop.eup %10721  ;;  %6149 = vrot.lane.b32.xlu1 %v6107_v25, %s16506_s29  ;;  %v5573_v53 = vor.u32 %v5571_v18, %v5570_v13  ;;  %v6279_v8 = vrot.slane %v15572_v23, 6  ;;  %v6650_v18 = vld [vmem:[#allocation3 + $0x58] sm:$0xf] }
 0x706   : > { %v8158_v44 = vpack.c.bf16 %v10722_v57, %v10720_v31  ;;  %v5564_v31 = vor.u32 %v5562_v54, %v5561_v16 }
 0x707   : > { %6147 = vrot.lane.b32.xlu0 %v6097_v40, %s16506_s29  ;;  %v4574_v17 = vpop.permute.xlu1 %4573  ;;  %v5776_v40 = vld [vmem:[#allocation3 + $0x58] sm:$0x7]  ;;  %v5574_v57 = vsel %vm11974_vm3, %v5566_v30, %v5573_v53  ;;  %v6281_v13 = vrot.slane %v6279_v8, 4  ;;  %v7735_v53 = vrot.slane %v7733_v59, 4 }
 0x708   : > { %v15540_v14 = vpop.permute.xlu0 %7331  ;;  %8203 = vmatpush1.bf16.msra.mxu1 %v8158_v44  ;;  %4613 = vst.msk [vmem:[#allocation4 + $0x78] sm:$0xf] %vm16935_vm7, %v4574_v17  ;;  %v5565_v2 = vsel %vm11974_vm3, %v5557_v6, %v5564_v31  ;;  %v5845_v56 = vrot.slane %v5776_v40, 5  ;;  %v7302_v44 = vrot.slane %v7237_v21, 5  ;;  %v15583_v17 = vld [vmem:[#allocation3 + $0x5c] sm:$0xf]  ;;  %vm16940_vm3 = vmmov %vm16939_vm2 }
 0x709   : > { %8204 = vmatprep.subr.bf16.mxu1 %v16936_v48  ;;  %4776 = vst.msk [vmem:[#allocation4 + $0x78] sm:$0xf] %vm16937_vm6, %v4737_v3  ;;  %6589 = vrot.lane.b32.xlu1 %v6542_v49, %s16508_s12  ;;  %v5148_v3 = vsel %vm12170_vm15, %v5143_v58, %v5147_v15  ;;  %v7305_v54 = vrot.slane %v15583_v17, 5  ;;  %v15595_v15 = vld [vmem:[#allocation3 + $0x5c] sm:$0xf]  ;;  %v6110_v40 = vshrl.u32 %v5939_v46, 16 }
 0x70a   : > { %v5847_v27 = vrot.slane %v5845_v56, 4  ;;  %v7303_v58 = vsel %vm11854_vm14, %v7301_v43, %v7302_v44  ;;  %v7304_v52 = vrot.slane %v7302_v44, 4  ;;  %v6113_v6 = vshll.u32 %v5939_v46, 16  ;;  %v7400_v43 = vld [vmem:[#allocation3 + $0x58] sm:$0xf] }
 0x70b   : > { %6587 = vrot.lane.b32.xlu0 %v6532_v12, %s16508_s12  ;;  %v15554_v22 = vpop.permute.xlu1 %7767  ;;  %v7671_v12 = vld [vmem:[#allocation3 + $0x58] sm:$0xf]  ;;  %v7739_v30 = vrot.slane %v15595_v15, 6  ;;  %v7072_v21 = vshrl.u32 %v15463_v5, 16  ;;  %v7556_v46 = vshll.u32 %v7400_v43, 16  ;;  %vm16941_vm7 = vcmask 290032  }
 0x70c   : > { %v5873_v9 = vpop.permute.xlu0 %5872  ;;  %v7306_v11 = vsel %vm11854_vm14, %v7304_v52, %v7305_v54  ;;  %vm16943_vm6 = vcmask 126032  }
 0x70d   : > { %5915 = vst.msk [vmem:[#allocation4 + $0x60] sm:$0xf] %vm16938_vm13, %v5873_v9  ;;  %5183 = vrot.lane.b32.xlu1 %v5148_v3, %s16445_s0  ;;  %v7736_v9 = vrot.slane %v7671_v12, 6  ;;  %v5846_v3 = vsel %vm11854_vm14, %v5844_v19, %v5845_v56 }
 0x70f   : > { %5181 = vrot.lane.b32.xlu0 %v5142_v0, %s16445_s0  ;;  %v15565_v25 = vpop.permute.xlu1 %6308  ;;  %v7738_v37 = vrot.slane %v7736_v9, 4  ;;  %v7737_v56 = vsel %vm11849_vm12, %v7735_v53, %v7736_v9  ;;  %v7553_v9 = vshrl.u32 %v7400_v43, 16  ;;  %s10846_s0 = smov 32  }
 0x710   : > { %v15563_v41 = vpop.permute.xlu0 %7765 }
 0x711   : > { %5609 = vrot.lane.b32.xlu1 %v5574_v57, %s16446_s20  ;;  %v6925_v57 = vld [vmem:[#allocation3 + $0x58] sm:$0xf]  ;;  %v7740_v5 = vsel %vm11849_vm12, %v7738_v37, %v7739_v30 }
 0x712   : > { %v7082_v44 = vshrl.u32 %v6925_v57, 16  ;;  %v6373_v37 = vld [vmem:[#allocation3 + $0x58] sm:$0xf] }
 0x713   : > { %5607 = vrot.lane.b32.xlu0 %v5565_v2, %s16446_s20  ;;  %v4900_v29 = vpop.permute.xlu1 %4899  ;;  %v6721_v2 = vrot.slane %v6650_v18, 7 }
 0x714   : > { %v15575_v35 = vpop.permute.xlu0 %6306  ;;  %4939 = vst.msk [vmem:[#allocation4 + $0x78] sm:$0xf] %vm16939_vm2, %v4900_v29  ;;  %v6112_v29 = vrot.slane %v6110_v40, 5  ;;  %v7084_v40 = vrot.slane %v7082_v44, 4  ;;  %v6548_v44 = vshll.u32 %v6373_v37, 16  ;;  %vm16945_vm2 = vcmask 175232  }
 0x715   : > { %5882 = vrot.lane.b32.xlu1 %v5847_v27, %s16457_s3  ;;  %v7078_v27 = vshll.u32 %v6925_v57, 16  ;;  %v6723_v12 = vrot.slane %v6721_v2, 4 }
 0x717   : > { %6868 = vrot.lane.b32.xlu0 %v6816_v45, %s16460_s27  ;;  %v15586_v49 = vpop.permute.xlu1 %6752  ;;  %v6115_v45 = vrot.slane %v6113_v6, 6  ;;  %v7080_v53 = vrot.slane %v7078_v27, 5  ;;  %v7401_v6 = vld [vmem:[#allocation3 + $0x5c] sm:$0xf] }
 0x718   : > { %v4898_v16 = vpop.permute.xlu0 %4897  ;;  %v7566_v27 = vshll.u32 %v7401_v6, 16 }
 0x719   : > { %4938 = vst.msk [vmem:[#allocation4 + $0x70] sm:$0xf] %vm16940_vm3, %v4898_v16  ;;  %6316 = vrot.lane.b32.xlu1 %v6281_v13, %s16467_s19  ;;  %v6724_v16 = vrot.slane %v6651_v63, 7  ;;  %v7074_v13 = vrot.slane %v7072_v21, 4  ;;  %v7555_v21 = vrot.slane %v7553_v9, 5  ;;  %v7558_v63 = vrot.slane %v7556_v46, 6  ;;  %vm16946_vm3 = vmmov %vm16943_vm6 }
 0x71a   : > { %v7085_v36 = vor.u32 %v7084_v40, %v7080_v53  ;;  %v6817_v46 = vld [vmem:[#allocation3 + $0x60] sm:$0x3] }
 0x71b   : > { %7339 = vrot.lane.b32.xlu0 %v7303_v58, %s16463_s14  ;;  %v15599_v31 = vpop.permute.xlu1 %5346  ;;  %v6278_v58 = vrot.slane %v6276_v55, 4  ;;  %v6725_v24 = vsel %vm11929_vm11, %v6723_v12, %v6724_v16  ;;  %v6720_v55 = vrot.slane %v6718_v10, 4  ;;  %v7563_v10 = vshrl.u32 %v7401_v6, 16 }
 0x71c   : > { %v15597_v0 = vpop.permute.xlu0 %6750 }
 0x71d   : > { %7341 = vrot.lane.b32.xlu1 %v7306_v11, %s16463_s14  ;;  %v6280_v18 = vsel %vm11849_vm12, %v6278_v58, %v6279_v8  ;;  %v7075_v11 = vor.u32 %v7074_v13, %v15495_v51  ;;  %v6722_v8 = vsel %vm11929_vm11, %v6720_v55, %v6721_v2  ;;  %v6545_v51 = vshrl.u32 %v6373_v37, 16 }
 0x71e   : > { %vm16942_vm11 = vcmask 76832   ;;  %v7559_v58 = vor.u32 %v7558_v63, %v7555_v21  ;;  %v7086_v13 = vrot.slane %v7085_v36, 4  ;;  %v7551_v55 = vrot.slane %v15502_v62, 4 }
 0x71f   : > { %5880 = vrot.lane.b32.xlu0 %v5846_v3, %s16457_s3  ;;  %v3935_v23 = vpop.permute.xlu1 %3934  ;;  %v15630_v3 = vor.u32 %v6115_v45, %v6112_v29  ;;  %v15644_v45 = vld [vmem:[#allocation3 + $0x5c] sm:$0xf]  ;;  %v7076_v4 = vrot.slane %v7075_v11, 4  ;;  %v6547_v40 = vrot.slane %v6545_v51, 6  ;;  %vm16944_vm13 = vmmov %vm16942_vm11  ;;  %v7239_v51 = vld [vmem:[#allocation3 + $0x60] sm:$0x7] }
 0x720   : > { %v15613_v59 = vpop.permute.xlu0 %5344  ;;  %3973 = vst.msk [vmem:[#allocation4 + $0x88] sm:$0x3] %vm3972_vm10, %v3935_v23  ;;  %v7560_v37 = vsel %vm11904_vm8, %v7551_v55, %v7559_v58  ;;  %vm16947_vm10 = vmmov %vm16945_vm2  ;;  %s17032_s3 = sld [smem:[#allocation55_spill]] }
 0x721   : > { %7775 = vrot.lane.b32.xlu1 %v7740_v5, %s16470_s13  ;;  %v6118_v29 = vrot.slane %v15630_v3, 4  ;;  %v7088_v5 = vshll.u32 %v15644_v45, 16  ;;  %v7081_v16 = vsel %vm11880_vm1, %v7076_v4, %v7080_v53 }
 0x723   : > { %7773 = vrot.lane.b32.xlu0 %v7737_v56, %s16470_s13  ;;  %v15626_v19 = vpop.permute.xlu1 %4740  ;;  %v15662_v11 = vrot.slane %v7088_v5, 5 }
 0x724   : > { %v3933_v52 = vpop.permute.xlu0 %3932 }
 0x725   : > { %3971 = vst.msk [vmem:[#allocation4 + $0x80] sm:$0xf] %vm16941_vm7, %v3933_v52  ;;  %6760 = vrot.lane.b32.xlu1 %v6725_v24, %s16479_s28  ;;  %v7565_v52 = vrot.slane %v7563_v10, 5  ;;  %v6550_v24 = vrot.slane %v6548_v44, 7  ;;  %v7091_v62 = vsel %vm11880_vm1, %v7086_v13, %v15662_v11  ;;  %vm16948_vm7 = vcmask 831232  }
 0x727   : > { %6314 = vrot.lane.b32.xlu0 %v6280_v18, %s16467_s19  ;;  %v15641_v23 = vpop.permute.xlu1 %6862  ;;  %v7568_v18 = vrot.slane %v7566_v27, 6  ;;  %v6551_v63 = vor.u32 %v6550_v24, %v6547_v40  ;;  %s17034_s19 = sld [smem:[#allocation56_spill]] }
 0x728   : > { %v7128_v57 = vpop.permute.xlu0 %7127 }
 0x729   : > { %v7153_v56 = vrot.slane %v7128_v57, 4  ;;  %6153 = vrot.lane.b32.xlu1 %v6118_v29, %s16506_s29  ;;  %v15677_v21 = vor.u32 %v7568_v18, %v7565_v52  ;;  %v7092_v29 = vshrl.u32 %v15644_v45, 16  ;;  %v7402_v45 = vld [vmem:[#allocation3 + $0x60] sm:$0xf] }
 0x72b   : > { %6758 = vrot.lane.b32.xlu0 %v6722_v8, %s16479_s28  ;;  %v7172_v43 = vsel %vm7161_vm4, %v7153_v56, %v7128_v57  ;;  %v7130_v12 = vpop.permute.xlu1 %7129  ;;  %v6374_v57 = vld [vmem:[#allocation3 + $0x5c] sm:$0x1]  ;;  %v7561_v8 = vrot.slane %v7559_v58, 4  ;;  %v6927_v56 = vld [vmem:[#allocation3 + $0x60] sm:$0x7]  ;;  %v7094_v4 = vrot.slane %v7092_v29, 4 }
 0x72c   : > { %7211 = vst.msk [vmem:[#allocation4 + $0x50] sm:$0xff] %vm13554_vm5, %v7172_v43  ;;  %v15651_v2 = vpop.permute.xlu0 %4738  ;;  %v7154_v9 = vrot.slane %v7130_v12, 4  ;;  %v6555_v36 = vshll.u32 %v6374_v57, 16  ;;  %v7098_v44 = vshll.u32 %v6927_v56, 16  ;;  %v7102_v43 = vshrl.u32 %v6927_v56, 16 }
 0x72d   : > { %7376 = vst.msk [vmem:[#allocation4 + $0x54] sm:$0xf] %vm16942_vm11, %v15540_v14  ;;  %6870 = vrot.lane.b32.xlu1 %v6817_v46, %s16460_s27  ;;  %vm16949_vm11 = vcmask 880432   ;;  %v7576_v46 = vshll.u32 %v7402_v45, 16  ;;  %v7095_v40 = vor.u32 %v7094_v4, %v15662_v11  ;;  %s16110_s20 = scalar_lea.hbm %s17034_s19, %s9473_s10 }
 0x72e   : > { %v7173_v14 = vsel %vm7161_vm4, %v7154_v9, %v7130_v12  ;;  %v6557_v12 = vrot.slane %v6555_v36, 7  ;;  %v7100_v52 = vrot.slane %v7098_v44, 5  ;;  %v7104_v9 = vrot.slane %v7102_v43, 4 }
 0x72f   : > { %7135 = vrot.lane.b32.xlu0 %v7081_v16, %s16576_s26  ;;  %7212 = vst.msk [vmem:[#allocation4 + $0x58] sm:$0xff] %vm13554_vm5, %v7173_v14  ;;  %v7605_v53 = vpop.permute.xlu1 %7604  ;;  %v7573_v16 = vshrl.u32 %v7402_v45, 16  ;;  %v7578_v55 = vrot.slane %v7576_v46, 6  ;;  %v7096_v61 = vrot.slane %v7095_v40, 4 }
 0x730   : > { %v7603_v6 = vpop.permute.xlu0 %7602  ;;  %7377 = vst.msk [vmem:[#allocation4 + $0x5c] sm:$0xf] %vm16944_vm13, %v15515_v33  ;;  %v6108_v33 = vrot.slane %v15520_v28, 4  ;;  %v7570_v28 = vsel %vm11904_vm8, %v7561_v8, %v15677_v21  ;;  %vm16951_vm13 = vmmov %vm16949_vm11 }
 0x731   : > { %7647 = vst.msk [vmem:[#allocation4 + $0x54] sm:$0xf] %vm16943_vm6, %v7603_v6  ;;  %7137 = vrot.lane.b32.xlu1 %v7091_v62, %s16576_s26  ;;  %vm16950_vm6 = vmmov %vm16948_vm7  ;;  %v7575_v24 = vrot.slane %v7573_v16, 5  ;;  %v7101_v6 = vsel %vm11880_vm1, %v7096_v61, %v7100_v52  ;;  %vm4344_vm1 = vcmask 386384  }
 0x732   : > { %7810 = vst.msk [vmem:[#allocation4 + $0x54] sm:$0xf] %vm16945_vm2, %v15563_v41  ;;  %v6117_v27 = vsel %vm11904_vm8, %v6108_v33, %v15630_v3  ;;  %v6543_v3 = vrot.slane %v15536_v1, 4  ;;  %vm16952_vm2 = vcmask 978832  }
 0x733   : > { %7610 = vrot.lane.b32.xlu0 %v7560_v37, %s16510_s8  ;;  %7648 = vst.msk [vmem:[#allocation4 + $0x5c] sm:$0xf] %vm16946_vm3, %v7605_v53  ;;  %v6146_v10 = vpop.permute.xlu1 %6145  ;;  %vm16953_vm3 = vmmov %vm16952_vm2  ;;  %v7571_v53 = vrot.slane %v15677_v21, 4 }
 0x734   : > { %7811 = vst.msk [vmem:[#allocation4 + $0x5c] sm:$0xf] %vm16947_vm10, %v15554_v22  ;;  %v6144_v41 = vpop.permute.xlu0 %6143  ;;  %v6553_v22 = vrot.slane %v6551_v63, 4  ;;  %v6552_v13 = vsel %vm12170_vm15, %v6543_v3, %v6551_v63  ;;  %vm16955_vm10 = vcmask 179200  }
 0x735   : > { %6186 = vst.msk [vmem:[#allocation4 + $0x60] sm:$0xf] %vm16948_vm7, %v6144_v41  ;;  %7612 = vrot.lane.b32.xlu1 %v7570_v28, %s16510_s8  ;;  %vm16956_vm7 = vcmask 634432  }
 0x736   : > { %6349 = vst.msk [vmem:[#allocation4 + $0x60] sm:$0xf] %vm16949_vm11, %v15575_v35  ;;  %v7308_v35 = vrot.slane %v7239_v51, 5  ;;  %v6558_v1 = vsel %vm12170_vm15, %v6553_v22, %v6557_v12  ;;  %vm16954_vm15 = vcmask 585232  }
 0x737   : > { %6187 = vst.msk [vmem:[#allocation4 + $0x68] sm:$0xf] %vm16950_vm6, %v6146_v10  ;;  %6151 = vrot.lane.b32.xlu0 %v6117_v27, %s16506_s29  ;;  %v6586_v58 = vpop.permute.xlu1 %6585  ;;  %vm16957_vm11 = vmmov %vm16954_vm15 }
 0x738   : > { %6350 = vst.msk [vmem:[#allocation4 + $0x68] sm:$0xf] %vm16951_vm13, %v15565_v25  ;;  %v6584_v5 = vpop.permute.xlu0 %6583  ;;  %v7307_v25 = vrot.slane %v7305_v54, 4  ;;  %vm16958_vm6 = vmmov %vm16956_vm7  ;;  %vm16960_vm13 = vcmask 732832  }
 0x739   : > { %6626 = vst.msk [vmem:[#allocation4 + $0x60] sm:$0xf] %vm6613_vm0, %v6584_v5  ;;  %6627 = vst.msk [vmem:[#allocation4 + $0x68] sm:$0xf] %vm6613_vm0, %v6586_v58  ;;  %6593 = vrot.lane.b32.xlu1 %v6558_v1, %s16508_s12 }
 0x73a   : > { %6793 = vst.msk [vmem:[#allocation4 + $0x60] sm:$0xf] %vm16952_vm2, %v15597_v0  ;;  %v10456_v0 = vld [vmem:[#allocation4 + $0x50] ss:$8 sps:$4 sm:$0xff]   ;;  %v7309_v17 = vsel %vm11854_vm14, %v7307_v25, %v7308_v35  ;;  %vm16959_vm14 = vcmask 683632  }
 0x73b   : > { %6591 = vrot.lane.b32.xlu0 %v6552_v13, %s16508_s12  ;;  %6903 = vst.msk [vmem:[#allocation4 + $0x60] sm:$0xf] %vm6890_vm9, %v15527_v34  ;;  %v10454_v18 = vld [vmem:[#allocation4 + $0x54] ss:$8 sps:$4 sm:$0xff]   ;;  %v5180_v54 = vpop.permute.xlu1 %5179  ;;  %v7310_v34 = vrot.slane %v7308_v35, 4  ;;  %vm16961_vm2 = vmmov %vm16959_vm14 }
 0x73c   : > { %6794 = vst.msk [vmem:[#allocation4 + $0x68] sm:$0xf] %vm16953_vm3, %v15586_v49  ;;  %v5178_v39 = vpop.permute.xlu0 %5177  ;;  %9392 = vmatprep.mubr.msk.bf16.mxu0 %vm16955_vm10, %v10454_v18  ;;  %v7105_v49 = vor.u32 %v7104_v9, %v7100_v52  ;;  %vm16962_vm3 = vmmov %vm16960_vm13  ;;  %vm16963_vm10 = vcmask 339232  }
 0x73d   : > { %6904 = vst.msk [vmem:[#allocation4 + $0x68] sm:$0xf] %vm6890_vm9, %v15641_v23  ;;  %8106 = vmatmul.mubr.bf16.gmra.mrb[216].mxu0 %v10456_v0  ;;  %7345 = vrot.lane.b32.xlu1 %v7310_v34, %s16463_s14 }
 0x73e   : > { %5218 = vst.msk [vmem:[#allocation4 + $0x70] sm:$0xf] %vm16954_vm15, %v5178_v39  ;;  %v7106_v11 = vrot.slane %v7105_v49, 4  ;;  %vm4234_vm15 = vcmask 337184  }
 0x73f   : > { %5385 = vst.msk [vmem:[#allocation4 + $0x70] sm:$0xf] %vm16956_vm7, %v15613_v59  ;;  %7343 = vrot.lane.b32.xlu0 %v7309_v17, %s16463_s14  ;;  %v5606_v14 = vpop.permute.xlu1 %5605  ;;  %v7579_v59 = vor.u32 %v7578_v55, %v7575_v24  ;;  %vm16964_vm7 = vcmask 388432  }
 0x740   : > { %5219 = vst.msk [vmem:[#allocation4 + $0x78] sm:$0xf] %vm16957_vm11, %v5180_v54  ;;  %v5604_v23 = vpop.permute.xlu0 %5603  ;;  %vm4615_vm11 = vcmask 435584  }
 0x741   : > { %5386 = vst.msk [vmem:[#allocation4 + $0x78] sm:$0xf] %vm16958_vm6, %v15599_v31  ;;  %v7673_v31 = vld [vmem:[#allocation3 + $0x60] sm:$0xf]  ;;  %7141 = vrot.lane.b32.xlu1 %v7106_v11, %s16576_s26  ;;  %v7581_v57 = vrot.slane %v7579_v59, 4  ;;  %vm4778_vm6 = vcmask 484784  }
 0x742   : > { %5644 = vst.msk [vmem:[#allocation4 + $0x70] sm:$0xf] %vm16959_vm14, %v5604_v23  ;;  %v7742_v62 = vrot.slane %v7673_v31, 6  ;;  %vm16966_vm14 = vcmask 486832  }
 0x743   : > { %5754 = vst.msk [vmem:[#allocation4 + $0x70] sm:$0xf] %vm16960_vm13, %v15448_v38  ;;  %7139 = vrot.lane.b32.xlu0 %v7101_v6, %s16576_s26  ;;  %v4197_v37 = vpop.permute.xlu1 %4196  ;;  %v7580_v38 = vsel %vm11904_vm8, %v7571_v53, %v7579_v59  ;;  %vm16965_vm8 = vcmask 437632   ;;  %vm4941_vm13 = vcmask 533984   ;;  %s17031_s26 = sld [smem:[#allocation54_spill]] }
 0x744   : > { %5645 = vst.msk [vmem:[#allocation4 + $0x78] sm:$0xf] %vm16961_vm2, %v5606_v14  ;;  %v4195_v50 = vpop.permute.xlu0 %4194  ;;  %v7744_v63 = vrot.slane %v7742_v62, 4 }
 0x745   : > { %5755 = vst.msk [vmem:[#allocation4 + $0x78] sm:$0xf] %vm16962_vm3, %v15469_v26  ;;  %7616 = vrot.lane.b32.xlu1 %v7581_v57, %s16510_s8  ;;  %v7741_v26 = vrot.slane %v7739_v30, 4  ;;  %vm16969_vm3 = vcmask 536032  }
 0x746   : > { %4233 = vst.msk [vmem:[#allocation4 + $0x80] sm:$0xf] %vm16963_vm10, %v4195_v50  ;;  %vm16972_vm10 = vcmask 126032  }
 0x747   : > { %4343 = vst.msk [vmem:[#allocation4 + $0x80] sm:$0xf] %vm16964_vm7, %v15466_v47  ;;  %7614 = vrot.lane.b32.xlu0 %v7580_v38, %s16510_s8  ;;  %v4578_v20 = vpop.permute.xlu1 %4577  ;;  %v7743_v21 = vsel %vm11849_vm12, %v7741_v26, %v7742_v62  ;;  %vm16967_vm12 = vcmask 782032   ;;  %vm16973_vm7 = vcmask 175232  }
 0x748   : > { %4235 = vst.msk [vmem:[#allocation4 + $0x88] sm:$0x3] %vm4234_vm15, %v4197_v37  ;;  %v15751_v8 = vpop.permute.xlu0 %5717  ;;  %vm16968_vm2 = vmmov %vm16967_vm12  ;;  %vm16970_vm15 = vcmask 76832  }
 0x749   : > { %4345 = vst.msk [vmem:[#allocation4 + $0x88] sm:$0x3] %vm4344_vm1, %v15489_v60  ;;  %7779 = vrot.lane.b32.xlu1 %v7744_v63, %s16470_s13  ;;  %vm16971_vm1 = vmmov %vm16970_vm15 }
 0x74a   : > { %4616 = vst.msk [vmem:[#allocation4 + $0x88] sm:$0x3] %vm4615_vm11, %v4578_v20  ;;  %vm16974_vm11 = vmmov %vm16972_vm10 }
 0x74b   : > { %7777 = vrot.lane.b32.xlu0 %v7743_v21, %s16470_s13  ;;  %4779 = vst.msk [vmem:[#allocation4 + $0x88] sm:$0x3] %vm4778_vm6, %v15626_v19  ;;  %v15759_v60 = vpop.permute.xlu1 %5719  ;;  %vm16975_vm6 = vmmov %vm16973_vm7 }
 0x74c   : > { %v4576_v47 = vpop.permute.xlu0 %4575 }
 0x74d   : > { %4614 = vst.msk [vmem:[#allocation4 + $0x80] sm:$0xf] %vm16965_vm8, %v4576_v47  ;;  %vm16976_vm8 = vcmask 831232  }
 0x74e   : > { %4777 = vst.msk [vmem:[#allocation4 + $0x80] sm:$0xf] %vm16966_vm14, %v15651_v2  ;;  %vm16977_vm14 = vcmask 880432  }
 0x74f   : > { %v4904_v32 = vpop.permute.xlu1 %4903 }
 0x750   : > { %v6865_v15 = vpop.permute.xlu0 %6864  ;;  %4942 = vst.msk [vmem:[#allocation4 + $0x88] sm:$0x3] %vm4941_vm13, %v4904_v32  ;;  %vm16978_vm13 = vmmov %vm16976_vm8 }
 0x753   : > { %v7338_v56 = vpop.permute.xlu1 %7337 }
 0x754   : > { %v7336_v30 = vpop.permute.xlu0 %7335 }
 0x755   : > { %v8091_v29 = vpop.f32.mrb[208].mxu0 }
 0x756   : > { %v8092_v41 = vadd.f32 %v15485_v42, %v8091_v29  ;;  %v8093_v36 = vpop.f32.mrb[209].mxu0 }
 0x757   : > { %v5879_v19 = vpop.permute.xlu1 %5878  ;;  %v8094_v10 = vpop.f32.mrb[210].mxu0 }
 0x758   : > { %5918 = vst.msk [vmem:[#allocation4 + $0x78] sm:$0xf] %vm16968_vm2, %v5879_v19  ;;  %v8095_v27 = vadd.f32 %v15485_v42, %v8094_v10  ;;  %v8096_v2 = vpop.f32.mrb[211].mxu0  ;;  %10723 = vtanh.f32 %v8092_v41  ;;  %vm16980_vm2 = vcmask 978832  }
 0x759   : > { %v5877_v33 = vpop.permute.xlu0 %5876 }
 0x75a   : > { %5917 = vst.msk [vmem:[#allocation4 + $0x70] sm:$0xf] %vm16967_vm12, %v5877_v33  ;;  %10725 = vtanh.f32 %v8095_v27  ;;  %vm16979_vm12 = vmmov %vm16977_vm14 }
 0x75b   : > { %v7772_v44 = vpop.permute.xlu1 %7771 }
 0x75d   : > { %v7770_v51 = vpop.permute.xlu0 %7769 }
 0x75f   : > { %v6313_v45 = vpop.permute.xlu1 %6312 }
 0x761   : > { %v6311_v43 = vpop.permute.xlu0 %6310 }
 0x762   : > { %v10724_v22 = vpop.eup %10723 }
 0x763   : > { %v6757_v3 = vpop.permute.xlu1 %6756 }
 0x764   : > { %v10726_v4 = vpop.eup %10725 }
 0x765   : > { %v4902_v28 = vpop.permute.xlu0 %4901  ;;  %v8159_v5 = vpack.c.bf16 %v10726_v4, %v10724_v22 }
 0x766   : > { %4940 = vst.msk [vmem:[#allocation4 + $0x80] sm:$0xf] %vm16969_vm3, %v4902_v28  ;;  %vm16981_vm3 = vmmov %vm16980_vm2 }
 0x767   : > { %v5351_v35 = vpop.permute.xlu1 %5350  ;;  %8205 = vmatpush1.bf16.msra.mxu1 %v8159_v5 }
 0x768   : > { %8206 = vmatprep.subr.bf16.mxu1 %v16936_v48 }
 0x769   : > { %v6755_v12 = vpop.permute.xlu0 %6754 }
 0x76b   : > { %v6867_v58 = vpop.permute.xlu1 %6866 }
 0x76d   : > { %v5349_v16 = vpop.permute.xlu0 %5348 }
 0x76f   : > { %v7134_v9 = vpop.permute.xlu1 %7133 }
 0x770   : > { %v7156_v46 = vrot.slane %v7134_v9, 4 }
 0x771   : > { %v7132_v13 = vpop.permute.xlu0 %7131 }
 0x772   : > { %v7155_v52 = vrot.slane %v7132_v13, 4  ;;  %v7175_v25 = vsel %vm7161_vm4, %v7156_v46, %v7134_v9 }
 0x773   : > { %7214 = vst.msk [vmem:[#allocation4 + $0x68] sm:$0xff] %vm13554_vm5, %v7175_v25  ;;  %v7609_v0 = vpop.permute.xlu1 %7608 }
 0x774   : > { %v7174_v1 = vsel %vm7161_vm4, %v7155_v52, %v7132_v13  ;;  %7379 = vst.msk [vmem:[#allocation4 + $0x6c] sm:$0xf] %vm16971_vm1, %v7338_v56  ;;  %vm5388_vm1 = vcmask 632384  }
 0x775   : > { %7213 = vst.msk [vmem:[#allocation4 + $0x60] sm:$0xff] %vm13554_vm5, %v7174_v1  ;;  %v7607_v18 = vpop.permute.xlu0 %7606 }
 0x776   : > { %7378 = vst.msk [vmem:[#allocation4 + $0x64] sm:$0xf] %vm16970_vm15, %v7336_v30  ;;  %vm5221_vm15 = vcmask 583184  }
 0x777   : > { %7649 = vst.msk [vmem:[#allocation4 + $0x64] sm:$0xf] %vm16972_vm10, %v7607_v18  ;;  %v6150_v39 = vpop.permute.xlu1 %6149  ;;  %vm16982_vm10 = vcmask 585232  }
 0x778   : > { %7812 = vst.msk [vmem:[#allocation4 + $0x64] sm:$0xf] %vm16973_vm7, %v7770_v51  ;;  %vm16983_vm7 = vcmask 179200  }
 0x779   : > { %7650 = vst.msk [vmem:[#allocation4 + $0x6c] sm:$0xf] %vm16974_vm11, %v7609_v0  ;;  %v6148_v40 = vpop.permute.xlu0 %6147  ;;  %vm16984_vm11 = vcmask 634432  }
 0x77a   : > { %7813 = vst.msk [vmem:[#allocation4 + $0x6c] sm:$0xf] %vm16975_vm6, %v7772_v44  ;;  %vm5647_vm6 = vcmask 681584  }
 0x77b   : > { %6188 = vst.msk [vmem:[#allocation4 + $0x70] sm:$0xf] %vm16976_vm8, %v6148_v40  ;;  %v6590_v54 = vpop.permute.xlu1 %6589  ;;  %vm5757_vm8 = vcmask 730784  }
 0x77c   : > { %6351 = vst.msk [vmem:[#allocation4 + $0x70] sm:$0xf] %vm16977_vm14, %v6311_v43  ;;  %v10459_v49 = vld [vmem:[#allocation4 + $0x60] ss:$8 sps:$4 sm:$0xff]   ;;  %vm16985_vm14 = vcmask 683632  }
 0x77d   : > { %6189 = vst.msk [vmem:[#allocation4 + $0x78] sm:$0xf] %vm16978_vm13, %v6150_v39  ;;  %v6588_v17 = vpop.permute.xlu0 %6587  ;;  %vm16986_vm13 = vcmask 732832  }
 0x77e   : > { %6352 = vst.msk [vmem:[#allocation4 + $0x78] sm:$0xf] %vm16979_vm12, %v6313_v45  ;;  %vm5920_vm12 = vcmask 779984  }
 0x77f   : > { %6628 = vst.msk [vmem:[#allocation4 + $0x70] sm:$0xf] %vm6613_vm0, %v6588_v17  ;;  %6629 = vst.msk [vmem:[#allocation4 + $0x78] sm:$0xf] %vm6613_vm0, %v6590_v54  ;;  %v5184_v55 = vpop.permute.xlu1 %5183 }
 0x780   : > { %6795 = vst.msk [vmem:[#allocation4 + $0x70] sm:$0xf] %vm16980_vm2, %v6755_v12  ;;  %vm16987_vm2 = vcmask 782032  }
 0x781   : > { %6905 = vst.msk [vmem:[#allocation4 + $0x70] sm:$0xf] %vm6890_vm9, %v6865_v15  ;;  %v10457_v34 = vld [vmem:[#allocation4 + $0x64] ss:$8 sps:$4 sm:$0xff]   ;;  %v5182_v24 = vpop.permute.xlu0 %5181 }
 0x782   : > { %6796 = vst.msk [vmem:[#allocation4 + $0x78] sm:$0xf] %vm16981_vm3, %v6757_v3  ;;  %9393 = vmatprep.mubr.msk.bf16.mxu0 %vm16983_vm7, %v10457_v34  ;;  %vm6191_vm3 = vcmask 829184   ;;  %vm16990_vm7 = vcmask 175232  }
 0x783   : > { %6906 = vst.msk [vmem:[#allocation4 + $0x78] sm:$0xf] %vm6890_vm9, %v6867_v58  ;;  %8114 = vmatmul.mubr.bf16.gmra.mrb[220].mxu0 %v10459_v49  ;;  %v5610_v23 = vpop.permute.xlu1 %5609 }
 0x784   : > { %5220 = vst.msk [vmem:[#allocation4 + $0x80] sm:$0xf] %vm16982_vm10, %v5182_v24  ;;  %vm16989_vm10 = vcmask 126032   ;;  %v10468_v24 = vld [vmem:[%s16158_s6 + $0x4] ss:$8 sps:$4 sm:$0xff]  }
 0x785   : > { %5387 = vst.msk [vmem:[#allocation4 + $0x80] sm:$0xf] %vm16984_vm11, %v5349_v16  ;;  %v5608_v61 = vpop.permute.xlu0 %5607  ;;  %vm16991_vm11 = vcmask 831232  }
 0x786   : > { %5222 = vst.msk [vmem:[#allocation4 + $0x88] sm:$0x3] %vm5221_vm15, %v5184_v55  ;;  %vm6354_vm15 = vcmask 878384  }
 0x787   : > { %5389 = vst.msk [vmem:[#allocation4 + $0x88] sm:$0x3] %vm5388_vm1, %v5351_v35  ;;  %v5883_v6 = vpop.permute.xlu1 %5882  ;;  %vm16988_vm1 = vcmask 76832  }
 0x788   : > { %5646 = vst.msk [vmem:[#allocation4 + $0x80] sm:$0xf] %vm16985_vm14, %v5608_v61  ;;  %vm16994_vm14 = vmmov %vm16989_vm10 }
 0x789   : > { %5756 = vst.msk [vmem:[#allocation4 + $0x80] sm:$0xf] %vm16986_vm13, %v15751_v8  ;;  %v6869_v14 = vpop.permute.xlu0 %6868  ;;  %vm6631_vm13 = vcmask 927584  }
 0x78a   : > { %5648 = vst.msk [vmem:[#allocation4 + $0x88] sm:$0x3] %vm5647_vm6, %v5610_v23  ;;  %vm16992_vm6 = vmmov %vm16988_vm1 }
 0x78b   : > { %5758 = vst.msk [vmem:[#allocation4 + $0x88] sm:$0x3] %vm5757_vm8, %v15759_v60  ;;  %v6317_v59 = vpop.permute.xlu1 %6316  ;;  %vm16993_vm8 = vcmask 880432  }
 0x78c   : > { %5921 = vst.msk [vmem:[#allocation4 + $0x88] sm:$0x3] %vm5920_vm12, %v5883_v6  ;;  %vm16995_vm12 = vmmov %vm16990_vm7 }
 0x78d   : > { %v7340_v11 = vpop.permute.xlu0 %7339 }
 0x78f   : > { %v7342_v53 = vpop.permute.xlu1 %7341 }
 0x791   : > { %v5881_v31 = vpop.permute.xlu0 %5880 }
 0x792   : > { %5919 = vst.msk [vmem:[#allocation4 + $0x80] sm:$0xf] %vm16987_vm2, %v5881_v31  ;;  %vm6798_vm2 = vcmask 976784  }
 0x793   : > { %v7776_v37 = vpop.permute.xlu1 %7775 }
 0x795   : > { %v7774_v50 = vpop.permute.xlu0 %7773 }
 0x797   : > { %v6761_v57 = vpop.permute.xlu1 %6760 }
 0x799   : > { %v6315_v38 = vpop.permute.xlu0 %6314 }
 0x79b   : > { %v6154_v26 = vpop.permute.xlu1 %6153 }
 0x79c   : > { %6192 = vst.msk [vmem:[#allocation4 + $0x88] sm:$0x3] %vm6191_vm3, %v6154_v26  ;;  %vm6908_vm3 = vcmask 1025984  }
 0x79d   : > { %v6759_v62 = vpop.permute.xlu0 %6758  ;;  %6355 = vst.msk [vmem:[#allocation4 + $0x88] sm:$0x3] %vm6354_vm15, %v6317_v59  ;;  %vm16996_vm15 = vcmask 978832  }
 0x79f   : > { %v6871_v21 = vpop.permute.xlu1 %6870 }
 0x7a1   : > { %v7136_v8 = vpop.permute.xlu0 %7135 }
 0x7a2   : > { %v7157_v20 = vrot.slane %v7136_v8, 4 }
 0x7a3   : > { %v7138_v60 = vpop.permute.xlu1 %7137 }
 0x7a4   : > { %v7176_v63 = vsel %vm7161_vm4, %v7157_v20, %v7136_v8  ;;  %v7158_v15 = vrot.slane %v7138_v60, 4 }
 0x7a5   : > { %7215 = vst.msk [vmem:[#allocation4 + $0x70] sm:$0xff] %vm13554_vm5, %v7176_v63  ;;  %v7611_v47 = vpop.permute.xlu0 %7610 }
 0x7a6   : > { %7380 = vst.msk [vmem:[#allocation4 + $0x74] sm:$0xf] %vm16988_vm1, %v7340_v11  ;;  %v7177_v32 = vsel %vm7161_vm4, %v7158_v15, %v7138_v60  ;;  %vm7218_vm1 = vcmask 1042416  }
 0x7a7   : > { %7651 = vst.msk [vmem:[#allocation4 + $0x74] sm:$0xf] %vm16989_vm10, %v7611_v47  ;;  %v7613_v56 = vpop.permute.xlu1 %7612  ;;  %vm7219_vm10 = vcmask 29700  }
 0x7a8   : > { %7814 = vst.msk [vmem:[#allocation4 + $0x74] sm:$0xf] %vm16990_vm7, %v7774_v50  ;;  %vm16997_vm7 = vcmask 179200  }
 0x7a9   : > { %v6152_v30 = vpop.permute.xlu0 %6151  ;;  %7216 = vst.msk [vmem:[#allocation4 + $0x78] sm:$0xff] %vm13554_vm5, %v7177_v32 }
 0x7aa   : > { %6190 = vst.msk [vmem:[#allocation4 + $0x80] sm:$0xf] %vm16991_vm11, %v6152_v30  ;;  %vm7654_vm11 = vcmask 123984  }
 0x7ab   : > { %7381 = vst.msk [vmem:[#allocation4 + $0x7c] sm:$0xf] %vm16992_vm6, %v7342_v53  ;;  %v6594_v33 = vpop.permute.xlu1 %6593 }
 0x7ac   : > { %6353 = vst.msk [vmem:[#allocation4 + $0x80] sm:$0xf] %vm16993_vm8, %v6315_v38  ;;  %vm16998_vm8 = vmmov %vm16994_vm14 }
 0x7ad   : > { %7652 = vst.msk [vmem:[#allocation4 + $0x7c] sm:$0xf] %vm16994_vm14, %v7613_v56  ;;  %v6592_v29 = vpop.permute.xlu0 %6591  ;;  %vm17000_vm14 = vmmov %vm16997_vm7 }
 0x7ae   : > { %7815 = vst.msk [vmem:[#allocation4 + $0x7c] sm:$0xf] %vm16995_vm12, %v7776_v37 }
 0x7af   : > { %6630 = vst.msk [vmem:[#allocation4 + $0x80] sm:$0xf] %vm6613_vm0, %v6592_v29  ;;  %v7346_v36 = vpop.permute.xlu1 %7345  ;;  %vm7220_vm0 = vmor %vm7219_vm10, %vm7218_vm1  ;;  %vm8285_vm10 = vcmask 254080  }
 0x7b0   : > { %6797 = vst.msk [vmem:[#allocation4 + $0x80] sm:$0xf] %vm16996_vm15, %v6759_v62  ;;  %v10462_v10 = vld [vmem:[#allocation4 + $0x70] ss:$8 sps:$4 sm:$0xff]   ;;  %vm17001_vm15 = vsmask.f32 256 }
 0x7b1   : > { %6632 = vst.msk [vmem:[#allocation4 + $0x88] sm:$0x3] %vm6631_vm13, %v6594_v33  ;;  %v7344_v41 = vpop.permute.xlu0 %7343  ;;  %vm8187_vm13 = vcmask 97280  }
 0x7b2   : > { %6907 = vst.msk [vmem:[#allocation4 + $0x80] sm:$0xf] %vm6890_vm9, %v6869_v14  ;;  %vm7383_vm9 = vcmask 74784   ;;  %9400 = vmatprep.mubr.msk.bf16.mxu1 %vm8187_vm13, %v10468_v24  ;;  %v8369_v24 = vld [vmem:[#allocation6 + $0x4] sm:$0x1] }
 0x7b3   : > { %6799 = vst.msk [vmem:[#allocation4 + $0x88] sm:$0x3] %vm6798_vm2, %v6761_v57  ;;  %v7142_v51 = vpop.permute.xlu1 %7141  ;;  %vm8263_vm2 = vcmask 125952  }
 0x7b4   : > { %6909 = vst.msk [vmem:[#allocation4 + $0x88] sm:$0x3] %vm6908_vm3, %v6871_v21  ;;  %v7160_v44 = vrot.slane %v7142_v51, 4  ;;  %vm8267_vm3 = vcmask 122880  }
 0x7b5   : > { %v10460_v19 = vld [vmem:[#allocation4 + $0x74] ss:$8 sps:$4 sm:$0xff]   ;;  %v7140_v27 = vpop.permute.xlu0 %7139  ;;  %vm15861_vm1 = vmand %vm8267_vm3, %vm17001_vm15 }
 0x7b6   : > { %v7159_v2 = vrot.slane %v7140_v27, 4  ;;  %9394 = vmatprep.mubr.msk.bf16.mxu0 %vm16997_vm7, %v10460_v19  ;;  %v8099_v45 = vpop.f32.mrb[212].mxu0  ;;  %v7179_v28 = vsel %vm7161_vm4, %v7160_v44, %v7142_v51  ;;  %v10469_v19 = vld [vmem:[%s16158_s6 + $0x14] ss:$8 sps:$4 sm:$0x1f]   ;;  %vm17005_vm7 = vmmov %vm17001_vm15 }
 0x7b7   : > { %8122 = vmatmul.mubr.bf16.gmra.mrb[224].mxu0 %v10462_v10  ;;  %v8100_v3 = vadd.f32 %v15485_v42, %v8099_v45  ;;  %v8101_v4 = vpop.f32.mrb[213].mxu0  ;;  %7221 = vst.msk [vmem:[#allocation4 + $0x88] sm:$0x33] %vm7220_vm0, %v7179_v28  ;;  %v7617_v5 = vpop.permute.xlu1 %7616  ;;  %v10471_v10 = vld [vmem:[%s16158_s6 + $0x10] ss:$8 sps:$4 sm:$0x1f]   ;;  %vm15969_vm0 = vmand %vm8285_vm10, %vm17005_vm7 }
 0x7b8   : > { %v7178_v43 = vsel %vm7161_vm4, %v7159_v2, %v7140_v27  ;;  %v8102_v12 = vpop.f32.mrb[214].mxu0  ;;  %7384 = vst.msk [vmem:[#allocation4 + $0x8c] sm:$0x3] %vm7383_vm9, %v7346_v36  ;;  %vm7817_vm4 = vcmask 173184   ;;  %v10466_v36 = vld [vmem:[%s16158_s6] ss:$8 sps:$4 sm:$0xff]  }
 0x7b9   : > { %7217 = vst.msk [vmem:[#allocation4 + $0x80] sm:$0xff] %vm13554_vm5, %v7178_v43  ;;  %v7615_v22 = vpop.permute.xlu0 %7614  ;;  %v8103_v35 = vadd.f32 %v15827_v7, %v8102_v12  ;;  %v8104_v16 = vpop.f32.mrb[215].mxu0  ;;  %10727 = vtanh.f32 %v8100_v3  ;;  %vm16999_vm5 = vmmov %vm16995_vm12  ;;  %vm8194_vm12 = vcmask 1045504   ;;  %vm8297_vm9 = vcmask 385280  }
 0x7ba   : > { %7382 = vst.msk [vmem:[#allocation4 + $0x84] sm:$0xf] %vm16992_vm6, %v7344_v41 }
 0x7bb   : > { %7653 = vst.msk [vmem:[#allocation4 + $0x84] sm:$0xf] %vm16998_vm8, %v7615_v22  ;;  %10729 = vtanh.f32 %v8103_v35  ;;  %v7780_v58 = vpop.permute.xlu1 %7779  ;;  %vm8311_vm8 = vcmask 516480  }
 0x7bc   : > { %7655 = vst.msk [vmem:[#allocation4 + $0x8c] sm:$0x3] %vm7654_vm11, %v7617_v5  ;;  %vm17008_vm11 = vmmov %vm17005_vm7 }
 0x7bd   : > { %v7778_v42 = vpop.permute.xlu0 %7777  ;;  %7818 = vst.msk [vmem:[#allocation4 + $0x8c] sm:$0x3] %vm7817_vm4, %v7780_v58  ;;  %vm15978_vm6 = vmand %vm8297_vm9, %vm17008_vm11 }
 0x7be   : > { %7816 = vst.msk [vmem:[#allocation4 + $0x84] sm:$0xf] %vm16999_vm5, %v7778_v42  ;;  %vm17011_vm4 = vmmov %vm17005_vm7 }
 0x7bf   : > { %vm15989_vm5 = vmand %vm8311_vm8, %vm17011_vm4  ;;  %vm17025_vm8 = vcmask 130048  }
 0x7c0   : > { %v10465_v46 = vld [vmem:[#allocation4 + $0x80] ss:$8 sps:$4 sm:$0x3f]   ;;  %vm17017_vm3 = vmmov %vm17011_vm4 }
 0x7c1   : > { %vm17020_vm10 = vmmov %vm17017_vm3 }
 0x7c2   : > { %vm17023_vm9 = vmmov %vm17017_vm3 }
 0x7c3   : > { %v10728_v13 = vpop.eup %10727 }
 0x7c5   : > { %v10463_v52 = vld [vmem:[#allocation4 + $0x84] ss:$8 sps:$4 sm:$0x3f]   ;;  %v10730_v9 = vpop.eup %10729 }
 0x7c6   : > { %9395 = vmatprep.mubr.msk.bf16.mxu0 %vm17000_vm14, %v10463_v52  ;;  %v8160_v1 = vpack.c.bf16 %v10730_v9, %v10728_v13  ;;  %vm8323_vm14 = vcmask 647680  }
 0x7c7   : > { %8130 = vmatmul.mubr.bf16.gmra.mrb[228].mxu0 %v10465_v46 }
 0x7c8   : > { %8207 = vmatpush1.bf16.msra.mxu1 %v8160_v1 }
 0x7c9   : > { %8208 = vmatprep.subr.bf16.mxu1 %v16936_v48 }
 0x810   : > { %v8107_v25 = vpop.f32.mrb[216].mxu0 }
 0x811   : > { %v8108_v18 = vadd.f32 %v15827_v7, %v8107_v25  ;;  %v8109_v0 = vpop.f32.mrb[217].mxu0 }
 0x812   : > { %v8110_v40 = vpop.f32.mrb[218].mxu0 }
 0x813   : > { %v8111_v39 = vadd.f32 %v15827_v7, %v8110_v40  ;;  %v8112_v17 = vpop.f32.mrb[219].mxu0  ;;  %10731 = vtanh.f32 %v8108_v18  ;;  %v8533_v40 = vld [vmem:[#allocation6 + $0xc] sm:$0x1] }
 0x815   : > { %10733 = vtanh.f32 %v8111_v39 }
 0x81d   : > { %v10732_v54 = vpop.eup %10731 }
 0x81f   : > { %v10734_v34 = vpop.eup %10733 }
 0x820   : > { %v8161_v49 = vpack.c.bf16 %v10734_v34, %v10732_v54  ;;  %v8273_v54 = vld [vmem:[#allocation6] sm:$0x1] }
 0x822   : > { %8209 = vmatpush1.bf16.msra.mxu1 %v8161_v49 }
 0x823   : > { %8210 = vmatprep.subr.bf16.mxu1 %v16936_v48 }
 0x856   : > { %v8115_v55 = vpop.f32.mrb[220].mxu0 }
 0x857   : > { %v8116_v61 = vadd.f32 %v15827_v7, %v8115_v55  ;;  %v8117_v23 = vpop.f32.mrb[221].mxu0  ;;  %v8451_v55 = vld [vmem:[#allocation6 + $0x8] sm:$0x1] }
 0x858   : > { %v8118_v14 = vpop.f32.mrb[222].mxu0 }
 0x859   : > { %v8119_v6 = vadd.f32 %v15827_v7, %v8118_v14  ;;  %v8120_v11 = vpop.f32.mrb[223].mxu0  ;;  %10735 = vtanh.f32 %v8116_v61 }
 0x85b   : > { %10737 = vtanh.f32 %v8119_v6 }
 0x863   : > { %v10736_v59 = vpop.eup %10735 }
 0x865   : > { %v10738_v31 = vpop.eup %10737 }
 0x866   : > { %v8162_v53 = vpack.c.bf16 %v10738_v31, %v10736_v59 }
 0x868   : > { %8211 = vmatpush1.bf16.msra.mxu1 %v8162_v53 }
 0x869   : > { %8212 = vmatprep.subr.bf16.mxu1 %v16936_v48 }
 0x88a   : > { %v8123_v50 = vpop.f32.mrb[224].mxu0 }
 0x88b   : > { %v8124_v37 = vadd.f32 %v15827_v7, %v8123_v50  ;;  %v8125_v38 = vpop.f32.mrb[225].mxu0 }
 0x88c   : > { %v8126_v57 = vpop.f32.mrb[226].mxu0 }
 0x88d   : > { %v8127_v62 = vadd.f32 %v15827_v7, %v8126_v57  ;;  %v8128_v26 = vpop.f32.mrb[227].mxu0  ;;  %10739 = vtanh.f32 %v8124_v37 }
 0x88f   : > { %10741 = vtanh.f32 %v8127_v62 }
 0x897   : > { %v10740_v8 = vpop.eup %10739 }
 0x899   : > { %v10742_v20 = vpop.eup %10741 }
 0x89a   : > { %v8163_v21 = vpack.c.bf16 %v10742_v20, %v10740_v8  ;;  %v8131_v63 = vpop.f32.mrb[228].mxu0 }
 0x89b   : > { %v8132_v47 = vadd.f32 %v15827_v7, %v8131_v63  ;;  %v8133_v60 = vpop.f32.mrb[229].mxu0 }
 0x89c   : > { %8213 = vmatpush1.bf16.msra.mxu1 %v8163_v21  ;;  %v8134_v15 = vpop.f32.mrb[230].mxu0 }
 0x89d   : > { %8214 = vmatprep.subr.bf16.mxu1 %v16936_v48  ;;  %v8135_v32 = vadd.f32 %v15827_v7, %v8134_v15  ;;  %v8136_v30 = vpop.f32.mrb[231].mxu0  ;;  %10743 = vtanh.f32 %v8132_v47  ;;  %v8269_v7 = vld [vmem:[#allocation5 + $0xc] sm:$0x1] }
 0x89f   : > { %10745 = vtanh.f32 %v8135_v32 }
 0x8a7   : > { %v10744_v56 = vpop.eup %10743 }
 0x8a9   : > { %v10746_v29 = vpop.eup %10745 }
 0x8aa   : > { %v8164_v33 = vpack.c.bf16 %v10746_v29, %v10744_v56 }
 0x8ac   : > { %v8196_v41 = vsel %vm8194_vm12, %v8164_v33, 0 }
 0x8ad   : > { %8215 = vmatpush1.bf16.msra.mxu1 %v8196_v41 }
 0x8ae   : > { %8795 = vmatprep.subr.bf16.mxu1 %v16936_v48 }
 0x8b0   : > { %8231 = vmatmul.mubr.bf16.vlgmr.msra.gmra.mrb[208].mxu1 %v10466_v36 }
 0x8b1   : > { %9401 = vmatprep.mubr.msk.bf16.mxu1 %vm8187_vm13, %v10469_v19  ;;  %vm17014_vm13 = vmmov %vm17011_vm4  ;;  %vm17026_vm4 = vcmask 1043456  }
 0x8b2   : > { %vm16000_vm12 = vmand %vm8323_vm14, %vm17014_vm13  ;;  %vm17029_vm14 = vcmask 1041408   ;;  %vm8992_vm13 = vcmask 687104  }
 0x8b8   : > { %8239 = vmatmul.mubr.bf16.gmra.mrb[212].mxu1 %v10471_v10 }
 0x983   : > { %v8232_v27 = vpop.f32.mrb[208].mxu1 }
 0x984   : > { %v9501_v2 = vpack.c.bf16 %v8232_v27, %v8232_v27  ;;  %v8234_v51 = vpop.f32.mrb[209].mxu1  ;;  %v10472_v27 = vld [vmem:[%s16159_s7 + $0x40] sm:$0xff]  }
 0x985   : > { %v8235_v44 = vpop.f32.mrb[210].mxu1  ;;  %9852 = vmatprep.subr.bf16.mxu0 %v10472_v27 }
 0x986   : > { %8264 = vst.msk [vmem:[#allocation5] sm:$0xf] %vm8263_vm2, %v9501_v2  ;;  %v9502_v43 = vpack.c.bf16 %v8235_v44, %v8235_v44  ;;  %v8237_v45 = vpop.f32.mrb[211].mxu1  ;;  %v10473_v2 = vld [vmem:[%s16159_s7] sm:$0xff]  }
 0x987   : > { %9853 = vmatpush3.bf16.msra.mxu0 %v10473_v2 }
 0x988   : > { %8265 = vst.msk [vmem:[#allocation5 + $0x4] sm:$0xf] %vm8263_vm2, %v9502_v43 }
 0x98b   : > { %v8240_v28 = vpop.f32.mrb[212].mxu1 }
 0x98c   : > { %v9503_v22 = vpack.c.bf16 %v8240_v28, %v8240_v28  ;;  %v8242_v3 = vpop.f32.mrb[213].mxu1 }
 0x98d   : > { %v8276_v4 = vld [vmem:[#allocation5] sm:$0x1]  ;;  %v8243_v12 = vpop.f32.mrb[214].mxu1  ;;  %v8290_v13 = vld [vmem:[#allocation5] sm:$0x2] }
 0x98e   : > { %8266 = vst.msk [vmem:[#allocation5 + $0x8] sm:$0xf] %vm8263_vm2, %v9503_v22  ;;  %v8278_v5 = vshrl.u32 %v8276_v4, 16  ;;  %v9504_v16 = vpack.c.bf16 %v8243_v12, %v8243_v12  ;;  %v8245_v9 = vpop.f32.mrb[215].mxu1  ;;  %v9407_v46 = vrot.slane %v8290_v13, 9  ;;  %v10475_v12 = vld [vmem:[%s16159_s7 + $0x48] sm:$0xff]  }
 0x98f   : > { %v8372_v35 = vld [vmem:[#allocation5 + $0x4] sm:$0x1]  ;;  %v8394_v18 = vld [vmem:[#allocation5 + $0x4] sm:$0x2]  ;;  %v8302_v17 = vld [vmem:[#allocation5] sm:$0x2]  ;;  %9854 = vmatprep.subr.bf16.mxu0 %v10475_v12 }
 0x990   : > { %8282 = vrot.lane.b32.xlu0 %v8278_v5, %s16470_s13  ;;  %v8374_v42 = vshrl.u32 %v8372_v35, 16  ;;  %v8270_v52 = vsel %vm15861_vm1, %v9504_v16, %v8269_v7  ;;  %v8384_v39 = vld [vmem:[#allocation5 + $0x4] sm:$0x2]  ;;  %v8396_v49 = vshrl.u32 %v8394_v18, 16  ;;  %v8272_v23 = vld [vmem:[#allocation5] sm:$0x1] }
 0x991   : > { %8271 = vst [vmem:[#allocation5 + $0xc] sm:$0x1] %v8270_v52  ;;  %v9414_v14 = vrot.slane %v8384_v39, 9  ;;  %v8304_v6 = vshrl.u32 %v8302_v17, 16  ;;  %v8274_v59 = vsel %vm15861_vm1, %v8272_v23, %v8273_v54  ;;  %v8368_v31 = vld [vmem:[#allocation5 + $0x4] sm:$0x1] }
 0x992   : > { %8378 = vrot.lane.b32.xlu1 %v8374_v42, %s16470_s13  ;;  %8275 = vst [vmem:[#allocation6] sm:$0x1] %v8274_v59  ;;  %v8370_v37 = vsel %vm15861_vm1, %v8368_v31, %v8369_v24  ;;  %v9415_v57 = vrot.slane %v8396_v49, 9  ;;  %v8316_v62 = vld [vmem:[#allocation5] sm:$0x4]  ;;  %v10474_v5 = vld [vmem:[%s16159_s7 + $0x80] sm:$0xff]  }
 0x993   : > { %8371 = vst [vmem:[#allocation6 + $0x4] sm:$0x1] %v8370_v37  ;;  %v9408_v26 = vrot.slane %v8304_v6, 9  ;;  %v9409_v20 = vrot.slane %v8316_v62, 10  ;;  %v8416_v63 = vld [vmem:[#allocation5 + $0x4] sm:$0x4]  ;;  %8796 = vmatpush1.bf16.msra.mxu1 %v10474_v5 }
 0x994   : > { %v8406_v60 = vld [vmem:[#allocation5 + $0x4] sm:$0x4]  ;;  %v8328_v15 = vld [vmem:[#allocation5] sm:$0x4]  ;;  %v8418_v30 = vshrl.u32 %v8416_v63, 16  ;;  %v10476_v7 = vld [vmem:[%s16159_s7 + $0x8] sm:$0xff]   ;;  %8797 = vmatprep.subr.bf16.mxu1 %v16936_v48 }
 0x995   : > { %v8454_v1 = vld [vmem:[#allocation5 + $0x8] sm:$0x1]  ;;  %v8466_v25 = vld [vmem:[#allocation5 + $0x8] sm:$0x2]  ;;  %v8488_v21 = vld [vmem:[#allocation5 + $0x8] sm:$0x4]  ;;  %9855 = vmatpush3.bf16.msra.mxu0 %v10476_v7 }
 0x996   : > { %v8456_v0 = vshrl.u32 %v8454_v1, 16  ;;  %8294 = vrot.lane.b32.xlu1 %v9407_v46, %s10846_s0  ;;  %v9421_v34 = vrot.slane %v8466_v25, 9  ;;  %v8450_v53 = vld [vmem:[#allocation5 + $0x8] sm:$0x1]  ;;  %v8476_v50 = vld [vmem:[#allocation5 + $0x8] sm:$0x2] }
 0x997   : > { %v8452_v38 = vsel %vm15861_vm1, %v8450_v53, %v8451_v55  ;;  %v8478_v8 = vshrl.u32 %v8476_v50, 16  ;;  %v9423_v32 = vrot.slane %v8488_v21, 10  ;;  %v9416_v56 = vrot.slane %v8406_v60, 10  ;;  %v8498_v33 = vld [vmem:[#allocation5 + $0x8] sm:$0x4]  ;;  %v10477_v9 = vld [vmem:[%s16159_s7 + $0x88] sm:$0xff]  }
 0x998   : > { %8460 = vrot.lane.b32.xlu0 %v8456_v0, %s16470_s13  ;;  %v8532_v61 = vld [vmem:[#allocation5 + $0xc] sm:$0x1]  ;;  %8453 = vst [vmem:[#allocation6 + $0x8] sm:$0x1] %v8452_v38  ;;  %s10847_s13 = smov 64   ;;  %v8330_v29 = vshrl.u32 %v8328_v15, 16  ;;  %8798 = vmatpush1.bf16.msra.mxu1 %v10477_v9 }
 0x999   : > { %v8534_v11 = vsel %vm15861_vm1, %v8532_v61, %v8533_v40  ;;  %v9422_v47 = vrot.slane %v8478_v8, 9  ;;  %v9417_v41 = vrot.slane %v8418_v30, 10  ;;  %v8342_v36 = vld [vmem:[#allocation5] sm:$0x8]  ;;  %v8500_v10 = vshrl.u32 %v8498_v33, 16  ;;  %v10478_v46 = vld [vmem:[%s16159_s7 + $0x50] sm:$0xff]   ;;  %8799 = vmatprep.subr.bf16.mxu1 %v16936_v48 }
 0x99a   : > { %8470 = vrot.lane.b32.xlu1 %v9421_v34, %s10846_s0  ;;  %8535 = vst [vmem:[#allocation6 + $0xc] sm:$0x1] %v8534_v11  ;;  %v9410_v19 = vrot.slane %v8330_v29, 10  ;;  %v9411_v51 = vrot.slane %v8342_v36, 11  ;;  %v8510_v44 = vld [vmem:[#allocation5 + $0x8] sm:$0x8]  ;;  %9856 = vmatprep.subr.bf16.mxu0 %v10478_v46 }
 0x99b   : > { %v8438_v43 = vld [vmem:[#allocation5 + $0x4] sm:$0x8]  ;;  %v9424_v45 = vrot.slane %v8500_v10, 10  ;;  %v8354_v22 = vld [vmem:[#allocation5] sm:$0x8]  ;;  %v9425_v3 = vrot.slane %v8510_v44, 11 }
 0x99c   : > { %8388 = vrot.lane.b32.xlu0 %v9414_v14, %s10846_s0  ;;  %v8428_v28 = vld [vmem:[#allocation5 + $0x4] sm:$0x8]  ;;  %v8440_v4 = vshrl.u32 %v8438_v43, 16  ;;  %v8356_v16 = vshrl.u32 %v8354_v22, 16  ;;  %v8520_v42 = vld [vmem:[#allocation5 + $0x8] sm:$0x8] }
 0x99d   : > { %v9418_v35 = vrot.slane %v8428_v28, 11  ;;  %v8522_v52 = vshrl.u32 %v8520_v42, 16  ;;  %v10479_v1 = vld [vmem:[%s16159_s7 + $0x10] sm:$0xff]   ;;  %v10481_v0 = vld [vmem:[%s16159_s7 + $0x58] sm:$0xff]   ;;  %v10484_v39 = vld [vmem:[%s16159_s7 + $0x60] sm:$0xff]   ;;  %v17004_v31 = vmov 0.0  }
 0x99e   : > { %8400 = vrot.lane.b32.xlu1 %v9415_v57, %s16440_s21  ;;  %v9419_v58 = vrot.slane %v8440_v4, 11  ;;  %v9412_v13 = vrot.slane %v8356_v16, 11  ;;  %9857 = vmatpush3.bf16.msra.mxu0 %v10479_v1  ;;  %v10480_v18 = vld [vmem:[%s16159_s7 + $0x90] sm:$0xff]   ;;  %v10482_v40 = vld [vmem:[%s16159_s7 + $0x18] sm:$0xff]   ;;  %v10485_v54 = vld [vmem:[%s16159_s7 + $0x20] sm:$0xff]   ;;  %vm8337_vm2 = vcmask 778880  }
 0x99f   : > { %v9426_v25 = vrot.slane %v8522_v52, 11  ;;  %8800 = vmatpush1.bf16.msra.mxu1 %v10480_v18  ;;  %9858 = vmatprep.subr.bf16.mxu0 %v10481_v0  ;;  %v10483_v17 = vld [vmem:[%s16159_s7 + $0x98] sm:$0xff]   ;;  %v10487_v34 = vld [vmem:[%s16159_s7 + $0x68] sm:$0xff]   ;;  %v10486_v49 = vld [vmem:[%s16159_s7 + $0xa0] sm:$0xff]   ;;  %vm8349_vm1 = vcmask 910080   ;;  %s10850_s0 = smov [#allocation7]  }
 0x9a0   : > { %8308 = vrot.lane.b32.xlu0 %v9408_v26, %s16440_s21  ;;  %8801 = vmatprep.subr.bf16.mxu1 %v16936_v48  ;;  %v10488_v24 = vld [vmem:[%s16159_s7 + $0x28] sm:$0xff]   ;;  %v10490_v55 = vld [vmem:[%s16159_s7 + $0x70] sm:$0xff]   ;;  %v10493_v14 = vld [vmem:[%s16159_s7 + $0x78] sm:$0xff]  }
 0x9a1   : > { %v10489_v61 = vld [vmem:[%s16159_s7 + $0xa8] sm:$0xff]   ;;  %v10491_v23 = vld [vmem:[%s16159_s7 + $0x30] sm:$0xff]   ;;  %v10494_v11 = vld [vmem:[%s16159_s7 + $0x38] sm:$0xff]  }
 0x9a2   : > { %8320 = vrot.lane.b32.xlu1 %v9409_v20, %s10847_s13  ;;  %9859 = vmatpush3.bf16.msra.mxu0 %v10482_v40  ;;  %v10492_v6 = vld [vmem:[%s16159_s7 + $0xb0] sm:$0xff]   ;;  %v10495_v59 = vld [vmem:[%s16159_s7 + $0xb8] sm:$0xff]   ;;  %v10498_v53 = vld [vmem:[%s16159_s7 + $0xc0] sm:$0xff]  }
 0x9a3   : > { %9860 = vmatprep.subr.bf16.mxu0 %v10484_v39  ;;  %8802 = vmatpush1.bf16.msra.mxu1 %v10483_v17  ;;  %v8287_v38 = vld [vmem:[#allocation6] sm:$0x1]  ;;  %v8381_v26 = vld [vmem:[#allocation6 + $0x4] sm:$0x1]  ;;  %v8463_v21 = vld [vmem:[#allocation6 + $0x8] sm:$0x1] }
 0x9a4   : > { %8482 = vrot.lane.b32.xlu0 %v9422_v47, %s16440_s21  ;;  %8803 = vmatprep.subr.bf16.mxu1 %v16936_v48  ;;  %vm16011_vm15 = vmand %vm8337_vm2, %vm17017_vm3  ;;  %v10509_v33 = vld [vmem:[%s16163_s11] sm:$0xff]   ;;  %v10512_v42 = vld [vmem:[%s16163_s11 + $0x18] sm:$0xff]   ;;  %s17028_s21 = sld [smem:[#allocation11_spill]] }
 0x9a5   : > { %vm16022_vm7 = vmand %vm8349_vm1, %vm17020_vm10 }
 0x9a6   : > { %8492 = vrot.lane.b32.xlu1 %v9423_v32, %s10847_s13  ;;  %9861 = vmatpush3.bf16.msra.mxu0 %v10485_v54 }
 0x9a7   : > { %9862 = vmatprep.subr.bf16.mxu0 %v10487_v34  ;;  %8804 = vmatpush1.bf16.msra.mxu1 %v10486_v49 }
 0x9a8   : > { %8410 = vrot.lane.b32.xlu0 %v9416_v56, %s10847_s13  ;;  %8805 = vmatprep.subr.bf16.mxu1 %v16936_v48  ;;  %s10758_s13 = sshll.u32 %s10850_s0, 4  ;;  %s10759_s13 = int_to_ptr.vmem [resolvable:$false] %s10758_s13 }
 0x9aa   : > { %8422 = vrot.lane.b32.xlu1 %v9417_v41, %s10848_s1  ;;  %9863 = vmatpush3.bf16.msra.mxu0 %v10488_v24  ;;  %s432_s18 = sand.u32 1, %s17028_s21  }
 0x9ab   : > { %9864 = vmatprep.subr.bf16.mxu0 %v10490_v55  ;;  %8806 = vmatpush1.bf16.msra.mxu1 %v10489_v61  ;;  %s433_s27 = scalar_lea.vmem [#allocation7], %s432_s18 }
 0x9ac   : > { %8334 = vrot.lane.b32.xlu0 %v9410_v19, %s10848_s1  ;;  %8807 = vmatprep.subr.bf16.mxu1 %v16936_v48  ;;  %s9055_s14 = sshll.u32 %s433_s27, 4  ;;  %s16112_s14 = int_to_ptr.vmem [resolvable:$true] %s9055_s14 }
 0x9ad   : > { %s10754_s22 = scalar_lea.vmem %s16112_s14, 16  ;;  %p10761_p0 = scmp.lt.s32.totalorder %s16112_s14, %s10759_s13 }
 0x9ae   : > { %8346 = vrot.lane.b32.xlu1 %v9411_v51, %s16506_s29  ;;  %9865 = vmatpush3.bf16.msra.mxu0 %v10491_v23  ;;  %p10755_p11 = scmp.ne.s32.totalorder %s16112_s14, %s10754_s22 }
 0x9af   : > { %9866 = vmatprep.subr.bf16.mxu0 %v10493_v14  ;;  %8808 = vmatpush1.bf16.msra.mxu1 %v10492_v6 }
 0x9b0   : > { %8504 = vrot.lane.b32.xlu0 %v9424_v45, %s10848_s1  ;;  %8809 = vmatprep.subr.bf16.mxu1 %v16936_v48  ;;  %p10756_p12 = pnand %p10755_p11, %p10959_p5  ;;  %s10760_s1 = scalar_lea.vmem %s10759_s13, 32 }
 0x9b1   : > { %p10762_p1 = scmp.lt.s32.totalorder %s10760_s1, %s10754_s22 }
 0x9b2   : > { %8514 = vrot.lane.b32.xlu1 %v9425_v3, %s16506_s29  ;;  %9867 = vmatpush3.bf16.msra.mxu0 %v10494_v11  ;;  %p10757_p13 = pneg %p10756_p12 }
 0x9b3   : > { %10144 = vmatprep.subr.bf16.mxu0 %v17004_v31  ;;  %8810 = vmatpush1.bf16.msra.mxu1 %v10495_v59  ;;  %p10763_p2 = por %p10762_p1, %p10761_p0 }
 0x9b4   : > { %8432 = vrot.lane.b32.xlu0 %v9418_v35, %s16506_s29  ;;  %8811 = vmatprep.subr.bf16.mxu1 %v16936_v48 }
 0x9b5   : > { %p10764_p3 = pnand %p10763_p2, %p10757_p13 }
 0x9b6   : > { %8444 = vrot.lane.b32.xlu1 %v9419_v58, %s10849_s2 }
 0x9b7   : > { %8812 = vmatpush1.bf16.msra.mxu1 %v10498_v53 }
 0x9b8   : > { %8360 = vrot.lane.b32.xlu0 %v9412_v13, %s10849_s2  ;;  %10164 = vmatprep.subr.bf16.mxu1 %v17004_v31 }
 0x9bc   : > { %8526 = vrot.lane.b32.xlu0 %v9426_v25, %s10849_s2 }
 0xa02   : > { %v8283_v37 = vpop.permute.xlu0 %8282 }
 0xa03   : > { %v8288_v57 = vsel %vm15969_vm0, %v8283_v37, %v8287_v38 }
 0xa04   : > { %8289 = vst [vmem:[#allocation6] sm:$0x1] %v8288_v57  ;;  %v8379_v62 = vpop.permute.xlu1 %8378 }
 0xa05   : > { %v8382_v48 = vsel %vm15969_vm0, %v8379_v62, %v8381_v26 }
 0xa06   : > { %8383 = vst [vmem:[#allocation6 + $0x4] sm:$0x1] %v8382_v48 }
 0xa08   : > { %v8295_v60 = vpop.permute.xlu1 %8294 }
 0xa0a   : > { %v8461_v20 = vpop.permute.xlu0 %8460 }
 0xa0b   : > { %v8464_v63 = vsel %vm15969_vm0, %v8461_v20, %v8463_v21  ;;  %v8299_v47 = vld [vmem:[#allocation6] sm:$0x1]  ;;  %vm8363_vm0 = vcmask 1041280   ;;  %v10501_v21 = vld [vmem:[%s16161_s9] sm:$0xff]  }
 0xa0c   : > { %8465 = vst [vmem:[#allocation6 + $0x8] sm:$0x1] %v8464_v63  ;;  %v8300_v15 = vsel %vm15978_vm6, %v8295_v60, %v8299_v47  ;;  %v8471_v29 = vpop.permute.xlu1 %8470  ;;  %vm8364_vm11 = vmand %vm8363_vm0, %vm17023_vm9  ;;  %v10502_v47 = vld [vmem:[%s16161_s9 + $0x8] sm:$0xff]  }
 0xa0d   : > { %8301 = vst [vmem:[#allocation6] sm:$0x1] %v8300_v15  ;;  %v8391_v32 = vld [vmem:[#allocation6 + $0x4] sm:$0x1] }
 0xa0e   : > { %v8389_v30 = vpop.permute.xlu0 %8388 }
 0xa0f   : > { %v8392_v56 = vsel %vm15978_vm6, %v8389_v30, %v8391_v32  ;;  %v10503_v32 = vld [vmem:[%s16161_s9 + $0x10] sm:$0xff]   ;;  %v10504_v30 = vld [vmem:[%s16161_s9 + $0x18] sm:$0xff]  }
 0xa10   : > { %8393 = vst [vmem:[#allocation6 + $0x4] sm:$0x1] %v8392_v56  ;;  %v8401_v2 = vpop.permute.xlu1 %8400  ;;  %v10505_v56 = vld [vmem:[%s16161_s9 + $0x20] sm:$0xff]  }
 0xa12   : > { %v8309_v10 = vpop.permute.xlu0 %8308 }
 0xa13   : > { %v8473_v41 = vld [vmem:[#allocation6 + $0x8] sm:$0x1] }
 0xa14   : > { %v8474_v36 = vsel %vm15978_vm6, %v8471_v29, %v8473_v41  ;;  %v8313_v19 = vld [vmem:[#allocation6] sm:$0x1]  ;;  %v8321_v3 = vpop.permute.xlu1 %8320  ;;  %vm17024_vm6 = vmmov 0  }
 0xa15   : > { %8475 = vst [vmem:[#allocation6 + $0x8] sm:$0x1] %v8474_v36  ;;  %v8314_v27 = vsel %vm15989_vm5, %v8309_v10, %v8313_v19  ;;  %v10506_v29 = vld [vmem:[%s16161_s9 + $0x28] sm:$0xff]   ;;  %v10507_v36 = vld [vmem:[%s16161_s9 + $0x30] sm:$0xff]   ;;  %v10508_v19 = vld [vmem:[%s16161_s9 + $0x38] ss:$0 sps:$4 sm:$0xff]  }
 0xa16   : > { %8315 = vst [vmem:[#allocation6] sm:$0x1] %v8314_v27  ;;  %v8483_v43 = vpop.permute.xlu0 %8482  ;;  %v10510_v41 = vld [vmem:[%s16163_s11 + $0x8] sm:$0xff]   ;;  %v8903_v10 = vsel %vm17026_vm4, %v10508_v19, 0 }
 0xa17   : > { %v8403_v51 = vld [vmem:[#allocation6 + $0x4] sm:$0x1] }
 0xa18   : > { %v8404_v44 = vsel %vm15989_vm5, %v8401_v2, %v8403_v51  ;;  %v8493_v16 = vpop.permute.xlu1 %8492  ;;  %v8588_v51 = vld [vmem:[%s17027_s16] sm:$0x1]  ;;  %s9043_s16 = scalar_lea.sflag [#allocation8], %s432_s18 }
 0xa19   : > { %8405 = vst [vmem:[#allocation6 + $0x4] sm:$0x1] %v8404_v44 }
 0xa1a   : > { %v8411_v7 = vpop.permute.xlu0 %8410 }
 0xa1c   : > { %v8485_v28 = vld [vmem:[#allocation6 + $0x8] sm:$0x1]  ;;  %v8423_v1 = vpop.permute.xlu1 %8422 }
 0xa1d   : > { %v8486_v22 = vsel %vm15989_vm5, %v8483_v43, %v8485_v28  ;;  %v8325_v4 = vld [vmem:[#allocation6] sm:$0x1]  ;;  %vm8898_vm5 = vcmask 982016  }
 0xa1e   : > { %8487 = vst [vmem:[#allocation6 + $0x8] sm:$0x1] %v8486_v22  ;;  %v8326_v5 = vsel %vm16000_vm12, %v8321_v3, %v8325_v4  ;;  %v8335_v9 = vpop.permute.xlu0 %8334 }
 0xa1f   : > { %8327 = vst [vmem:[#allocation6] sm:$0x1] %v8326_v5 }
 0xa20   : > { %v8413_v12 = vld [vmem:[#allocation6 + $0x4] sm:$0x1]  ;;  %v8347_v17 = vpop.permute.xlu1 %8346 }
 0xa21   : > { %v8414_v35 = vsel %vm16000_vm12, %v8411_v7, %v8413_v12 }
 0xa22   : > { %8415 = vst [vmem:[#allocation6 + $0x4] sm:$0x1] %v8414_v35  ;;  %v8505_v0 = vpop.permute.xlu0 %8504 }
 0xa24   : > { %v8515_v23 = vpop.permute.xlu1 %8514 }
 0xa25   : > { %v8495_v58 = vld [vmem:[#allocation6 + $0x8] sm:$0x1] }
 0xa26   : > { %v8496_v13 = vsel %vm16000_vm12, %v8493_v16, %v8495_v58  ;;  %v8339_v52 = vld [vmem:[#allocation6] sm:$0x1]  ;;  %v8433_v55 = vpop.permute.xlu0 %8432  ;;  %v10511_v16 = vld [vmem:[%s16163_s11 + $0x10] sm:$0xff]   ;;  %v10513_v58 = vld [vmem:[%s16163_s11 + $0x20] sm:$0xff]   ;;  %vm9040_vm12 = vcmask 73728  }
 0xa27   : > { %8497 = vst [vmem:[#allocation6 + $0x8] sm:$0x1] %v8496_v13  ;;  %v8340_v46 = vsel %vm16011_vm15, %v8335_v9, %v8339_v52  ;;  %v10514_v13 = vld [vmem:[%s16163_s11 + $0x28] ss:$0 sps:$4 sm:$0x33]  }
 0xa28   : > { %8341 = vst [vmem:[#allocation6] sm:$0x1] %v8340_v46  ;;  %v8445_v50 = vpop.permute.xlu1 %8444  ;;  %v8998_v52 = vsel %vm17029_vm14, %v10514_v13, 0  ;;  %v8852_v9 = vld [vmem:[%s17031_s26] sm:$0x1] }
 0xa29   : > { %v8425_v25 = vld [vmem:[#allocation6 + $0x4] sm:$0x1] }
 0xa2a   : > { %v8426_v18 = vsel %vm16011_vm15, %v8423_v1, %v8425_v25  ;;  %v8361_v59 = vpop.permute.xlu0 %8360 }
 0xa2b   : > { %8427 = vst [vmem:[#allocation6 + $0x4] sm:$0x1] %v8426_v18 }
 0xa2e   : > { %v8507_v39 = vld [vmem:[#allocation6 + $0x8] sm:$0x1]  ;;  %v8527_v57 = vpop.permute.xlu0 %8526 }
 0xa2f   : > { %v8351_v54 = vld [vmem:[#allocation6] sm:$0x1]  ;;  %v8508_v34 = vsel %vm16011_vm15, %v8505_v0, %v8507_v39 }
 0xa30   : > { %v8352_v49 = vsel %vm16022_vm7, %v8347_v17, %v8351_v54  ;;  %8509 = vst [vmem:[#allocation6 + $0x8] sm:$0x1] %v8508_v34 }
 0xa31   : > { %8353 = vst [vmem:[#allocation6] sm:$0x1] %v8352_v49 }
 0xa32   : > { %v8435_v24 = vld [vmem:[#allocation6 + $0x4] sm:$0x1] }
 0xa33   : > { %v8436_v61 = vsel %vm16022_vm7, %v8433_v55, %v8435_v24 }
 0xa34   : > { %8437 = vst [vmem:[#allocation6 + $0x4] sm:$0x1] %v8436_v61 }
 0xa37   : > { %v8517_v14 = vld [vmem:[#allocation6 + $0x8] sm:$0x1] }
 0xa38   : > { %v8518_v6 = vsel %vm16022_vm7, %v8515_v23, %v8517_v14  ;;  %v8365_v11 = vld [vmem:[#allocation6] sm:$0x1] }
 0xa39   : > { %8519 = vst [vmem:[#allocation6 + $0x8] sm:$0x1] %v8518_v6  ;;  %v8366_v53 = vsel %vm8364_vm11, %v8361_v59, %v8365_v11 }
 0xa3a   : > { %8367 = vst [vmem:[#allocation6] sm:$0x1] %v8366_v53 }
 0xa3b   : > { %v8447_v37 = vld [vmem:[#allocation6 + $0x4] sm:$0x1] }
 0xa3c   : > { %v8448_v38 = vsel %vm8364_vm11, %v8445_v50, %v8447_v37 }
 0xa3d   : > { %8449 = vst [vmem:[#allocation6 + $0x4] sm:$0x1] %v8448_v38 }
 0xa40   : > { %v8529_v62 = vld [vmem:[#allocation6 + $0x8] sm:$0x1] }
 0xa41   : > { %v8530_v26 = vsel %vm8364_vm11, %v8527_v57, %v8529_v62 }
 0xa42   : > { %8531 = vst [vmem:[#allocation6 + $0x8] sm:$0x1] %v8530_v26 }
 0xa44   : > { %v8536_v48 = vld [vmem:[#allocation6] sm:$0x11] }
 0xa45   : > { %v9427_v8 = vcombine.low %v8536_v48, %v8536_v48  ;;  %v9428_v20 = vcombine.high %v8536_v48, %v8536_v48 }
 0xa47   : > { %8787 = vmatprep.mubr.bf16.mxu0 %v9428_v20 }
 0xa48   : > { %8788 = vmatmul.mubr.bf16.vlgmr.msra.gmra.mrb[232].mxu0 %v9427_v8 }
 0xa49   : > { %v8537_v63 = vld [vmem:[#allocation6 + $0x8] sm:$0x11]  ;;  %10145 = vmatpush3.bf16.msra.mxu0 %v10501_v21  ;;  %10160 = vmatprep.mubr.msk.bf16.mxu0 %vm17024_vm6, %v17004_v31 }
 0xa4a   : > { %v9429_v60 = vcombine.low %v8537_v63, %v8537_v63  ;;  %v9430_v15 = vcombine.high %v8537_v63, %v8537_v63  ;;  %10146 = vmatprep.subr.bf16.mxu0 %v17004_v31 }
 0xa4c   : > { %9456 = vmatprep.mubr.msk.bf16.mxu1 %vm17025_vm8, %v9430_v15 }
 0xa4d   : > { %8828 = vmatmul.mubr.bf16.vlgmr.msra.gmra.mrb[216].mxu1 %v9429_v60  ;;  %10147 = vmatpush3.bf16.msra.mxu0 %v10502_v47 }
 0xa4e   : > { %10148 = vmatprep.subr.bf16.mxu0 %v17004_v31  ;;  %10176 = vmatprep.mubr.msk.bf16.mxu1 %vm17024_vm6, %v17004_v31 }
 0xa4f   : > { %10165 = vmatpush3.bf16.msra.mxu1 %v10509_v33 }
 0xa50   : > { %10166 = vmatprep.subr.bf16.mxu1 %v17004_v31 }
 0xa51   : > { %10149 = vmatpush3.bf16.msra.mxu0 %v10503_v32 }
 0xa52   : > { %10150 = vmatprep.subr.bf16.mxu0 %v17004_v31 }
 0xa53   : > { %10167 = vmatpush3.bf16.msra.mxu1 %v10510_v41 }
 0xa54   : > { %10168 = vmatprep.subr.bf16.mxu1 %v17004_v31 }
 0xa55   : > { %10151 = vmatpush3.bf16.msra.mxu0 %v10504_v30 }
 0xa56   : > { %10152 = vmatprep.subr.bf16.mxu0 %v17004_v31 }
 0xa57   : > { %10169 = vmatpush3.bf16.msra.mxu1 %v10511_v16 }
 0xa58   : > { %10170 = vmatprep.subr.bf16.mxu1 %v17004_v31 }
 0xa59   : > { %10153 = vmatpush3.bf16.msra.mxu0 %v10505_v56 }
 0xa5a   : > { %10154 = vmatprep.subr.bf16.mxu0 %v17004_v31 }
 0xa5b   : > { %10171 = vmatpush3.bf16.msra.mxu1 %v10512_v42 }
 0xa5c   : > { %10172 = vmatprep.subr.bf16.mxu1 %v17004_v31 }
 0xa5d   : > { %10155 = vmatpush3.bf16.msra.mxu0 %v10506_v29 }
 0xa5e   : > { %10156 = vmatprep.subr.bf16.mxu0 %v17004_v31 }
 0xa5f   : > { %10173 = vmatpush3.bf16.msra.mxu1 %v10513_v58 }
 0xa60   : > { %10174 = vmatprep.subr.bf16.mxu1 %v17004_v31 }
 0xa61   : > { %10157 = vmatpush3.bf16.msra.mxu0 %v10507_v36 }
 0xa62   : > { %10158 = vmatprep.subr.bf16.mxu0 %v17004_v31  ;;  %v8958_v31 = vld [vmem:[%s17032_s3] sm:$0x1] }
 0xa63   : > { %10175 = vmatpush3.bf16.msra.mxu1 %v8998_v52 }
 0xa65   : > { %10159 = vmatpush3.bf16.msra.mxu0 %v8903_v10 }
 0xb1b   : > { %v9868_v27 = vpop.f32.mrb[232].mxu0 }
 0xb1c   : > { %v9869_v2 = vpop.f32.mrb[233].mxu0 }
 0xb1d   : > { %v9870_v44 = vadd.f32 %v9869_v2, %v9868_v27  ;;  %v9871_v43 = vpop.f32.mrb[234].mxu0 }
 0xb1e   : > { %v9872_v45 = vpop.f32.mrb[235].mxu0 }
 0xb1f   : > { %v8790_v28 = vadd.f32 %v9870_v44, %v8588_v51 }
 0xb20   : > { %v8829_v22 = vpop.f32.mrb[216].mxu1 }
 0xb21   : > { %v8830_v3 = vadd.f32 %v8829_v22, %v8790_v28  ;;  %v8831_v4 = vpop.f32.mrb[217].mxu1 }
 0xb22   : > { %v8832_v5 = vpop.f32.mrb[218].mxu1 }
 0xb23   : > { %10747 = vtanh.f32 %v8830_v3  ;;  %v8833_v12 = vpop.f32.mrb[219].mxu1 }
 0xb2d   : > { %v10748_v7 = vpop.eup %10747 }
 0xb2e   : > { %v8836_v35 = vpack.c.bf16 %v10748_v7, %v10748_v7 }
 0xb30   : > { %10161 = vmatmul.mubr.msk.bf16.vlgmr.msra.gmra.mrb[236].mxu0 %vm8898_vm5, %v8836_v35 }
 0xc03   : > { %v8939_v46 = vpop.f32.mrb[236].mxu0 }
 0xc04   : > { %v8940_v1 = vadd.f32 %v8939_v46, %v8852_v9  ;;  %v10162_v25 = vpop.f32.mrb[237].mxu0 }
 0xc05   : > { %v8942_v18 = vpop.f32.mrb[238].mxu0 }
 0xc06   : > { %10749 = vtanh.f32 %v8940_v1  ;;  %v10163_v0 = vpop.f32.mrb[239].mxu0 }
 0xc10   : > { %v10750_v40 = vpop.eup %10749 }
 0xc11   : > { %v8946_v39 = vpack.c.bf16 %v10750_v40, %v10750_v40 }
 0xc13   : > { %10177 = vmatmul.mubr.msk.bf16.vlgmr.msra.gmra.mrb[220].mxu1 %vm8992_vm13, %v8946_v39 }
 0xce6   : > { %v9034_v17 = vpop.f32.mrb[220].mxu1 }
 0xce7   : > { %v9035_v54 = vadd.f32 %v9034_v17, %v8958_v31  ;;  %v10178_v34 = vpop.f32.mrb[221].mxu1 }
 0xce8   : > { %v9037_v49 = vpop.f32.mrb[222].mxu1 }
 0xce9   : > { %v10179_v24 = vpop.f32.mrb[223].mxu1  ;;  %9041 = vst.msk [vmem:[%s433_s27] sm:$0x1] %vm9040_vm12, %v9035_v54 }
 0xcea   : > { %10767 = shalt.err (!%p10764_p3)
}
 0xceb   : > { %s10768_s23 = scalar_lea.hbm %s16110_s20, 16  ;;  %s10772_s15 = scalar_lea.hbm %s17034_s19, 32 }
 0xcec   : > { %p10769_p4 = scmp.ne.s32.totalorder %s16110_s20, %s10768_s23  ;;  %p10773_p9 = scmp.lt.u32.totalorder %s16110_s20, %s17034_s19 }
 0xced   : > { %p10774_p10 = scmp.lt.u32.totalorder %s10772_s15, %s10768_s23  ;;  %p10776_p12 = scmp.lt.u32.totalorder %s10768_s23, %s16110_s20 }
 0xcee   : > { %p10770_p7 = pnand %p10769_p4, %p10959_p5 }
 0xcef   : > { %p10775_p11 = por %p10774_p10, %p10773_p9 }
 0xcf0   : > { %p10771_p8 = pneg %p10770_p7 }
 0xcf1   : > { %p10777_p13 = por %p10776_p12, %p10775_p11 }
 0xcf3   : > { %p10778_p0 = pnand %p10777_p13, %p10771_p8 }
 0xcf5   : > { %10781 = shalt.err (!%p10778_p0)
}
 0xcf6   : > { %10180 = dma.vmem_to_hbm [thread:$0]  (%p10959_p5), %s16112_s14, 16, %s16110_s20, %s9043_s16  }
 0xcf7 PF: > { %s17035_s28 = sld [smem:[#allocation13_spill]]  ;;  %s17036_s12 = sld [smem:[#allocation10_spill]] }
 0xcfd   : > { %p10186_p1 = scmp.ge.s32.totalorder %s17035_s28, 2  ;;  %s9067_s18 = sand.u32 1, %s17036_s12  }
 0xcfe   : > { %s9068_s2 = scalar_lea.sflag [#allocation8], %s9067_s18 }
 0xcff   : > { %p10183_p2 = pnand %p10186_p1, %p10963_p6 }
 0xd01   : > { %10799 = dma.done.wait (!%p10183_p2), %s9068_s2, 16  }
 0xd02   : > { %10801 = vsyncadd (!%p10183_p2), %s9068_s2, 4294967280  ;;  %s17038_s28 = sld [smem:[#allocation15_spill]]  ;;  %s17039_s25 = sld [smem:[#allocation11_spill]] }
 0xd03   : > { %s17040_s26 = sld [smem:[#allocation12_spill]]  ;;  %s17041_s27 = sld [smem:[#allocation16_spill]] }
 0xd08   : > { %p23_p3 = scmp.ge.s32.totalorder %s17038_s28, 4  }
 0xd0a   :  { %25 = sbr.rel (!%p23_p3) target bundleno = 13 (0xd), region = 107 }
 0xd11   :  { %9072 = vsyncpa [#allocation8], 1 }
 0xd12   :  { %9074 = vsyncpa [#allocation8 + $0x1], 1 }

</bundles_post_ra>
